<compile_context>
chip_gen: v7x
topology: tpu7x:2x2x1
jax: 0.10.0
libtpu: 0.0.40
codegen_flags: <defaults>
</compile_context>

<pallas_src>
import math

import jax
import jax.numpy as jnp
from jax.experimental import pallas as pl
from jax.experimental.pallas import tpu as pltpu

IN_FEATURES = 2000
HIDDEN = 1024
PRE_KAN = 10                         # output of third Linear == KAN in_features
KAN_OUT = 2
GRID_SIZE = 10                       # KAN "grid" argument
SPLINE_ORDER = 3
NUM_BASIS = GRID_SIZE + SPLINE_ORDER                 # 13 basis functions
NUM_KNOTS = GRID_SIZE + 2 * SPLINE_ORDER + 1         # 17 knots
GRID_RANGE = (-1.0, 1.0)
_H = (GRID_RANGE[1] - GRID_RANGE[0]) / GRID_SIZE     # 0.2
_KNOTS = tuple(GRID_RANGE[0] + _H * (m - SPLINE_ORDER) for m in range(NUM_KNOTS))

TM_MAX = 256                         # batch tile (fits VMEM on v5e/v6e/v7x)


def _silu(x):
    return x * jax.nn.sigmoid(x)


def _tree_sum(terms):
    """Pairwise tree reduction (shorter dependency chain than a fold)."""
    while len(terms) > 1:
        nxt = [terms[i] + terms[i + 1] for i in range(0, len(terms) - 1, 2)]
        if len(terms) % 2:
            nxt.append(terms[-1])
        terms = nxt
    return terms[0]


def mlp_kan_kernel(x_ref, w1_ref, b1_ref, w2_ref, b2_ref, w3_ref, b3_ref,
                   wk_ref, o_ref):
    # ---- MLP: 3x (Linear + SiLU); bf16 MXU matmuls with f32 accumulation ----
    x = x_ref[...].astype(jnp.bfloat16)
    h1 = jnp.dot(x, w1_ref[...], preferred_element_type=jnp.float32)
    h1 = _silu(h1 + b1_ref[...])
    h2 = jnp.dot(h1.astype(jnp.bfloat16), w2_ref[...],
                 preferred_element_type=jnp.float32)
    h2 = _silu(h2 + b2_ref[...])
    z = jnp.dot(h2.astype(jnp.bfloat16), w3_ref[...],
                preferred_element_type=jnp.float32)
    z = _silu(z + b3_ref[...])                       # (TM, 10) -- KAN input

    # ---- KAN([10, 2], grid=10): base branch  SiLU(z) @ W_base^T ----
    terms = [jnp.dot(_silu(z), wk_ref[0], preferred_element_type=jnp.float32)]

    # ---- KAN spline branch: Cox-de Boor recursion with static scalar knots ----
    t = _KNOTS
    bases = [((z >= t[m]) & (z < t[m + 1])).astype(jnp.float32)
             for m in range(NUM_KNOTS - 1)]                  # 16 degree-0 bases
    for k in range(1, SPLINE_ORDER + 1):
        inv = 1.0 / (k * _H)                                 # uniform-knot denom
        bases = [((z - t[m]) * inv) * bases[m]
                 + ((t[m + k + 1] - z) * inv) * bases[m + 1]
                 for m in range(len(bases) - 1)]
    # len(bases) == NUM_BASIS == 13, each (TM, 10)
    for i in range(NUM_BASIS):
        terms.append(jnp.dot(bases[i], wk_ref[1 + i],
                             preferred_element_type=jnp.float32))

    o_ref[...] = _tree_sum(terms).astype(o_ref.dtype)


def model_forward(x, params):
    """x: [batch, 2000] (native dtype). Returns [batch, 2] float32."""
    w1, b1, w2, b2, w3, b3, wk = params
    n = x.shape[0]
    tm = n if n <= TM_MAX else TM_MAX
    grid = (pl.cdiv(n, tm),)

    weight_spec = lambda shape: pl.BlockSpec(shape, lambda i: (0,) * len(shape))
    return pl.pallas_call(
        mlp_kan_kernel,
        out_shape=jax.ShapeDtypeStruct((n, KAN_OUT), jnp.float32),
        grid=grid,
        in_specs=[
            pl.BlockSpec((tm, IN_FEATURES), lambda i: (i, 0)),     # x tile streams
            weight_spec((IN_FEATURES, HIDDEN)),                    # w1 (bf16) resident
            weight_spec((1, HIDDEN)),                              # b1
            weight_spec((HIDDEN, HIDDEN)),                         # w2 (bf16)
            weight_spec((1, HIDDEN)),                              # b2
            weight_spec((HIDDEN, PRE_KAN)),                        # w3 (bf16)
            weight_spec((1, PRE_KAN)),                             # b3
            weight_spec((1 + NUM_BASIS, PRE_KAN, KAN_OUT)),        # packed KAN weights
        ],
        out_specs=pl.BlockSpec((tm, KAN_OUT), lambda i: (i, 0)),
        compiler_params=pltpu.CompilerParams(
            dimension_semantics=("parallel",),
            vmem_limit_bytes=32 * 1024 * 1024),
    )(x, w1, b1, w2, b2, w3, b3, wk)


def init_params(key):
    """Deterministic synthetic parameters. Linear weights stored [in, out]
    (transposed vs. torch) in bf16; biases (1, out) f32; KAN weights packed as
    wk[0] = W_base^T (10,2), wk[1+i][j,o] = scaled_spline_weight[o,j,i]."""
    ks = jax.random.split(key, 8)

    def lin(kw, kb, fan_in, fan_out):
        bound = 1.0 / math.sqrt(fan_in)
        w = jax.random.uniform(kw, (fan_in, fan_out), jnp.float32, -bound, bound)
        b = jax.random.uniform(kb, (1, fan_out), jnp.float32, -bound, bound)
        return w.astype(jnp.bfloat16), b

    w1, b1 = lin(ks[0], ks[1], IN_FEATURES, HIDDEN)
    w2, b2 = lin(ks[2], ks[3], HIDDEN, HIDDEN)
    w3, b3 = lin(ks[4], ks[5], HIDDEN, PRE_KAN)

    kb = 1.0 / math.sqrt(PRE_KAN)
    base_w = jax.random.uniform(ks[6], (KAN_OUT, PRE_KAN), jnp.float32, -kb, kb)
    ssw = 0.1 * jax.random.uniform(ks[7], (KAN_OUT, PRE_KAN, NUM_BASIS),
                                   jnp.float32, -kb, kb)   # scaled spline weight

    # efficient-kan grid buffer: identical uniform knot row per input feature
    knots = (jnp.arange(-SPLINE_ORDER, GRID_SIZE + SPLINE_ORDER + 1,
                        dtype=jnp.float32) * _H + GRID_RANGE[0])
    grid = jnp.tile(knots[None, :], (PRE_KAN, 1))          # (10, 17)

    wk = jnp.concatenate([base_w.T[None], jnp.transpose(ssw, (2, 1, 0))],
                         axis=0).astype(jnp.float32)       # (14, 10, 2)

    kernel_params = (w1, b1, w2, b2, w3, b3, wk)
    ref_params = (w1, b1, w2, b2, w3, b3, base_w, ssw, grid)
    return kernel_params, ref_params


def _b_splines_ref(x, grid, spline_order):
    """Pure-JAX port of efficient-kan b_splines. x: (n, in), grid: (in, K)."""
    x = x[:, :, None]
    g = grid[None]
    bases = ((x >= g[:, :, :-1]) & (x < g[:, :, 1:])).astype(x.dtype)
    for k in range(1, spline_order + 1):
        bases = ((x - g[:, :, : -(k + 1)])
                 / (g[:, :, k:-1] - g[:, :, : -(k + 1)]) * bases[:, :, :-1]
                 + (g[:, :, k + 1:] - x)
                 / (g[:, :, k + 1:] - g[:, :, 1:-k]) * bases[:, :, 1:])
    return bases                                            # (n, in, NUM_BASIS)


def reference(x, ref_params):
    w1, b1, w2, b2, w3, b3, base_w, ssw, grid = ref_params
    f32 = jnp.float32
    hp = jax.lax.Precision.HIGHEST
    xb = x.astype(jnp.bfloat16).astype(f32)                 # mirror kernel rounding
    h1 = _silu(jnp.dot(xb, w1.astype(f32), precision=hp) + b1)
    h2 = _silu(jnp.dot(h1.astype(jnp.bfloat16).astype(f32), w2.astype(f32),
                       precision=hp) + b2)
    z = _silu(jnp.dot(h2.astype(jnp.bfloat16).astype(f32), w3.astype(f32),
                      precision=hp) + b3)
    base = jnp.dot(_silu(z), base_w.T, precision=hp)
    spl = _b_splines_ref(z, grid, SPLINE_ORDER)
    spline = jnp.dot(spl.reshape(z.shape[0], -1),
                     ssw.reshape(KAN_OUT, -1).T, precision=hp)
    return base + spline


if __name__ == "__main__":
    key = jax.random.PRNGKey(0)
    kp, kx = jax.random.split(key)
    params, ref_params = init_params(kp)

    batch = 8
    x = jax.random.normal(kx, (batch, IN_FEATURES), jnp.float32)

    out = jax.block_until_ready(model_forward(x, params))
    ref = jax.block_until_ready(reference(x, ref_params))

    assert out.shape == (batch, KAN_OUT), out.shape
    max_err = float(jnp.max(jnp.abs(out - ref)))
    assert jnp.allclose(out, ref, atol=5e-3, rtol=5e-3), max_err

    print("KERNEL_OK")
</pallas_src>

<mosaic_0001>
module attributes {stable_mosaic.version = 11 : i64} {
  func.func @mlp_kan_kernel(%arg0: i32, %arg1: memref<8x2000xf32, #tpu.memory_space<vmem>>, %arg2: memref<2000x1024xbf16, #tpu.memory_space<vmem>>, %arg3: memref<1x1024xf32, #tpu.memory_space<vmem>>, %arg4: memref<1024x1024xbf16, #tpu.memory_space<vmem>>, %arg5: memref<1x1024xf32, #tpu.memory_space<vmem>>, %arg6: memref<1024x10xbf16, #tpu.memory_space<vmem>>, %arg7: memref<1x10xf32, #tpu.memory_space<vmem>>, %arg8: memref<14x10x2xf32, #tpu.memory_space<vmem>>, %arg9: memref<8x2xf32, #tpu.memory_space<vmem>>) attributes {dimension_semantics = [#tpu.dimension_semantics<parallel>], iteration_bounds = array<i64: 1>, scalar_prefetch = 0 : i64, scratch_operands = 0 : i64, tpu.core_type = #tpu.core_type<tc>, window_params = [{transform_indices = @transform_0, window_bounds = array<i64: 8, 2000>}, {pipeline_mode = #tpu.pipeline_mode<synchronous>, transform_indices = @transform_1, window_bounds = array<i64: 2000, 1024>}, {pipeline_mode = #tpu.pipeline_mode<synchronous>, transform_indices = @transform_2, window_bounds = array<i64: 1, 1024>}, {pipeline_mode = #tpu.pipeline_mode<synchronous>, transform_indices = @transform_3, window_bounds = array<i64: 1024, 1024>}, {pipeline_mode = #tpu.pipeline_mode<synchronous>, transform_indices = @transform_4, window_bounds = array<i64: 1, 1024>}, {pipeline_mode = #tpu.pipeline_mode<synchronous>, transform_indices = @transform_5, window_bounds = array<i64: 1024, 10>}, {pipeline_mode = #tpu.pipeline_mode<synchronous>, transform_indices = @transform_6, window_bounds = array<i64: 1, 10>}, {pipeline_mode = #tpu.pipeline_mode<synchronous>, transform_indices = @transform_7, window_bounds = array<i64: 14, 10, 2>}, {transform_indices = @transform_8, window_bounds = array<i64: 8, 2>}]} {
    %c0 = arith.constant 0 : index
    %c0_0 = arith.constant 0 : index
    %0 = vector.load %arg1[%c0, %c0_0] : memref<8x2000xf32, #tpu.memory_space<vmem>>, vector<8x2000xf32>
    %1 = arith.truncf %0 : vector<8x2000xf32> to vector<8x2000xbf16>
    %c0_1 = arith.constant 0 : index
    %c0_2 = arith.constant 0 : index
    %2 = vector.load %arg2[%c0_1, %c0_2] : memref<2000x1024xbf16, #tpu.memory_space<vmem>>, vector<2000x1024xbf16>
    %cst = arith.constant dense<0.000000e+00> : vector<8x1024xf32>
    %3 = tpu.matmul %1, %2, %cst {dimension_numbers = #tpu.dot_dimension_numbers<[1], [0], [0], [1], [0, 0, 1, 1], [], []>} : vector<8x2000xbf16>, vector<2000x1024xbf16>, vector<8x1024xf32> -> vector<8x1024xf32>
    %c0_3 = arith.constant 0 : index
    %c0_4 = arith.constant 0 : index
    %4 = vector.load %arg3[%c0_3, %c0_4] : memref<1x1024xf32, #tpu.memory_space<vmem>>, vector<1x1024xf32>
    %5 = vector.broadcast %4 : vector<1x1024xf32> to vector<8x1024xf32>
    %6 = arith.addf %3, %5 : vector<8x1024xf32>
    %7 = arith.negf %6 : vector<8x1024xf32>
    %8 = math.exp %7 : vector<8x1024xf32>
    %cst_5 = arith.constant 1.000000e+00 : f32
    %9 = vector.broadcast %cst_5 : f32 to vector<8x1024xf32>
    %10 = arith.addf %9, %8 : vector<8x1024xf32>
    %11 = arith.divf %9, %10 : vector<8x1024xf32>
    %12 = arith.mulf %6, %11 : vector<8x1024xf32>
    %13 = arith.truncf %12 : vector<8x1024xf32> to vector<8x1024xbf16>
    %c0_6 = arith.constant 0 : index
    %c0_7 = arith.constant 0 : index
    %14 = vector.load %arg4[%c0_6, %c0_7] : memref<1024x1024xbf16, #tpu.memory_space<vmem>>, vector<1024x1024xbf16>
    %cst_8 = arith.constant dense<0.000000e+00> : vector<8x1024xf32>
    %15 = tpu.matmul %13, %14, %cst_8 {dimension_numbers = #tpu.dot_dimension_numbers<[1], [0], [0], [1], [0, 0, 1, 1], [], []>} : vector<8x1024xbf16>, vector<1024x1024xbf16>, vector<8x1024xf32> -> vector<8x1024xf32>
    %c0_9 = arith.constant 0 : index
    %c0_10 = arith.constant 0 : index
    %16 = vector.load %arg5[%c0_9, %c0_10] : memref<1x1024xf32, #tpu.memory_space<vmem>>, vector<1x1024xf32>
    %17 = vector.broadcast %16 : vector<1x1024xf32> to vector<8x1024xf32>
    %18 = arith.addf %15, %17 : vector<8x1024xf32>
    %19 = arith.negf %18 : vector<8x1024xf32>
    %20 = math.exp %19 : vector<8x1024xf32>
    %cst_11 = arith.constant 1.000000e+00 : f32
    %21 = vector.broadcast %cst_11 : f32 to vector<8x1024xf32>
    %22 = arith.addf %21, %20 : vector<8x1024xf32>
    %23 = arith.divf %21, %22 : vector<8x1024xf32>
    %24 = arith.mulf %18, %23 : vector<8x1024xf32>
    %25 = arith.truncf %24 : vector<8x1024xf32> to vector<8x1024xbf16>
    %c0_12 = arith.constant 0 : index
    %c0_13 = arith.constant 0 : index
    %26 = vector.load %arg6[%c0_12, %c0_13] : memref<1024x10xbf16, #tpu.memory_space<vmem>>, vector<1024x10xbf16>
    %cst_14 = arith.constant dense<0.000000e+00> : vector<8x10xf32>
    %27 = tpu.matmul %25, %26, %cst_14 {dimension_numbers = #tpu.dot_dimension_numbers<[1], [0], [0], [1], [0, 0, 1, 1], [], []>} : vector<8x1024xbf16>, vector<1024x10xbf16>, vector<8x10xf32> -> vector<8x10xf32>
    %c0_15 = arith.constant 0 : index
    %c0_16 = arith.constant 0 : index
    %28 = vector.load %arg7[%c0_15, %c0_16] : memref<1x10xf32, #tpu.memory_space<vmem>>, vector<1x10xf32>
    %29 = vector.broadcast %28 : vector<1x10xf32> to vector<8x10xf32>
    %30 = arith.addf %27, %29 : vector<8x10xf32>
    %31 = arith.negf %30 : vector<8x10xf32>
    %32 = math.exp %31 : vector<8x10xf32>
    %cst_17 = arith.constant 1.000000e+00 : f32
    %33 = vector.broadcast %cst_17 : f32 to vector<8x10xf32>
    %34 = arith.addf %33, %32 : vector<8x10xf32>
    %35 = arith.divf %33, %34 : vector<8x10xf32>
    %36 = arith.mulf %30, %35 : vector<8x10xf32>
    %37 = arith.negf %36 : vector<8x10xf32>
    %38 = math.exp %37 : vector<8x10xf32>
    %cst_18 = arith.constant 1.000000e+00 : f32
    %39 = vector.broadcast %cst_18 : f32 to vector<8x10xf32>
    %40 = arith.addf %39, %38 : vector<8x10xf32>
    %41 = arith.divf %39, %40 : vector<8x10xf32>
    %42 = arith.mulf %36, %41 : vector<8x10xf32>
    %c0_19 = arith.constant 0 : index
    %c0_20 = arith.constant 0 : index
    %c0_21 = arith.constant 0 : index
    %43 = vector.load %arg8[%c0_19, %c0_20, %c0_21] : memref<14x10x2xf32, #tpu.memory_space<vmem>>, vector<1x10x2xf32>
    %44 = vector.shape_cast %43 : vector<1x10x2xf32> to vector<10x2xf32>
    %cst_22 = arith.constant dense<0.000000e+00> : vector<8x2xf32>
    %45 = tpu.matmul %42, %44, %cst_22 {dimension_numbers = #tpu.dot_dimension_numbers<[1], [0], [0], [1], [0, 0, 1, 1], [], []>} : vector<8x10xf32>, vector<10x2xf32>, vector<8x2xf32> -> vector<8x2xf32>
    %cst_23 = arith.constant -1.600000e+00 : f32
    %46 = vector.broadcast %cst_23 : f32 to vector<8x10xf32>
    %47 = arith.cmpf oge, %36, %46 : vector<8x10xf32>
    %cst_24 = arith.constant -1.400000e+00 : f32
    %48 = vector.broadcast %cst_24 : f32 to vector<8x10xf32>
    %49 = arith.cmpf olt, %36, %48 : vector<8x10xf32>
    %50 = arith.andi %47, %49 : vector<8x10xi1>
    %51 = arith.extui %50 : vector<8x10xi1> to vector<8x10xi32>
    %52 = arith.sitofp %51 : vector<8x10xi32> to vector<8x10xf32>
    %cst_25 = arith.constant -1.400000e+00 : f32
    %53 = vector.broadcast %cst_25 : f32 to vector<8x10xf32>
    %54 = arith.cmpf oge, %36, %53 : vector<8x10xf32>
    %cst_26 = arith.constant -1.200000e+00 : f32
    %55 = vector.broadcast %cst_26 : f32 to vector<8x10xf32>
    %56 = arith.cmpf olt, %36, %55 : vector<8x10xf32>
    %57 = arith.andi %54, %56 : vector<8x10xi1>
    %58 = arith.extui %57 : vector<8x10xi1> to vector<8x10xi32>
    %59 = arith.sitofp %58 : vector<8x10xi32> to vector<8x10xf32>
    %cst_27 = arith.constant -1.200000e+00 : f32
    %60 = vector.broadcast %cst_27 : f32 to vector<8x10xf32>
    %61 = arith.cmpf oge, %36, %60 : vector<8x10xf32>
    %cst_28 = arith.constant -1.000000e+00 : f32
    %62 = vector.broadcast %cst_28 : f32 to vector<8x10xf32>
    %63 = arith.cmpf olt, %36, %62 : vector<8x10xf32>
    %64 = arith.andi %61, %63 : vector<8x10xi1>
    %65 = arith.extui %64 : vector<8x10xi1> to vector<8x10xi32>
    %66 = arith.sitofp %65 : vector<8x10xi32> to vector<8x10xf32>
    %cst_29 = arith.constant -1.000000e+00 : f32
    %67 = vector.broadcast %cst_29 : f32 to vector<8x10xf32>
    %68 = arith.cmpf oge, %36, %67 : vector<8x10xf32>
    %cst_30 = arith.constant -8.000000e-01 : f32
    %69 = vector.broadcast %cst_30 : f32 to vector<8x10xf32>
    %70 = arith.cmpf olt, %36, %69 : vector<8x10xf32>
    %71 = arith.andi %68, %70 : vector<8x10xi1>
    %72 = arith.extui %71 : vector<8x10xi1> to vector<8x10xi32>
    %73 = arith.sitofp %72 : vector<8x10xi32> to vector<8x10xf32>
    %cst_31 = arith.constant -8.000000e-01 : f32
    %74 = vector.broadcast %cst_31 : f32 to vector<8x10xf32>
    %75 = arith.cmpf oge, %36, %74 : vector<8x10xf32>
    %cst_32 = arith.constant -6.000000e-01 : f32
    %76 = vector.broadcast %cst_32 : f32 to vector<8x10xf32>
    %77 = arith.cmpf olt, %36, %76 : vector<8x10xf32>
    %78 = arith.andi %75, %77 : vector<8x10xi1>
    %79 = arith.extui %78 : vector<8x10xi1> to vector<8x10xi32>
    %80 = arith.sitofp %79 : vector<8x10xi32> to vector<8x10xf32>
    %cst_33 = arith.constant -6.000000e-01 : f32
    %81 = vector.broadcast %cst_33 : f32 to vector<8x10xf32>
    %82 = arith.cmpf oge, %36, %81 : vector<8x10xf32>
    %cst_34 = arith.constant -4.000000e-01 : f32
    %83 = vector.broadcast %cst_34 : f32 to vector<8x10xf32>
    %84 = arith.cmpf olt, %36, %83 : vector<8x10xf32>
    %85 = arith.andi %82, %84 : vector<8x10xi1>
    %86 = arith.extui %85 : vector<8x10xi1> to vector<8x10xi32>
    %87 = arith.sitofp %86 : vector<8x10xi32> to vector<8x10xf32>
    %cst_35 = arith.constant -4.000000e-01 : f32
    %88 = vector.broadcast %cst_35 : f32 to vector<8x10xf32>
    %89 = arith.cmpf oge, %36, %88 : vector<8x10xf32>
    %cst_36 = arith.constant -2.000000e-01 : f32
    %90 = vector.broadcast %cst_36 : f32 to vector<8x10xf32>
    %91 = arith.cmpf olt, %36, %90 : vector<8x10xf32>
    %92 = arith.andi %89, %91 : vector<8x10xi1>
    %93 = arith.extui %92 : vector<8x10xi1> to vector<8x10xi32>
    %94 = arith.sitofp %93 : vector<8x10xi32> to vector<8x10xf32>
    %cst_37 = arith.constant -2.000000e-01 : f32
    %95 = vector.broadcast %cst_37 : f32 to vector<8x10xf32>
    %96 = arith.cmpf oge, %36, %95 : vector<8x10xf32>
    %cst_38 = arith.constant 0.000000e+00 : f32
    %97 = vector.broadcast %cst_38 : f32 to vector<8x10xf32>
    %98 = arith.cmpf olt, %36, %97 : vector<8x10xf32>
    %99 = arith.andi %96, %98 : vector<8x10xi1>
    %100 = arith.extui %99 : vector<8x10xi1> to vector<8x10xi32>
    %101 = arith.sitofp %100 : vector<8x10xi32> to vector<8x10xf32>
    %cst_39 = arith.constant 0.000000e+00 : f32
    %102 = vector.broadcast %cst_39 : f32 to vector<8x10xf32>
    %103 = arith.cmpf oge, %36, %102 : vector<8x10xf32>
    %cst_40 = arith.constant 2.000000e-01 : f32
    %104 = vector.broadcast %cst_40 : f32 to vector<8x10xf32>
    %105 = arith.cmpf olt, %36, %104 : vector<8x10xf32>
    %106 = arith.andi %103, %105 : vector<8x10xi1>
    %107 = arith.extui %106 : vector<8x10xi1> to vector<8x10xi32>
    %108 = arith.sitofp %107 : vector<8x10xi32> to vector<8x10xf32>
    %cst_41 = arith.constant 2.000000e-01 : f32
    %109 = vector.broadcast %cst_41 : f32 to vector<8x10xf32>
    %110 = arith.cmpf oge, %36, %109 : vector<8x10xf32>
    %cst_42 = arith.constant 4.000000e-01 : f32
    %111 = vector.broadcast %cst_42 : f32 to vector<8x10xf32>
    %112 = arith.cmpf olt, %36, %111 : vector<8x10xf32>
    %113 = arith.andi %110, %112 : vector<8x10xi1>
    %114 = arith.extui %113 : vector<8x10xi1> to vector<8x10xi32>
    %115 = arith.sitofp %114 : vector<8x10xi32> to vector<8x10xf32>
    %cst_43 = arith.constant 4.000000e-01 : f32
    %116 = vector.broadcast %cst_43 : f32 to vector<8x10xf32>
    %117 = arith.cmpf oge, %36, %116 : vector<8x10xf32>
    %cst_44 = arith.constant 6.000000e-01 : f32
    %118 = vector.broadcast %cst_44 : f32 to vector<8x10xf32>
    %119 = arith.cmpf olt, %36, %118 : vector<8x10xf32>
    %120 = arith.andi %117, %119 : vector<8x10xi1>
    %121 = arith.extui %120 : vector<8x10xi1> to vector<8x10xi32>
    %122 = arith.sitofp %121 : vector<8x10xi32> to vector<8x10xf32>
    %cst_45 = arith.constant 6.000000e-01 : f32
    %123 = vector.broadcast %cst_45 : f32 to vector<8x10xf32>
    %124 = arith.cmpf oge, %36, %123 : vector<8x10xf32>
    %cst_46 = arith.constant 8.000000e-01 : f32
    %125 = vector.broadcast %cst_46 : f32 to vector<8x10xf32>
    %126 = arith.cmpf olt, %36, %125 : vector<8x10xf32>
    %127 = arith.andi %124, %126 : vector<8x10xi1>
    %128 = arith.extui %127 : vector<8x10xi1> to vector<8x10xi32>
    %129 = arith.sitofp %128 : vector<8x10xi32> to vector<8x10xf32>
    %cst_47 = arith.constant 8.000000e-01 : f32
    %130 = vector.broadcast %cst_47 : f32 to vector<8x10xf32>
    %131 = arith.cmpf oge, %36, %130 : vector<8x10xf32>
    %cst_48 = arith.constant 1.000000e+00 : f32
    %132 = vector.broadcast %cst_48 : f32 to vector<8x10xf32>
    %133 = arith.cmpf olt, %36, %132 : vector<8x10xf32>
    %134 = arith.andi %131, %133 : vector<8x10xi1>
    %135 = arith.extui %134 : vector<8x10xi1> to vector<8x10xi32>
    %136 = arith.sitofp %135 : vector<8x10xi32> to vector<8x10xf32>
    %cst_49 = arith.constant 1.000000e+00 : f32
    %137 = vector.broadcast %cst_49 : f32 to vector<8x10xf32>
    %138 = arith.cmpf oge, %36, %137 : vector<8x10xf32>
    %cst_50 = arith.constant 1.200000e+00 : f32
    %139 = vector.broadcast %cst_50 : f32 to vector<8x10xf32>
    %140 = arith.cmpf olt, %36, %139 : vector<8x10xf32>
    %141 = arith.andi %138, %140 : vector<8x10xi1>
    %142 = arith.extui %141 : vector<8x10xi1> to vector<8x10xi32>
    %143 = arith.sitofp %142 : vector<8x10xi32> to vector<8x10xf32>
    %cst_51 = arith.constant 1.200000e+00 : f32
    %144 = vector.broadcast %cst_51 : f32 to vector<8x10xf32>
    %145 = arith.cmpf oge, %36, %144 : vector<8x10xf32>
    %cst_52 = arith.constant 1.400000e+00 : f32
    %146 = vector.broadcast %cst_52 : f32 to vector<8x10xf32>
    %147 = arith.cmpf olt, %36, %146 : vector<8x10xf32>
    %148 = arith.andi %145, %147 : vector<8x10xi1>
    %149 = arith.extui %148 : vector<8x10xi1> to vector<8x10xi32>
    %150 = arith.sitofp %149 : vector<8x10xi32> to vector<8x10xf32>
    %cst_53 = arith.constant 1.400000e+00 : f32
    %151 = vector.broadcast %cst_53 : f32 to vector<8x10xf32>
    %152 = arith.cmpf oge, %36, %151 : vector<8x10xf32>
    %cst_54 = arith.constant 1.600000e+00 : f32
    %153 = vector.broadcast %cst_54 : f32 to vector<8x10xf32>
    %154 = arith.cmpf olt, %36, %153 : vector<8x10xf32>
    %155 = arith.andi %152, %154 : vector<8x10xi1>
    %156 = arith.extui %155 : vector<8x10xi1> to vector<8x10xi32>
    %157 = arith.sitofp %156 : vector<8x10xi32> to vector<8x10xf32>
    %cst_55 = arith.constant -1.600000e+00 : f32
    %158 = vector.broadcast %cst_55 : f32 to vector<8x10xf32>
    %159 = arith.subf %36, %158 : vector<8x10xf32>
    %cst_56 = arith.constant 5.000000e+00 : f32
    %160 = vector.broadcast %cst_56 : f32 to vector<8x10xf32>
    %161 = arith.mulf %159, %160 : vector<8x10xf32>
    %162 = arith.mulf %161, %52 : vector<8x10xf32>
    %cst_57 = arith.constant -1.200000e+00 : f32
    %163 = vector.broadcast %cst_57 : f32 to vector<8x10xf32>
    %164 = arith.subf %163, %36 : vector<8x10xf32>
    %cst_58 = arith.constant 5.000000e+00 : f32
    %165 = vector.broadcast %cst_58 : f32 to vector<8x10xf32>
    %166 = arith.mulf %164, %165 : vector<8x10xf32>
    %167 = arith.mulf %166, %59 : vector<8x10xf32>
    %168 = arith.addf %162, %167 : vector<8x10xf32>
    %cst_59 = arith.constant -1.400000e+00 : f32
    %169 = vector.broadcast %cst_59 : f32 to vector<8x10xf32>
    %170 = arith.subf %36, %169 : vector<8x10xf32>
    %cst_60 = arith.constant 5.000000e+00 : f32
    %171 = vector.broadcast %cst_60 : f32 to vector<8x10xf32>
    %172 = arith.mulf %170, %171 : vector<8x10xf32>
    %173 = arith.mulf %172, %59 : vector<8x10xf32>
    %cst_61 = arith.constant -1.000000e+00 : f32
    %174 = vector.broadcast %cst_61 : f32 to vector<8x10xf32>
    %175 = arith.subf %174, %36 : vector<8x10xf32>
    %cst_62 = arith.constant 5.000000e+00 : f32
    %176 = vector.broadcast %cst_62 : f32 to vector<8x10xf32>
    %177 = arith.mulf %175, %176 : vector<8x10xf32>
    %178 = arith.mulf %177, %66 : vector<8x10xf32>
    %179 = arith.addf %173, %178 : vector<8x10xf32>
    %cst_63 = arith.constant -1.200000e+00 : f32
    %180 = vector.broadcast %cst_63 : f32 to vector<8x10xf32>
    %181 = arith.subf %36, %180 : vector<8x10xf32>
    %cst_64 = arith.constant 5.000000e+00 : f32
    %182 = vector.broadcast %cst_64 : f32 to vector<8x10xf32>
    %183 = arith.mulf %181, %182 : vector<8x10xf32>
    %184 = arith.mulf %183, %66 : vector<8x10xf32>
    %cst_65 = arith.constant -8.000000e-01 : f32
    %185 = vector.broadcast %cst_65 : f32 to vector<8x10xf32>
    %186 = arith.subf %185, %36 : vector<8x10xf32>
    %cst_66 = arith.constant 5.000000e+00 : f32
    %187 = vector.broadcast %cst_66 : f32 to vector<8x10xf32>
    %188 = arith.mulf %186, %187 : vector<8x10xf32>
    %189 = arith.mulf %188, %73 : vector<8x10xf32>
    %190 = arith.addf %184, %189 : vector<8x10xf32>
    %cst_67 = arith.constant -1.000000e+00 : f32
    %191 = vector.broadcast %cst_67 : f32 to vector<8x10xf32>
    %192 = arith.subf %36, %191 : vector<8x10xf32>
    %cst_68 = arith.constant 5.000000e+00 : f32
    %193 = vector.broadcast %cst_68 : f32 to vector<8x10xf32>
    %194 = arith.mulf %192, %193 : vector<8x10xf32>
    %195 = arith.mulf %194, %73 : vector<8x10xf32>
    %cst_69 = arith.constant -6.000000e-01 : f32
    %196 = vector.broadcast %cst_69 : f32 to vector<8x10xf32>
    %197 = arith.subf %196, %36 : vector<8x10xf32>
    %cst_70 = arith.constant 5.000000e+00 : f32
    %198 = vector.broadcast %cst_70 : f32 to vector<8x10xf32>
    %199 = arith.mulf %197, %198 : vector<8x10xf32>
    %200 = arith.mulf %199, %80 : vector<8x10xf32>
    %201 = arith.addf %195, %200 : vector<8x10xf32>
    %cst_71 = arith.constant -8.000000e-01 : f32
    %202 = vector.broadcast %cst_71 : f32 to vector<8x10xf32>
    %203 = arith.subf %36, %202 : vector<8x10xf32>
    %cst_72 = arith.constant 5.000000e+00 : f32
    %204 = vector.broadcast %cst_72 : f32 to vector<8x10xf32>
    %205 = arith.mulf %203, %204 : vector<8x10xf32>
    %206 = arith.mulf %205, %80 : vector<8x10xf32>
    %cst_73 = arith.constant -4.000000e-01 : f32
    %207 = vector.broadcast %cst_73 : f32 to vector<8x10xf32>
    %208 = arith.subf %207, %36 : vector<8x10xf32>
    %cst_74 = arith.constant 5.000000e+00 : f32
    %209 = vector.broadcast %cst_74 : f32 to vector<8x10xf32>
    %210 = arith.mulf %208, %209 : vector<8x10xf32>
    %211 = arith.mulf %210, %87 : vector<8x10xf32>
    %212 = arith.addf %206, %211 : vector<8x10xf32>
    %cst_75 = arith.constant -6.000000e-01 : f32
    %213 = vector.broadcast %cst_75 : f32 to vector<8x10xf32>
    %214 = arith.subf %36, %213 : vector<8x10xf32>
    %cst_76 = arith.constant 5.000000e+00 : f32
    %215 = vector.broadcast %cst_76 : f32 to vector<8x10xf32>
    %216 = arith.mulf %214, %215 : vector<8x10xf32>
    %217 = arith.mulf %216, %87 : vector<8x10xf32>
    %cst_77 = arith.constant -2.000000e-01 : f32
    %218 = vector.broadcast %cst_77 : f32 to vector<8x10xf32>
    %219 = arith.subf %218, %36 : vector<8x10xf32>
    %cst_78 = arith.constant 5.000000e+00 : f32
    %220 = vector.broadcast %cst_78 : f32 to vector<8x10xf32>
    %221 = arith.mulf %219, %220 : vector<8x10xf32>
    %222 = arith.mulf %221, %94 : vector<8x10xf32>
    %223 = arith.addf %217, %222 : vector<8x10xf32>
    %cst_79 = arith.constant -4.000000e-01 : f32
    %224 = vector.broadcast %cst_79 : f32 to vector<8x10xf32>
    %225 = arith.subf %36, %224 : vector<8x10xf32>
    %cst_80 = arith.constant 5.000000e+00 : f32
    %226 = vector.broadcast %cst_80 : f32 to vector<8x10xf32>
    %227 = arith.mulf %225, %226 : vector<8x10xf32>
    %228 = arith.mulf %227, %94 : vector<8x10xf32>
    %cst_81 = arith.constant 0.000000e+00 : f32
    %229 = vector.broadcast %cst_81 : f32 to vector<8x10xf32>
    %230 = arith.subf %229, %36 : vector<8x10xf32>
    %cst_82 = arith.constant 5.000000e+00 : f32
    %231 = vector.broadcast %cst_82 : f32 to vector<8x10xf32>
    %232 = arith.mulf %230, %231 : vector<8x10xf32>
    %233 = arith.mulf %232, %101 : vector<8x10xf32>
    %234 = arith.addf %228, %233 : vector<8x10xf32>
    %cst_83 = arith.constant -2.000000e-01 : f32
    %235 = vector.broadcast %cst_83 : f32 to vector<8x10xf32>
    %236 = arith.subf %36, %235 : vector<8x10xf32>
    %cst_84 = arith.constant 5.000000e+00 : f32
    %237 = vector.broadcast %cst_84 : f32 to vector<8x10xf32>
    %238 = arith.mulf %236, %237 : vector<8x10xf32>
    %239 = arith.mulf %238, %101 : vector<8x10xf32>
    %cst_85 = arith.constant 2.000000e-01 : f32
    %240 = vector.broadcast %cst_85 : f32 to vector<8x10xf32>
    %241 = arith.subf %240, %36 : vector<8x10xf32>
    %cst_86 = arith.constant 5.000000e+00 : f32
    %242 = vector.broadcast %cst_86 : f32 to vector<8x10xf32>
    %243 = arith.mulf %241, %242 : vector<8x10xf32>
    %244 = arith.mulf %243, %108 : vector<8x10xf32>
    %245 = arith.addf %239, %244 : vector<8x10xf32>
    %cst_87 = arith.constant 0.000000e+00 : f32
    %246 = vector.broadcast %cst_87 : f32 to vector<8x10xf32>
    %247 = arith.subf %36, %246 : vector<8x10xf32>
    %cst_88 = arith.constant 5.000000e+00 : f32
    %248 = vector.broadcast %cst_88 : f32 to vector<8x10xf32>
    %249 = arith.mulf %247, %248 : vector<8x10xf32>
    %250 = arith.mulf %249, %108 : vector<8x10xf32>
    %cst_89 = arith.constant 4.000000e-01 : f32
    %251 = vector.broadcast %cst_89 : f32 to vector<8x10xf32>
    %252 = arith.subf %251, %36 : vector<8x10xf32>
    %cst_90 = arith.constant 5.000000e+00 : f32
    %253 = vector.broadcast %cst_90 : f32 to vector<8x10xf32>
    %254 = arith.mulf %252, %253 : vector<8x10xf32>
    %255 = arith.mulf %254, %115 : vector<8x10xf32>
    %256 = arith.addf %250, %255 : vector<8x10xf32>
    %cst_91 = arith.constant 2.000000e-01 : f32
    %257 = vector.broadcast %cst_91 : f32 to vector<8x10xf32>
    %258 = arith.subf %36, %257 : vector<8x10xf32>
    %cst_92 = arith.constant 5.000000e+00 : f32
    %259 = vector.broadcast %cst_92 : f32 to vector<8x10xf32>
    %260 = arith.mulf %258, %259 : vector<8x10xf32>
    %261 = arith.mulf %260, %115 : vector<8x10xf32>
    %cst_93 = arith.constant 6.000000e-01 : f32
    %262 = vector.broadcast %cst_93 : f32 to vector<8x10xf32>
    %263 = arith.subf %262, %36 : vector<8x10xf32>
    %cst_94 = arith.constant 5.000000e+00 : f32
    %264 = vector.broadcast %cst_94 : f32 to vector<8x10xf32>
    %265 = arith.mulf %263, %264 : vector<8x10xf32>
    %266 = arith.mulf %265, %122 : vector<8x10xf32>
    %267 = arith.addf %261, %266 : vector<8x10xf32>
    %cst_95 = arith.constant 4.000000e-01 : f32
    %268 = vector.broadcast %cst_95 : f32 to vector<8x10xf32>
    %269 = arith.subf %36, %268 : vector<8x10xf32>
    %cst_96 = arith.constant 5.000000e+00 : f32
    %270 = vector.broadcast %cst_96 : f32 to vector<8x10xf32>
    %271 = arith.mulf %269, %270 : vector<8x10xf32>
    %272 = arith.mulf %271, %122 : vector<8x10xf32>
    %cst_97 = arith.constant 8.000000e-01 : f32
    %273 = vector.broadcast %cst_97 : f32 to vector<8x10xf32>
    %274 = arith.subf %273, %36 : vector<8x10xf32>
    %cst_98 = arith.constant 5.000000e+00 : f32
    %275 = vector.broadcast %cst_98 : f32 to vector<8x10xf32>
    %276 = arith.mulf %274, %275 : vector<8x10xf32>
    %277 = arith.mulf %276, %129 : vector<8x10xf32>
    %278 = arith.addf %272, %277 : vector<8x10xf32>
    %cst_99 = arith.constant 6.000000e-01 : f32
    %279 = vector.broadcast %cst_99 : f32 to vector<8x10xf32>
    %280 = arith.subf %36, %279 : vector<8x10xf32>
    %cst_100 = arith.constant 5.000000e+00 : f32
    %281 = vector.broadcast %cst_100 : f32 to vector<8x10xf32>
    %282 = arith.mulf %280, %281 : vector<8x10xf32>
    %283 = arith.mulf %282, %129 : vector<8x10xf32>
    %cst_101 = arith.constant 1.000000e+00 : f32
    %284 = vector.broadcast %cst_101 : f32 to vector<8x10xf32>
    %285 = arith.subf %284, %36 : vector<8x10xf32>
    %cst_102 = arith.constant 5.000000e+00 : f32
    %286 = vector.broadcast %cst_102 : f32 to vector<8x10xf32>
    %287 = arith.mulf %285, %286 : vector<8x10xf32>
    %288 = arith.mulf %287, %136 : vector<8x10xf32>
    %289 = arith.addf %283, %288 : vector<8x10xf32>
    %cst_103 = arith.constant 8.000000e-01 : f32
    %290 = vector.broadcast %cst_103 : f32 to vector<8x10xf32>
    %291 = arith.subf %36, %290 : vector<8x10xf32>
    %cst_104 = arith.constant 5.000000e+00 : f32
    %292 = vector.broadcast %cst_104 : f32 to vector<8x10xf32>
    %293 = arith.mulf %291, %292 : vector<8x10xf32>
    %294 = arith.mulf %293, %136 : vector<8x10xf32>
    %cst_105 = arith.constant 1.200000e+00 : f32
    %295 = vector.broadcast %cst_105 : f32 to vector<8x10xf32>
    %296 = arith.subf %295, %36 : vector<8x10xf32>
    %cst_106 = arith.constant 5.000000e+00 : f32
    %297 = vector.broadcast %cst_106 : f32 to vector<8x10xf32>
    %298 = arith.mulf %296, %297 : vector<8x10xf32>
    %299 = arith.mulf %298, %143 : vector<8x10xf32>
    %300 = arith.addf %294, %299 : vector<8x10xf32>
    %cst_107 = arith.constant 1.000000e+00 : f32
    %301 = vector.broadcast %cst_107 : f32 to vector<8x10xf32>
    %302 = arith.subf %36, %301 : vector<8x10xf32>
    %cst_108 = arith.constant 5.000000e+00 : f32
    %303 = vector.broadcast %cst_108 : f32 to vector<8x10xf32>
    %304 = arith.mulf %302, %303 : vector<8x10xf32>
    %305 = arith.mulf %304, %143 : vector<8x10xf32>
    %cst_109 = arith.constant 1.400000e+00 : f32
    %306 = vector.broadcast %cst_109 : f32 to vector<8x10xf32>
    %307 = arith.subf %306, %36 : vector<8x10xf32>
    %cst_110 = arith.constant 5.000000e+00 : f32
    %308 = vector.broadcast %cst_110 : f32 to vector<8x10xf32>
    %309 = arith.mulf %307, %308 : vector<8x10xf32>
    %310 = arith.mulf %309, %150 : vector<8x10xf32>
    %311 = arith.addf %305, %310 : vector<8x10xf32>
    %cst_111 = arith.constant 1.200000e+00 : f32
    %312 = vector.broadcast %cst_111 : f32 to vector<8x10xf32>
    %313 = arith.subf %36, %312 : vector<8x10xf32>
    %cst_112 = arith.constant 5.000000e+00 : f32
    %314 = vector.broadcast %cst_112 : f32 to vector<8x10xf32>
    %315 = arith.mulf %313, %314 : vector<8x10xf32>
    %316 = arith.mulf %315, %150 : vector<8x10xf32>
    %cst_113 = arith.constant 1.600000e+00 : f32
    %317 = vector.broadcast %cst_113 : f32 to vector<8x10xf32>
    %318 = arith.subf %317, %36 : vector<8x10xf32>
    %cst_114 = arith.constant 5.000000e+00 : f32
    %319 = vector.broadcast %cst_114 : f32 to vector<8x10xf32>
    %320 = arith.mulf %318, %319 : vector<8x10xf32>
    %321 = arith.mulf %320, %157 : vector<8x10xf32>
    %322 = arith.addf %316, %321 : vector<8x10xf32>
    %cst_115 = arith.constant -1.600000e+00 : f32
    %323 = vector.broadcast %cst_115 : f32 to vector<8x10xf32>
    %324 = arith.subf %36, %323 : vector<8x10xf32>
    %cst_116 = arith.constant 2.500000e+00 : f32
    %325 = vector.broadcast %cst_116 : f32 to vector<8x10xf32>
    %326 = arith.mulf %324, %325 : vector<8x10xf32>
    %327 = arith.mulf %326, %168 : vector<8x10xf32>
    %cst_117 = arith.constant -1.000000e+00 : f32
    %328 = vector.broadcast %cst_117 : f32 to vector<8x10xf32>
    %329 = arith.subf %328, %36 : vector<8x10xf32>
    %cst_118 = arith.constant 2.500000e+00 : f32
    %330 = vector.broadcast %cst_118 : f32 to vector<8x10xf32>
    %331 = arith.mulf %329, %330 : vector<8x10xf32>
    %332 = arith.mulf %331, %179 : vector<8x10xf32>
    %333 = arith.addf %327, %332 : vector<8x10xf32>
    %cst_119 = arith.constant -1.400000e+00 : f32
    %334 = vector.broadcast %cst_119 : f32 to vector<8x10xf32>
    %335 = arith.subf %36, %334 : vector<8x10xf32>
    %cst_120 = arith.constant 2.500000e+00 : f32
    %336 = vector.broadcast %cst_120 : f32 to vector<8x10xf32>
    %337 = arith.mulf %335, %336 : vector<8x10xf32>
    %338 = arith.mulf %337, %179 : vector<8x10xf32>
    %cst_121 = arith.constant -8.000000e-01 : f32
    %339 = vector.broadcast %cst_121 : f32 to vector<8x10xf32>
    %340 = arith.subf %339, %36 : vector<8x10xf32>
    %cst_122 = arith.constant 2.500000e+00 : f32
    %341 = vector.broadcast %cst_122 : f32 to vector<8x10xf32>
    %342 = arith.mulf %340, %341 : vector<8x10xf32>
    %343 = arith.mulf %342, %190 : vector<8x10xf32>
    %344 = arith.addf %338, %343 : vector<8x10xf32>
    %cst_123 = arith.constant -1.200000e+00 : f32
    %345 = vector.broadcast %cst_123 : f32 to vector<8x10xf32>
    %346 = arith.subf %36, %345 : vector<8x10xf32>
    %cst_124 = arith.constant 2.500000e+00 : f32
    %347 = vector.broadcast %cst_124 : f32 to vector<8x10xf32>
    %348 = arith.mulf %346, %347 : vector<8x10xf32>
    %349 = arith.mulf %348, %190 : vector<8x10xf32>
    %cst_125 = arith.constant -6.000000e-01 : f32
    %350 = vector.broadcast %cst_125 : f32 to vector<8x10xf32>
    %351 = arith.subf %350, %36 : vector<8x10xf32>
    %cst_126 = arith.constant 2.500000e+00 : f32
    %352 = vector.broadcast %cst_126 : f32 to vector<8x10xf32>
    %353 = arith.mulf %351, %352 : vector<8x10xf32>
    %354 = arith.mulf %353, %201 : vector<8x10xf32>
    %355 = arith.addf %349, %354 : vector<8x10xf32>
    %cst_127 = arith.constant -1.000000e+00 : f32
    %356 = vector.broadcast %cst_127 : f32 to vector<8x10xf32>
    %357 = arith.subf %36, %356 : vector<8x10xf32>
    %cst_128 = arith.constant 2.500000e+00 : f32
    %358 = vector.broadcast %cst_128 : f32 to vector<8x10xf32>
    %359 = arith.mulf %357, %358 : vector<8x10xf32>
    %360 = arith.mulf %359, %201 : vector<8x10xf32>
    %cst_129 = arith.constant -4.000000e-01 : f32
    %361 = vector.broadcast %cst_129 : f32 to vector<8x10xf32>
    %362 = arith.subf %361, %36 : vector<8x10xf32>
    %cst_130 = arith.constant 2.500000e+00 : f32
    %363 = vector.broadcast %cst_130 : f32 to vector<8x10xf32>
    %364 = arith.mulf %362, %363 : vector<8x10xf32>
    %365 = arith.mulf %364, %212 : vector<8x10xf32>
    %366 = arith.addf %360, %365 : vector<8x10xf32>
    %cst_131 = arith.constant -8.000000e-01 : f32
    %367 = vector.broadcast %cst_131 : f32 to vector<8x10xf32>
    %368 = arith.subf %36, %367 : vector<8x10xf32>
    %cst_132 = arith.constant 2.500000e+00 : f32
    %369 = vector.broadcast %cst_132 : f32 to vector<8x10xf32>
    %370 = arith.mulf %368, %369 : vector<8x10xf32>
    %371 = arith.mulf %370, %212 : vector<8x10xf32>
    %cst_133 = arith.constant -2.000000e-01 : f32
    %372 = vector.broadcast %cst_133 : f32 to vector<8x10xf32>
    %373 = arith.subf %372, %36 : vector<8x10xf32>
    %cst_134 = arith.constant 2.500000e+00 : f32
    %374 = vector.broadcast %cst_134 : f32 to vector<8x10xf32>
    %375 = arith.mulf %373, %374 : vector<8x10xf32>
    %376 = arith.mulf %375, %223 : vector<8x10xf32>
    %377 = arith.addf %371, %376 : vector<8x10xf32>
    %cst_135 = arith.constant -6.000000e-01 : f32
    %378 = vector.broadcast %cst_135 : f32 to vector<8x10xf32>
    %379 = arith.subf %36, %378 : vector<8x10xf32>
    %cst_136 = arith.constant 2.500000e+00 : f32
    %380 = vector.broadcast %cst_136 : f32 to vector<8x10xf32>
    %381 = arith.mulf %379, %380 : vector<8x10xf32>
    %382 = arith.mulf %381, %223 : vector<8x10xf32>
    %cst_137 = arith.constant 0.000000e+00 : f32
    %383 = vector.broadcast %cst_137 : f32 to vector<8x10xf32>
    %384 = arith.subf %383, %36 : vector<8x10xf32>
    %cst_138 = arith.constant 2.500000e+00 : f32
    %385 = vector.broadcast %cst_138 : f32 to vector<8x10xf32>
    %386 = arith.mulf %384, %385 : vector<8x10xf32>
    %387 = arith.mulf %386, %234 : vector<8x10xf32>
    %388 = arith.addf %382, %387 : vector<8x10xf32>
    %cst_139 = arith.constant -4.000000e-01 : f32
    %389 = vector.broadcast %cst_139 : f32 to vector<8x10xf32>
    %390 = arith.subf %36, %389 : vector<8x10xf32>
    %cst_140 = arith.constant 2.500000e+00 : f32
    %391 = vector.broadcast %cst_140 : f32 to vector<8x10xf32>
    %392 = arith.mulf %390, %391 : vector<8x10xf32>
    %393 = arith.mulf %392, %234 : vector<8x10xf32>
    %cst_141 = arith.constant 2.000000e-01 : f32
    %394 = vector.broadcast %cst_141 : f32 to vector<8x10xf32>
    %395 = arith.subf %394, %36 : vector<8x10xf32>
    %cst_142 = arith.constant 2.500000e+00 : f32
    %396 = vector.broadcast %cst_142 : f32 to vector<8x10xf32>
    %397 = arith.mulf %395, %396 : vector<8x10xf32>
    %398 = arith.mulf %397, %245 : vector<8x10xf32>
    %399 = arith.addf %393, %398 : vector<8x10xf32>
    %cst_143 = arith.constant -2.000000e-01 : f32
    %400 = vector.broadcast %cst_143 : f32 to vector<8x10xf32>
    %401 = arith.subf %36, %400 : vector<8x10xf32>
    %cst_144 = arith.constant 2.500000e+00 : f32
    %402 = vector.broadcast %cst_144 : f32 to vector<8x10xf32>
    %403 = arith.mulf %401, %402 : vector<8x10xf32>
    %404 = arith.mulf %403, %245 : vector<8x10xf32>
    %cst_145 = arith.constant 4.000000e-01 : f32
    %405 = vector.broadcast %cst_145 : f32 to vector<8x10xf32>
    %406 = arith.subf %405, %36 : vector<8x10xf32>
    %cst_146 = arith.constant 2.500000e+00 : f32
    %407 = vector.broadcast %cst_146 : f32 to vector<8x10xf32>
    %408 = arith.mulf %406, %407 : vector<8x10xf32>
    %409 = arith.mulf %408, %256 : vector<8x10xf32>
    %410 = arith.addf %404, %409 : vector<8x10xf32>
    %cst_147 = arith.constant 0.000000e+00 : f32
    %411 = vector.broadcast %cst_147 : f32 to vector<8x10xf32>
    %412 = arith.subf %36, %411 : vector<8x10xf32>
    %cst_148 = arith.constant 2.500000e+00 : f32
    %413 = vector.broadcast %cst_148 : f32 to vector<8x10xf32>
    %414 = arith.mulf %412, %413 : vector<8x10xf32>
    %415 = arith.mulf %414, %256 : vector<8x10xf32>
    %cst_149 = arith.constant 6.000000e-01 : f32
    %416 = vector.broadcast %cst_149 : f32 to vector<8x10xf32>
    %417 = arith.subf %416, %36 : vector<8x10xf32>
    %cst_150 = arith.constant 2.500000e+00 : f32
    %418 = vector.broadcast %cst_150 : f32 to vector<8x10xf32>
    %419 = arith.mulf %417, %418 : vector<8x10xf32>
    %420 = arith.mulf %419, %267 : vector<8x10xf32>
    %421 = arith.addf %415, %420 : vector<8x10xf32>
    %cst_151 = arith.constant 2.000000e-01 : f32
    %422 = vector.broadcast %cst_151 : f32 to vector<8x10xf32>
    %423 = arith.subf %36, %422 : vector<8x10xf32>
    %cst_152 = arith.constant 2.500000e+00 : f32
    %424 = vector.broadcast %cst_152 : f32 to vector<8x10xf32>
    %425 = arith.mulf %423, %424 : vector<8x10xf32>
    %426 = arith.mulf %425, %267 : vector<8x10xf32>
    %cst_153 = arith.constant 8.000000e-01 : f32
    %427 = vector.broadcast %cst_153 : f32 to vector<8x10xf32>
    %428 = arith.subf %427, %36 : vector<8x10xf32>
    %cst_154 = arith.constant 2.500000e+00 : f32
    %429 = vector.broadcast %cst_154 : f32 to vector<8x10xf32>
    %430 = arith.mulf %428, %429 : vector<8x10xf32>
    %431 = arith.mulf %430, %278 : vector<8x10xf32>
    %432 = arith.addf %426, %431 : vector<8x10xf32>
    %cst_155 = arith.constant 4.000000e-01 : f32
    %433 = vector.broadcast %cst_155 : f32 to vector<8x10xf32>
    %434 = arith.subf %36, %433 : vector<8x10xf32>
    %cst_156 = arith.constant 2.500000e+00 : f32
    %435 = vector.broadcast %cst_156 : f32 to vector<8x10xf32>
    %436 = arith.mulf %434, %435 : vector<8x10xf32>
    %437 = arith.mulf %436, %278 : vector<8x10xf32>
    %cst_157 = arith.constant 1.000000e+00 : f32
    %438 = vector.broadcast %cst_157 : f32 to vector<8x10xf32>
    %439 = arith.subf %438, %36 : vector<8x10xf32>
    %cst_158 = arith.constant 2.500000e+00 : f32
    %440 = vector.broadcast %cst_158 : f32 to vector<8x10xf32>
    %441 = arith.mulf %439, %440 : vector<8x10xf32>
    %442 = arith.mulf %441, %289 : vector<8x10xf32>
    %443 = arith.addf %437, %442 : vector<8x10xf32>
    %cst_159 = arith.constant 6.000000e-01 : f32
    %444 = vector.broadcast %cst_159 : f32 to vector<8x10xf32>
    %445 = arith.subf %36, %444 : vector<8x10xf32>
    %cst_160 = arith.constant 2.500000e+00 : f32
    %446 = vector.broadcast %cst_160 : f32 to vector<8x10xf32>
    %447 = arith.mulf %445, %446 : vector<8x10xf32>
    %448 = arith.mulf %447, %289 : vector<8x10xf32>
    %cst_161 = arith.constant 1.200000e+00 : f32
    %449 = vector.broadcast %cst_161 : f32 to vector<8x10xf32>
    %450 = arith.subf %449, %36 : vector<8x10xf32>
    %cst_162 = arith.constant 2.500000e+00 : f32
    %451 = vector.broadcast %cst_162 : f32 to vector<8x10xf32>
    %452 = arith.mulf %450, %451 : vector<8x10xf32>
    %453 = arith.mulf %452, %300 : vector<8x10xf32>
    %454 = arith.addf %448, %453 : vector<8x10xf32>
    %cst_163 = arith.constant 8.000000e-01 : f32
    %455 = vector.broadcast %cst_163 : f32 to vector<8x10xf32>
    %456 = arith.subf %36, %455 : vector<8x10xf32>
    %cst_164 = arith.constant 2.500000e+00 : f32
    %457 = vector.broadcast %cst_164 : f32 to vector<8x10xf32>
    %458 = arith.mulf %456, %457 : vector<8x10xf32>
    %459 = arith.mulf %458, %300 : vector<8x10xf32>
    %cst_165 = arith.constant 1.400000e+00 : f32
    %460 = vector.broadcast %cst_165 : f32 to vector<8x10xf32>
    %461 = arith.subf %460, %36 : vector<8x10xf32>
    %cst_166 = arith.constant 2.500000e+00 : f32
    %462 = vector.broadcast %cst_166 : f32 to vector<8x10xf32>
    %463 = arith.mulf %461, %462 : vector<8x10xf32>
    %464 = arith.mulf %463, %311 : vector<8x10xf32>
    %465 = arith.addf %459, %464 : vector<8x10xf32>
    %cst_167 = arith.constant 1.000000e+00 : f32
    %466 = vector.broadcast %cst_167 : f32 to vector<8x10xf32>
    %467 = arith.subf %36, %466 : vector<8x10xf32>
    %cst_168 = arith.constant 2.500000e+00 : f32
    %468 = vector.broadcast %cst_168 : f32 to vector<8x10xf32>
    %469 = arith.mulf %467, %468 : vector<8x10xf32>
    %470 = arith.mulf %469, %311 : vector<8x10xf32>
    %cst_169 = arith.constant 1.600000e+00 : f32
    %471 = vector.broadcast %cst_169 : f32 to vector<8x10xf32>
    %472 = arith.subf %471, %36 : vector<8x10xf32>
    %cst_170 = arith.constant 2.500000e+00 : f32
    %473 = vector.broadcast %cst_170 : f32 to vector<8x10xf32>
    %474 = arith.mulf %472, %473 : vector<8x10xf32>
    %475 = arith.mulf %474, %322 : vector<8x10xf32>
    %476 = arith.addf %470, %475 : vector<8x10xf32>
    %cst_171 = arith.constant -1.600000e+00 : f32
    %477 = vector.broadcast %cst_171 : f32 to vector<8x10xf32>
    %478 = arith.subf %36, %477 : vector<8x10xf32>
    %cst_172 = arith.constant 1.66666663 : f32
    %479 = vector.broadcast %cst_172 : f32 to vector<8x10xf32>
    %480 = arith.mulf %478, %479 : vector<8x10xf32>
    %481 = arith.mulf %480, %333 : vector<8x10xf32>
    %cst_173 = arith.constant -8.000000e-01 : f32
    %482 = vector.broadcast %cst_173 : f32 to vector<8x10xf32>
    %483 = arith.subf %482, %36 : vector<8x10xf32>
    %cst_174 = arith.constant 1.66666663 : f32
    %484 = vector.broadcast %cst_174 : f32 to vector<8x10xf32>
    %485 = arith.mulf %483, %484 : vector<8x10xf32>
    %486 = arith.mulf %485, %344 : vector<8x10xf32>
    %487 = arith.addf %481, %486 : vector<8x10xf32>
    %cst_175 = arith.constant -1.400000e+00 : f32
    %488 = vector.broadcast %cst_175 : f32 to vector<8x10xf32>
    %489 = arith.subf %36, %488 : vector<8x10xf32>
    %cst_176 = arith.constant 1.66666663 : f32
    %490 = vector.broadcast %cst_176 : f32 to vector<8x10xf32>
    %491 = arith.mulf %489, %490 : vector<8x10xf32>
    %492 = arith.mulf %491, %344 : vector<8x10xf32>
    %cst_177 = arith.constant -6.000000e-01 : f32
    %493 = vector.broadcast %cst_177 : f32 to vector<8x10xf32>
    %494 = arith.subf %493, %36 : vector<8x10xf32>
    %cst_178 = arith.constant 1.66666663 : f32
    %495 = vector.broadcast %cst_178 : f32 to vector<8x10xf32>
    %496 = arith.mulf %494, %495 : vector<8x10xf32>
    %497 = arith.mulf %496, %355 : vector<8x10xf32>
    %498 = arith.addf %492, %497 : vector<8x10xf32>
    %cst_179 = arith.constant -1.200000e+00 : f32
    %499 = vector.broadcast %cst_179 : f32 to vector<8x10xf32>
    %500 = arith.subf %36, %499 : vector<8x10xf32>
    %cst_180 = arith.constant 1.66666663 : f32
    %501 = vector.broadcast %cst_180 : f32 to vector<8x10xf32>
    %502 = arith.mulf %500, %501 : vector<8x10xf32>
    %503 = arith.mulf %502, %355 : vector<8x10xf32>
    %cst_181 = arith.constant -4.000000e-01 : f32
    %504 = vector.broadcast %cst_181 : f32 to vector<8x10xf32>
    %505 = arith.subf %504, %36 : vector<8x10xf32>
    %cst_182 = arith.constant 1.66666663 : f32
    %506 = vector.broadcast %cst_182 : f32 to vector<8x10xf32>
    %507 = arith.mulf %505, %506 : vector<8x10xf32>
    %508 = arith.mulf %507, %366 : vector<8x10xf32>
    %509 = arith.addf %503, %508 : vector<8x10xf32>
    %cst_183 = arith.constant -1.000000e+00 : f32
    %510 = vector.broadcast %cst_183 : f32 to vector<8x10xf32>
    %511 = arith.subf %36, %510 : vector<8x10xf32>
    %cst_184 = arith.constant 1.66666663 : f32
    %512 = vector.broadcast %cst_184 : f32 to vector<8x10xf32>
    %513 = arith.mulf %511, %512 : vector<8x10xf32>
    %514 = arith.mulf %513, %366 : vector<8x10xf32>
    %cst_185 = arith.constant -2.000000e-01 : f32
    %515 = vector.broadcast %cst_185 : f32 to vector<8x10xf32>
    %516 = arith.subf %515, %36 : vector<8x10xf32>
    %cst_186 = arith.constant 1.66666663 : f32
    %517 = vector.broadcast %cst_186 : f32 to vector<8x10xf32>
    %518 = arith.mulf %516, %517 : vector<8x10xf32>
    %519 = arith.mulf %518, %377 : vector<8x10xf32>
    %520 = arith.addf %514, %519 : vector<8x10xf32>
    %cst_187 = arith.constant -8.000000e-01 : f32
    %521 = vector.broadcast %cst_187 : f32 to vector<8x10xf32>
    %522 = arith.subf %36, %521 : vector<8x10xf32>
    %cst_188 = arith.constant 1.66666663 : f32
    %523 = vector.broadcast %cst_188 : f32 to vector<8x10xf32>
    %524 = arith.mulf %522, %523 : vector<8x10xf32>
    %525 = arith.mulf %524, %377 : vector<8x10xf32>
    %cst_189 = arith.constant 0.000000e+00 : f32
    %526 = vector.broadcast %cst_189 : f32 to vector<8x10xf32>
    %527 = arith.subf %526, %36 : vector<8x10xf32>
    %cst_190 = arith.constant 1.66666663 : f32
    %528 = vector.broadcast %cst_190 : f32 to vector<8x10xf32>
    %529 = arith.mulf %527, %528 : vector<8x10xf32>
    %530 = arith.mulf %529, %388 : vector<8x10xf32>
    %531 = arith.addf %525, %530 : vector<8x10xf32>
    %cst_191 = arith.constant -6.000000e-01 : f32
    %532 = vector.broadcast %cst_191 : f32 to vector<8x10xf32>
    %533 = arith.subf %36, %532 : vector<8x10xf32>
    %cst_192 = arith.constant 1.66666663 : f32
    %534 = vector.broadcast %cst_192 : f32 to vector<8x10xf32>
    %535 = arith.mulf %533, %534 : vector<8x10xf32>
    %536 = arith.mulf %535, %388 : vector<8x10xf32>
    %cst_193 = arith.constant 2.000000e-01 : f32
    %537 = vector.broadcast %cst_193 : f32 to vector<8x10xf32>
    %538 = arith.subf %537, %36 : vector<8x10xf32>
    %cst_194 = arith.constant 1.66666663 : f32
    %539 = vector.broadcast %cst_194 : f32 to vector<8x10xf32>
    %540 = arith.mulf %538, %539 : vector<8x10xf32>
    %541 = arith.mulf %540, %399 : vector<8x10xf32>
    %542 = arith.addf %536, %541 : vector<8x10xf32>
    %cst_195 = arith.constant -4.000000e-01 : f32
    %543 = vector.broadcast %cst_195 : f32 to vector<8x10xf32>
    %544 = arith.subf %36, %543 : vector<8x10xf32>
    %cst_196 = arith.constant 1.66666663 : f32
    %545 = vector.broadcast %cst_196 : f32 to vector<8x10xf32>
    %546 = arith.mulf %544, %545 : vector<8x10xf32>
    %547 = arith.mulf %546, %399 : vector<8x10xf32>
    %cst_197 = arith.constant 4.000000e-01 : f32
    %548 = vector.broadcast %cst_197 : f32 to vector<8x10xf32>
    %549 = arith.subf %548, %36 : vector<8x10xf32>
    %cst_198 = arith.constant 1.66666663 : f32
    %550 = vector.broadcast %cst_198 : f32 to vector<8x10xf32>
    %551 = arith.mulf %549, %550 : vector<8x10xf32>
    %552 = arith.mulf %551, %410 : vector<8x10xf32>
    %553 = arith.addf %547, %552 : vector<8x10xf32>
    %cst_199 = arith.constant -2.000000e-01 : f32
    %554 = vector.broadcast %cst_199 : f32 to vector<8x10xf32>
    %555 = arith.subf %36, %554 : vector<8x10xf32>
    %cst_200 = arith.constant 1.66666663 : f32
    %556 = vector.broadcast %cst_200 : f32 to vector<8x10xf32>
    %557 = arith.mulf %555, %556 : vector<8x10xf32>
    %558 = arith.mulf %557, %410 : vector<8x10xf32>
    %cst_201 = arith.constant 6.000000e-01 : f32
    %559 = vector.broadcast %cst_201 : f32 to vector<8x10xf32>
    %560 = arith.subf %559, %36 : vector<8x10xf32>
    %cst_202 = arith.constant 1.66666663 : f32
    %561 = vector.broadcast %cst_202 : f32 to vector<8x10xf32>
    %562 = arith.mulf %560, %561 : vector<8x10xf32>
    %563 = arith.mulf %562, %421 : vector<8x10xf32>
    %564 = arith.addf %558, %563 : vector<8x10xf32>
    %cst_203 = arith.constant 0.000000e+00 : f32
    %565 = vector.broadcast %cst_203 : f32 to vector<8x10xf32>
    %566 = arith.subf %36, %565 : vector<8x10xf32>
    %cst_204 = arith.constant 1.66666663 : f32
    %567 = vector.broadcast %cst_204 : f32 to vector<8x10xf32>
    %568 = arith.mulf %566, %567 : vector<8x10xf32>
    %569 = arith.mulf %568, %421 : vector<8x10xf32>
    %cst_205 = arith.constant 8.000000e-01 : f32
    %570 = vector.broadcast %cst_205 : f32 to vector<8x10xf32>
    %571 = arith.subf %570, %36 : vector<8x10xf32>
    %cst_206 = arith.constant 1.66666663 : f32
    %572 = vector.broadcast %cst_206 : f32 to vector<8x10xf32>
    %573 = arith.mulf %571, %572 : vector<8x10xf32>
    %574 = arith.mulf %573, %432 : vector<8x10xf32>
    %575 = arith.addf %569, %574 : vector<8x10xf32>
    %cst_207 = arith.constant 2.000000e-01 : f32
    %576 = vector.broadcast %cst_207 : f32 to vector<8x10xf32>
    %577 = arith.subf %36, %576 : vector<8x10xf32>
    %cst_208 = arith.constant 1.66666663 : f32
    %578 = vector.broadcast %cst_208 : f32 to vector<8x10xf32>
    %579 = arith.mulf %577, %578 : vector<8x10xf32>
    %580 = arith.mulf %579, %432 : vector<8x10xf32>
    %cst_209 = arith.constant 1.000000e+00 : f32
    %581 = vector.broadcast %cst_209 : f32 to vector<8x10xf32>
    %582 = arith.subf %581, %36 : vector<8x10xf32>
    %cst_210 = arith.constant 1.66666663 : f32
    %583 = vector.broadcast %cst_210 : f32 to vector<8x10xf32>
    %584 = arith.mulf %582, %583 : vector<8x10xf32>
    %585 = arith.mulf %584, %443 : vector<8x10xf32>
    %586 = arith.addf %580, %585 : vector<8x10xf32>
    %cst_211 = arith.constant 4.000000e-01 : f32
    %587 = vector.broadcast %cst_211 : f32 to vector<8x10xf32>
    %588 = arith.subf %36, %587 : vector<8x10xf32>
    %cst_212 = arith.constant 1.66666663 : f32
    %589 = vector.broadcast %cst_212 : f32 to vector<8x10xf32>
    %590 = arith.mulf %588, %589 : vector<8x10xf32>
    %591 = arith.mulf %590, %443 : vector<8x10xf32>
    %cst_213 = arith.constant 1.200000e+00 : f32
    %592 = vector.broadcast %cst_213 : f32 to vector<8x10xf32>
    %593 = arith.subf %592, %36 : vector<8x10xf32>
    %cst_214 = arith.constant 1.66666663 : f32
    %594 = vector.broadcast %cst_214 : f32 to vector<8x10xf32>
    %595 = arith.mulf %593, %594 : vector<8x10xf32>
    %596 = arith.mulf %595, %454 : vector<8x10xf32>
    %597 = arith.addf %591, %596 : vector<8x10xf32>
    %cst_215 = arith.constant 6.000000e-01 : f32
    %598 = vector.broadcast %cst_215 : f32 to vector<8x10xf32>
    %599 = arith.subf %36, %598 : vector<8x10xf32>
    %cst_216 = arith.constant 1.66666663 : f32
    %600 = vector.broadcast %cst_216 : f32 to vector<8x10xf32>
    %601 = arith.mulf %599, %600 : vector<8x10xf32>
    %602 = arith.mulf %601, %454 : vector<8x10xf32>
    %cst_217 = arith.constant 1.400000e+00 : f32
    %603 = vector.broadcast %cst_217 : f32 to vector<8x10xf32>
    %604 = arith.subf %603, %36 : vector<8x10xf32>
    %cst_218 = arith.constant 1.66666663 : f32
    %605 = vector.broadcast %cst_218 : f32 to vector<8x10xf32>
    %606 = arith.mulf %604, %605 : vector<8x10xf32>
    %607 = arith.mulf %606, %465 : vector<8x10xf32>
    %608 = arith.addf %602, %607 : vector<8x10xf32>
    %cst_219 = arith.constant 8.000000e-01 : f32
    %609 = vector.broadcast %cst_219 : f32 to vector<8x10xf32>
    %610 = arith.subf %36, %609 : vector<8x10xf32>
    %cst_220 = arith.constant 1.66666663 : f32
    %611 = vector.broadcast %cst_220 : f32 to vector<8x10xf32>
    %612 = arith.mulf %610, %611 : vector<8x10xf32>
    %613 = arith.mulf %612, %465 : vector<8x10xf32>
    %cst_221 = arith.constant 1.600000e+00 : f32
    %614 = vector.broadcast %cst_221 : f32 to vector<8x10xf32>
    %615 = arith.subf %614, %36 : vector<8x10xf32>
    %cst_222 = arith.constant 1.66666663 : f32
    %616 = vector.broadcast %cst_222 : f32 to vector<8x10xf32>
    %617 = arith.mulf %615, %616 : vector<8x10xf32>
    %618 = arith.mulf %617, %476 : vector<8x10xf32>
    %619 = arith.addf %613, %618 : vector<8x10xf32>
    %c1 = arith.constant 1 : index
    %c0_223 = arith.constant 0 : index
    %c0_224 = arith.constant 0 : index
    %620 = vector.load %arg8[%c1, %c0_223, %c0_224] : memref<14x10x2xf32, #tpu.memory_space<vmem>>, vector<1x10x2xf32>
    %621 = vector.shape_cast %620 : vector<1x10x2xf32> to vector<10x2xf32>
    %cst_225 = arith.constant dense<0.000000e+00> : vector<8x2xf32>
    %622 = tpu.matmul %487, %621, %cst_225 {dimension_numbers = #tpu.dot_dimension_numbers<[1], [0], [0], [1], [0, 0, 1, 1], [], []>} : vector<8x10xf32>, vector<10x2xf32>, vector<8x2xf32> -> vector<8x2xf32>
    %c2 = arith.constant 2 : index
    %c0_226 = arith.constant 0 : index
    %c0_227 = arith.constant 0 : index
    %623 = vector.load %arg8[%c2, %c0_226, %c0_227] : memref<14x10x2xf32, #tpu.memory_space<vmem>>, vector<1x10x2xf32>
    %624 = vector.shape_cast %623 : vector<1x10x2xf32> to vector<10x2xf32>
    %cst_228 = arith.constant dense<0.000000e+00> : vector<8x2xf32>
    %625 = tpu.matmul %498, %624, %cst_228 {dimension_numbers = #tpu.dot_dimension_numbers<[1], [0], [0], [1], [0, 0, 1, 1], [], []>} : vector<8x10xf32>, vector<10x2xf32>, vector<8x2xf32> -> vector<8x2xf32>
    %c3 = arith.constant 3 : index
    %c0_229 = arith.constant 0 : index
    %c0_230 = arith.constant 0 : index
    %626 = vector.load %arg8[%c3, %c0_229, %c0_230] : memref<14x10x2xf32, #tpu.memory_space<vmem>>, vector<1x10x2xf32>
    %627 = vector.shape_cast %626 : vector<1x10x2xf32> to vector<10x2xf32>
    %cst_231 = arith.constant dense<0.000000e+00> : vector<8x2xf32>
    %628 = tpu.matmul %509, %627, %cst_231 {dimension_numbers = #tpu.dot_dimension_numbers<[1], [0], [0], [1], [0, 0, 1, 1], [], []>} : vector<8x10xf32>, vector<10x2xf32>, vector<8x2xf32> -> vector<8x2xf32>
    %c4 = arith.constant 4 : index
    %c0_232 = arith.constant 0 : index
    %c0_233 = arith.constant 0 : index
    %629 = vector.load %arg8[%c4, %c0_232, %c0_233] : memref<14x10x2xf32, #tpu.memory_space<vmem>>, vector<1x10x2xf32>
    %630 = vector.shape_cast %629 : vector<1x10x2xf32> to vector<10x2xf32>
    %cst_234 = arith.constant dense<0.000000e+00> : vector<8x2xf32>
    %631 = tpu.matmul %520, %630, %cst_234 {dimension_numbers = #tpu.dot_dimension_numbers<[1], [0], [0], [1], [0, 0, 1, 1], [], []>} : vector<8x10xf32>, vector<10x2xf32>, vector<8x2xf32> -> vector<8x2xf32>
    %c5 = arith.constant 5 : index
    %c0_235 = arith.constant 0 : index
    %c0_236 = arith.constant 0 : index
    %632 = vector.load %arg8[%c5, %c0_235, %c0_236] : memref<14x10x2xf32, #tpu.memory_space<vmem>>, vector<1x10x2xf32>
    %633 = vector.shape_cast %632 : vector<1x10x2xf32> to vector<10x2xf32>
    %cst_237 = arith.constant dense<0.000000e+00> : vector<8x2xf32>
    %634 = tpu.matmul %531, %633, %cst_237 {dimension_numbers = #tpu.dot_dimension_numbers<[1], [0], [0], [1], [0, 0, 1, 1], [], []>} : vector<8x10xf32>, vector<10x2xf32>, vector<8x2xf32> -> vector<8x2xf32>
    %c6 = arith.constant 6 : index
    %c0_238 = arith.constant 0 : index
    %c0_239 = arith.constant 0 : index
    %635 = vector.load %arg8[%c6, %c0_238, %c0_239] : memref<14x10x2xf32, #tpu.memory_space<vmem>>, vector<1x10x2xf32>
    %636 = vector.shape_cast %635 : vector<1x10x2xf32> to vector<10x2xf32>
    %cst_240 = arith.constant dense<0.000000e+00> : vector<8x2xf32>
    %637 = tpu.matmul %542, %636, %cst_240 {dimension_numbers = #tpu.dot_dimension_numbers<[1], [0], [0], [1], [0, 0, 1, 1], [], []>} : vector<8x10xf32>, vector<10x2xf32>, vector<8x2xf32> -> vector<8x2xf32>
    %c7 = arith.constant 7 : index
    %c0_241 = arith.constant 0 : index
    %c0_242 = arith.constant 0 : index
    %638 = vector.load %arg8[%c7, %c0_241, %c0_242] : memref<14x10x2xf32, #tpu.memory_space<vmem>>, vector<1x10x2xf32>
    %639 = vector.shape_cast %638 : vector<1x10x2xf32> to vector<10x2xf32>
    %cst_243 = arith.constant dense<0.000000e+00> : vector<8x2xf32>
    %640 = tpu.matmul %553, %639, %cst_243 {dimension_numbers = #tpu.dot_dimension_numbers<[1], [0], [0], [1], [0, 0, 1, 1], [], []>} : vector<8x10xf32>, vector<10x2xf32>, vector<8x2xf32> -> vector<8x2xf32>
    %c8 = arith.constant 8 : index
    %c0_244 = arith.constant 0 : index
    %c0_245 = arith.constant 0 : index
    %641 = vector.load %arg8[%c8, %c0_244, %c0_245] : memref<14x10x2xf32, #tpu.memory_space<vmem>>, vector<1x10x2xf32>
    %642 = vector.shape_cast %641 : vector<1x10x2xf32> to vector<10x2xf32>
    %cst_246 = arith.constant dense<0.000000e+00> : vector<8x2xf32>
    %643 = tpu.matmul %564, %642, %cst_246 {dimension_numbers = #tpu.dot_dimension_numbers<[1], [0], [0], [1], [0, 0, 1, 1], [], []>} : vector<8x10xf32>, vector<10x2xf32>, vector<8x2xf32> -> vector<8x2xf32>
    %c9 = arith.constant 9 : index
    %c0_247 = arith.constant 0 : index
    %c0_248 = arith.constant 0 : index
    %644 = vector.load %arg8[%c9, %c0_247, %c0_248] : memref<14x10x2xf32, #tpu.memory_space<vmem>>, vector<1x10x2xf32>
    %645 = vector.shape_cast %644 : vector<1x10x2xf32> to vector<10x2xf32>
    %cst_249 = arith.constant dense<0.000000e+00> : vector<8x2xf32>
    %646 = tpu.matmul %575, %645, %cst_249 {dimension_numbers = #tpu.dot_dimension_numbers<[1], [0], [0], [1], [0, 0, 1, 1], [], []>} : vector<8x10xf32>, vector<10x2xf32>, vector<8x2xf32> -> vector<8x2xf32>
    %c10 = arith.constant 10 : index
    %c0_250 = arith.constant 0 : index
    %c0_251 = arith.constant 0 : index
    %647 = vector.load %arg8[%c10, %c0_250, %c0_251] : memref<14x10x2xf32, #tpu.memory_space<vmem>>, vector<1x10x2xf32>
    %648 = vector.shape_cast %647 : vector<1x10x2xf32> to vector<10x2xf32>
    %cst_252 = arith.constant dense<0.000000e+00> : vector<8x2xf32>
    %649 = tpu.matmul %586, %648, %cst_252 {dimension_numbers = #tpu.dot_dimension_numbers<[1], [0], [0], [1], [0, 0, 1, 1], [], []>} : vector<8x10xf32>, vector<10x2xf32>, vector<8x2xf32> -> vector<8x2xf32>
    %c11 = arith.constant 11 : index
    %c0_253 = arith.constant 0 : index
    %c0_254 = arith.constant 0 : index
    %650 = vector.load %arg8[%c11, %c0_253, %c0_254] : memref<14x10x2xf32, #tpu.memory_space<vmem>>, vector<1x10x2xf32>
    %651 = vector.shape_cast %650 : vector<1x10x2xf32> to vector<10x2xf32>
    %cst_255 = arith.constant dense<0.000000e+00> : vector<8x2xf32>
    %652 = tpu.matmul %597, %651, %cst_255 {dimension_numbers = #tpu.dot_dimension_numbers<[1], [0], [0], [1], [0, 0, 1, 1], [], []>} : vector<8x10xf32>, vector<10x2xf32>, vector<8x2xf32> -> vector<8x2xf32>
    %c12 = arith.constant 12 : index
    %c0_256 = arith.constant 0 : index
    %c0_257 = arith.constant 0 : index
    %653 = vector.load %arg8[%c12, %c0_256, %c0_257] : memref<14x10x2xf32, #tpu.memory_space<vmem>>, vector<1x10x2xf32>
    %654 = vector.shape_cast %653 : vector<1x10x2xf32> to vector<10x2xf32>
    %cst_258 = arith.constant dense<0.000000e+00> : vector<8x2xf32>
    %655 = tpu.matmul %608, %654, %cst_258 {dimension_numbers = #tpu.dot_dimension_numbers<[1], [0], [0], [1], [0, 0, 1, 1], [], []>} : vector<8x10xf32>, vector<10x2xf32>, vector<8x2xf32> -> vector<8x2xf32>
    %c13 = arith.constant 13 : index
    %c0_259 = arith.constant 0 : index
    %c0_260 = arith.constant 0 : index
    %656 = vector.load %arg8[%c13, %c0_259, %c0_260] : memref<14x10x2xf32, #tpu.memory_space<vmem>>, vector<1x10x2xf32>
    %657 = vector.shape_cast %656 : vector<1x10x2xf32> to vector<10x2xf32>
    %cst_261 = arith.constant dense<0.000000e+00> : vector<8x2xf32>
    %658 = tpu.matmul %619, %657, %cst_261 {dimension_numbers = #tpu.dot_dimension_numbers<[1], [0], [0], [1], [0, 0, 1, 1], [], []>} : vector<8x10xf32>, vector<10x2xf32>, vector<8x2xf32> -> vector<8x2xf32>
    %659 = arith.addf %45, %622 : vector<8x2xf32>
    %660 = arith.addf %625, %628 : vector<8x2xf32>
    %661 = arith.addf %631, %634 : vector<8x2xf32>
    %662 = arith.addf %637, %640 : vector<8x2xf32>
    %663 = arith.addf %643, %646 : vector<8x2xf32>
    %664 = arith.addf %649, %652 : vector<8x2xf32>
    %665 = arith.addf %655, %658 : vector<8x2xf32>
    %666 = arith.addf %659, %660 : vector<8x2xf32>
    %667 = arith.addf %661, %662 : vector<8x2xf32>
    %668 = arith.addf %663, %664 : vector<8x2xf32>
    %669 = arith.addf %666, %667 : vector<8x2xf32>
    %670 = arith.addf %668, %665 : vector<8x2xf32>
    %671 = arith.addf %669, %670 : vector<8x2xf32>
    %c0_262 = arith.constant 0 : index
    %c0_263 = arith.constant 0 : index
    %672 = vector.load %arg9[%c0_262, %c0_263] : memref<8x2xf32, #tpu.memory_space<vmem>>, vector<8x2xf32>
    tpu.vector_store %arg9[%c0_262, %c0_263], %671 {strides = array<i32>} : memref<8x2xf32, #tpu.memory_space<vmem>>, vector<8x2xf32>,
    return
  }
  func.func @transform_0(%arg0: i32) -> (i32, i32) {
    %c0_i32 = arith.constant 0 : i32
    %c0_i32_0 = arith.constant 0 : i32
    return %arg0, %c0_i32 : i32, i32
  }
  func.func @transform_1(%arg0: i32) -> (i32, i32) {
    %c0_i32 = arith.constant 0 : i32
    %c0_i32_0 = arith.constant 0 : i32
    %c0_i32_1 = arith.constant 0 : i32
    return %c0_i32, %c0_i32_0 : i32, i32
  }
  func.func @transform_2(%arg0: i32) -> (i32, i32) {
    %c0_i32 = arith.constant 0 : i32
    %c0_i32_0 = arith.constant 0 : i32
    %c0_i32_1 = arith.constant 0 : i32
    return %c0_i32, %c0_i32_0 : i32, i32
  }
  func.func @transform_3(%arg0: i32) -> (i32, i32) {
    %c0_i32 = arith.constant 0 : i32
    %c0_i32_0 = arith.constant 0 : i32
    %c0_i32_1 = arith.constant 0 : i32
    return %c0_i32, %c0_i32_0 : i32, i32
  }
  func.func @transform_4(%arg0: i32) -> (i32, i32) {
    %c0_i32 = arith.constant 0 : i32
    %c0_i32_0 = arith.constant 0 : i32
    %c0_i32_1 = arith.constant 0 : i32
    return %c0_i32, %c0_i32_0 : i32, i32
  }
  func.func @transform_5(%arg0: i32) -> (i32, i32) {
    %c0_i32 = arith.constant 0 : i32
    %c0_i32_0 = arith.constant 0 : i32
    %c0_i32_1 = arith.constant 0 : i32
    return %c0_i32, %c0_i32_0 : i32, i32
  }
  func.func @transform_6(%arg0: i32) -> (i32, i32) {
    %c0_i32 = arith.constant 0 : i32
    %c0_i32_0 = arith.constant 0 : i32
    %c0_i32_1 = arith.constant 0 : i32
    return %c0_i32, %c0_i32_0 : i32, i32
  }
  func.func @transform_7(%arg0: i32) -> (i32, i32, i32) {
    %c0_i32 = arith.constant 0 : i32
    %c0_i32_0 = arith.constant 0 : i32
    %c0_i32_1 = arith.constant 0 : i32
    %c0_i32_2 = arith.constant 0 : i32
    return %c0_i32, %c0_i32_0, %c0_i32_1 : i32, i32, i32
  }
  func.func @transform_8(%arg0: i32) -> (i32, i32) {
    %c0_i32 = arith.constant 0 : i32
    %c0_i32_0 = arith.constant 0 : i32
    return %arg0, %c0_i32 : i32, i32
  }
}

</mosaic_0001>

<bundles_post_ra>
// kernel: tpu_custom_call.1
= control target key start
LH: loop header
LB: loop body
LE: loop exit
PB: predicated region body
PF: predicated region fallthrough
CT: control target
= control target key end

     0   :  { %13 = vsyncpa [#allocation3], 0  ;;  %s17013_s0 = inlined_call_operand.hbm [shape: f32[8,2000], index: 0, kind: input, shape index: {}]   ;;  %s17014_s1 = inlined_call_operand.hbm [shape: bf16[2000,1024], index: 1, kind: input, shape index: {}]   ;;  %s17015_s2 = inlined_call_operand.hbm [shape: f32[1,1024], index: 2, kind: input, shape index: {}]   ;;  %s17016_s3 = inlined_call_operand.hbm [shape: bf16[1024,1024], index: 3, kind: input, shape index: {}]   ;;  %s17017_s4 = inlined_call_operand.hbm [shape: f32[1,1024], index: 4, kind: input, shape index: {}]   ;;  %s17018_s5 = inlined_call_operand.vmem [shape: bf16[1024,10], index: 5, kind: input, shape index: {}]   ;;  %s17019_s6 = inlined_call_operand.hbm [shape: f32[1,10], index: 6, kind: input, shape index: {}]   ;;  %s17020_s7 = inlined_call_operand.vmem [shape: f32[14,10,2], index: 7, kind: input, shape index: {}]   ;;  %s17021_s8 = inlined_call_operand.vmem [shape: f32[8,2], index: 8, kind: output, shape index: {}]  }
   0x1   :  { %14 = vsyncpa [#allocation5], 0 }
   0x2   :  { %15 = vsyncpa [#allocation8], 0 }
   0x3   :  { %16 = vsyncpa [#allocation11], 0  ;;  %s15985_s27 = smov [#allocation4]   ;;  %s15845_s9 = scalar_lea.hbm %s17014_s1, 128000 }
   0x4   :  { %s32_s28 = sshll.u32 %s15985_s27, 4  ;;  %p15846_p0 = scmp.ne.s32.totalorder %s17014_s1, %s15845_s9  ;;  %s33_s28 = int_to_ptr.vmem [resolvable:$true] %s32_s28 }
   0x5   :  { %p15849_p1 = scmp.lt.u32.totalorder %s15845_s9, %s17014_s1 }
   0x7   :  { %p15851_p2 = pnand %p15849_p1, %p15846_p0 }
   0x9   :  { %15854 = shalt.err (!%p15851_p2)
}
   0xa   :  { %s15855_s14 = scalar_lea.vmem %s33_s28, 128000  ;;  %p15860_p4 = scmp.lt.s32.totalorder %s33_s28, %s33_s28 }
   0xb   :  { %p15856_p3 = scmp.ne.s32.totalorder %s33_s28, %s15855_s14  ;;  %p15861_p5 = scmp.lt.s32.totalorder %s15855_s14, %s15855_s14 }
   0xd   :  { %p15862_p6 = por %p15861_p5, %p15860_p4 }
   0xf   :  { %p15863_p7 = pnand %p15862_p6, %p15856_p3 }
  0x11   :  { %15866 = shalt.err (!%p15863_p7)
}
  0x12   :  { %s15986_s15 = smov 512   ;;  %s15987_s16 = smov 32  }
  0x13   :  { %38 = dma.hbm_to_vmem [thread:$0]  %s17014_s1, 128000, %s33_s28, [#allocation5], %s15986_s15, %s15986_s15, %s15987_s16  }
  0x14   :  { %s15988_s19 = smov [#allocation7]   ;;  %s15989_s21 = smov [#allocation2]  }
  0x15   :  { %s54_s20 = sshll.u32 %s15988_s19, 4  ;;  %s23_s22 = sshll.u32 %s15989_s21, 4  ;;  %s55_s20 = int_to_ptr.vmem [resolvable:$true] %s54_s20  ;;  %s24_s22 = int_to_ptr.vmem [resolvable:$true] %s23_s22 }
  0x16   :  { %s15867_s25 = scalar_lea.hbm %s17016_s3, 65536 }
  0x17   :  { %p15868_p8 = scmp.ne.s32.totalorder %s17016_s3, %s15867_s25  ;;  %p15871_p9 = scmp.lt.u32.totalorder %s15867_s25, %s17016_s3 }
  0x19   :  { %p15873_p10 = pnand %p15871_p9, %p15868_p8 }
  0x1b   :  { %15876 = shalt.err (!%p15873_p10)
}
  0x1c   :  { %s15877_s1 = scalar_lea.vmem %s55_s20, 65536  ;;  %p15882_p12 = scmp.lt.s32.totalorder %s55_s20, %s55_s20 }
  0x1d   :  { %p15878_p11 = scmp.ne.s32.totalorder %s55_s20, %s15877_s1  ;;  %p15883_p13 = scmp.lt.s32.totalorder %s15877_s1, %s15877_s1 }
  0x1f   :  { %p15884_p0 = por %p15883_p13, %p15882_p12 }
  0x21   :  { %p15885_p1 = pnand %p15884_p0, %p15878_p11 }
  0x23   :  { %15888 = shalt.err (!%p15885_p1)
}
  0x24   :  { %60 = dma.hbm_to_vmem [thread:$0]  %s17016_s3, 65536, %s55_s20, [#allocation8], %s15986_s15, %s15986_s15, %s15987_s16  }
  0x25   :  { %s15889_s12 = scalar_lea.hbm %s17013_s0, 2048 }
  0x26   :  { %p15890_p2 = scmp.ne.s32.totalorder %s17013_s0, %s15889_s12  ;;  %p15893_p3 = scmp.lt.u32.totalorder %s15889_s12, %s17013_s0 }
  0x28   :  { %p15895_p4 = pnand %p15893_p3, %p15890_p2 }
  0x2a   :  { %15898 = shalt.err (!%p15895_p4)
}
  0x2b   :  { %s15899_s19 = scalar_lea.vmem %s24_s22, 2048  ;;  %p15904_p6 = scmp.lt.s32.totalorder %s24_s22, %s24_s22 }
  0x2c   :  { %p15900_p5 = scmp.ne.s32.totalorder %s24_s22, %s15899_s19  ;;  %p15905_p7 = scmp.lt.s32.totalorder %s15899_s19, %s15899_s19 }
  0x2e   :  { %p15906_p8 = por %p15905_p7, %p15904_p6 }
  0x30   :  { %p15907_p9 = pnand %p15906_p8, %p15900_p5 }
  0x32   :  { %15910 = shalt.err (!%p15907_p9)
}
  0x33   :  { %26 = dma.hbm_to_vmem [thread:$0]  %s17013_s0, 2048, %s24_s22, [#allocation3]  }
  0x34   :  { %s15990_s16 = smov [#allocation6]   ;;  %s15991_s21 = smov [#allocation9]  }
  0x35   :  { %s45_s20 = sshll.u32 %s15990_s16, 4  ;;  %s67_s23 = sshll.u32 %s15991_s21, 4  ;;  %s46_s20 = int_to_ptr.vmem [resolvable:$true] %s45_s20  ;;  %s68_s23 = int_to_ptr.vmem [resolvable:$true] %s67_s23 }
  0x36   :  { %s15911_s26 = scalar_lea.hbm %s17015_s2, 128 }
  0x37   :  { %p15912_p10 = scmp.ne.s32.totalorder %s17015_s2, %s15911_s26  ;;  %p15915_p11 = scmp.lt.u32.totalorder %s15911_s26, %s17015_s2 }
  0x39   :  { %p15917_p12 = pnand %p15915_p11, %p15912_p10 }
  0x3b   :  { %15920 = shalt.err (!%p15917_p12)
}
  0x3c   :  { %s15921_s0 = scalar_lea.vmem %s46_s20, 128  ;;  %p15926_p0 = scmp.lt.s32.totalorder %s46_s20, %s46_s20 }
  0x3d   :  { %p15922_p13 = scmp.ne.s32.totalorder %s46_s20, %s15921_s0  ;;  %p15927_p1 = scmp.lt.s32.totalorder %s15921_s0, %s15921_s0 }
  0x3f   :  { %p15928_p2 = por %p15927_p1, %p15926_p0 }
  0x41   :  { %p15929_p3 = pnand %p15928_p2, %p15922_p13 }
  0x43   :  { %15932 = shalt.err (!%p15929_p3)
}
  0x44   :  { %48 = dma.hbm_to_vmem [thread:$0]  %s17015_s2, 128, %s46_s20, [#allocation5]  }
  0x45   :  { %s15933_s11 = scalar_lea.hbm %s17017_s4, 128 }
  0x46   :  { %p15934_p4 = scmp.ne.s32.totalorder %s17017_s4, %s15933_s11  ;;  %p15937_p5 = scmp.lt.u32.totalorder %s15933_s11, %s17017_s4 }
  0x48   :  { %p15939_p6 = pnand %p15937_p5, %p15934_p4 }
  0x4a   :  { %15942 = shalt.err (!%p15939_p6)
}
  0x4b   :  { %s15943_s18 = scalar_lea.vmem %s68_s23, 128  ;;  %p15948_p8 = scmp.lt.s32.totalorder %s68_s23, %s68_s23 }
  0x4c   :  { %p15944_p7 = scmp.ne.s32.totalorder %s68_s23, %s15943_s18  ;;  %p15949_p9 = scmp.lt.s32.totalorder %s15943_s18, %s15943_s18 }
  0x4e   :  { %p15950_p10 = por %p15949_p9, %p15948_p8 }
  0x50   :  { %p15951_p11 = pnand %p15950_p10, %p15944_p7 }
  0x52   :  { %15954 = shalt.err (!%p15951_p11)
}
  0x53   :  { %70 = dma.hbm_to_vmem [thread:$0]  %s17017_s4, 128, %s68_s23, [#allocation8]  }
  0x54   :  { %s15992_s3 = smov [#allocation10]   ;;  %s15955_s21 = scalar_lea.hbm %s17019_s6, 16 }
  0x55   :  { %s79_s15 = sshll.u32 %s15992_s3, 4  ;;  %p15956_p12 = scmp.ne.s32.totalorder %s17019_s6, %s15955_s21  ;;  %s80_s15 = int_to_ptr.vmem [resolvable:$true] %s79_s15 }
  0x56   :  { %p15959_p13 = scmp.lt.u32.totalorder %s15955_s21, %s17019_s6 }
  0x58   :  { %p15961_p0 = pnand %p15959_p13, %p15956_p12 }
  0x5a   :  { %15964 = shalt.err (!%p15961_p0)
}
  0x5b   :  { %s15965_s29 = scalar_lea.vmem %s80_s15, 16  ;;  %s15969_s4 = scalar_lea.vmem %s80_s15, 32 }
  0x5c   :  { %p15966_p1 = scmp.ne.s32.totalorder %s80_s15, %s15965_s29  ;;  %p15970_p2 = scmp.lt.s32.totalorder %s80_s15, %s80_s15 }
  0x5d   :  { %p15971_p3 = scmp.lt.s32.totalorder %s15969_s4, %s15965_s29 }
  0x5f   :  { %p15972_p4 = por %p15971_p3, %p15970_p2 }
  0x61   :  { %p15973_p5 = pnand %p15972_p4, %p15966_p1 }
  0x63   :  { %15976 = shalt.err (!%p15973_p5)
}
  0x64   :  { %82 = dma.hbm_to_vmem [thread:$0]  %s17019_s6, 16, %s80_s15, [#allocation11]  }
  0x65   :  { %15977 = dma.done.wait [#allocation3], 2048  }
  0x66   :  { %15978 = vsyncadd [#allocation3], 4294965248 }
  0x67   :  { %15979 = dma.done.wait [#allocation5], 128128  }
  0x68   :  { %15980 = vsyncadd [#allocation5], 4294839168 }
  0x69   :  { %15981 = dma.done.wait [#allocation8], 65664  }
  0x6a   :  { %15982 = vsyncadd [#allocation8], 4294901632 }
  0x6b   :  { %15983 = dma.done.wait [#allocation11], 16  }
  0x6c   :  { %15984 = vsyncadd [#allocation11], 4294967280  ;;  %v136_v0 = vld [vmem:[#allocation4] sm:$0xff]  ;;  %v137_v2 = vld [vmem:[#allocation4 + $0x8] sm:$0xff]  ;;  %vm6178_vm0 = vcmask 654336   ;;  %vm12413_vm1 = vcmask 1041408  }
  0x6d   :  { %v140_v1 = vld [vmem:[#allocation4 + $0x20] sm:$0xff]  ;;  %v141_v4 = vld [vmem:[#allocation4 + $0x28] sm:$0xff]  ;;  %vm15994_vm2 = vmmov 1   ;;  %vm15995_vm4 = vmmov 0  }
  0x6e   :  { %v13528_v3 = vcombine.high %v136_v0, %v140_v1  ;;  %v13527_v5 = vcombine.low %v136_v0, %v140_v1  ;;  %v144_v6 = vld [vmem:[#allocation4 + $0x40] sm:$0xff]  ;;  %v13530_v8 = vcombine.high %v137_v2, %v141_v4  ;;  %v13529_v9 = vcombine.low %v137_v2, %v141_v4  ;;  %v145_v11 = vld [vmem:[#allocation4 + $0x48] sm:$0xff]  ;;  %vm16597_vm3 = vmpackc.low %vm12413_vm1, %vm15994_vm2 }
  0x6f   :  { %v148_v7 = vld [vmem:[#allocation4 + $0x60] sm:$0xff]  ;;  %v149_v12 = vld [vmem:[#allocation4 + $0x68] sm:$0xff]  ;;  %vm12409_vm1 = vcmask 80896  }
  0x70   :  { %v13536_v10 = vcombine.high %v144_v6, %v148_v7  ;;  %v152_v13 = vld [vmem:[#allocation4 + $0x80] sm:$0xff]  ;;  %6182 = vmatprep.subr.bf16.mxu0 %v13528_v3  ;;  %v13538_v14 = vcombine.high %v145_v11, %v149_v12  ;;  %v153_v16 = vld [vmem:[#allocation4 + $0x88] sm:$0xff]  ;;  %6510 = vmatprep.subr.bf16.mxu1 %v13530_v8  ;;  %v13535_v18 = vcombine.low %v144_v6, %v148_v7 }
  0x71   :  { %v156_v15 = vld [vmem:[#allocation4 + $0xa0] sm:$0xff]  ;;  %v157_v17 = vld [vmem:[#allocation4 + $0xa8] sm:$0xff]  ;;  %6183 = vmatpush1.bf16.msra.mxu0 %v13527_v5  ;;  %6511 = vmatpush1.bf16.msra.mxu1 %v13529_v9  ;;  %v13537_v19 = vcombine.low %v145_v11, %v149_v12 }
  0x72   :  { %6184 = vmatprep.subr.bf16.mxu0 %v13536_v10  ;;  %v13544_v20 = vcombine.high %v152_v13, %v156_v15  ;;  %6512 = vmatprep.subr.bf16.mxu1 %v13538_v14  ;;  %v13546_v21 = vcombine.high %v153_v16, %v157_v17  ;;  %v160_v22 = vld [vmem:[#allocation4 + $0xc0] sm:$0xff]  ;;  %v161_v24 = vld [vmem:[#allocation4 + $0xc8] sm:$0xff]  ;;  %v13543_v26 = vcombine.low %v152_v13, %v156_v15 }
  0x73   :  { %v164_v23 = vld [vmem:[#allocation4 + $0xe0] sm:$0xff]  ;;  %v165_v25 = vld [vmem:[#allocation4 + $0xe8] sm:$0xff]  ;;  %v13545_v27 = vcombine.low %v153_v16, %v157_v17 }
  0x74   :  { %v13552_v28 = vcombine.high %v160_v22, %v164_v23  ;;  %v13554_v29 = vcombine.high %v161_v24, %v165_v25  ;;  %v168_v30 = vld [vmem:[#allocation4 + $0x100] sm:$0xff]  ;;  %v169_v32 = vld [vmem:[#allocation4 + $0x108] sm:$0xff]  ;;  %v13551_v34 = vcombine.low %v160_v22, %v164_v23  ;;  %v13553_v35 = vcombine.low %v161_v24, %v165_v25 }
  0x75   :  { %6185 = vmatpush1.bf16.msra.mxu0 %v13535_v18  ;;  %6513 = vmatpush1.bf16.msra.mxu1 %v13537_v19  ;;  %v172_v31 = vld [vmem:[#allocation4 + $0x120] sm:$0xff]  ;;  %v173_v33 = vld [vmem:[#allocation4 + $0x128] sm:$0xff] }
  0x76   :  { %6186 = vmatprep.subr.bf16.mxu0 %v13544_v20  ;;  %6514 = vmatprep.subr.bf16.mxu1 %v13546_v21  ;;  %v13560_v36 = vcombine.high %v168_v30, %v172_v31  ;;  %v13562_v37 = vcombine.high %v169_v32, %v173_v33  ;;  %v176_v38 = vld [vmem:[#allocation4 + $0x140] sm:$0xff]  ;;  %v177_v40 = vld [vmem:[#allocation4 + $0x148] sm:$0xff]  ;;  %v13559_v42 = vcombine.low %v168_v30, %v172_v31 }
  0x77   :  { %v180_v39 = vld [vmem:[#allocation4 + $0x160] sm:$0xff]  ;;  %v181_v41 = vld [vmem:[#allocation4 + $0x168] sm:$0xff]  ;;  %v13561_v43 = vcombine.low %v169_v32, %v173_v33 }
  0x78   :  { %v13568_v44 = vcombine.high %v176_v38, %v180_v39  ;;  %v13570_v45 = vcombine.high %v177_v40, %v181_v41  ;;  %v184_v46 = vld [vmem:[#allocation4 + $0x180] sm:$0xff]  ;;  %v185_v48 = vld [vmem:[#allocation4 + $0x188] sm:$0xff]  ;;  %v13567_v50 = vcombine.low %v176_v38, %v180_v39  ;;  %v13569_v51 = vcombine.low %v177_v40, %v181_v41 }
  0x79   :  { %6187 = vmatpush1.bf16.msra.mxu0 %v13543_v26  ;;  %6515 = vmatpush1.bf16.msra.mxu1 %v13545_v27  ;;  %v188_v47 = vld [vmem:[#allocation4 + $0x1a0] sm:$0xff]  ;;  %v189_v49 = vld [vmem:[#allocation4 + $0x1a8] sm:$0xff] }
  0x7a   :  { %6188 = vmatprep.subr.bf16.mxu0 %v13552_v28  ;;  %6516 = vmatprep.subr.bf16.mxu1 %v13554_v29  ;;  %v13576_v52 = vcombine.high %v184_v46, %v188_v47  ;;  %v105_v53 = vld [vmem:[#allocation2 + $0x8] sm:$0xff]  ;;  %v13578_v54 = vcombine.high %v185_v48, %v189_v49  ;;  %v192_v55 = vld [vmem:[#allocation4 + $0x1c0] sm:$0xff]  ;;  %v13575_v60 = vcombine.low %v184_v46, %v188_v47 }
  0x7b   :  { %v196_v56 = vld [vmem:[#allocation4 + $0x1e0] sm:$0xff]  ;;  %v16114_v57 = vpack.c.bf16 %v105_v53, %v105_v53  ;;  %v193_v58 = vld [vmem:[#allocation4 + $0x1c8] sm:$0xff]  ;;  %v13577_v61 = vcombine.low %v185_v48, %v189_v49 }
  0x7c   :  { %v197_v59 = vld [vmem:[#allocation4 + $0x1e8] sm:$0xff]  ;;  %v13584_v62 = vcombine.high %v192_v55, %v196_v56  ;;  %v200_v0 = vld [vmem:[#allocation4 + $0x200] sm:$0xff]  ;;  %v13583_v4 = vcombine.low %v192_v55, %v196_v56 }
  0x7d   :  { %6189 = vmatpush1.bf16.msra.mxu0 %v13551_v34  ;;  %6517 = vmatpush1.bf16.msra.mxu1 %v13553_v35  ;;  %v13586_v63 = vcombine.high %v193_v58, %v197_v59  ;;  %v204_v1 = vld [vmem:[#allocation4 + $0x220] sm:$0xff]  ;;  %v201_v2 = vld [vmem:[#allocation4 + $0x208] sm:$0xff]  ;;  %v13585_v5 = vcombine.low %v193_v58, %v197_v59 }
  0x7e   :  { %6190 = vmatprep.subr.bf16.mxu0 %v13560_v36  ;;  %6518 = vmatprep.subr.bf16.mxu1 %v13562_v37  ;;  %v205_v3 = vld [vmem:[#allocation4 + $0x228] sm:$0xff]  ;;  %v13592_v6 = vcombine.high %v200_v0, %v204_v1  ;;  %v208_v8 = vld [vmem:[#allocation4 + $0x240] sm:$0xff]  ;;  %v13591_v12 = vcombine.low %v200_v0, %v204_v1 }
  0x7f   :  { %6214 = vmatprep.mubr.bf16.mxu0 %v16114_v57  ;;  %6542 = vmatprep.mubr.bf16.mxu1 %v16114_v57  ;;  %v13594_v7 = vcombine.high %v201_v2, %v205_v3  ;;  %v212_v9 = vld [vmem:[#allocation4 + $0x260] sm:$0xff]  ;;  %v209_v10 = vld [vmem:[#allocation4 + $0x248] sm:$0xff]  ;;  %v13593_v13 = vcombine.low %v201_v2, %v205_v3 }
  0x80   :  { %v213_v11 = vld [vmem:[#allocation4 + $0x268] sm:$0xff]  ;;  %v13600_v14 = vcombine.high %v208_v8, %v212_v9  ;;  %v216_v16 = vld [vmem:[#allocation4 + $0x280] sm:$0xff]  ;;  %v13599_v20 = vcombine.low %v208_v8, %v212_v9 }
  0x81   :  { %6191 = vmatpush1.bf16.msra.mxu0 %v13559_v42  ;;  %6519 = vmatpush1.bf16.msra.mxu1 %v13561_v43  ;;  %v13602_v15 = vcombine.high %v209_v10, %v213_v11  ;;  %v220_v17 = vld [vmem:[#allocation4 + $0x2a0] sm:$0xff]  ;;  %v217_v18 = vld [vmem:[#allocation4 + $0x288] sm:$0xff]  ;;  %v13601_v21 = vcombine.low %v209_v10, %v213_v11 }
  0x82   :  { %6192 = vmatprep.subr.bf16.mxu0 %v13568_v44  ;;  %6520 = vmatprep.subr.bf16.mxu1 %v13570_v45  ;;  %v221_v19 = vld [vmem:[#allocation4 + $0x2a8] sm:$0xff]  ;;  %v13608_v22 = vcombine.high %v216_v16, %v220_v17  ;;  %v224_v24 = vld [vmem:[#allocation4 + $0x2c0] sm:$0xff]  ;;  %v13607_v28 = vcombine.low %v216_v16, %v220_v17 }
  0x83   :  { %v13610_v23 = vcombine.high %v217_v18, %v221_v19  ;;  %v228_v25 = vld [vmem:[#allocation4 + $0x2e0] sm:$0xff]  ;;  %v225_v26 = vld [vmem:[#allocation4 + $0x2c8] sm:$0xff]  ;;  %v13609_v29 = vcombine.low %v217_v18, %v221_v19 }
  0x84   :  { %v229_v27 = vld [vmem:[#allocation4 + $0x2e8] sm:$0xff]  ;;  %v13616_v30 = vcombine.high %v224_v24, %v228_v25  ;;  %v232_v32 = vld [vmem:[#allocation4 + $0x300] sm:$0xff]  ;;  %v13615_v36 = vcombine.low %v224_v24, %v228_v25 }
  0x85   :  { %6193 = vmatpush1.bf16.msra.mxu0 %v13567_v50  ;;  %6521 = vmatpush1.bf16.msra.mxu1 %v13569_v51  ;;  %v13618_v31 = vcombine.high %v225_v26, %v229_v27  ;;  %v236_v33 = vld [vmem:[#allocation4 + $0x320] sm:$0xff]  ;;  %v233_v34 = vld [vmem:[#allocation4 + $0x308] sm:$0xff]  ;;  %v13617_v37 = vcombine.low %v225_v26, %v229_v27 }
  0x86   :  { %6194 = vmatprep.subr.bf16.mxu0 %v13576_v52  ;;  %6522 = vmatprep.subr.bf16.mxu1 %v13578_v54  ;;  %v237_v35 = vld [vmem:[#allocation4 + $0x328] sm:$0xff]  ;;  %v13624_v38 = vcombine.high %v232_v32, %v236_v33  ;;  %v240_v40 = vld [vmem:[#allocation4 + $0x340] sm:$0xff]  ;;  %v13623_v44 = vcombine.low %v232_v32, %v236_v33 }
  0x87   :  { %v13626_v39 = vcombine.high %v233_v34, %v237_v35  ;;  %v244_v41 = vld [vmem:[#allocation4 + $0x360] sm:$0xff]  ;;  %v241_v42 = vld [vmem:[#allocation4 + $0x348] sm:$0xff]  ;;  %v13625_v45 = vcombine.low %v233_v34, %v237_v35 }
  0x88   :  { %v245_v43 = vld [vmem:[#allocation4 + $0x368] sm:$0xff]  ;;  %v13632_v46 = vcombine.high %v240_v40, %v244_v41  ;;  %v248_v48 = vld [vmem:[#allocation4 + $0x380] sm:$0xff]  ;;  %v13631_v52 = vcombine.low %v240_v40, %v244_v41 }
  0x89   :  { %6195 = vmatpush1.bf16.msra.mxu0 %v13575_v60  ;;  %6523 = vmatpush1.bf16.msra.mxu1 %v13577_v61  ;;  %v13634_v47 = vcombine.high %v241_v42, %v245_v43  ;;  %v252_v49 = vld [vmem:[#allocation4 + $0x3a0] sm:$0xff]  ;;  %v249_v50 = vld [vmem:[#allocation4 + $0x388] sm:$0xff]  ;;  %v13633_v53 = vcombine.low %v241_v42, %v245_v43 }
  0x8a   :  { %6196 = vmatprep.subr.bf16.mxu0 %v13584_v62  ;;  %6524 = vmatprep.subr.bf16.mxu1 %v13586_v63  ;;  %v253_v51 = vld [vmem:[#allocation4 + $0x3a8] sm:$0xff]  ;;  %v13640_v54 = vcombine.high %v248_v48, %v252_v49  ;;  %v256_v56 = vld [vmem:[#allocation4 + $0x3c0] sm:$0xff]  ;;  %v13639_v61 = vcombine.low %v248_v48, %v252_v49 }
  0x8b   :  { %v13642_v55 = vcombine.high %v249_v50, %v253_v51  ;;  %v260_v58 = vld [vmem:[#allocation4 + $0x3e0] sm:$0xff]  ;;  %v257_v59 = vld [vmem:[#allocation4 + $0x3c8] sm:$0xff]  ;;  %v13641_v62 = vcombine.low %v249_v50, %v253_v51 }
  0x8c   :  { %v261_v60 = vld [vmem:[#allocation4 + $0x3e8] sm:$0xff]  ;;  %v13648_v63 = vcombine.high %v256_v56, %v260_v58  ;;  %v264_v1 = vld [vmem:[#allocation4 + $0x400] sm:$0xff] }
  0x8d   :  { %6197 = vmatpush1.bf16.msra.mxu0 %v13583_v4  ;;  %6525 = vmatpush1.bf16.msra.mxu1 %v13585_v5  ;;  %v13650_v0 = vcombine.high %v257_v59, %v261_v60  ;;  %v268_v2 = vld [vmem:[#allocation4 + $0x420] sm:$0xff]  ;;  %v265_v3 = vld [vmem:[#allocation4 + $0x408] sm:$0xff]  ;;  %v13647_v5 = vcombine.low %v256_v56, %v260_v58 }
  0x8e   :  { %6198 = vmatprep.subr.bf16.mxu0 %v13592_v6  ;;  %6526 = vmatprep.subr.bf16.mxu1 %v13594_v7  ;;  %v269_v4 = vld [vmem:[#allocation4 + $0x428] sm:$0xff]  ;;  %v104_v6 = vld [vmem:[#allocation2] sm:$0xff]  ;;  %v13649_v7 = vcombine.low %v257_v59, %v261_v60  ;;  %v13656_v8 = vcombine.high %v264_v1, %v268_v2  ;;  %v13655_v16 = vcombine.low %v264_v1, %v268_v2 }
  0x8f   :  { %v13658_v9 = vcombine.high %v265_v3, %v269_v4  ;;  %v272_v10 = vld [vmem:[#allocation4 + $0x440] sm:$0xff]  ;;  %v13657_v17 = vcombine.low %v265_v3, %v269_v4  ;;  %v285_v24 = vld [vmem:[#allocation4 + $0x4a8] sm:$0xff] }
  0x90   :  { %v276_v11 = vld [vmem:[#allocation4 + $0x460] sm:$0xff]  ;;  %v293_v32 = vld [vmem:[#allocation4 + $0x4e8] sm:$0xff] }
  0x91   :  { %6199 = vmatpush1.bf16.msra.mxu0 %v13591_v12  ;;  %6527 = vmatpush1.bf16.msra.mxu1 %v13593_v13  ;;  %v16118_v12 = vpack.c.bf16 %v104_v6, %v104_v6  ;;  %v273_v13 = vld [vmem:[#allocation4 + $0x448] sm:$0xff]  ;;  %v13664_v18 = vcombine.high %v272_v10, %v276_v11  ;;  %v13663_v25 = vcombine.low %v272_v10, %v276_v11  ;;  %v332_v6 = vld [vmem:[#allocation4 + $0x620] sm:$0xff] }
  0x92   :  { %6200 = vmatprep.subr.bf16.mxu0 %v13600_v14  ;;  %6528 = vmatprep.subr.bf16.mxu1 %v13602_v15  ;;  %v277_v14 = vld [vmem:[#allocation4 + $0x468] sm:$0xff]  ;;  %v107_v15 = vld [vmem:[#allocation2 + $0x18] sm:$0xff] }
  0x93   :  { %v13666_v19 = vcombine.high %v273_v13, %v277_v14  ;;  %v13665_v26 = vcombine.low %v273_v13, %v277_v14  ;;  %v301_v40 = vld [vmem:[#allocation4 + $0x528] sm:$0xff]  ;;  %v336_v14 = vld [vmem:[#allocation4 + $0x640] sm:$0xff] }
  0x94   :  { %v309_v48 = vld [vmem:[#allocation4 + $0x568] sm:$0xff] }
  0x95   :  { %6201 = vmatpush1.bf16.msra.mxu0 %v13599_v20  ;;  %6529 = vmatpush1.bf16.msra.mxu1 %v13601_v21  ;;  %v280_v20 = vld [vmem:[#allocation4 + $0x480] sm:$0xff]  ;;  %v317_v56 = vld [vmem:[#allocation4 + $0x5a8] sm:$0xff] }
  0x96   :  { %6202 = vmatprep.subr.bf16.mxu0 %v13608_v22  ;;  %6530 = vmatprep.subr.bf16.mxu1 %v13610_v23  ;;  %v284_v21 = vld [vmem:[#allocation4 + $0x4a0] sm:$0xff]  ;;  %v281_v22 = vld [vmem:[#allocation4 + $0x488] sm:$0xff]  ;;  %v16120_v23 = vpack.c.bf16 %v107_v15, %v107_v15 }
  0x97   :  { %v13672_v27 = vcombine.high %v280_v20, %v284_v21  ;;  %v13671_v33 = vcombine.low %v280_v20, %v284_v21  ;;  %v13673_v34 = vcombine.low %v281_v22, %v285_v24  ;;  %v325_v1 = vld [vmem:[#allocation4 + $0x5e8] sm:$0xff]  ;;  %v340_v15 = vld [vmem:[#allocation4 + $0x660] sm:$0xff] }
  0x98   :  { %v13728_v21 = vcombine.high %v336_v14, %v340_v15 }
  0x99   :  { %6203 = vmatpush1.bf16.msra.mxu0 %v13607_v28  ;;  %6531 = vmatpush1.bf16.msra.mxu1 %v13609_v29  ;;  %v288_v28 = vld [vmem:[#allocation4 + $0x4c0] sm:$0xff] }
  0x9a   :  { %6204 = vmatprep.subr.bf16.mxu0 %v13616_v30  ;;  %6532 = vmatprep.subr.bf16.mxu1 %v13618_v31  ;;  %v292_v29 = vld [vmem:[#allocation4 + $0x4e0] sm:$0xff]  ;;  %v289_v30 = vld [vmem:[#allocation4 + $0x4c8] sm:$0xff]  ;;  %v13674_v31 = vcombine.high %v281_v22, %v285_v24 }
  0x9b   :  { %v13680_v35 = vcombine.high %v288_v28, %v292_v29  ;;  %v13679_v41 = vcombine.low %v288_v28, %v292_v29  ;;  %v13681_v42 = vcombine.low %v289_v30, %v293_v32  ;;  %v344_v22 = vld [vmem:[#allocation4 + $0x680] sm:$0xff]  ;;  %v13727_v28 = vcombine.low %v336_v14, %v340_v15  ;;  %v106_v14 = vld [vmem:[#allocation2 + $0x10] sm:$0xff] }
  0x9c   :  { %v348_v24 = vld [vmem:[#allocation4 + $0x6a0] sm:$0xff] }
  0x9d   :  { %6205 = vmatpush1.bf16.msra.mxu0 %v13615_v36  ;;  %6533 = vmatpush1.bf16.msra.mxu1 %v13617_v37  ;;  %v296_v36 = vld [vmem:[#allocation4 + $0x500] sm:$0xff] }
  0x9e   :  { %6206 = vmatprep.subr.bf16.mxu0 %v13624_v38  ;;  %6534 = vmatprep.subr.bf16.mxu1 %v13626_v39  ;;  %v300_v37 = vld [vmem:[#allocation4 + $0x520] sm:$0xff]  ;;  %v297_v38 = vld [vmem:[#allocation4 + $0x508] sm:$0xff]  ;;  %v13682_v39 = vcombine.high %v289_v30, %v293_v32  ;;  %v13736_v30 = vcombine.high %v344_v22, %v348_v24 }
  0x9f   :  { %v13688_v43 = vcombine.high %v296_v36, %v300_v37  ;;  %v13687_v49 = vcombine.low %v296_v36, %v300_v37  ;;  %v13689_v50 = vcombine.low %v297_v38, %v301_v40  ;;  %v356_v32 = vld [vmem:[#allocation4 + $0x6e0] sm:$0xff]  ;;  %v13735_v36 = vcombine.low %v344_v22, %v348_v24  ;;  %v109_v24 = vld [vmem:[#allocation2 + $0x28] sm:$0xff] }
  0xa1   :  { %6207 = vmatpush1.bf16.msra.mxu0 %v13623_v44  ;;  %6535 = vmatpush1.bf16.msra.mxu1 %v13625_v45  ;;  %v304_v44 = vld [vmem:[#allocation4 + $0x540] sm:$0xff] }
  0xa2   :  { %6208 = vmatprep.subr.bf16.mxu0 %v13632_v46  ;;  %6536 = vmatprep.subr.bf16.mxu1 %v13634_v47  ;;  %v308_v45 = vld [vmem:[#allocation4 + $0x560] sm:$0xff]  ;;  %v305_v46 = vld [vmem:[#allocation4 + $0x548] sm:$0xff]  ;;  %v13690_v47 = vcombine.high %v297_v38, %v301_v40 }
  0xa3   :  { %v13696_v51 = vcombine.high %v304_v44, %v308_v45  ;;  %v13695_v58 = vcombine.low %v304_v44, %v308_v45  ;;  %v13697_v59 = vcombine.low %v305_v46, %v309_v48  ;;  %v364_v40 = vld [vmem:[#allocation4 + $0x720] sm:$0xff] }
  0xa5   :  { %6209 = vmatpush1.bf16.msra.mxu0 %v13631_v52  ;;  %6537 = vmatpush1.bf16.msra.mxu1 %v13633_v53  ;;  %v312_v52 = vld [vmem:[#allocation4 + $0x580] sm:$0xff] }
  0xa6   :  { %6210 = vmatprep.subr.bf16.mxu0 %v13640_v54  ;;  %6538 = vmatprep.subr.bf16.mxu1 %v13642_v55  ;;  %v316_v53 = vld [vmem:[#allocation4 + $0x5a0] sm:$0xff]  ;;  %v313_v54 = vld [vmem:[#allocation4 + $0x588] sm:$0xff]  ;;  %v13698_v55 = vcombine.high %v305_v46, %v309_v48 }
  0xa7   :  { %v13704_v60 = vcombine.high %v312_v52, %v316_v53  ;;  %v13703_v2 = vcombine.low %v312_v52, %v316_v53  ;;  %v13705_v3 = vcombine.low %v313_v54, %v317_v56  ;;  %v372_v48 = vld [vmem:[#allocation4 + $0x760] sm:$0xff] }
  0xa9   :  { %6211 = vmatpush1.bf16.msra.mxu0 %v13639_v61  ;;  %6539 = vmatpush1.bf16.msra.mxu1 %v13641_v62  ;;  %v320_v61 = vld [vmem:[#allocation4 + $0x5c0] sm:$0xff] }
  0xaa   :  { %6212 = vmatprep.subr.bf16.mxu0 %v13648_v63  ;;  %6540 = vmatprep.subr.bf16.mxu1 %v13650_v0  ;;  %v324_v62 = vld [vmem:[#allocation4 + $0x5e0] sm:$0xff]  ;;  %v321_v63 = vld [vmem:[#allocation4 + $0x5c8] sm:$0xff]  ;;  %v13706_v0 = vcombine.high %v313_v54, %v317_v56 }
  0xab   :  { %v13712_v4 = vcombine.high %v320_v61, %v324_v62  ;;  %v13711_v10 = vcombine.low %v320_v61, %v324_v62  ;;  %v13713_v11 = vcombine.low %v321_v63, %v325_v1  ;;  %v380_v56 = vld [vmem:[#allocation4 + $0x7a0] sm:$0xff] }
  0xad   :  { %6213 = vmatpush1.bf16.msra.mxu0 %v13647_v5  ;;  %6541 = vmatpush1.bf16.msra.mxu1 %v13649_v7  ;;  %v328_v5 = vld [vmem:[#allocation4 + $0x600] sm:$0xff]  ;;  %v329_v7 = vld [vmem:[#allocation4 + $0x608] sm:$0xff] }
  0xae   :  { %6223 = vmatprep.subr.bf16.mxu0 %v13656_v8  ;;  %6551 = vmatprep.subr.bf16.mxu1 %v13658_v9  ;;  %v13714_v8 = vcombine.high %v321_v63, %v325_v1  ;;  %v333_v9 = vld [vmem:[#allocation4 + $0x628] sm:$0xff]  ;;  %v13720_v13 = vcombine.high %v328_v5, %v332_v6  ;;  %v388_v1 = vld [vmem:[#allocation4 + $0x7e0] sm:$0xff] }
  0xaf   :  { %v13721_v20 = vcombine.low %v329_v7, %v333_v9 }
  0xb0   :  { %6215 = vmatmul.mubr.bf16.vlgmr.msra.gmra.mrb[0].mxu0 %v16118_v12  ;;  %6543 = vmatmul.mubr.bf16.vlgmr.msra.gmra.mrb[0].mxu1 %v16118_v12 }
  0xb1   :  { %6224 = vmatpush1.bf16.msra.mxu0 %v13655_v16  ;;  %6552 = vmatpush1.bf16.msra.mxu1 %v13657_v17  ;;  %v337_v16 = vld [vmem:[#allocation4 + $0x648] sm:$0xff]  ;;  %v13722_v17 = vcombine.high %v329_v7, %v333_v9  ;;  %v396_v9 = vld [vmem:[#allocation4 + $0x820] sm:$0xff] }
  0xb2   :  { %6225 = vmatprep.subr.bf16.mxu0 %v13664_v18  ;;  %6553 = vmatprep.subr.bf16.mxu1 %v13666_v19  ;;  %v341_v18 = vld [vmem:[#allocation4 + $0x668] sm:$0xff]  ;;  %v13719_v19 = vcombine.low %v328_v5, %v332_v6  ;;  %v392_v6 = vld [vmem:[#allocation4 + $0x800] sm:$0xff] }
  0xb3   :  { %6255 = vmatprep.mubr.bf16.mxu0 %v16120_v23  ;;  %6583 = vmatprep.mubr.bf16.mxu1 %v16120_v23  ;;  %v13729_v29 = vcombine.low %v337_v16, %v341_v18 }
  0xb5   :  { %6226 = vmatpush1.bf16.msra.mxu0 %v13663_v25  ;;  %6554 = vmatpush1.bf16.msra.mxu1 %v13665_v26  ;;  %v345_v25 = vld [vmem:[#allocation4 + $0x688] sm:$0xff]  ;;  %v13730_v26 = vcombine.high %v337_v16, %v341_v18  ;;  %v400_v16 = vld [vmem:[#allocation4 + $0x840] sm:$0xff]  ;;  %v13784_v18 = vcombine.high %v392_v6, %v396_v9 }
  0xb6   :  { %6227 = vmatprep.subr.bf16.mxu0 %v13672_v27  ;;  %6555 = vmatprep.subr.bf16.mxu1 %v13674_v31  ;;  %v349_v27 = vld [vmem:[#allocation4 + $0x6a8] sm:$0xff]  ;;  %v352_v31 = vld [vmem:[#allocation4 + $0x6c0] sm:$0xff] }
  0xb7   :  { %v13737_v37 = vcombine.low %v345_v25, %v349_v27  ;;  %v13744_v38 = vcombine.high %v352_v31, %v356_v32  ;;  %v13743_v44 = vcombine.low %v352_v31, %v356_v32  ;;  %v412_v31 = vld [vmem:[#allocation4 + $0x8a0] sm:$0xff]  ;;  %v409_v32 = vld [vmem:[#allocation4 + $0x888] sm:$0xff] }
  0xb9   :  { %6228 = vmatpush1.bf16.msra.mxu0 %v13671_v33  ;;  %6556 = vmatpush1.bf16.msra.mxu1 %v13673_v34  ;;  %v353_v33 = vld [vmem:[#allocation4 + $0x6c8] sm:$0xff]  ;;  %v13738_v34 = vcombine.high %v345_v25, %v349_v27  ;;  %v16126_v25 = vpack.c.bf16 %v106_v14, %v106_v14 }
  0xba   :  { %6229 = vmatprep.subr.bf16.mxu0 %v13680_v35  ;;  %6557 = vmatprep.subr.bf16.mxu1 %v13682_v39  ;;  %v357_v35 = vld [vmem:[#allocation4 + $0x6e8] sm:$0xff]  ;;  %v360_v39 = vld [vmem:[#allocation4 + $0x700] sm:$0xff] }
  0xbb   :  { %v13745_v45 = vcombine.low %v353_v33, %v357_v35  ;;  %v13752_v46 = vcombine.high %v360_v39, %v364_v40  ;;  %v13751_v52 = vcombine.low %v360_v39, %v364_v40  ;;  %v416_v39 = vld [vmem:[#allocation4 + $0x8c0] sm:$0xff] }
  0xbc   :  { %v420_v40 = vld [vmem:[#allocation4 + $0x8e0] sm:$0xff] }
  0xbd   :  { %6230 = vmatpush1.bf16.msra.mxu0 %v13679_v41  ;;  %6558 = vmatpush1.bf16.msra.mxu1 %v13681_v42  ;;  %v361_v41 = vld [vmem:[#allocation4 + $0x708] sm:$0xff]  ;;  %v13746_v42 = vcombine.high %v353_v33, %v357_v35 }
  0xbe   :  { %6231 = vmatprep.subr.bf16.mxu0 %v13688_v43  ;;  %6559 = vmatprep.subr.bf16.mxu1 %v13690_v47  ;;  %v365_v43 = vld [vmem:[#allocation4 + $0x728] sm:$0xff]  ;;  %v368_v47 = vld [vmem:[#allocation4 + $0x740] sm:$0xff] }
  0xbf   :  { %v13753_v53 = vcombine.low %v361_v41, %v365_v43  ;;  %v13760_v54 = vcombine.high %v368_v47, %v372_v48  ;;  %v13759_v61 = vcombine.low %v368_v47, %v372_v48  ;;  %v413_v33 = vld [vmem:[#allocation4 + $0x8a8] sm:$0xff]  ;;  %v424_v47 = vld [vmem:[#allocation4 + $0x900] sm:$0xff] }
  0xc0   :  { %v428_v48 = vld [vmem:[#allocation4 + $0x920] sm:$0xff] }
  0xc1   :  { %6232 = vmatpush1.bf16.msra.mxu0 %v13687_v49  ;;  %6560 = vmatpush1.bf16.msra.mxu1 %v13689_v50  ;;  %v369_v49 = vld [vmem:[#allocation4 + $0x748] sm:$0xff]  ;;  %v13754_v50 = vcombine.high %v361_v41, %v365_v43 }
  0xc2   :  { %6233 = vmatprep.subr.bf16.mxu0 %v13696_v51  ;;  %6561 = vmatprep.subr.bf16.mxu1 %v13698_v55  ;;  %v373_v51 = vld [vmem:[#allocation4 + $0x768] sm:$0xff]  ;;  %v376_v55 = vld [vmem:[#allocation4 + $0x780] sm:$0xff] }
  0xc3   :  { %v13761_v62 = vcombine.low %v369_v49, %v373_v51  ;;  %v13768_v63 = vcombine.high %v376_v55, %v380_v56  ;;  %v13767_v5 = vcombine.low %v376_v55, %v380_v56  ;;  %v417_v41 = vld [vmem:[#allocation4 + $0x8c8] sm:$0xff]  ;;  %v432_v55 = vld [vmem:[#allocation4 + $0x940] sm:$0xff] }
  0xc4   :  { %v436_v56 = vld [vmem:[#allocation4 + $0x960] sm:$0xff] }
  0xc5   :  { %6234 = vmatpush1.bf16.msra.mxu0 %v13695_v58  ;;  %6562 = vmatpush1.bf16.msra.mxu1 %v13697_v59  ;;  %v377_v58 = vld [vmem:[#allocation4 + $0x788] sm:$0xff]  ;;  %v13762_v59 = vcombine.high %v369_v49, %v373_v51  ;;  %v13807_v51 = vcombine.low %v416_v39, %v420_v40 }
  0xc6   :  { %6235 = vmatprep.subr.bf16.mxu0 %v13704_v60  ;;  %6563 = vmatprep.subr.bf16.mxu1 %v13706_v0  ;;  %v381_v60 = vld [vmem:[#allocation4 + $0x7a8] sm:$0xff]  ;;  %v384_v0 = vld [vmem:[#allocation4 + $0x7c0] sm:$0xff] }
  0xc7   :  { %v13769_v7 = vcombine.low %v377_v58, %v381_v60  ;;  %v13775_v15 = vcombine.low %v384_v0, %v388_v1  ;;  %v425_v49 = vld [vmem:[#allocation4 + $0x908] sm:$0xff] }
  0xc9   :  { %6236 = vmatpush1.bf16.msra.mxu0 %v13703_v2  ;;  %6564 = vmatpush1.bf16.msra.mxu1 %v13705_v3  ;;  %v385_v2 = vld [vmem:[#allocation4 + $0x7c8] sm:$0xff]  ;;  %v13770_v3 = vcombine.high %v377_v58, %v381_v60  ;;  %v13815_v60 = vcombine.low %v424_v47, %v428_v48 }
  0xca   :  { %6237 = vmatprep.subr.bf16.mxu0 %v13712_v4  ;;  %6565 = vmatprep.subr.bf16.mxu1 %v13714_v8  ;;  %v389_v4 = vld [vmem:[#allocation4 + $0x7e8] sm:$0xff]  ;;  %v13776_v8 = vcombine.high %v384_v0, %v388_v1  ;;  %v440_v0 = vld [vmem:[#allocation4 + $0x980] sm:$0xff] }
  0xcb   :  { %v433_v58 = vld [vmem:[#allocation4 + $0x948] sm:$0xff]  ;;  %v444_v1 = vld [vmem:[#allocation4 + $0x9a0] sm:$0xff] }
  0xcd   :  { %6238 = vmatpush1.bf16.msra.mxu0 %v13711_v10  ;;  %6566 = vmatpush1.bf16.msra.mxu1 %v13713_v11  ;;  %v393_v10 = vld [vmem:[#allocation4 + $0x808] sm:$0xff] }
  0xce   :  { %6239 = vmatprep.subr.bf16.mxu0 %v13720_v13  ;;  %6567 = vmatprep.subr.bf16.mxu1 %v13722_v17  ;;  %v397_v11 = vld [vmem:[#allocation4 + $0x828] sm:$0xff]  ;;  %v13778_v13 = vcombine.high %v385_v2, %v389_v4  ;;  %v13777_v17 = vcombine.low %v385_v2, %v389_v4  ;;  %v13823_v4 = vcombine.low %v432_v55, %v436_v56 }
  0xcf   :  { %v13786_v22 = vcombine.high %v393_v10, %v397_v11  ;;  %v13785_v27 = vcombine.low %v393_v10, %v397_v11  ;;  %v441_v2 = vld [vmem:[#allocation4 + $0x988] sm:$0xff] }
  0xd0   :  { %v449_v10 = vld [vmem:[#allocation4 + $0x9c8] sm:$0xff] }
  0xd1   :  { %6240 = vmatpush1.bf16.msra.mxu0 %v13719_v19  ;;  %6568 = vmatpush1.bf16.msra.mxu1 %v13721_v20  ;;  %v404_v19 = vld [vmem:[#allocation4 + $0x860] sm:$0xff]  ;;  %v401_v20 = vld [vmem:[#allocation4 + $0x848] sm:$0xff] }
  0xd2   :  { %6241 = vmatprep.subr.bf16.mxu0 %v13728_v21  ;;  %6569 = vmatprep.subr.bf16.mxu1 %v13730_v26  ;;  %v405_v21 = vld [vmem:[#allocation4 + $0x868] sm:$0xff]  ;;  %v13783_v26 = vcombine.low %v392_v6, %v396_v9  ;;  %v13791_v35 = vcombine.low %v400_v16, %v404_v19  ;;  %v13832_v6 = vcombine.high %v440_v0, %v444_v1  ;;  %v452_v9 = vld [vmem:[#allocation4 + $0x9e0] sm:$0xff] }
  0xd3   :  { %v453_v11 = vld [vmem:[#allocation4 + $0x9e8] sm:$0xff] }
  0xd5   :  { %6242 = vmatpush1.bf16.msra.mxu0 %v13727_v28  ;;  %6570 = vmatpush1.bf16.msra.mxu1 %v13729_v29  ;;  %v13792_v28 = vcombine.high %v400_v16, %v404_v19  ;;  %v408_v29 = vld [vmem:[#allocation4 + $0x880] sm:$0xff]  ;;  %v13842_v16 = vcombine.high %v449_v10, %v453_v11  ;;  %v457_v19 = vld [vmem:[#allocation4 + $0xa08] sm:$0xff] }
  0xd6   :  { %6243 = vmatprep.subr.bf16.mxu0 %v13736_v30  ;;  %6571 = vmatprep.subr.bf16.mxu1 %v13738_v34  ;;  %v13794_v30 = vcombine.high %v401_v20, %v405_v21  ;;  %v16128_v34 = vpack.c.bf16 %v109_v24, %v109_v24  ;;  %v13799_v43 = vcombine.low %v408_v29, %v412_v31 }
  0xd9   :  { %6244 = vmatpush1.bf16.msra.mxu0 %v13735_v36  ;;  %6572 = vmatpush1.bf16.msra.mxu1 %v13737_v37  ;;  %v13793_v36 = vcombine.low %v401_v20, %v405_v21  ;;  %v13800_v37 = vcombine.high %v408_v29, %v412_v31  ;;  %v461_v20 = vld [vmem:[#allocation4 + $0xa28] sm:$0xff] }
  0xda   :  { %6245 = vmatprep.subr.bf16.mxu0 %v13744_v38  ;;  %6573 = vmatprep.subr.bf16.mxu1 %v13746_v42  ;;  %v13802_v38 = vcombine.high %v409_v32, %v413_v33  ;;  %v421_v42 = vld [vmem:[#allocation4 + $0x8e8] sm:$0xff] }
  0xdb   :  { %v465_v29 = vld [vmem:[#allocation4 + $0xa48] sm:$0xff] }
  0xdd   :  { %6246 = vmatpush1.bf16.msra.mxu0 %v13743_v44  ;;  %6574 = vmatpush1.bf16.msra.mxu1 %v13745_v45  ;;  %v13801_v44 = vcombine.low %v409_v32, %v413_v33  ;;  %v13808_v45 = vcombine.high %v416_v39, %v420_v40  ;;  %v13849_v32 = vcombine.low %v457_v19, %v461_v20  ;;  %v477_v39 = vld [vmem:[#allocation4 + $0xaa8] sm:$0xff] }
  0xde   :  { %6247 = vmatprep.subr.bf16.mxu0 %v13752_v46  ;;  %6575 = vmatprep.subr.bf16.mxu1 %v13754_v50  ;;  %v13810_v46 = vcombine.high %v417_v41, %v421_v42  ;;  %v429_v50 = vld [vmem:[#allocation4 + $0x928] sm:$0xff] }
  0xe1   :  { %6248 = vmatpush1.bf16.msra.mxu0 %v13751_v52  ;;  %6576 = vmatpush1.bf16.msra.mxu1 %v13753_v53  ;;  %v13809_v52 = vcombine.low %v417_v41, %v421_v42  ;;  %v13816_v53 = vcombine.high %v424_v47, %v428_v48  ;;  %v485_v47 = vld [vmem:[#allocation4 + $0xae8] sm:$0xff] }
  0xe2   :  { %6249 = vmatprep.subr.bf16.mxu0 %v13760_v54  ;;  %6577 = vmatprep.subr.bf16.mxu1 %v13762_v59  ;;  %v13818_v54 = vcombine.high %v425_v49, %v429_v50  ;;  %v437_v59 = vld [vmem:[#allocation4 + $0x968] sm:$0xff] }
  0xe5   :  { %6250 = vmatpush1.bf16.msra.mxu0 %v13759_v61  ;;  %6578 = vmatpush1.bf16.msra.mxu1 %v13761_v62  ;;  %v13817_v61 = vcombine.low %v425_v49, %v429_v50  ;;  %v13824_v62 = vcombine.high %v432_v55, %v436_v56  ;;  %v493_v55 = vld [vmem:[#allocation4 + $0xb28] sm:$0xff] }
  0xe6   :  { %6251 = vmatprep.subr.bf16.mxu0 %v13768_v63  ;;  %6579 = vmatprep.subr.bf16.mxu1 %v13770_v3  ;;  %v13826_v63 = vcombine.high %v433_v58, %v437_v59  ;;  %v445_v3 = vld [vmem:[#allocation4 + $0x9a8] sm:$0xff] }
  0xe7   :  { %v13833_v14 = vcombine.low %v441_v2, %v445_v3 }
  0xe9   :  { %6252 = vmatpush1.bf16.msra.mxu0 %v13767_v5  ;;  %6580 = vmatpush1.bf16.msra.mxu1 %v13769_v7  ;;  %v13825_v5 = vcombine.low %v433_v58, %v437_v59  ;;  %v13834_v7 = vcombine.high %v441_v2, %v445_v3 }
  0xea   :  { %6253 = vmatprep.subr.bf16.mxu0 %v13776_v8  ;;  %6581 = vmatprep.subr.bf16.mxu1 %v13778_v13  ;;  %v448_v8 = vld [vmem:[#allocation4 + $0x9c0] sm:$0xff]  ;;  %v13831_v13 = vcombine.low %v440_v0, %v444_v1  ;;  %v501_v0 = vld [vmem:[#allocation4 + $0xb68] sm:$0xff] }
  0xeb   :  { %v13839_v21 = vcombine.low %v448_v8, %v452_v9 }
  0xed   :  { %6254 = vmatpush1.bf16.msra.mxu0 %v13775_v15  ;;  %6582 = vmatpush1.bf16.msra.mxu1 %v13777_v17  ;;  %v13840_v15 = vcombine.high %v448_v8, %v452_v9  ;;  %v456_v17 = vld [vmem:[#allocation4 + $0xa00] sm:$0xff]  ;;  %v509_v8 = vld [vmem:[#allocation4 + $0xba8] sm:$0xff] }
  0xee   :  { %6264 = vmatprep.subr.bf16.mxu0 %v13784_v18  ;;  %6592 = vmatprep.subr.bf16.mxu1 %v13786_v22  ;;  %v460_v18 = vld [vmem:[#allocation4 + $0xa20] sm:$0xff]  ;;  %v13841_v22 = vcombine.low %v449_v10, %v453_v11 }
  0xef   :  { %v13848_v24 = vcombine.high %v456_v17, %v460_v18  ;;  %v13847_v31 = vcombine.low %v456_v17, %v460_v18  ;;  %v517_v17 = vld [vmem:[#allocation4 + $0xbe8] sm:$0xff] }
  0xf0   :  { %6256 = vmatmul.mubr.bf16.vlgmr.msra.gmra.mrb[0].mxu0 %v16126_v25  ;;  %6584 = vmatmul.mubr.bf16.vlgmr.msra.gmra.mrb[0].mxu1 %v16126_v25 }
  0xf1   :  { %6265 = vmatpush1.bf16.msra.mxu0 %v13783_v26  ;;  %6593 = vmatpush1.bf16.msra.mxu1 %v13785_v27  ;;  %v13850_v26 = vcombine.high %v457_v19, %v461_v20  ;;  %v464_v27 = vld [vmem:[#allocation4 + $0xa40] sm:$0xff] }
  0xf2   :  { %6266 = vmatprep.subr.bf16.mxu0 %v13792_v28  ;;  %6594 = vmatprep.subr.bf16.mxu1 %v13794_v30  ;;  %v468_v28 = vld [vmem:[#allocation4 + $0xa60] sm:$0xff]  ;;  %v469_v30 = vld [vmem:[#allocation4 + $0xa68] sm:$0xff] }
  0xf3   :  { %6296 = vmatprep.mubr.bf16.mxu0 %v16128_v34  ;;  %6624 = vmatprep.mubr.bf16.mxu1 %v16128_v34  ;;  %v13856_v33 = vcombine.high %v464_v27, %v468_v28  ;;  %v13855_v40 = vcombine.low %v464_v27, %v468_v28  ;;  %v13857_v41 = vcombine.low %v465_v29, %v469_v30  ;;  %v525_v27 = vld [vmem:[#allocation4 + $0xc28] sm:$0xff] }
  0xf5   :  { %6267 = vmatpush1.bf16.msra.mxu0 %v13791_v35  ;;  %6595 = vmatpush1.bf16.msra.mxu1 %v13793_v36  ;;  %v13858_v35 = vcombine.high %v465_v29, %v469_v30  ;;  %v472_v36 = vld [vmem:[#allocation4 + $0xa80] sm:$0xff] }
  0xf6   :  { %6268 = vmatprep.subr.bf16.mxu0 %v13800_v37  ;;  %6596 = vmatprep.subr.bf16.mxu1 %v13802_v38  ;;  %v476_v37 = vld [vmem:[#allocation4 + $0xaa0] sm:$0xff]  ;;  %v473_v38 = vld [vmem:[#allocation4 + $0xa88] sm:$0xff] }
  0xf7   :  { %v13864_v42 = vcombine.high %v472_v36, %v476_v37  ;;  %v13863_v48 = vcombine.low %v472_v36, %v476_v37  ;;  %v13865_v49 = vcombine.low %v473_v38, %v477_v39  ;;  %v108_v29 = vld [vmem:[#allocation2 + $0x20] sm:$0xff]  ;;  %v529_v37 = vld [vmem:[#allocation4 + $0xc48] sm:$0xff] }
  0xf8   :  { %v16134_v36 = vpack.c.bf16 %v108_v29, %v108_v29 }
  0xf9   :  { %6269 = vmatpush1.bf16.msra.mxu0 %v13799_v43  ;;  %6597 = vmatpush1.bf16.msra.mxu1 %v13801_v44  ;;  %v13866_v43 = vcombine.high %v473_v38, %v477_v39  ;;  %v480_v44 = vld [vmem:[#allocation4 + $0xac0] sm:$0xff]  ;;  %v533_v38 = vld [vmem:[#allocation4 + $0xc68] sm:$0xff]  ;;  %v111_v39 = vld [vmem:[#allocation2 + $0x38] sm:$0xff] }
  0xfa   :  { %6270 = vmatprep.subr.bf16.mxu0 %v13808_v45  ;;  %6598 = vmatprep.subr.bf16.mxu1 %v13810_v46  ;;  %v484_v45 = vld [vmem:[#allocation4 + $0xae0] sm:$0xff]  ;;  %v481_v46 = vld [vmem:[#allocation4 + $0xac8] sm:$0xff] }
  0xfb   :  { %v13872_v50 = vcombine.high %v480_v44, %v484_v45  ;;  %v13871_v56 = vcombine.low %v480_v44, %v484_v45  ;;  %v13873_v58 = vcombine.low %v481_v46, %v485_v47  ;;  %v536_v44 = vld [vmem:[#allocation4 + $0xc80] sm:$0xff] }
  0xfc   :  { %v540_v45 = vld [vmem:[#allocation4 + $0xca0] sm:$0xff] }
  0xfd   :  { %6271 = vmatpush1.bf16.msra.mxu0 %v13807_v51  ;;  %6599 = vmatpush1.bf16.msra.mxu1 %v13809_v52  ;;  %v13874_v51 = vcombine.high %v481_v46, %v485_v47  ;;  %v488_v52 = vld [vmem:[#allocation4 + $0xb00] sm:$0xff]  ;;  %v16136_v46 = vpack.c.bf16 %v111_v39, %v111_v39  ;;  %v537_v47 = vld [vmem:[#allocation4 + $0xc88] sm:$0xff] }
  0xfe   :  { %6272 = vmatprep.subr.bf16.mxu0 %v13816_v53  ;;  %6600 = vmatprep.subr.bf16.mxu1 %v13818_v54  ;;  %v492_v53 = vld [vmem:[#allocation4 + $0xb20] sm:$0xff]  ;;  %v489_v54 = vld [vmem:[#allocation4 + $0xb08] sm:$0xff] }
  0xff   :  { %v13880_v59 = vcombine.high %v488_v52, %v492_v53  ;;  %v13879_v1 = vcombine.low %v488_v52, %v492_v53  ;;  %v13881_v2 = vcombine.low %v489_v54, %v493_v55  ;;  %v544_v53 = vld [vmem:[#allocation4 + $0xcc0] sm:$0xff] }
 0x101   :  { %6273 = vmatpush1.bf16.msra.mxu0 %v13815_v60  ;;  %6601 = vmatpush1.bf16.msra.mxu1 %v13817_v61  ;;  %v13882_v60 = vcombine.high %v489_v54, %v493_v55  ;;  %v496_v61 = vld [vmem:[#allocation4 + $0xb40] sm:$0xff]  ;;  %v545_v55 = vld [vmem:[#allocation4 + $0xcc8] sm:$0xff] }
 0x102   :  { %6274 = vmatprep.subr.bf16.mxu0 %v13824_v62  ;;  %6602 = vmatprep.subr.bf16.mxu1 %v13826_v63  ;;  %v500_v62 = vld [vmem:[#allocation4 + $0xb60] sm:$0xff]  ;;  %v497_v63 = vld [vmem:[#allocation4 + $0xb48] sm:$0xff] }
 0x103   :  { %v13888_v3 = vcombine.high %v496_v61, %v500_v62  ;;  %v13887_v9 = vcombine.low %v496_v61, %v500_v62  ;;  %v13889_v10 = vcombine.low %v497_v63, %v501_v0  ;;  %v548_v54 = vld [vmem:[#allocation4 + $0xce0] sm:$0xff] }
 0x104   :  { %v552_v62 = vld [vmem:[#allocation4 + $0xd00] sm:$0xff] }
 0x105   :  { %6275 = vmatpush1.bf16.msra.mxu0 %v13823_v4  ;;  %6603 = vmatpush1.bf16.msra.mxu1 %v13825_v5  ;;  %v13890_v4 = vcombine.high %v497_v63, %v501_v0  ;;  %v504_v5 = vld [vmem:[#allocation4 + $0xb80] sm:$0xff]  ;;  %v553_v0 = vld [vmem:[#allocation4 + $0xd08] sm:$0xff] }
 0x106   :  { %6276 = vmatprep.subr.bf16.mxu0 %v13832_v6  ;;  %6604 = vmatprep.subr.bf16.mxu1 %v13834_v7  ;;  %v508_v6 = vld [vmem:[#allocation4 + $0xba0] sm:$0xff]  ;;  %v505_v7 = vld [vmem:[#allocation4 + $0xb88] sm:$0xff] }
 0x107   :  { %v13896_v11 = vcombine.high %v504_v5, %v508_v6  ;;  %v13895_v18 = vcombine.low %v504_v5, %v508_v6  ;;  %v13897_v19 = vcombine.low %v505_v7, %v509_v8  ;;  %v556_v63 = vld [vmem:[#allocation4 + $0xd20] sm:$0xff] }
 0x108   :  { %v560_v6 = vld [vmem:[#allocation4 + $0xd40] sm:$0xff] }
 0x109   :  { %6277 = vmatpush1.bf16.msra.mxu0 %v13831_v13  ;;  %6605 = vmatpush1.bf16.msra.mxu1 %v13833_v14  ;;  %v13898_v13 = vcombine.high %v505_v7, %v509_v8  ;;  %v512_v14 = vld [vmem:[#allocation4 + $0xbc0] sm:$0xff]  ;;  %v561_v8 = vld [vmem:[#allocation4 + $0xd48] sm:$0xff] }
 0x10a   :  { %6278 = vmatprep.subr.bf16.mxu0 %v13840_v15  ;;  %6606 = vmatprep.subr.bf16.mxu1 %v13842_v16  ;;  %v516_v15 = vld [vmem:[#allocation4 + $0xbe0] sm:$0xff]  ;;  %v513_v16 = vld [vmem:[#allocation4 + $0xbc8] sm:$0xff] }
 0x10b   :  { %v13904_v20 = vcombine.high %v512_v14, %v516_v15  ;;  %v13903_v28 = vcombine.low %v512_v14, %v516_v15  ;;  %v13905_v30 = vcombine.low %v513_v16, %v517_v17  ;;  %v564_v7 = vld [vmem:[#allocation4 + $0xd60] sm:$0xff] }
 0x10c   :  { %v568_v15 = vld [vmem:[#allocation4 + $0xd80] sm:$0xff] }
 0x10d   :  { %6279 = vmatpush1.bf16.msra.mxu0 %v13839_v21  ;;  %6607 = vmatpush1.bf16.msra.mxu1 %v13841_v22  ;;  %v13906_v21 = vcombine.high %v513_v16, %v517_v17  ;;  %v520_v22 = vld [vmem:[#allocation4 + $0xc00] sm:$0xff]  ;;  %v569_v17 = vld [vmem:[#allocation4 + $0xd88] sm:$0xff] }
 0x10e   :  { %6280 = vmatprep.subr.bf16.mxu0 %v13848_v24  ;;  %6608 = vmatprep.subr.bf16.mxu1 %v13850_v26  ;;  %v524_v24 = vld [vmem:[#allocation4 + $0xc20] sm:$0xff]  ;;  %v521_v26 = vld [vmem:[#allocation4 + $0xc08] sm:$0xff] }
 0x10f   :  { %v572_v16 = vld [vmem:[#allocation4 + $0xda0] sm:$0xff] }
 0x110   :  { %v13959_v29 = vcombine.low %v568_v15, %v572_v16 }
 0x111   :  { %6281 = vmatpush1.bf16.msra.mxu0 %v13847_v31  ;;  %6609 = vmatpush1.bf16.msra.mxu1 %v13849_v32  ;;  %v13912_v31 = vcombine.high %v520_v22, %v524_v24  ;;  %v13914_v32 = vcombine.high %v521_v26, %v525_v27 }
 0x112   :  { %6282 = vmatprep.subr.bf16.mxu0 %v13856_v33  ;;  %6610 = vmatprep.subr.bf16.mxu1 %v13858_v35  ;;  %v528_v33 = vld [vmem:[#allocation4 + $0xc40] sm:$0xff] }
 0x113   :  { %v532_v35 = vld [vmem:[#allocation4 + $0xc60] sm:$0xff] }
 0x115   :  { %6283 = vmatpush1.bf16.msra.mxu0 %v13855_v40  ;;  %6611 = vmatpush1.bf16.msra.mxu1 %v13857_v41  ;;  %v13911_v40 = vcombine.low %v520_v22, %v524_v24  ;;  %v13913_v41 = vcombine.low %v521_v26, %v525_v27  ;;  %v576_v24 = vld [vmem:[#allocation4 + $0xdc0] sm:$0xff]  ;;  %v577_v27 = vld [vmem:[#allocation4 + $0xdc8] sm:$0xff] }
 0x116   :  { %6284 = vmatprep.subr.bf16.mxu0 %v13864_v42  ;;  %6612 = vmatprep.subr.bf16.mxu1 %v13866_v43  ;;  %v13920_v42 = vcombine.high %v528_v33, %v532_v35  ;;  %v13922_v43 = vcombine.high %v529_v37, %v533_v38  ;;  %v580_v26 = vld [vmem:[#allocation4 + $0xde0] sm:$0xff] }
 0x117   :  { %v13967_v39 = vcombine.low %v576_v24, %v580_v26 }
 0x119   :  { %6285 = vmatpush1.bf16.msra.mxu0 %v13863_v48  ;;  %6613 = vmatpush1.bf16.msra.mxu1 %v13865_v49  ;;  %v541_v48 = vld [vmem:[#allocation4 + $0xca8] sm:$0xff]  ;;  %v13919_v49 = vcombine.low %v528_v33, %v532_v35  ;;  %v584_v33 = vld [vmem:[#allocation4 + $0xe00] sm:$0xff] }
 0x11a   :  { %6286 = vmatprep.subr.bf16.mxu0 %v13872_v50  ;;  %6614 = vmatprep.subr.bf16.mxu1 %v13874_v51  ;;  %v13921_v50 = vcombine.low %v529_v37, %v533_v38  ;;  %v13928_v51 = vcombine.high %v536_v44, %v540_v45  ;;  %v13930_v52 = vcombine.high %v537_v47, %v541_v48  ;;  %v588_v35 = vld [vmem:[#allocation4 + $0xe20] sm:$0xff]  ;;  %v585_v37 = vld [vmem:[#allocation4 + $0xe08] sm:$0xff] }
 0x11b   :  { %v589_v38 = vld [vmem:[#allocation4 + $0xe28] sm:$0xff] }
 0x11d   :  { %6287 = vmatpush1.bf16.msra.mxu0 %v13871_v56  ;;  %6615 = vmatpush1.bf16.msra.mxu1 %v13873_v58  ;;  %v549_v56 = vld [vmem:[#allocation4 + $0xce8] sm:$0xff]  ;;  %v13927_v58 = vcombine.low %v536_v44, %v540_v45  ;;  %v596_v44 = vld [vmem:[#allocation4 + $0xe60] sm:$0xff] }
 0x11e   :  { %6288 = vmatprep.subr.bf16.mxu0 %v13880_v59  ;;  %6616 = vmatprep.subr.bf16.mxu1 %v13882_v60  ;;  %v13929_v59 = vcombine.low %v537_v47, %v541_v48  ;;  %v13936_v60 = vcombine.high %v544_v53, %v548_v54  ;;  %v13938_v61 = vcombine.high %v545_v55, %v549_v56  ;;  %v593_v45 = vld [vmem:[#allocation4 + $0xe48] sm:$0xff] }
 0x11f   :  { %v597_v47 = vld [vmem:[#allocation4 + $0xe68] sm:$0xff]  ;;  %v13975_v48 = vcombine.low %v584_v33, %v588_v35 }
 0x121   :  { %6289 = vmatpush1.bf16.msra.mxu0 %v13879_v1  ;;  %6617 = vmatpush1.bf16.msra.mxu1 %v13881_v2  ;;  %v557_v1 = vld [vmem:[#allocation4 + $0xd28] sm:$0xff]  ;;  %v13935_v2 = vcombine.low %v544_v53, %v548_v54  ;;  %v604_v53 = vld [vmem:[#allocation4 + $0xea0] sm:$0xff] }
 0x122   :  { %6290 = vmatprep.subr.bf16.mxu0 %v13888_v3  ;;  %6618 = vmatprep.subr.bf16.mxu1 %v13890_v4  ;;  %v13937_v3 = vcombine.low %v545_v55, %v549_v56  ;;  %v13944_v4 = vcombine.high %v552_v62, %v556_v63  ;;  %v13946_v5 = vcombine.high %v553_v0, %v557_v1  ;;  %v601_v54 = vld [vmem:[#allocation4 + $0xe88] sm:$0xff] }
 0x123   :  { %v605_v55 = vld [vmem:[#allocation4 + $0xea8] sm:$0xff] }
 0x125   :  { %6291 = vmatpush1.bf16.msra.mxu0 %v13887_v9  ;;  %6619 = vmatpush1.bf16.msra.mxu1 %v13889_v10  ;;  %v565_v9 = vld [vmem:[#allocation4 + $0xd68] sm:$0xff]  ;;  %v13943_v10 = vcombine.low %v552_v62, %v556_v63  ;;  %v612_v62 = vld [vmem:[#allocation4 + $0xee0] sm:$0xff] }
 0x126   :  { %6292 = vmatprep.subr.bf16.mxu0 %v13896_v11  ;;  %6620 = vmatprep.subr.bf16.mxu1 %v13898_v13  ;;  %v13945_v11 = vcombine.low %v553_v0, %v557_v1  ;;  %v13952_v13 = vcombine.high %v560_v6, %v564_v7  ;;  %v13954_v14 = vcombine.high %v561_v8, %v565_v9  ;;  %v609_v63 = vld [vmem:[#allocation4 + $0xec8] sm:$0xff] }
 0x127   :  { %v613_v0 = vld [vmem:[#allocation4 + $0xee8] sm:$0xff] }
 0x129   :  { %6293 = vmatpush1.bf16.msra.mxu0 %v13895_v18  ;;  %6621 = vmatpush1.bf16.msra.mxu1 %v13897_v19  ;;  %v573_v18 = vld [vmem:[#allocation4 + $0xda8] sm:$0xff]  ;;  %v13951_v19 = vcombine.low %v560_v6, %v564_v7  ;;  %v620_v6 = vld [vmem:[#allocation4 + $0xf20] sm:$0xff] }
 0x12a   :  { %6294 = vmatprep.subr.bf16.mxu0 %v13904_v20  ;;  %6622 = vmatprep.subr.bf16.mxu1 %v13906_v21  ;;  %v13953_v20 = vcombine.low %v561_v8, %v565_v9  ;;  %v13960_v21 = vcombine.high %v568_v15, %v572_v16  ;;  %v13962_v22 = vcombine.high %v569_v17, %v573_v18  ;;  %v617_v7 = vld [vmem:[#allocation4 + $0xf08] sm:$0xff]  ;;  %v628_v15 = vld [vmem:[#allocation4 + $0xf60] sm:$0xff] }
 0x12b   :  { %v621_v8 = vld [vmem:[#allocation4 + $0xf28] sm:$0xff] }
 0x12c   :  { %v625_v16 = vld [vmem:[#allocation4 + $0xf48] sm:$0xff] }
 0x12d   :  { %6295 = vmatpush1.bf16.msra.mxu0 %v13903_v28  ;;  %6623 = vmatpush1.bf16.msra.mxu1 %v13905_v30  ;;  %v581_v28 = vld [vmem:[#allocation4 + $0xde8] sm:$0xff]  ;;  %v13961_v30 = vcombine.low %v569_v17, %v573_v18 }
 0x12e   :  { %6305 = vmatprep.subr.bf16.mxu0 %v13912_v31  ;;  %6633 = vmatprep.subr.bf16.mxu1 %v13914_v32  ;;  %v13968_v31 = vcombine.high %v576_v24, %v580_v26  ;;  %v13970_v32 = vcombine.high %v577_v27, %v581_v28  ;;  %v629_v17 = vld [vmem:[#allocation4 + $0xf68] sm:$0xff]  ;;  %v636_v24 = vld [vmem:[#allocation4 + $0xfa0] sm:$0xff] }
 0x12f   :  { %v633_v26 = vld [vmem:[#allocation4 + $0xf88] sm:$0xff] }
 0x130   :  { %6297 = vmatmul.mubr.bf16.vlgmr.msra.gmra.mrb[0].mxu0 %v16134_v36  ;;  %6625 = vmatmul.mubr.bf16.vlgmr.msra.gmra.mrb[0].mxu1 %v16134_v36 }
 0x131   :  { %6306 = vmatpush1.bf16.msra.mxu0 %v13911_v40  ;;  %6634 = vmatpush1.bf16.msra.mxu1 %v13913_v41  ;;  %v13969_v40 = vcombine.low %v577_v27, %v581_v28  ;;  %v13976_v41 = vcombine.high %v584_v33, %v588_v35  ;;  %v637_v27 = vld [vmem:[#allocation4 + $0xfa8] sm:$0xff]  ;;  %v644_v33 = vld [vmem:[#allocation4 + $0xfe0] sm:$0xff] }
 0x132   :  { %6307 = vmatprep.subr.bf16.mxu0 %v13920_v42  ;;  %6635 = vmatprep.subr.bf16.mxu1 %v13922_v43  ;;  %v13978_v42 = vcombine.high %v585_v37, %v589_v38  ;;  %v592_v43 = vld [vmem:[#allocation4 + $0xe40] sm:$0xff]  ;;  %v641_v35 = vld [vmem:[#allocation4 + $0xfc8] sm:$0xff] }
 0x133   :  { %6337 = vmatprep.mubr.bf16.mxu0 %v16136_v46  ;;  %6665 = vmatprep.mubr.bf16.mxu1 %v16136_v46  ;;  %v13983_v56 = vcombine.low %v592_v43, %v596_v44 }
 0x135   :  { %6308 = vmatpush1.bf16.msra.mxu0 %v13919_v49  ;;  %6636 = vmatpush1.bf16.msra.mxu1 %v13921_v50  ;;  %v13977_v49 = vcombine.low %v585_v37, %v589_v38  ;;  %v13984_v50 = vcombine.high %v592_v43, %v596_v44  ;;  %v645_v37 = vld [vmem:[#allocation4 + $0xfe8] sm:$0xff]  ;;  %v652_v43 = vld [vmem:[#allocation4 + $0x1020] sm:$0xff] }
 0x136   :  { %6309 = vmatprep.subr.bf16.mxu0 %v13928_v51  ;;  %6637 = vmatprep.subr.bf16.mxu1 %v13930_v52  ;;  %v13986_v51 = vcombine.high %v593_v45, %v597_v47  ;;  %v600_v52 = vld [vmem:[#allocation4 + $0xe80] sm:$0xff]  ;;  %v649_v44 = vld [vmem:[#allocation4 + $0x1008] sm:$0xff] }
 0x137   :  { %v13991_v1 = vcombine.low %v600_v52, %v604_v53 }
 0x139   :  { %6310 = vmatpush1.bf16.msra.mxu0 %v13927_v58  ;;  %6638 = vmatpush1.bf16.msra.mxu1 %v13929_v59  ;;  %v13985_v58 = vcombine.low %v593_v45, %v597_v47  ;;  %v13992_v59 = vcombine.high %v600_v52, %v604_v53  ;;  %v653_v45 = vld [vmem:[#allocation4 + $0x1028] sm:$0xff]  ;;  %v656_v52 = vld [vmem:[#allocation4 + $0x1040] sm:$0xff] }
 0x13a   :  { %6311 = vmatprep.subr.bf16.mxu0 %v13936_v60  ;;  %6639 = vmatprep.subr.bf16.mxu1 %v13938_v61  ;;  %v13994_v60 = vcombine.high %v601_v54, %v605_v55  ;;  %v608_v61 = vld [vmem:[#allocation4 + $0xec0] sm:$0xff] }
 0x13b   :  { %v13999_v9 = vcombine.low %v608_v61, %v612_v62  ;;  %v660_v53 = vld [vmem:[#allocation4 + $0x1060] sm:$0xff] }
 0x13d   :  { %6312 = vmatpush1.bf16.msra.mxu0 %v13935_v2  ;;  %6640 = vmatpush1.bf16.msra.mxu1 %v13937_v3  ;;  %v13993_v2 = vcombine.low %v601_v54, %v605_v55  ;;  %v14000_v3 = vcombine.high %v608_v61, %v612_v62  ;;  %v657_v55 = vld [vmem:[#allocation4 + $0x1048] sm:$0xff]  ;;  %v14048_v61 = vcombine.high %v656_v52, %v660_v53 }
 0x13e   :  { %6313 = vmatprep.subr.bf16.mxu0 %v13944_v4  ;;  %6641 = vmatprep.subr.bf16.mxu1 %v13946_v5  ;;  %v14002_v4 = vcombine.high %v609_v63, %v613_v0  ;;  %v616_v5 = vld [vmem:[#allocation4 + $0xf00] sm:$0xff] }
 0x13f   :  { %v14007_v18 = vcombine.low %v616_v5, %v620_v6 }
 0x141   :  { %6314 = vmatpush1.bf16.msra.mxu0 %v13943_v10  ;;  %6642 = vmatpush1.bf16.msra.mxu1 %v13945_v11  ;;  %v14001_v10 = vcombine.low %v609_v63, %v613_v0  ;;  %v14008_v11 = vcombine.high %v616_v5, %v620_v6  ;;  %v664_v63 = vld [vmem:[#allocation4 + $0x1080] sm:$0xff] }
 0x142   :  { %6315 = vmatprep.subr.bf16.mxu0 %v13952_v13  ;;  %6643 = vmatprep.subr.bf16.mxu1 %v13954_v14  ;;  %v14010_v13 = vcombine.high %v617_v7, %v621_v8  ;;  %v624_v14 = vld [vmem:[#allocation4 + $0xf40] sm:$0xff] }
 0x143   :  { %v14015_v28 = vcombine.low %v624_v14, %v628_v15  ;;  %v668_v0 = vld [vmem:[#allocation4 + $0x10a0] sm:$0xff] }
 0x144   :  { %v14056_v6 = vcombine.high %v664_v63, %v668_v0 }
 0x145   :  { %6316 = vmatpush1.bf16.msra.mxu0 %v13951_v19  ;;  %6644 = vmatpush1.bf16.msra.mxu1 %v13953_v20  ;;  %v14009_v19 = vcombine.low %v617_v7, %v621_v8  ;;  %v14016_v20 = vcombine.high %v624_v14, %v628_v15  ;;  %v672_v8 = vld [vmem:[#allocation4 + $0x10c0] sm:$0xff] }
 0x146   :  { %6317 = vmatprep.subr.bf16.mxu0 %v13960_v21  ;;  %6645 = vmatprep.subr.bf16.mxu1 %v13962_v22  ;;  %v14018_v21 = vcombine.high %v625_v16, %v629_v17  ;;  %v632_v22 = vld [vmem:[#allocation4 + $0xf80] sm:$0xff] }
 0x147   :  { %v14023_v38 = vcombine.low %v632_v22, %v636_v24 }
 0x149   :  { %6318 = vmatpush1.bf16.msra.mxu0 %v13959_v29  ;;  %6646 = vmatpush1.bf16.msra.mxu1 %v13961_v30  ;;  %v14017_v29 = vcombine.low %v625_v16, %v629_v17  ;;  %v14024_v30 = vcombine.high %v632_v22, %v636_v24  ;;  %v680_v17 = vld [vmem:[#allocation4 + $0x1100] sm:$0xff] }
 0x14a   :  { %6319 = vmatprep.subr.bf16.mxu0 %v13968_v31  ;;  %6647 = vmatprep.subr.bf16.mxu1 %v13970_v32  ;;  %v14026_v31 = vcombine.high %v633_v26, %v637_v27  ;;  %v640_v32 = vld [vmem:[#allocation4 + $0xfc0] sm:$0xff] }
 0x14b   :  { %v14031_v47 = vcombine.low %v640_v32, %v644_v33 }
 0x14d   :  { %6320 = vmatpush1.bf16.msra.mxu0 %v13967_v39  ;;  %6648 = vmatpush1.bf16.msra.mxu1 %v13969_v40  ;;  %v14025_v39 = vcombine.low %v633_v26, %v637_v27  ;;  %v14032_v40 = vcombine.high %v640_v32, %v644_v33  ;;  %v688_v27 = vld [vmem:[#allocation4 + $0x1140] sm:$0xff] }
 0x14e   :  { %6321 = vmatprep.subr.bf16.mxu0 %v13976_v41  ;;  %6649 = vmatprep.subr.bf16.mxu1 %v13978_v42  ;;  %v14034_v41 = vcombine.high %v641_v35, %v645_v37  ;;  %v648_v42 = vld [vmem:[#allocation4 + $0x1000] sm:$0xff] }
 0x151   :  { %6322 = vmatpush1.bf16.msra.mxu0 %v13975_v48  ;;  %6650 = vmatpush1.bf16.msra.mxu1 %v13977_v49  ;;  %v110_v48 = vld [vmem:[#allocation2 + $0x30] sm:$0xff]  ;;  %v14033_v49 = vcombine.low %v641_v35, %v645_v37  ;;  %v696_v37 = vld [vmem:[#allocation4 + $0x1180] sm:$0xff] }
 0x152   :  { %6323 = vmatprep.subr.bf16.mxu0 %v13984_v50  ;;  %6651 = vmatprep.subr.bf16.mxu1 %v13986_v51  ;;  %v14040_v50 = vcombine.high %v648_v42, %v652_v43  ;;  %v14042_v51 = vcombine.high %v649_v44, %v653_v45  ;;  %v16142_v54 = vpack.c.bf16 %v110_v48, %v110_v48  ;;  %v705_v48 = vld [vmem:[#allocation4 + $0x11c8] sm:$0xff] }
 0x155   :  { %6324 = vmatpush1.bf16.msra.mxu0 %v13983_v56  ;;  %6652 = vmatpush1.bf16.msra.mxu1 %v13985_v58  ;;  %v661_v56 = vld [vmem:[#allocation4 + $0x1068] sm:$0xff] }
 0x156   :  { %6325 = vmatprep.subr.bf16.mxu0 %v13992_v59  ;;  %6653 = vmatprep.subr.bf16.mxu1 %v13994_v60  ;;  %v113_v58 = vld [vmem:[#allocation2 + $0x48] sm:$0xff]  ;;  %v14039_v59 = vcombine.low %v648_v42, %v652_v43  ;;  %v14041_v60 = vcombine.low %v649_v44, %v653_v45  ;;  %v14050_v62 = vcombine.high %v657_v55, %v661_v56  ;;  %v704_v45 = vld [vmem:[#allocation4 + $0x11c0] sm:$0xff] }
 0x157   :  { %v14049_v5 = vcombine.low %v657_v55, %v661_v56  ;;  %v712_v55 = vld [vmem:[#allocation4 + $0x1200] sm:$0xff] }
 0x158   :  { %v716_v56 = vld [vmem:[#allocation4 + $0x1220] sm:$0xff] }
 0x159   :  { %6326 = vmatpush1.bf16.msra.mxu0 %v13991_v1  ;;  %6654 = vmatpush1.bf16.msra.mxu1 %v13993_v2  ;;  %v16144_v1 = vpack.c.bf16 %v113_v58, %v113_v58  ;;  %v665_v2 = vld [vmem:[#allocation4 + $0x1088] sm:$0xff] }
 0x15a   :  { %6327 = vmatprep.subr.bf16.mxu0 %v14000_v3  ;;  %6655 = vmatprep.subr.bf16.mxu1 %v14002_v4  ;;  %v669_v3 = vld [vmem:[#allocation4 + $0x10a8] sm:$0xff]  ;;  %v14047_v4 = vcombine.low %v656_v52, %v660_v53 }
 0x15b   :  { %v14058_v7 = vcombine.high %v665_v2, %v669_v3  ;;  %v14057_v14 = vcombine.low %v665_v2, %v669_v3  ;;  %v713_v58 = vld [vmem:[#allocation4 + $0x1208] sm:$0xff]  ;;  %v724_v2 = vld [vmem:[#allocation4 + $0x1260] sm:$0xff] }
 0x15c   :  { %v721_v3 = vld [vmem:[#allocation4 + $0x1248] sm:$0xff] }
 0x15d   :  { %6328 = vmatpush1.bf16.msra.mxu0 %v13999_v9  ;;  %6656 = vmatpush1.bf16.msra.mxu1 %v14001_v10  ;;  %v676_v9 = vld [vmem:[#allocation4 + $0x10e0] sm:$0xff]  ;;  %v673_v10 = vld [vmem:[#allocation4 + $0x10c8] sm:$0xff] }
 0x15e   :  { %6329 = vmatprep.subr.bf16.mxu0 %v14008_v11  ;;  %6657 = vmatprep.subr.bf16.mxu1 %v14010_v13  ;;  %v677_v11 = vld [vmem:[#allocation4 + $0x10e8] sm:$0xff]  ;;  %v14055_v13 = vcombine.low %v664_v63, %v668_v0  ;;  %v14064_v15 = vcombine.high %v672_v8, %v676_v9  ;;  %v720_v0 = vld [vmem:[#allocation4 + $0x1240] sm:$0xff] }
 0x15f   :  { %v14066_v16 = vcombine.high %v673_v10, %v677_v11  ;;  %v14065_v22 = vcombine.low %v673_v10, %v677_v11  ;;  %v732_v10 = vld [vmem:[#allocation4 + $0x12a0] sm:$0xff]  ;;  %v729_v11 = vld [vmem:[#allocation4 + $0x1288] sm:$0xff] }
 0x161   :  { %6330 = vmatpush1.bf16.msra.mxu0 %v14007_v18  ;;  %6658 = vmatpush1.bf16.msra.mxu1 %v14009_v19  ;;  %v684_v18 = vld [vmem:[#allocation4 + $0x1120] sm:$0xff]  ;;  %v681_v19 = vld [vmem:[#allocation4 + $0x1108] sm:$0xff] }
 0x162   :  { %6331 = vmatprep.subr.bf16.mxu0 %v14016_v20  ;;  %6659 = vmatprep.subr.bf16.mxu1 %v14018_v21  ;;  %v685_v20 = vld [vmem:[#allocation4 + $0x1128] sm:$0xff]  ;;  %v14063_v21 = vcombine.low %v672_v8, %v676_v9  ;;  %v14072_v24 = vcombine.high %v680_v17, %v684_v18  ;;  %v728_v9 = vld [vmem:[#allocation4 + $0x1280] sm:$0xff] }
 0x163   :  { %v14074_v26 = vcombine.high %v681_v19, %v685_v20  ;;  %v14073_v32 = vcombine.low %v681_v19, %v685_v20  ;;  %v740_v19 = vld [vmem:[#allocation4 + $0x12e0] sm:$0xff]  ;;  %v737_v20 = vld [vmem:[#allocation4 + $0x12c8] sm:$0xff] }
 0x165   :  { %6332 = vmatpush1.bf16.msra.mxu0 %v14015_v28  ;;  %6660 = vmatpush1.bf16.msra.mxu1 %v14017_v29  ;;  %v692_v28 = vld [vmem:[#allocation4 + $0x1160] sm:$0xff]  ;;  %v689_v29 = vld [vmem:[#allocation4 + $0x1148] sm:$0xff] }
 0x166   :  { %6333 = vmatprep.subr.bf16.mxu0 %v14024_v30  ;;  %6661 = vmatprep.subr.bf16.mxu1 %v14026_v31  ;;  %v693_v30 = vld [vmem:[#allocation4 + $0x1168] sm:$0xff]  ;;  %v14071_v31 = vcombine.low %v680_v17, %v684_v18  ;;  %v14080_v33 = vcombine.high %v688_v27, %v692_v28  ;;  %v736_v18 = vld [vmem:[#allocation4 + $0x12c0] sm:$0xff] }
 0x167   :  { %v14082_v35 = vcombine.high %v689_v29, %v693_v30  ;;  %v14081_v42 = vcombine.low %v689_v29, %v693_v30  ;;  %v748_v29 = vld [vmem:[#allocation4 + $0x1320] sm:$0xff]  ;;  %v745_v30 = vld [vmem:[#allocation4 + $0x1308] sm:$0xff] }
 0x169   :  { %6334 = vmatpush1.bf16.msra.mxu0 %v14023_v38  ;;  %6662 = vmatpush1.bf16.msra.mxu1 %v14025_v39  ;;  %v700_v38 = vld [vmem:[#allocation4 + $0x11a0] sm:$0xff]  ;;  %v697_v39 = vld [vmem:[#allocation4 + $0x1188] sm:$0xff] }
 0x16a   :  { %6335 = vmatprep.subr.bf16.mxu0 %v14032_v40  ;;  %6663 = vmatprep.subr.bf16.mxu1 %v14034_v41  ;;  %v701_v40 = vld [vmem:[#allocation4 + $0x11a8] sm:$0xff]  ;;  %v14079_v41 = vcombine.low %v688_v27, %v692_v28  ;;  %v14088_v43 = vcombine.high %v696_v37, %v700_v38  ;;  %v744_v28 = vld [vmem:[#allocation4 + $0x1300] sm:$0xff] }
 0x16b   :  { %v14090_v44 = vcombine.high %v697_v39, %v701_v40 }
 0x16d   :  { %6336 = vmatpush1.bf16.msra.mxu0 %v14031_v47  ;;  %6664 = vmatpush1.bf16.msra.mxu1 %v14033_v49  ;;  %v708_v47 = vld [vmem:[#allocation4 + $0x11e0] sm:$0xff]  ;;  %v709_v49 = vld [vmem:[#allocation4 + $0x11e8] sm:$0xff] }
 0x16e   :  { %6346 = vmatprep.subr.bf16.mxu0 %v14040_v50  ;;  %6674 = vmatprep.subr.bf16.mxu1 %v14042_v51  ;;  %v14087_v50 = vcombine.low %v696_v37, %v700_v38  ;;  %v14089_v51 = vcombine.low %v697_v39, %v701_v40  ;;  %v14096_v52 = vcombine.high %v704_v45, %v708_v47  ;;  %v752_v38 = vld [vmem:[#allocation4 + $0x1340] sm:$0xff]  ;;  %v753_v40 = vld [vmem:[#allocation4 + $0x1348] sm:$0xff] }
 0x16f   :  { %v14098_v53 = vcombine.high %v705_v48, %v709_v49  ;;  %v756_v39 = vld [vmem:[#allocation4 + $0x1360] sm:$0xff] }
 0x170   :  { %6338 = vmatmul.mubr.bf16.vlgmr.msra.gmra.mrb[0].mxu0 %v16142_v54  ;;  %6666 = vmatmul.mubr.bf16.vlgmr.msra.gmra.mrb[0].mxu1 %v16142_v54 }
 0x171   :  { %6347 = vmatpush1.bf16.msra.mxu0 %v14039_v59  ;;  %6675 = vmatpush1.bf16.msra.mxu1 %v14041_v60  ;;  %v717_v59 = vld [vmem:[#allocation4 + $0x1228] sm:$0xff]  ;;  %v14095_v60 = vcombine.low %v704_v45, %v708_v47  ;;  %v760_v47 = vld [vmem:[#allocation4 + $0x1380] sm:$0xff] }
 0x172   :  { %6348 = vmatprep.subr.bf16.mxu0 %v14048_v61  ;;  %6676 = vmatprep.subr.bf16.mxu1 %v14050_v62  ;;  %v14097_v61 = vcombine.low %v705_v48, %v709_v49  ;;  %v14104_v62 = vcombine.high %v712_v55, %v716_v56  ;;  %v14106_v63 = vcombine.high %v713_v58, %v717_v59  ;;  %v764_v48 = vld [vmem:[#allocation4 + $0x13a0] sm:$0xff]  ;;  %v761_v49 = vld [vmem:[#allocation4 + $0x1388] sm:$0xff] }
 0x173   :  { %6378 = vmatprep.mubr.bf16.mxu0 %v16144_v1  ;;  %6706 = vmatprep.mubr.bf16.mxu1 %v16144_v1 }
 0x175   :  { %6349 = vmatpush1.bf16.msra.mxu0 %v14047_v4  ;;  %6677 = vmatpush1.bf16.msra.mxu1 %v14049_v5  ;;  %v725_v4 = vld [vmem:[#allocation4 + $0x1268] sm:$0xff]  ;;  %v14103_v5 = vcombine.low %v712_v55, %v716_v56  ;;  %v768_v56 = vld [vmem:[#allocation4 + $0x13c0] sm:$0xff] }
 0x176   :  { %6350 = vmatprep.subr.bf16.mxu0 %v14056_v6  ;;  %6678 = vmatprep.subr.bf16.mxu1 %v14058_v7  ;;  %v14105_v6 = vcombine.low %v713_v58, %v717_v59  ;;  %v14112_v7 = vcombine.high %v720_v0, %v724_v2  ;;  %v14114_v8 = vcombine.high %v721_v3, %v725_v4  ;;  %v772_v58 = vld [vmem:[#allocation4 + $0x13e0] sm:$0xff]  ;;  %v769_v59 = vld [vmem:[#allocation4 + $0x13c8] sm:$0xff] }
 0x179   :  { %6351 = vmatpush1.bf16.msra.mxu0 %v14055_v13  ;;  %6679 = vmatpush1.bf16.msra.mxu1 %v14057_v14  ;;  %v733_v13 = vld [vmem:[#allocation4 + $0x12a8] sm:$0xff]  ;;  %v14111_v14 = vcombine.low %v720_v0, %v724_v2  ;;  %v776_v2 = vld [vmem:[#allocation4 + $0x1400] sm:$0xff] }
 0x17a   :  { %6352 = vmatprep.subr.bf16.mxu0 %v14064_v15  ;;  %6680 = vmatprep.subr.bf16.mxu1 %v14066_v16  ;;  %v14113_v15 = vcombine.low %v721_v3, %v725_v4  ;;  %v14120_v16 = vcombine.high %v728_v9, %v732_v10  ;;  %v14122_v17 = vcombine.high %v729_v11, %v733_v13  ;;  %v780_v3 = vld [vmem:[#allocation4 + $0x1420] sm:$0xff]  ;;  %v777_v4 = vld [vmem:[#allocation4 + $0x1408] sm:$0xff] }
 0x17d   :  { %6353 = vmatpush1.bf16.msra.mxu0 %v14063_v21  ;;  %6681 = vmatpush1.bf16.msra.mxu1 %v14065_v22  ;;  %v741_v21 = vld [vmem:[#allocation4 + $0x12e8] sm:$0xff]  ;;  %v14119_v22 = vcombine.low %v728_v9, %v732_v10  ;;  %v14168_v9 = vcombine.high %v776_v2, %v780_v3 }
 0x17e   :  { %6354 = vmatprep.subr.bf16.mxu0 %v14072_v24  ;;  %6682 = vmatprep.subr.bf16.mxu1 %v14074_v26  ;;  %v14121_v24 = vcombine.low %v729_v11, %v733_v13  ;;  %v14128_v26 = vcombine.high %v736_v18, %v740_v19  ;;  %v14130_v27 = vcombine.high %v737_v20, %v741_v21  ;;  %v784_v11 = vld [vmem:[#allocation4 + $0x1440] sm:$0xff] }
 0x17f   :  { %v788_v13 = vld [vmem:[#allocation4 + $0x1460] sm:$0xff] }
 0x181   :  { %6355 = vmatpush1.bf16.msra.mxu0 %v14071_v31  ;;  %6683 = vmatpush1.bf16.msra.mxu1 %v14073_v32  ;;  %v749_v31 = vld [vmem:[#allocation4 + $0x1328] sm:$0xff]  ;;  %v14127_v32 = vcombine.low %v736_v18, %v740_v19  ;;  %v14167_v18 = vcombine.low %v776_v2, %v780_v3 }
 0x182   :  { %6356 = vmatprep.subr.bf16.mxu0 %v14080_v33  ;;  %6684 = vmatprep.subr.bf16.mxu1 %v14082_v35  ;;  %v14129_v33 = vcombine.low %v737_v20, %v741_v21  ;;  %v14136_v35 = vcombine.high %v744_v28, %v748_v29  ;;  %v14138_v37 = vcombine.high %v745_v30, %v749_v31  ;;  %v829_v2 = vld [vmem:[#allocation4 + $0x15a8] sm:$0xff] }
 0x183   :  { %v14176_v20 = vcombine.high %v784_v11, %v788_v13 }
 0x185   :  { %6357 = vmatpush1.bf16.msra.mxu0 %v14079_v41  ;;  %6685 = vmatpush1.bf16.msra.mxu1 %v14081_v42  ;;  %v757_v41 = vld [vmem:[#allocation4 + $0x1368] sm:$0xff]  ;;  %v14135_v42 = vcombine.low %v744_v28, %v748_v29  ;;  %v14175_v29 = vcombine.low %v784_v11, %v788_v13 }
 0x186   :  { %6358 = vmatprep.subr.bf16.mxu0 %v14088_v43  ;;  %6686 = vmatprep.subr.bf16.mxu1 %v14090_v44  ;;  %v14137_v43 = vcombine.low %v745_v30, %v749_v31  ;;  %v14144_v44 = vcombine.high %v752_v38, %v756_v39  ;;  %v14146_v45 = vcombine.high %v753_v40, %v757_v41  ;;  %v797_v28 = vld [vmem:[#allocation4 + $0x14a8] sm:$0xff] }
 0x189   :  { %6359 = vmatpush1.bf16.msra.mxu0 %v14087_v50  ;;  %6687 = vmatpush1.bf16.msra.mxu1 %v14089_v51  ;;  %v765_v50 = vld [vmem:[#allocation4 + $0x13a8] sm:$0xff]  ;;  %v14143_v51 = vcombine.low %v752_v38, %v756_v39 }
 0x18a   :  { %6360 = vmatprep.subr.bf16.mxu0 %v14096_v52  ;;  %6688 = vmatprep.subr.bf16.mxu1 %v14098_v53  ;;  %v14145_v52 = vcombine.low %v753_v40, %v757_v41  ;;  %v14152_v53 = vcombine.high %v760_v47, %v764_v48  ;;  %v14154_v55 = vcombine.high %v761_v49, %v765_v50  ;;  %v805_v38 = vld [vmem:[#allocation4 + $0x14e8] sm:$0xff] }
 0x18d   :  { %6361 = vmatpush1.bf16.msra.mxu0 %v14095_v60  ;;  %6689 = vmatpush1.bf16.msra.mxu1 %v14097_v61  ;;  %v773_v60 = vld [vmem:[#allocation4 + $0x13e8] sm:$0xff]  ;;  %v14151_v61 = vcombine.low %v760_v47, %v764_v48 }
 0x18e   :  { %6362 = vmatprep.subr.bf16.mxu0 %v14104_v62  ;;  %6690 = vmatprep.subr.bf16.mxu1 %v14106_v63  ;;  %v14153_v62 = vcombine.low %v761_v49, %v765_v50  ;;  %v14160_v63 = vcombine.high %v768_v56, %v772_v58  ;;  %v14162_v0 = vcombine.high %v769_v59, %v773_v60  ;;  %v813_v47 = vld [vmem:[#allocation4 + $0x1528] sm:$0xff] }
 0x191   :  { %6363 = vmatpush1.bf16.msra.mxu0 %v14103_v5  ;;  %6691 = vmatpush1.bf16.msra.mxu1 %v14105_v6  ;;  %v781_v5 = vld [vmem:[#allocation4 + $0x1428] sm:$0xff]  ;;  %v14159_v6 = vcombine.low %v768_v56, %v772_v58 }
 0x192   :  { %6364 = vmatprep.subr.bf16.mxu0 %v14112_v7  ;;  %6692 = vmatprep.subr.bf16.mxu1 %v14114_v8  ;;  %v112_v7 = vld [vmem:[#allocation2 + $0x40] sm:$0xff]  ;;  %v14161_v8 = vcombine.low %v769_v59, %v773_v60  ;;  %v14170_v10 = vcombine.high %v777_v4, %v781_v5  ;;  %v14169_v19 = vcombine.low %v777_v4, %v781_v5  ;;  %v821_v56 = vld [vmem:[#allocation4 + $0x1568] sm:$0xff] }
 0x195   :  { %6365 = vmatpush1.bf16.msra.mxu0 %v14111_v14  ;;  %6693 = vmatpush1.bf16.msra.mxu1 %v14113_v15  ;;  %v16150_v14 = vpack.c.bf16 %v112_v7, %v112_v7  ;;  %v785_v15 = vld [vmem:[#allocation4 + $0x1448] sm:$0xff]  ;;  %v832_v7 = vld [vmem:[#allocation4 + $0x15c0] sm:$0xff] }
 0x196   :  { %6366 = vmatprep.subr.bf16.mxu0 %v14120_v16  ;;  %6694 = vmatprep.subr.bf16.mxu1 %v14122_v17  ;;  %v789_v16 = vld [vmem:[#allocation4 + $0x1468] sm:$0xff]  ;;  %v115_v17 = vld [vmem:[#allocation2 + $0x58] sm:$0xff] }
 0x197   :  { %v14178_v21 = vcombine.high %v785_v15, %v789_v16  ;;  %v14177_v30 = vcombine.low %v785_v15, %v789_v16 }
 0x199   :  { %6367 = vmatpush1.bf16.msra.mxu0 %v14119_v22  ;;  %6695 = vmatpush1.bf16.msra.mxu1 %v14121_v24  ;;  %v792_v22 = vld [vmem:[#allocation4 + $0x1480] sm:$0xff] }
 0x19a   :  { %6368 = vmatprep.subr.bf16.mxu0 %v14128_v26  ;;  %6696 = vmatprep.subr.bf16.mxu1 %v14130_v27  ;;  %v796_v24 = vld [vmem:[#allocation4 + $0x14a0] sm:$0xff]  ;;  %v16152_v26 = vpack.c.bf16 %v115_v17, %v115_v17  ;;  %v793_v27 = vld [vmem:[#allocation4 + $0x1488] sm:$0xff] }
 0x19b   :  { %v14184_v31 = vcombine.high %v792_v22, %v796_v24  ;;  %v14183_v39 = vcombine.low %v792_v22, %v796_v24  ;;  %v14185_v40 = vcombine.low %v793_v27, %v797_v28  ;;  %v840_v17 = vld [vmem:[#allocation4 + $0x1600] sm:$0xff] }
 0x19d   :  { %6369 = vmatpush1.bf16.msra.mxu0 %v14127_v32  ;;  %6697 = vmatpush1.bf16.msra.mxu1 %v14129_v33  ;;  %v14186_v32 = vcombine.high %v793_v27, %v797_v28  ;;  %v800_v33 = vld [vmem:[#allocation4 + $0x14c0] sm:$0xff] }
 0x19e   :  { %6370 = vmatprep.subr.bf16.mxu0 %v14136_v35  ;;  %6698 = vmatprep.subr.bf16.mxu1 %v14138_v37  ;;  %v804_v35 = vld [vmem:[#allocation4 + $0x14e0] sm:$0xff]  ;;  %v801_v37 = vld [vmem:[#allocation4 + $0x14c8] sm:$0xff] }
 0x19f   :  { %v14192_v41 = vcombine.high %v800_v33, %v804_v35  ;;  %v14191_v48 = vcombine.low %v800_v33, %v804_v35  ;;  %v14193_v49 = vcombine.low %v801_v37, %v805_v38  ;;  %v848_v28 = vld [vmem:[#allocation4 + $0x1640] sm:$0xff] }
 0x1a1   :  { %6371 = vmatpush1.bf16.msra.mxu0 %v14135_v42  ;;  %6699 = vmatpush1.bf16.msra.mxu1 %v14137_v43  ;;  %v14194_v42 = vcombine.high %v801_v37, %v805_v38  ;;  %v808_v43 = vld [vmem:[#allocation4 + $0x1500] sm:$0xff] }
 0x1a2   :  { %6372 = vmatprep.subr.bf16.mxu0 %v14144_v44  ;;  %6700 = vmatprep.subr.bf16.mxu1 %v14146_v45  ;;  %v812_v44 = vld [vmem:[#allocation4 + $0x1520] sm:$0xff]  ;;  %v809_v45 = vld [vmem:[#allocation4 + $0x1508] sm:$0xff] }
 0x1a3   :  { %v14200_v50 = vcombine.high %v808_v43, %v812_v44  ;;  %v14199_v58 = vcombine.low %v808_v43, %v812_v44  ;;  %v14201_v59 = vcombine.low %v809_v45, %v813_v47  ;;  %v856_v38 = vld [vmem:[#allocation4 + $0x1680] sm:$0xff] }
 0x1a5   :  { %6373 = vmatpush1.bf16.msra.mxu0 %v14143_v51  ;;  %6701 = vmatpush1.bf16.msra.mxu1 %v14145_v52  ;;  %v14202_v51 = vcombine.high %v809_v45, %v813_v47  ;;  %v816_v52 = vld [vmem:[#allocation4 + $0x1540] sm:$0xff] }
 0x1a6   :  { %6374 = vmatprep.subr.bf16.mxu0 %v14152_v53  ;;  %6702 = vmatprep.subr.bf16.mxu1 %v14154_v55  ;;  %v820_v53 = vld [vmem:[#allocation4 + $0x1560] sm:$0xff]  ;;  %v817_v55 = vld [vmem:[#allocation4 + $0x1548] sm:$0xff] }
 0x1a7   :  { %v14208_v60 = vcombine.high %v816_v52, %v820_v53  ;;  %v14207_v3 = vcombine.low %v816_v52, %v820_v53  ;;  %v14209_v4 = vcombine.low %v817_v55, %v821_v56  ;;  %v864_v47 = vld [vmem:[#allocation4 + $0x16c0] sm:$0xff] }
 0x1a9   :  { %6375 = vmatpush1.bf16.msra.mxu0 %v14151_v61  ;;  %6703 = vmatpush1.bf16.msra.mxu1 %v14153_v62  ;;  %v14210_v61 = vcombine.high %v817_v55, %v821_v56  ;;  %v824_v62 = vld [vmem:[#allocation4 + $0x1580] sm:$0xff] }
 0x1aa   :  { %6376 = vmatprep.subr.bf16.mxu0 %v14160_v63  ;;  %6704 = vmatprep.subr.bf16.mxu1 %v14162_v0  ;;  %v828_v63 = vld [vmem:[#allocation4 + $0x15a0] sm:$0xff]  ;;  %v825_v0 = vld [vmem:[#allocation4 + $0x1588] sm:$0xff] }
 0x1ab   :  { %v14216_v5 = vcombine.high %v824_v62, %v828_v63  ;;  %v14215_v11 = vcombine.low %v824_v62, %v828_v63  ;;  %v14217_v13 = vcombine.low %v825_v0, %v829_v2  ;;  %v872_v56 = vld [vmem:[#allocation4 + $0x1700] sm:$0xff] }
 0x1ad   :  { %6377 = vmatpush1.bf16.msra.mxu0 %v14159_v6  ;;  %6705 = vmatpush1.bf16.msra.mxu1 %v14161_v8  ;;  %v14218_v6 = vcombine.high %v825_v0, %v829_v2  ;;  %v836_v8 = vld [vmem:[#allocation4 + $0x15e0] sm:$0xff] }
 0x1ae   :  { %6387 = vmatprep.subr.bf16.mxu0 %v14168_v9  ;;  %6715 = vmatprep.subr.bf16.mxu1 %v14170_v10  ;;  %v833_v9 = vld [vmem:[#allocation4 + $0x15c8] sm:$0xff]  ;;  %v14224_v15 = vcombine.high %v832_v7, %v836_v8  ;;  %v880_v2 = vld [vmem:[#allocation4 + $0x1740] sm:$0xff] }
 0x1af   :  { %v837_v10 = vld [vmem:[#allocation4 + $0x15e8] sm:$0xff] }
 0x1b0   :  { %6379 = vmatmul.mubr.bf16.vlgmr.msra.gmra.mrb[0].mxu0 %v16150_v14  ;;  %6707 = vmatmul.mubr.bf16.vlgmr.msra.gmra.mrb[0].mxu1 %v16150_v14  ;;  %v14226_v16 = vcombine.high %v833_v9, %v837_v10  ;;  %v14225_v22 = vcombine.low %v833_v9, %v837_v10  ;;  %v888_v10 = vld [vmem:[#allocation4 + $0x1780] sm:$0xff] }
 0x1b1   :  { %6388 = vmatpush1.bf16.msra.mxu0 %v14167_v18  ;;  %6716 = vmatpush1.bf16.msra.mxu1 %v14169_v19  ;;  %v844_v18 = vld [vmem:[#allocation4 + $0x1620] sm:$0xff]  ;;  %v841_v19 = vld [vmem:[#allocation4 + $0x1608] sm:$0xff] }
 0x1b2   :  { %6389 = vmatprep.subr.bf16.mxu0 %v14176_v20  ;;  %6717 = vmatprep.subr.bf16.mxu1 %v14178_v21  ;;  %v845_v20 = vld [vmem:[#allocation4 + $0x1628] sm:$0xff]  ;;  %v14223_v21 = vcombine.low %v832_v7, %v836_v8  ;;  %v14232_v24 = vcombine.high %v840_v17, %v844_v18 }
 0x1b3   :  { %6419 = vmatprep.mubr.bf16.mxu0 %v16152_v26  ;;  %6747 = vmatprep.mubr.bf16.mxu1 %v16152_v26  ;;  %v14234_v27 = vcombine.high %v841_v19, %v845_v20  ;;  %v14233_v33 = vcombine.low %v841_v19, %v845_v20  ;;  %v896_v20 = vld [vmem:[#allocation4 + $0x17c0] sm:$0xff] }
 0x1b5   :  { %6390 = vmatpush1.bf16.msra.mxu0 %v14175_v29  ;;  %6718 = vmatpush1.bf16.msra.mxu1 %v14177_v30  ;;  %v852_v29 = vld [vmem:[#allocation4 + $0x1660] sm:$0xff]  ;;  %v849_v30 = vld [vmem:[#allocation4 + $0x1648] sm:$0xff] }
 0x1b6   :  { %6391 = vmatprep.subr.bf16.mxu0 %v14184_v31  ;;  %6719 = vmatprep.subr.bf16.mxu1 %v14186_v32  ;;  %v853_v31 = vld [vmem:[#allocation4 + $0x1668] sm:$0xff]  ;;  %v14231_v32 = vcombine.low %v840_v17, %v844_v18  ;;  %v14240_v35 = vcombine.high %v848_v28, %v852_v29 }
 0x1b7   :  { %v14242_v37 = vcombine.high %v849_v30, %v853_v31  ;;  %v14241_v43 = vcombine.low %v849_v30, %v853_v31  ;;  %v904_v31 = vld [vmem:[#allocation4 + $0x1800] sm:$0xff] }
 0x1b9   :  { %6392 = vmatpush1.bf16.msra.mxu0 %v14183_v39  ;;  %6720 = vmatpush1.bf16.msra.mxu1 %v14185_v40  ;;  %v860_v39 = vld [vmem:[#allocation4 + $0x16a0] sm:$0xff]  ;;  %v857_v40 = vld [vmem:[#allocation4 + $0x1688] sm:$0xff] }
 0x1ba   :  { %6393 = vmatprep.subr.bf16.mxu0 %v14192_v41  ;;  %6721 = vmatprep.subr.bf16.mxu1 %v14194_v42  ;;  %v861_v41 = vld [vmem:[#allocation4 + $0x16a8] sm:$0xff]  ;;  %v14239_v42 = vcombine.low %v848_v28, %v852_v29  ;;  %v14248_v44 = vcombine.high %v856_v38, %v860_v39 }
 0x1bb   :  { %v14250_v45 = vcombine.high %v857_v40, %v861_v41  ;;  %v14249_v52 = vcombine.low %v857_v40, %v861_v41 }
 0x1bd   :  { %6394 = vmatpush1.bf16.msra.mxu0 %v14191_v48  ;;  %6722 = vmatpush1.bf16.msra.mxu1 %v14193_v49  ;;  %v868_v48 = vld [vmem:[#allocation4 + $0x16e0] sm:$0xff]  ;;  %v865_v49 = vld [vmem:[#allocation4 + $0x16c8] sm:$0xff] }
 0x1be   :  { %6395 = vmatprep.subr.bf16.mxu0 %v14200_v50  ;;  %6723 = vmatprep.subr.bf16.mxu1 %v14202_v51  ;;  %v869_v50 = vld [vmem:[#allocation4 + $0x16e8] sm:$0xff]  ;;  %v14247_v51 = vcombine.low %v856_v38, %v860_v39  ;;  %v14256_v53 = vcombine.high %v864_v47, %v868_v48  ;;  %v114_v38 = vld [vmem:[#allocation2 + $0x50] sm:$0xff] }
 0x1bf   :  { %v14258_v55 = vcombine.high %v865_v49, %v869_v50  ;;  %v14257_v62 = vcombine.low %v865_v49, %v869_v50 }
 0x1c1   :  { %6396 = vmatpush1.bf16.msra.mxu0 %v14199_v58  ;;  %6724 = vmatpush1.bf16.msra.mxu1 %v14201_v59  ;;  %v876_v58 = vld [vmem:[#allocation4 + $0x1720] sm:$0xff]  ;;  %v873_v59 = vld [vmem:[#allocation4 + $0x1708] sm:$0xff] }
 0x1c2   :  { %6397 = vmatprep.subr.bf16.mxu0 %v14208_v60  ;;  %6725 = vmatprep.subr.bf16.mxu1 %v14210_v61  ;;  %v877_v60 = vld [vmem:[#allocation4 + $0x1728] sm:$0xff]  ;;  %v14255_v61 = vcombine.low %v864_v47, %v868_v48  ;;  %v14264_v63 = vcombine.high %v872_v56, %v876_v58 }
 0x1c3   :  { %v14266_v0 = vcombine.high %v873_v59, %v877_v60  ;;  %v14265_v7 = vcombine.low %v873_v59, %v877_v60  ;;  %v917_v47 = vld [vmem:[#allocation4 + $0x1868] sm:$0xff] }
 0x1c4   :  { %v117_v48 = vld [vmem:[#allocation2 + $0x68] sm:$0xff] }
 0x1c5   :  { %6398 = vmatpush1.bf16.msra.mxu0 %v14207_v3  ;;  %6726 = vmatpush1.bf16.msra.mxu1 %v14209_v4  ;;  %v884_v3 = vld [vmem:[#allocation4 + $0x1760] sm:$0xff]  ;;  %v881_v4 = vld [vmem:[#allocation4 + $0x1748] sm:$0xff] }
 0x1c6   :  { %6399 = vmatprep.subr.bf16.mxu0 %v14216_v5  ;;  %6727 = vmatprep.subr.bf16.mxu1 %v14218_v6  ;;  %v885_v5 = vld [vmem:[#allocation4 + $0x1768] sm:$0xff]  ;;  %v14263_v6 = vcombine.low %v872_v56, %v876_v58  ;;  %v14272_v8 = vcombine.high %v880_v2, %v884_v3  ;;  %v16160_v56 = vpack.c.bf16 %v117_v48, %v117_v48 }
 0x1c7   :  { %v14274_v9 = vcombine.high %v881_v4, %v885_v5  ;;  %v14273_v17 = vcombine.low %v881_v4, %v885_v5  ;;  %v921_v58 = vld [vmem:[#allocation4 + $0x1888] sm:$0xff] }
 0x1c8   :  { %v925_v59 = vld [vmem:[#allocation4 + $0x18a8] sm:$0xff] }
 0x1c9   :  { %6400 = vmatpush1.bf16.msra.mxu0 %v14215_v11  ;;  %6728 = vmatpush1.bf16.msra.mxu1 %v14217_v13  ;;  %v892_v11 = vld [vmem:[#allocation4 + $0x17a0] sm:$0xff]  ;;  %v889_v13 = vld [vmem:[#allocation4 + $0x1788] sm:$0xff] }
 0x1ca   :  { %6401 = vmatprep.subr.bf16.mxu0 %v14224_v15  ;;  %6729 = vmatprep.subr.bf16.mxu1 %v14226_v16  ;;  %v893_v15 = vld [vmem:[#allocation4 + $0x17a8] sm:$0xff]  ;;  %v14271_v16 = vcombine.low %v880_v2, %v884_v3  ;;  %v14280_v18 = vcombine.high %v888_v10, %v892_v11  ;;  %v932_v2 = vld [vmem:[#allocation4 + $0x18e0] sm:$0xff] }
 0x1cb   :  { %v14282_v19 = vcombine.high %v889_v13, %v893_v15  ;;  %v14281_v28 = vcombine.low %v889_v13, %v893_v15  ;;  %v929_v3 = vld [vmem:[#allocation4 + $0x18c8] sm:$0xff] }
 0x1cc   :  { %v933_v4 = vld [vmem:[#allocation4 + $0x18e8] sm:$0xff] }
 0x1cd   :  { %6402 = vmatpush1.bf16.msra.mxu0 %v14223_v21  ;;  %6730 = vmatpush1.bf16.msra.mxu1 %v14225_v22  ;;  %v900_v21 = vld [vmem:[#allocation4 + $0x17e0] sm:$0xff]  ;;  %v897_v22 = vld [vmem:[#allocation4 + $0x17c8] sm:$0xff] }
 0x1ce   :  { %6403 = vmatprep.subr.bf16.mxu0 %v14232_v24  ;;  %6731 = vmatprep.subr.bf16.mxu1 %v14234_v27  ;;  %v901_v24 = vld [vmem:[#allocation4 + $0x17e8] sm:$0xff]  ;;  %v14279_v27 = vcombine.low %v888_v10, %v892_v11  ;;  %v14288_v29 = vcombine.high %v896_v20, %v900_v21  ;;  %v940_v10 = vld [vmem:[#allocation4 + $0x1920] sm:$0xff] }
 0x1cf   :  { %v14290_v30 = vcombine.high %v897_v22, %v901_v24  ;;  %v14289_v39 = vcombine.low %v897_v22, %v901_v24  ;;  %v937_v11 = vld [vmem:[#allocation4 + $0x1908] sm:$0xff] }
 0x1d0   :  { %v941_v13 = vld [vmem:[#allocation4 + $0x1928] sm:$0xff] }
 0x1d1   :  { %6404 = vmatpush1.bf16.msra.mxu0 %v14231_v32  ;;  %6732 = vmatpush1.bf16.msra.mxu1 %v14233_v33  ;;  %v908_v32 = vld [vmem:[#allocation4 + $0x1820] sm:$0xff]  ;;  %v905_v33 = vld [vmem:[#allocation4 + $0x1808] sm:$0xff] }
 0x1d2   :  { %6405 = vmatprep.subr.bf16.mxu0 %v14240_v35  ;;  %6733 = vmatprep.subr.bf16.mxu1 %v14242_v37  ;;  %v909_v35 = vld [vmem:[#allocation4 + $0x1828] sm:$0xff]  ;;  %v14287_v37 = vcombine.low %v896_v20, %v900_v21  ;;  %v14296_v40 = vcombine.high %v904_v31, %v908_v32  ;;  %v14295_v49 = vcombine.low %v904_v31, %v908_v32  ;;  %v948_v20 = vld [vmem:[#allocation4 + $0x1960] sm:$0xff] }
 0x1d3   :  { %v14298_v41 = vcombine.high %v905_v33, %v909_v35  ;;  %v14297_v50 = vcombine.low %v905_v33, %v909_v35  ;;  %v945_v21 = vld [vmem:[#allocation4 + $0x1948] sm:$0xff]  ;;  %v956_v31 = vld [vmem:[#allocation4 + $0x19a0] sm:$0xff] }
 0x1d4   :  { %v949_v22 = vld [vmem:[#allocation4 + $0x1968] sm:$0xff] }
 0x1d5   :  { %6406 = vmatpush1.bf16.msra.mxu0 %v14239_v42  ;;  %6734 = vmatpush1.bf16.msra.mxu1 %v14241_v43  ;;  %v912_v42 = vld [vmem:[#allocation4 + $0x1840] sm:$0xff]  ;;  %v953_v32 = vld [vmem:[#allocation4 + $0x1988] sm:$0xff] }
 0x1d6   :  { %6407 = vmatprep.subr.bf16.mxu0 %v14248_v44  ;;  %6735 = vmatprep.subr.bf16.mxu1 %v14250_v45  ;;  %v916_v43 = vld [vmem:[#allocation4 + $0x1860] sm:$0xff]  ;;  %v16158_v44 = vpack.c.bf16 %v114_v38, %v114_v38  ;;  %v913_v45 = vld [vmem:[#allocation4 + $0x1848] sm:$0xff] }
 0x1d7   :  { %v14303_v60 = vcombine.low %v912_v42, %v916_v43  ;;  %v957_v33 = vld [vmem:[#allocation4 + $0x19a8] sm:$0xff] }
 0x1d9   :  { %6408 = vmatpush1.bf16.msra.mxu0 %v14247_v51  ;;  %6736 = vmatpush1.bf16.msra.mxu1 %v14249_v52  ;;  %v14304_v51 = vcombine.high %v912_v42, %v916_v43  ;;  %v14306_v52 = vcombine.high %v913_v45, %v917_v47  ;;  %v961_v42 = vld [vmem:[#allocation4 + $0x19c8] sm:$0xff] }
 0x1da   :  { %6409 = vmatprep.subr.bf16.mxu0 %v14256_v53  ;;  %6737 = vmatprep.subr.bf16.mxu1 %v14258_v55  ;;  %v920_v53 = vld [vmem:[#allocation4 + $0x1880] sm:$0xff]  ;;  %v965_v43 = vld [vmem:[#allocation4 + $0x19e8] sm:$0xff] }
 0x1db   :  { %v924_v55 = vld [vmem:[#allocation4 + $0x18a0] sm:$0xff] }
 0x1dc   :  { %v14311_v5 = vcombine.low %v920_v53, %v924_v55 }
 0x1dd   :  { %6410 = vmatpush1.bf16.msra.mxu0 %v14255_v61  ;;  %6738 = vmatpush1.bf16.msra.mxu1 %v14257_v62  ;;  %v14305_v61 = vcombine.low %v913_v45, %v917_v47  ;;  %v14312_v62 = vcombine.high %v920_v53, %v924_v55  ;;  %v14345_v47 = vcombine.low %v953_v32, %v957_v33  ;;  %v973_v53 = vld [vmem:[#allocation4 + $0x1a28] sm:$0xff] }
 0x1de   :  { %6411 = vmatprep.subr.bf16.mxu0 %v14264_v63  ;;  %6739 = vmatprep.subr.bf16.mxu1 %v14266_v0  ;;  %v14314_v63 = vcombine.high %v921_v58, %v925_v59  ;;  %v928_v0 = vld [vmem:[#allocation4 + $0x18c0] sm:$0xff] }
 0x1df   :  { %v14319_v15 = vcombine.low %v928_v0, %v932_v2 }
 0x1e1   :  { %6412 = vmatpush1.bf16.msra.mxu0 %v14263_v6  ;;  %6740 = vmatpush1.bf16.msra.mxu1 %v14265_v7  ;;  %v14313_v6 = vcombine.low %v921_v58, %v925_v59  ;;  %v14320_v7 = vcombine.high %v928_v0, %v932_v2  ;;  %v14353_v58 = vcombine.low %v961_v42, %v965_v43  ;;  %v981_v0 = vld [vmem:[#allocation4 + $0x1a68] sm:$0xff] }
 0x1e2   :  { %6413 = vmatprep.subr.bf16.mxu0 %v14272_v8  ;;  %6741 = vmatprep.subr.bf16.mxu1 %v14274_v9  ;;  %v14322_v8 = vcombine.high %v929_v3, %v933_v4  ;;  %v936_v9 = vld [vmem:[#allocation4 + $0x1900] sm:$0xff] }
 0x1e3   :  { %v14327_v24 = vcombine.low %v936_v9, %v940_v10 }
 0x1e5   :  { %6414 = vmatpush1.bf16.msra.mxu0 %v14271_v16  ;;  %6742 = vmatpush1.bf16.msra.mxu1 %v14273_v17  ;;  %v14321_v16 = vcombine.low %v929_v3, %v933_v4  ;;  %v14328_v17 = vcombine.high %v936_v9, %v940_v10  ;;  %v989_v9 = vld [vmem:[#allocation4 + $0x1aa8] sm:$0xff] }
 0x1e6   :  { %6415 = vmatprep.subr.bf16.mxu0 %v14280_v18  ;;  %6743 = vmatprep.subr.bf16.mxu1 %v14282_v19  ;;  %v14330_v18 = vcombine.high %v937_v11, %v941_v13  ;;  %v944_v19 = vld [vmem:[#allocation4 + $0x1940] sm:$0xff] }
 0x1e7   :  { %v14335_v35 = vcombine.low %v944_v19, %v948_v20 }
 0x1e9   :  { %6416 = vmatpush1.bf16.msra.mxu0 %v14279_v27  ;;  %6744 = vmatpush1.bf16.msra.mxu1 %v14281_v28  ;;  %v14329_v27 = vcombine.low %v937_v11, %v941_v13  ;;  %v14336_v28 = vcombine.high %v944_v19, %v948_v20  ;;  %v997_v19 = vld [vmem:[#allocation4 + $0x1ae8] sm:$0xff] }
 0x1ea   :  { %6417 = vmatprep.subr.bf16.mxu0 %v14288_v29  ;;  %6745 = vmatprep.subr.bf16.mxu1 %v14290_v30  ;;  %v14338_v29 = vcombine.high %v945_v21, %v949_v22  ;;  %v952_v30 = vld [vmem:[#allocation4 + $0x1980] sm:$0xff] }
 0x1eb   :  { %v14344_v38 = vcombine.high %v952_v30, %v956_v31  ;;  %v14343_v45 = vcombine.low %v952_v30, %v956_v31  ;;  %v1005_v30 = vld [vmem:[#allocation4 + $0x1b28] sm:$0xff] }
 0x1ed   :  { %6418 = vmatpush1.bf16.msra.mxu0 %v14287_v37  ;;  %6746 = vmatpush1.bf16.msra.mxu1 %v14289_v39  ;;  %v14337_v37 = vcombine.low %v945_v21, %v949_v22  ;;  %v14346_v39 = vcombine.high %v953_v32, %v957_v33 }
 0x1ee   :  { %6428 = vmatprep.subr.bf16.mxu0 %v14296_v40  ;;  %6756 = vmatprep.subr.bf16.mxu1 %v14298_v41  ;;  %v960_v40 = vld [vmem:[#allocation4 + $0x19c0] sm:$0xff] }
 0x1ef   :  { %v964_v41 = vld [vmem:[#allocation4 + $0x19e0] sm:$0xff] }
 0x1f0   :  { %6420 = vmatmul.mubr.bf16.vlgmr.msra.gmra.mrb[0].mxu0 %v16158_v44  ;;  %6748 = vmatmul.mubr.bf16.vlgmr.msra.gmra.mrb[0].mxu1 %v16158_v44  ;;  %v14352_v48 = vcombine.high %v960_v40, %v964_v41  ;;  %v14351_v55 = vcombine.low %v960_v40, %v964_v41  ;;  %v1013_v40 = vld [vmem:[#allocation4 + $0x1b68] sm:$0xff] }
 0x1f1   :  { %6429 = vmatpush1.bf16.msra.mxu0 %v14295_v49  ;;  %6757 = vmatpush1.bf16.msra.mxu1 %v14297_v50  ;;  %v14354_v49 = vcombine.high %v961_v42, %v965_v43  ;;  %v968_v50 = vld [vmem:[#allocation4 + $0x1a00] sm:$0xff] }
 0x1f2   :  { %6430 = vmatprep.subr.bf16.mxu0 %v14304_v51  ;;  %6758 = vmatprep.subr.bf16.mxu1 %v14306_v52  ;;  %v972_v51 = vld [vmem:[#allocation4 + $0x1a20] sm:$0xff]  ;;  %v969_v52 = vld [vmem:[#allocation4 + $0x1a08] sm:$0xff] }
 0x1f3   :  { %6460 = vmatprep.mubr.bf16.mxu0 %v16160_v56  ;;  %6788 = vmatprep.mubr.bf16.mxu1 %v16160_v56  ;;  %v14360_v59 = vcombine.high %v968_v50, %v972_v51  ;;  %v14359_v2 = vcombine.low %v968_v50, %v972_v51  ;;  %v14361_v3 = vcombine.low %v969_v52, %v973_v53  ;;  %v1021_v50 = vld [vmem:[#allocation4 + $0x1ba8] sm:$0xff] }
 0x1f5   :  { %6431 = vmatpush1.bf16.msra.mxu0 %v14303_v60  ;;  %6759 = vmatpush1.bf16.msra.mxu1 %v14305_v61  ;;  %v14362_v60 = vcombine.high %v969_v52, %v973_v53  ;;  %v976_v61 = vld [vmem:[#allocation4 + $0x1a40] sm:$0xff] }
 0x1f6   :  { %6432 = vmatprep.subr.bf16.mxu0 %v14312_v62  ;;  %6760 = vmatprep.subr.bf16.mxu1 %v14314_v63  ;;  %v980_v62 = vld [vmem:[#allocation4 + $0x1a60] sm:$0xff]  ;;  %v977_v63 = vld [vmem:[#allocation4 + $0x1a48] sm:$0xff] }
 0x1f7   :  { %v14368_v4 = vcombine.high %v976_v61, %v980_v62  ;;  %v14367_v10 = vcombine.low %v976_v61, %v980_v62  ;;  %v14369_v11 = vcombine.low %v977_v63, %v981_v0  ;;  %v1029_v61 = vld [vmem:[#allocation4 + $0x1be8] sm:$0xff] }
 0x1f9   :  { %6433 = vmatpush1.bf16.msra.mxu0 %v14311_v5  ;;  %6761 = vmatpush1.bf16.msra.mxu1 %v14313_v6  ;;  %v14370_v5 = vcombine.high %v977_v63, %v981_v0  ;;  %v984_v6 = vld [vmem:[#allocation4 + $0x1a80] sm:$0xff] }
 0x1fa   :  { %6434 = vmatprep.subr.bf16.mxu0 %v14320_v7  ;;  %6762 = vmatprep.subr.bf16.mxu1 %v14322_v8  ;;  %v988_v7 = vld [vmem:[#allocation4 + $0x1aa0] sm:$0xff]  ;;  %v985_v8 = vld [vmem:[#allocation4 + $0x1a88] sm:$0xff] }
 0x1fb   :  { %v14376_v13 = vcombine.high %v984_v6, %v988_v7  ;;  %v14375_v20 = vcombine.low %v984_v6, %v988_v7  ;;  %v14377_v21 = vcombine.low %v985_v8, %v989_v9  ;;  %v1037_v6 = vld [vmem:[#allocation4 + $0x1c28] sm:$0xff] }
 0x1fd   :  { %6435 = vmatpush1.bf16.msra.mxu0 %v14319_v15  ;;  %6763 = vmatpush1.bf16.msra.mxu1 %v14321_v16  ;;  %v14378_v15 = vcombine.high %v985_v8, %v989_v9  ;;  %v992_v16 = vld [vmem:[#allocation4 + $0x1ac0] sm:$0xff] }
 0x1fe   :  { %6436 = vmatprep.subr.bf16.mxu0 %v14328_v17  ;;  %6764 = vmatprep.subr.bf16.mxu1 %v14330_v18  ;;  %v996_v17 = vld [vmem:[#allocation4 + $0x1ae0] sm:$0xff]  ;;  %v993_v18 = vld [vmem:[#allocation4 + $0x1ac8] sm:$0xff] }
 0x1ff   :  { %v14384_v22 = vcombine.high %v992_v16, %v996_v17  ;;  %v14383_v31 = vcombine.low %v992_v16, %v996_v17  ;;  %v14385_v32 = vcombine.low %v993_v18, %v997_v19  ;;  %v116_v8 = vld [vmem:[#allocation2 + $0x60] sm:$0xff]  ;;  %v1041_v17 = vld [vmem:[#allocation4 + $0x1c48] sm:$0xff] }
 0x200   :  { %v16166_v16 = vpack.c.bf16 %v116_v8, %v116_v8 }
 0x201   :  { %6437 = vmatpush1.bf16.msra.mxu0 %v14327_v24  ;;  %6765 = vmatpush1.bf16.msra.mxu1 %v14329_v27  ;;  %v14386_v24 = vcombine.high %v993_v18, %v997_v19  ;;  %v1000_v27 = vld [vmem:[#allocation4 + $0x1b00] sm:$0xff]  ;;  %v1045_v18 = vld [vmem:[#allocation4 + $0x1c68] sm:$0xff]  ;;  %v119_v19 = vld [vmem:[#allocation2 + $0x78] sm:$0xff] }
 0x202   :  { %6438 = vmatprep.subr.bf16.mxu0 %v14336_v28  ;;  %6766 = vmatprep.subr.bf16.mxu1 %v14338_v29  ;;  %v1004_v28 = vld [vmem:[#allocation4 + $0x1b20] sm:$0xff]  ;;  %v1001_v29 = vld [vmem:[#allocation4 + $0x1b08] sm:$0xff] }
 0x203   :  { %v14392_v33 = vcombine.high %v1000_v27, %v1004_v28  ;;  %v14391_v41 = vcombine.low %v1000_v27, %v1004_v28  ;;  %v14393_v42 = vcombine.low %v1001_v29, %v1005_v30  ;;  %v1048_v27 = vld [vmem:[#allocation4 + $0x1c80] sm:$0xff] }
 0x204   :  { %v1052_v28 = vld [vmem:[#allocation4 + $0x1ca0] sm:$0xff] }
 0x205   :  { %6439 = vmatpush1.bf16.msra.mxu0 %v14335_v35  ;;  %6767 = vmatpush1.bf16.msra.mxu1 %v14337_v37  ;;  %v14394_v35 = vcombine.high %v1001_v29, %v1005_v30  ;;  %v1008_v37 = vld [vmem:[#allocation4 + $0x1b40] sm:$0xff]  ;;  %v16168_v29 = vpack.c.bf16 %v119_v19, %v119_v19  ;;  %v1049_v30 = vld [vmem:[#allocation4 + $0x1c88] sm:$0xff] }
 0x206   :  { %6440 = vmatprep.subr.bf16.mxu0 %v14344_v38  ;;  %6768 = vmatprep.subr.bf16.mxu1 %v14346_v39  ;;  %v1012_v38 = vld [vmem:[#allocation4 + $0x1b60] sm:$0xff]  ;;  %v1009_v39 = vld [vmem:[#allocation4 + $0x1b48] sm:$0xff] }
 0x207   :  { %v14400_v43 = vcombine.high %v1008_v37, %v1012_v38  ;;  %v14399_v51 = vcombine.low %v1008_v37, %v1012_v38  ;;  %v14401_v52 = vcombine.low %v1009_v39, %v1013_v40  ;;  %v1056_v38 = vld [vmem:[#allocation4 + $0x1cc0] sm:$0xff] }
 0x209   :  { %6441 = vmatpush1.bf16.msra.mxu0 %v14343_v45  ;;  %6769 = vmatpush1.bf16.msra.mxu1 %v14345_v47  ;;  %v14402_v45 = vcombine.high %v1009_v39, %v1013_v40  ;;  %v1016_v47 = vld [vmem:[#allocation4 + $0x1b80] sm:$0xff]  ;;  %v1057_v40 = vld [vmem:[#allocation4 + $0x1cc8] sm:$0xff] }
 0x20a   :  { %6442 = vmatprep.subr.bf16.mxu0 %v14352_v48  ;;  %6770 = vmatprep.subr.bf16.mxu1 %v14354_v49  ;;  %v1020_v48 = vld [vmem:[#allocation4 + $0x1ba0] sm:$0xff]  ;;  %v1017_v49 = vld [vmem:[#allocation4 + $0x1b88] sm:$0xff] }
 0x20b   :  { %v14408_v53 = vcombine.high %v1016_v47, %v1020_v48  ;;  %v14407_v62 = vcombine.low %v1016_v47, %v1020_v48  ;;  %v14409_v63 = vcombine.low %v1017_v49, %v1021_v50  ;;  %v1060_v39 = vld [vmem:[#allocation4 + $0x1ce0] sm:$0xff] }
 0x20c   :  { %v1064_v48 = vld [vmem:[#allocation4 + $0x1d00] sm:$0xff] }
 0x20d   :  { %6443 = vmatpush1.bf16.msra.mxu0 %v14351_v55  ;;  %6771 = vmatpush1.bf16.msra.mxu1 %v14353_v58  ;;  %v14410_v55 = vcombine.high %v1017_v49, %v1021_v50  ;;  %v1024_v58 = vld [vmem:[#allocation4 + $0x1bc0] sm:$0xff]  ;;  %v1065_v50 = vld [vmem:[#allocation4 + $0x1d08] sm:$0xff] }
 0x20e   :  { %6444 = vmatprep.subr.bf16.mxu0 %v14360_v59  ;;  %6772 = vmatprep.subr.bf16.mxu1 %v14362_v60  ;;  %v1028_v59 = vld [vmem:[#allocation4 + $0x1be0] sm:$0xff]  ;;  %v1025_v60 = vld [vmem:[#allocation4 + $0x1bc8] sm:$0xff] }
 0x20f   :  { %v14416_v0 = vcombine.high %v1024_v58, %v1028_v59  ;;  %v14415_v7 = vcombine.low %v1024_v58, %v1028_v59  ;;  %v14417_v9 = vcombine.low %v1025_v60, %v1029_v61  ;;  %v1068_v49 = vld [vmem:[#allocation4 + $0x1d20] sm:$0xff] }
 0x210   :  { %v1072_v59 = vld [vmem:[#allocation4 + $0x1d40] sm:$0xff] }
 0x211   :  { %6445 = vmatpush1.bf16.msra.mxu0 %v14359_v2  ;;  %6773 = vmatpush1.bf16.msra.mxu1 %v14361_v3  ;;  %v14418_v2 = vcombine.high %v1025_v60, %v1029_v61  ;;  %v1032_v3 = vld [vmem:[#allocation4 + $0x1c00] sm:$0xff]  ;;  %v1073_v61 = vld [vmem:[#allocation4 + $0x1d48] sm:$0xff] }
 0x212   :  { %6446 = vmatprep.subr.bf16.mxu0 %v14368_v4  ;;  %6774 = vmatprep.subr.bf16.mxu1 %v14370_v5  ;;  %v1036_v4 = vld [vmem:[#allocation4 + $0x1c20] sm:$0xff]  ;;  %v1033_v5 = vld [vmem:[#allocation4 + $0x1c08] sm:$0xff] }
 0x213   :  { %v1076_v60 = vld [vmem:[#allocation4 + $0x1d60] sm:$0xff] }
 0x214   :  { %v14463_v8 = vcombine.low %v1072_v59, %v1076_v60 }
 0x215   :  { %6447 = vmatpush1.bf16.msra.mxu0 %v14367_v10  ;;  %6775 = vmatpush1.bf16.msra.mxu1 %v14369_v11  ;;  %v14424_v10 = vcombine.high %v1032_v3, %v1036_v4  ;;  %v14426_v11 = vcombine.high %v1033_v5, %v1037_v6 }
 0x216   :  { %6448 = vmatprep.subr.bf16.mxu0 %v14376_v13  ;;  %6776 = vmatprep.subr.bf16.mxu1 %v14378_v15  ;;  %v1040_v13 = vld [vmem:[#allocation4 + $0x1c40] sm:$0xff] }
 0x217   :  { %v1044_v15 = vld [vmem:[#allocation4 + $0x1c60] sm:$0xff] }
 0x219   :  { %6449 = vmatpush1.bf16.msra.mxu0 %v14375_v20  ;;  %6777 = vmatpush1.bf16.msra.mxu1 %v14377_v21  ;;  %v14423_v20 = vcombine.low %v1032_v3, %v1036_v4  ;;  %v14425_v21 = vcombine.low %v1033_v5, %v1037_v6  ;;  %v1080_v4 = vld [vmem:[#allocation4 + $0x1d80] sm:$0xff]  ;;  %v1081_v6 = vld [vmem:[#allocation4 + $0x1d88] sm:$0xff] }
 0x21a   :  { %6450 = vmatprep.subr.bf16.mxu0 %v14384_v22  ;;  %6778 = vmatprep.subr.bf16.mxu1 %v14386_v24  ;;  %v14432_v22 = vcombine.high %v1040_v13, %v1044_v15  ;;  %v14434_v24 = vcombine.high %v1041_v17, %v1045_v18  ;;  %v1084_v5 = vld [vmem:[#allocation4 + $0x1da0] sm:$0xff] }
 0x21b   :  { %v14471_v19 = vcombine.low %v1080_v4, %v1084_v5 }
 0x21d   :  { %6451 = vmatpush1.bf16.msra.mxu0 %v14383_v31  ;;  %6779 = vmatpush1.bf16.msra.mxu1 %v14385_v32  ;;  %v1053_v31 = vld [vmem:[#allocation4 + $0x1ca8] sm:$0xff]  ;;  %v14431_v32 = vcombine.low %v1040_v13, %v1044_v15  ;;  %v1088_v13 = vld [vmem:[#allocation4 + $0x1dc0] sm:$0xff] }
 0x21e   :  { %6452 = vmatprep.subr.bf16.mxu0 %v14392_v33  ;;  %6780 = vmatprep.subr.bf16.mxu1 %v14394_v35  ;;  %v14433_v33 = vcombine.low %v1041_v17, %v1045_v18  ;;  %v14440_v35 = vcombine.high %v1048_v27, %v1052_v28  ;;  %v14442_v37 = vcombine.high %v1049_v30, %v1053_v31  ;;  %v1092_v15 = vld [vmem:[#allocation4 + $0x1de0] sm:$0xff]  ;;  %v1089_v17 = vld [vmem:[#allocation4 + $0x1dc8] sm:$0xff] }
 0x21f   :  { %v1093_v18 = vld [vmem:[#allocation4 + $0x1de8] sm:$0xff] }
 0x221   :  { %6453 = vmatpush1.bf16.msra.mxu0 %v14391_v41  ;;  %6781 = vmatpush1.bf16.msra.mxu1 %v14393_v42  ;;  %v1061_v41 = vld [vmem:[#allocation4 + $0x1ce8] sm:$0xff]  ;;  %v14439_v42 = vcombine.low %v1048_v27, %v1052_v28  ;;  %v1100_v27 = vld [vmem:[#allocation4 + $0x1e20] sm:$0xff] }
 0x222   :  { %6454 = vmatprep.subr.bf16.mxu0 %v14400_v43  ;;  %6782 = vmatprep.subr.bf16.mxu1 %v14402_v45  ;;  %v14441_v43 = vcombine.low %v1049_v30, %v1053_v31  ;;  %v14448_v45 = vcombine.high %v1056_v38, %v1060_v39  ;;  %v14450_v47 = vcombine.high %v1057_v40, %v1061_v41  ;;  %v1097_v28 = vld [vmem:[#allocation4 + $0x1e08] sm:$0xff] }
 0x223   :  { %v1101_v30 = vld [vmem:[#allocation4 + $0x1e28] sm:$0xff]  ;;  %v14479_v31 = vcombine.low %v1088_v13, %v1092_v15 }
 0x225   :  { %6455 = vmatpush1.bf16.msra.mxu0 %v14399_v51  ;;  %6783 = vmatpush1.bf16.msra.mxu1 %v14401_v52  ;;  %v1069_v51 = vld [vmem:[#allocation4 + $0x1d28] sm:$0xff]  ;;  %v14447_v52 = vcombine.low %v1056_v38, %v1060_v39  ;;  %v1108_v38 = vld [vmem:[#allocation4 + $0x1e60] sm:$0xff] }
 0x226   :  { %6456 = vmatprep.subr.bf16.mxu0 %v14408_v53  ;;  %6784 = vmatprep.subr.bf16.mxu1 %v14410_v55  ;;  %v14449_v53 = vcombine.low %v1057_v40, %v1061_v41  ;;  %v14456_v55 = vcombine.high %v1064_v48, %v1068_v49  ;;  %v14458_v58 = vcombine.high %v1065_v50, %v1069_v51  ;;  %v1105_v39 = vld [vmem:[#allocation4 + $0x1e48] sm:$0xff] }
 0x227   :  { %v1109_v40 = vld [vmem:[#allocation4 + $0x1e68] sm:$0xff] }
 0x229   :  { %6457 = vmatpush1.bf16.msra.mxu0 %v14407_v62  ;;  %6785 = vmatpush1.bf16.msra.mxu1 %v14409_v63  ;;  %v1077_v62 = vld [vmem:[#allocation4 + $0x1d68] sm:$0xff]  ;;  %v14455_v63 = vcombine.low %v1064_v48, %v1068_v49  ;;  %v1116_v48 = vld [vmem:[#allocation4 + $0x1ea0] sm:$0xff] }
 0x22a   :  { %6458 = vmatprep.subr.bf16.mxu0 %v14416_v0  ;;  %6786 = vmatprep.subr.bf16.mxu1 %v14418_v2  ;;  %v14457_v0 = vcombine.low %v1065_v50, %v1069_v51  ;;  %v14464_v2 = vcombine.high %v1072_v59, %v1076_v60  ;;  %v14466_v3 = vcombine.high %v1073_v61, %v1077_v62  ;;  %v1113_v49 = vld [vmem:[#allocation4 + $0x1e88] sm:$0xff]  ;;  %v1124_v59 = vld [vmem:[#allocation4 + $0x1ee0] sm:$0xff] }
 0x22b   :  { %v1117_v50 = vld [vmem:[#allocation4 + $0x1ea8] sm:$0xff] }
 0x22c   :  { %v1121_v60 = vld [vmem:[#allocation4 + $0x1ec8] sm:$0xff] }
 0x22d   :  { %6459 = vmatpush1.bf16.msra.mxu0 %v14415_v7  ;;  %6787 = vmatpush1.bf16.msra.mxu1 %v14417_v9  ;;  %v1085_v7 = vld [vmem:[#allocation4 + $0x1da8] sm:$0xff]  ;;  %v14465_v9 = vcombine.low %v1073_v61, %v1077_v62 }
 0x22e   :  { %6469 = vmatprep.subr.bf16.mxu0 %v14424_v10  ;;  %6797 = vmatprep.subr.bf16.mxu1 %v14426_v11  ;;  %v14472_v10 = vcombine.high %v1080_v4, %v1084_v5  ;;  %v14474_v11 = vcombine.high %v1081_v6, %v1085_v7  ;;  %v1125_v61 = vld [vmem:[#allocation4 + $0x1ee8] sm:$0xff]  ;;  %v1132_v4 = vld [vmem:[#allocation4 + $0x1f20] sm:$0xff] }
 0x22f   :  { %v1129_v5 = vld [vmem:[#allocation4 + $0x1f08] sm:$0xff] }
 0x230   :  { %6461 = vmatmul.mubr.bf16.vlgmr.msra.gmra.mrb[0].mxu0 %v16166_v16  ;;  %6789 = vmatmul.mubr.bf16.vlgmr.msra.gmra.mrb[0].mxu1 %v16166_v16 }
 0x231   :  { %6470 = vmatpush1.bf16.msra.mxu0 %v14423_v20  ;;  %6798 = vmatpush1.bf16.msra.mxu1 %v14425_v21  ;;  %v14473_v20 = vcombine.low %v1081_v6, %v1085_v7  ;;  %v14480_v21 = vcombine.high %v1088_v13, %v1092_v15  ;;  %v1133_v6 = vld [vmem:[#allocation4 + $0x1f28] sm:$0xff]  ;;  %v142_v13 = vld [vmem:[#allocation4 + $0x30] sm:$0xff]  ;;  %v139_v15 = vld [vmem:[#allocation4 + $0x18] sm:$0xff] }
 0x232   :  { %6471 = vmatprep.subr.bf16.mxu0 %v14432_v22  ;;  %6799 = vmatprep.subr.bf16.mxu1 %v14434_v24  ;;  %v14482_v22 = vcombine.high %v1089_v17, %v1093_v18  ;;  %v1096_v24 = vld [vmem:[#allocation4 + $0x1e00] sm:$0xff] }
 0x233   :  { %14527 = vmatprep.mubr.msk.bf16.mxu0 %vm6178_vm0, %v16168_v29  ;;  %14528 = vmatprep.mubr.msk.bf16.mxu1 %vm6178_vm0, %v16168_v29  ;;  %v14487_v41 = vcombine.low %v1096_v24, %v1100_v27 }
 0x235   :  { %6472 = vmatpush1.bf16.msra.mxu0 %v14431_v32  ;;  %6800 = vmatpush1.bf16.msra.mxu1 %v14433_v33  ;;  %v14481_v32 = vcombine.low %v1089_v17, %v1093_v18  ;;  %v14488_v33 = vcombine.high %v1096_v24, %v1100_v27  ;;  %v143_v17 = vld [vmem:[#allocation4 + $0x38] sm:$0xff]  ;;  %v146_v24 = vld [vmem:[#allocation4 + $0x50] sm:$0xff] }
 0x236   :  { %6473 = vmatprep.subr.bf16.mxu0 %v14440_v35  ;;  %6801 = vmatprep.subr.bf16.mxu1 %v14442_v37  ;;  %v14490_v35 = vcombine.high %v1097_v28, %v1101_v30  ;;  %v1104_v37 = vld [vmem:[#allocation4 + $0x1e40] sm:$0xff]  ;;  %v150_v27 = vld [vmem:[#allocation4 + $0x70] sm:$0xff] }
 0x237   :  { %v14495_v51 = vcombine.low %v1104_v37, %v1108_v38 }
 0x239   :  { %6474 = vmatpush1.bf16.msra.mxu0 %v14439_v42  ;;  %6802 = vmatpush1.bf16.msra.mxu1 %v14441_v43  ;;  %v14489_v42 = vcombine.low %v1097_v28, %v1101_v30  ;;  %v14496_v43 = vcombine.high %v1104_v37, %v1108_v38  ;;  %v147_v30 = vld [vmem:[#allocation4 + $0x58] sm:$0xff]  ;;  %v154_v38 = vld [vmem:[#allocation4 + $0x90] sm:$0xff] }
 0x23a   :  { %6475 = vmatprep.subr.bf16.mxu0 %v14448_v45  ;;  %6803 = vmatprep.subr.bf16.mxu1 %v14450_v47  ;;  %v14498_v45 = vcombine.high %v1105_v39, %v1109_v40  ;;  %v1112_v47 = vld [vmem:[#allocation4 + $0x1e80] sm:$0xff] }
 0x23b   :  { %v14503_v62 = vcombine.low %v1112_v47, %v1116_v48 }
 0x23d   :  { %6476 = vmatpush1.bf16.msra.mxu0 %v14447_v52  ;;  %6804 = vmatpush1.bf16.msra.mxu1 %v14449_v53  ;;  %v14497_v52 = vcombine.low %v1105_v39, %v1109_v40  ;;  %v14504_v53 = vcombine.high %v1112_v47, %v1116_v48  ;;  %v158_v39 = vld [vmem:[#allocation4 + $0xb0] sm:$0xff]  ;;  %v155_v40 = vld [vmem:[#allocation4 + $0x98] sm:$0xff] }
 0x23e   :  { %6477 = vmatprep.subr.bf16.mxu0 %v14456_v55  ;;  %6805 = vmatprep.subr.bf16.mxu1 %v14458_v58  ;;  %v14506_v55 = vcombine.high %v1113_v49, %v1117_v50  ;;  %v1120_v58 = vld [vmem:[#allocation4 + $0x1ec0] sm:$0xff]  ;;  %v162_v48 = vld [vmem:[#allocation4 + $0xd0] sm:$0xff] }
 0x23f   :  { %v14511_v7 = vcombine.low %v1120_v58, %v1124_v59 }
 0x241   :  { %6478 = vmatpush1.bf16.msra.mxu0 %v14455_v63  ;;  %6806 = vmatpush1.bf16.msra.mxu1 %v14457_v0  ;;  %v14505_v63 = vcombine.low %v1113_v49, %v1117_v50  ;;  %v14512_v0 = vcombine.high %v1120_v58, %v1124_v59  ;;  %v166_v49 = vld [vmem:[#allocation4 + $0xf0] sm:$0xff]  ;;  %v163_v50 = vld [vmem:[#allocation4 + $0xd8] sm:$0xff] }
 0x242   :  { %6479 = vmatprep.subr.bf16.mxu0 %v14464_v2  ;;  %6807 = vmatprep.subr.bf16.mxu1 %v14466_v3  ;;  %v14514_v2 = vcombine.high %v1121_v60, %v1125_v61  ;;  %v1128_v3 = vld [vmem:[#allocation4 + $0x1f00] sm:$0xff]  ;;  %v170_v59 = vld [vmem:[#allocation4 + $0x110] sm:$0xff] }
 0x243   :  { %v14519_v18 = vcombine.low %v1128_v3, %v1132_v4 }
 0x245   :  { %6480 = vmatpush1.bf16.msra.mxu0 %v14463_v8  ;;  %6808 = vmatpush1.bf16.msra.mxu1 %v14465_v9  ;;  %v14513_v8 = vcombine.low %v1121_v60, %v1125_v61  ;;  %v14520_v9 = vcombine.high %v1128_v3, %v1132_v4  ;;  %v174_v60 = vld [vmem:[#allocation4 + $0x130] sm:$0xff]  ;;  %v171_v61 = vld [vmem:[#allocation4 + $0x118] sm:$0xff] }
 0x246   :  { %6481 = vmatprep.subr.bf16.mxu0 %v14472_v10  ;;  %6809 = vmatprep.subr.bf16.mxu1 %v14474_v11  ;;  %v14522_v10 = vcombine.high %v1129_v5, %v1133_v6  ;;  %v138_v11 = vld [vmem:[#allocation4 + $0x10] sm:$0xff] }
 0x247   :  { %v178_v3 = vld [vmem:[#allocation4 + $0x150] sm:$0xff] }
 0x248   :  { %v182_v4 = vld [vmem:[#allocation4 + $0x170] sm:$0xff] }
 0x249   :  { %6482 = vmatpush1.bf16.msra.mxu0 %v14471_v19  ;;  %6810 = vmatpush1.bf16.msra.mxu1 %v14473_v20  ;;  %v118_v19 = vld [vmem:[#allocation2 + $0x70] sm:$0xff]  ;;  %v14521_v20 = vcombine.low %v1129_v5, %v1133_v6  ;;  %v179_v5 = vld [vmem:[#allocation4 + $0x158] sm:$0xff] }
 0x24a   :  { %6483 = vmatprep.subr.bf16.mxu0 %v14480_v21  ;;  %6811 = vmatprep.subr.bf16.mxu1 %v14482_v22  ;;  %v13532_v21 = vcombine.high %v138_v11, %v142_v13  ;;  %v13534_v22 = vcombine.high %v139_v15, %v143_v17  ;;  %v16176_v28 = vpack.c.bf16 %v118_v19, %v118_v19  ;;  %v183_v6 = vld [vmem:[#allocation4 + $0x178] sm:$0xff] }
 0x24b   :  { %v13573_v19 = vcombine.low %v179_v5, %v183_v6 }
 0x24d   :  { %6484 = vmatpush1.bf16.msra.mxu0 %v14479_v31  ;;  %6812 = vmatpush1.bf16.msra.mxu1 %v14481_v32  ;;  %v151_v31 = vld [vmem:[#allocation4 + $0x78] sm:$0xff]  ;;  %v13531_v32 = vcombine.low %v138_v11, %v142_v13  ;;  %v186_v11 = vld [vmem:[#allocation4 + $0x190] sm:$0xff] }
 0x24e   :  { %6485 = vmatprep.subr.bf16.mxu0 %v14488_v33  ;;  %6813 = vmatprep.subr.bf16.mxu1 %v14490_v35  ;;  %v13533_v33 = vcombine.low %v139_v15, %v143_v17  ;;  %v13540_v35 = vcombine.high %v146_v24, %v150_v27  ;;  %v13542_v37 = vcombine.high %v147_v30, %v151_v31  ;;  %v190_v13 = vld [vmem:[#allocation4 + $0x1b0] sm:$0xff]  ;;  %v187_v15 = vld [vmem:[#allocation4 + $0x198] sm:$0xff] }
 0x24f   :  { %v191_v17 = vld [vmem:[#allocation4 + $0x1b8] sm:$0xff] }
 0x251   :  { %6486 = vmatpush1.bf16.msra.mxu0 %v14487_v41  ;;  %6814 = vmatpush1.bf16.msra.mxu1 %v14489_v42  ;;  %v159_v41 = vld [vmem:[#allocation4 + $0xb8] sm:$0xff]  ;;  %v13539_v42 = vcombine.low %v146_v24, %v150_v27  ;;  %v198_v24 = vld [vmem:[#allocation4 + $0x1f0] sm:$0xff] }
 0x252   :  { %6487 = vmatprep.subr.bf16.mxu0 %v14496_v43  ;;  %6815 = vmatprep.subr.bf16.mxu1 %v14498_v45  ;;  %v13541_v43 = vcombine.low %v147_v30, %v151_v31  ;;  %v13548_v45 = vcombine.high %v154_v38, %v158_v39  ;;  %v13550_v47 = vcombine.high %v155_v40, %v159_v41  ;;  %v195_v27 = vld [vmem:[#allocation4 + $0x1d8] sm:$0xff] }
 0x253   :  { %v199_v30 = vld [vmem:[#allocation4 + $0x1f8] sm:$0xff]  ;;  %v13579_v31 = vcombine.low %v186_v11, %v190_v13 }
 0x255   :  { %6488 = vmatpush1.bf16.msra.mxu0 %v14495_v51  ;;  %6816 = vmatpush1.bf16.msra.mxu1 %v14497_v52  ;;  %v167_v51 = vld [vmem:[#allocation4 + $0xf8] sm:$0xff]  ;;  %v13547_v52 = vcombine.low %v154_v38, %v158_v39  ;;  %v206_v38 = vld [vmem:[#allocation4 + $0x230] sm:$0xff] }
 0x256   :  { %6489 = vmatprep.subr.bf16.mxu0 %v14504_v53  ;;  %6817 = vmatprep.subr.bf16.mxu1 %v14506_v55  ;;  %v13549_v53 = vcombine.low %v155_v40, %v159_v41  ;;  %v13556_v55 = vcombine.high %v162_v48, %v166_v49  ;;  %v13558_v58 = vcombine.high %v163_v50, %v167_v51  ;;  %v203_v39 = vld [vmem:[#allocation4 + $0x218] sm:$0xff] }
 0x257   :  { %v207_v40 = vld [vmem:[#allocation4 + $0x238] sm:$0xff] }
 0x259   :  { %6490 = vmatpush1.bf16.msra.mxu0 %v14503_v62  ;;  %6818 = vmatpush1.bf16.msra.mxu1 %v14505_v63  ;;  %v175_v62 = vld [vmem:[#allocation4 + $0x138] sm:$0xff]  ;;  %v13555_v63 = vcombine.low %v162_v48, %v166_v49  ;;  %v214_v48 = vld [vmem:[#allocation4 + $0x270] sm:$0xff] }
 0x25a   :  { %6491 = vmatprep.subr.bf16.mxu0 %v14512_v0  ;;  %6819 = vmatprep.subr.bf16.mxu1 %v14514_v2  ;;  %v13557_v0 = vcombine.low %v163_v50, %v167_v51  ;;  %v13564_v2 = vcombine.high %v170_v59, %v174_v60  ;;  %v211_v49 = vld [vmem:[#allocation4 + $0x258] sm:$0xff] }
 0x25b   :  { %v215_v50 = vld [vmem:[#allocation4 + $0x278] sm:$0xff] }
 0x25d   :  { %6492 = vmatpush1.bf16.msra.mxu0 %v14511_v7  ;;  %6820 = vmatpush1.bf16.msra.mxu1 %v14513_v8  ;;  %v13563_v7 = vcombine.low %v170_v59, %v174_v60  ;;  %v13565_v8 = vcombine.low %v171_v61, %v175_v62  ;;  %v222_v59 = vld [vmem:[#allocation4 + $0x2b0] sm:$0xff]  ;;  %v219_v60 = vld [vmem:[#allocation4 + $0x298] sm:$0xff] }
 0x25e   :  { %6493 = vmatprep.subr.bf16.mxu0 %v14520_v9  ;;  %6821 = vmatprep.subr.bf16.mxu1 %v14522_v10  ;;  %v13572_v9 = vcombine.high %v178_v3, %v182_v4  ;;  %v13574_v10 = vcombine.high %v179_v5, %v183_v6  ;;  %v231_v5 = vld [vmem:[#allocation4 + $0x2f8] sm:$0xff] }
 0x261   :  { %6494 = vmatpush1.bf16.msra.mxu0 %v14519_v18  ;;  %6822 = vmatpush1.bf16.msra.mxu1 %v14521_v20  ;;  %v13571_v18 = vcombine.low %v178_v3, %v182_v4  ;;  %v13580_v20 = vcombine.high %v186_v11, %v190_v13  ;;  %v230_v3 = vld [vmem:[#allocation4 + $0x2f0] sm:$0xff]  ;;  %v227_v4 = vld [vmem:[#allocation4 + $0x2d8] sm:$0xff] }
 0x262   :  { %6838 = vmatprep.subr.bf16.mxu0 %v13532_v21  ;;  %7166 = vmatprep.subr.bf16.mxu1 %v13534_v22  ;;  %v13582_v21 = vcombine.high %v187_v15, %v191_v17  ;;  %v194_v22 = vld [vmem:[#allocation4 + $0x1d0] sm:$0xff]  ;;  %v235_v13 = vld [vmem:[#allocation4 + $0x318] sm:$0xff] }
 0x263   :  { %v13587_v41 = vcombine.low %v194_v22, %v198_v24  ;;  %v238_v11 = vld [vmem:[#allocation4 + $0x330] sm:$0xff] }
 0x264   :  { %6502 = vmatmul.mubr.bf16.vlgmr.msra.gmra.mrb[0].mxu0 %v16176_v28  ;;  %6830 = vmatmul.mubr.bf16.vlgmr.msra.gmra.mrb[0].mxu1 %v16176_v28 }
 0x265   :  { %6839 = vmatpush1.bf16.msra.mxu0 %v13531_v32  ;;  %7167 = vmatpush1.bf16.msra.mxu1 %v13533_v33  ;;  %v13581_v32 = vcombine.low %v187_v15, %v191_v17  ;;  %v13588_v33 = vcombine.high %v194_v22, %v198_v24  ;;  %v239_v15 = vld [vmem:[#allocation4 + $0x338] sm:$0xff]  ;;  %v246_v22 = vld [vmem:[#allocation4 + $0x370] sm:$0xff] }
 0x266   :  { %6840 = vmatprep.subr.bf16.mxu0 %v13540_v35  ;;  %7168 = vmatprep.subr.bf16.mxu1 %v13542_v37  ;;  %v13590_v35 = vcombine.high %v195_v27, %v199_v30  ;;  %v202_v37 = vld [vmem:[#allocation4 + $0x210] sm:$0xff]  ;;  %v243_v24 = vld [vmem:[#allocation4 + $0x358] sm:$0xff] }
 0x267   :  { %6870 = vmatprep.mubr.bf16.mxu0 %v16114_v57  ;;  %7198 = vmatprep.mubr.bf16.mxu1 %v16114_v57  ;;  %v13566_v57 = vcombine.high %v171_v61, %v175_v62  ;;  %v13595_v51 = vcombine.low %v202_v37, %v206_v38  ;;  %v223_v61 = vld [vmem:[#allocation4 + $0x2b8] sm:$0xff] }
 0x269   :  { %6841 = vmatpush1.bf16.msra.mxu0 %v13539_v42  ;;  %7169 = vmatpush1.bf16.msra.mxu1 %v13541_v43  ;;  %v13589_v42 = vcombine.low %v195_v27, %v199_v30  ;;  %v13596_v43 = vcombine.high %v202_v37, %v206_v38  ;;  %v247_v27 = vld [vmem:[#allocation4 + $0x378] sm:$0xff]  ;;  %v254_v37 = vld [vmem:[#allocation4 + $0x3b0] sm:$0xff] }
 0x26a   :  { %6842 = vmatprep.subr.bf16.mxu0 %v13548_v45  ;;  %7170 = vmatprep.subr.bf16.mxu1 %v13550_v47  ;;  %v13598_v45 = vcombine.high %v203_v39, %v207_v40  ;;  %v210_v47 = vld [vmem:[#allocation4 + $0x250] sm:$0xff]  ;;  %v251_v38 = vld [vmem:[#allocation4 + $0x398] sm:$0xff] }
 0x26b   :  { %v13603_v62 = vcombine.low %v210_v47, %v214_v48 }
 0x26d   :  { %6843 = vmatpush1.bf16.msra.mxu0 %v13547_v52  ;;  %7171 = vmatpush1.bf16.msra.mxu1 %v13549_v53  ;;  %v13597_v52 = vcombine.low %v203_v39, %v207_v40  ;;  %v13604_v53 = vcombine.high %v210_v47, %v214_v48  ;;  %v255_v39 = vld [vmem:[#allocation4 + $0x3b8] sm:$0xff]  ;;  %v262_v47 = vld [vmem:[#allocation4 + $0x3f0] sm:$0xff] }
 0x26e   :  { %6844 = vmatprep.subr.bf16.mxu0 %v13556_v55  ;;  %7172 = vmatprep.subr.bf16.mxu1 %v13558_v58  ;;  %v13606_v55 = vcombine.high %v211_v49, %v215_v50  ;;  %v218_v58 = vld [vmem:[#allocation4 + $0x290] sm:$0xff]  ;;  %v259_v48 = vld [vmem:[#allocation4 + $0x3d8] sm:$0xff] }
 0x26f   :  { %v13611_v6 = vcombine.low %v218_v58, %v222_v59 }
 0x271   :  { %6845 = vmatpush1.bf16.msra.mxu0 %v13555_v63  ;;  %7173 = vmatpush1.bf16.msra.mxu1 %v13557_v0  ;;  %v13605_v63 = vcombine.low %v211_v49, %v215_v50  ;;  %v13612_v0 = vcombine.high %v218_v58, %v222_v59  ;;  %v263_v49 = vld [vmem:[#allocation4 + $0x3f8] sm:$0xff]  ;;  %v270_v58 = vld [vmem:[#allocation4 + $0x430] sm:$0xff] }
 0x272   :  { %6846 = vmatprep.subr.bf16.mxu0 %v13564_v2  ;;  %7174 = vmatprep.subr.bf16.mxu1 %v13566_v57  ;;  %v13614_v2 = vcombine.high %v219_v60, %v223_v61  ;;  %v226_v57 = vld [vmem:[#allocation4 + $0x2d0] sm:$0xff]  ;;  %v267_v59 = vld [vmem:[#allocation4 + $0x418] sm:$0xff] }
 0x273   :  { %v13619_v17 = vcombine.low %v226_v57, %v230_v3 }
 0x275   :  { %6847 = vmatpush1.bf16.msra.mxu0 %v13563_v7  ;;  %7175 = vmatpush1.bf16.msra.mxu1 %v13565_v8  ;;  %v13613_v7 = vcombine.low %v219_v60, %v223_v61  ;;  %v13620_v8 = vcombine.high %v226_v57, %v230_v3  ;;  %v271_v60 = vld [vmem:[#allocation4 + $0x438] sm:$0xff]  ;;  %v278_v57 = vld [vmem:[#allocation4 + $0x470] sm:$0xff] }
 0x276   :  { %6848 = vmatprep.subr.bf16.mxu0 %v13572_v9  ;;  %7176 = vmatprep.subr.bf16.mxu1 %v13574_v10  ;;  %v13622_v9 = vcombine.high %v227_v4, %v231_v5  ;;  %v234_v10 = vld [vmem:[#allocation4 + $0x310] sm:$0xff]  ;;  %v275_v3 = vld [vmem:[#allocation4 + $0x458] sm:$0xff] }
 0x277   :  { %v13627_v30 = vcombine.low %v234_v10, %v238_v11 }
 0x279   :  { %6849 = vmatpush1.bf16.msra.mxu0 %v13571_v18  ;;  %7177 = vmatpush1.bf16.msra.mxu1 %v13573_v19  ;;  %v13621_v18 = vcombine.low %v227_v4, %v231_v5  ;;  %v13628_v19 = vcombine.high %v234_v10, %v238_v11  ;;  %v279_v4 = vld [vmem:[#allocation4 + $0x478] sm:$0xff]  ;;  %v286_v10 = vld [vmem:[#allocation4 + $0x4b0] sm:$0xff] }
 0x27a   :  { %6850 = vmatprep.subr.bf16.mxu0 %v13580_v20  ;;  %7178 = vmatprep.subr.bf16.mxu1 %v13582_v21  ;;  %v13630_v20 = vcombine.high %v235_v13, %v239_v15  ;;  %v242_v21 = vld [vmem:[#allocation4 + $0x350] sm:$0xff]  ;;  %v283_v11 = vld [vmem:[#allocation4 + $0x498] sm:$0xff] }
 0x27b   :  { %v13635_v40 = vcombine.low %v242_v21, %v246_v22 }
 0x27d   :  { %6851 = vmatpush1.bf16.msra.mxu0 %v13579_v31  ;;  %7179 = vmatpush1.bf16.msra.mxu1 %v13581_v32  ;;  %v13629_v31 = vcombine.low %v235_v13, %v239_v15  ;;  %v13636_v32 = vcombine.high %v242_v21, %v246_v22  ;;  %v287_v13 = vld [vmem:[#allocation4 + $0x4b8] sm:$0xff]  ;;  %v294_v21 = vld [vmem:[#allocation4 + $0x4f0] sm:$0xff] }
 0x27e   :  { %6852 = vmatprep.subr.bf16.mxu0 %v13588_v33  ;;  %7180 = vmatprep.subr.bf16.mxu1 %v13590_v35  ;;  %v13638_v33 = vcombine.high %v243_v24, %v247_v27  ;;  %v250_v35 = vld [vmem:[#allocation4 + $0x390] sm:$0xff]  ;;  %v291_v22 = vld [vmem:[#allocation4 + $0x4d8] sm:$0xff] }
 0x27f   :  { %v13643_v50 = vcombine.low %v250_v35, %v254_v37 }
 0x281   :  { %6853 = vmatpush1.bf16.msra.mxu0 %v13587_v41  ;;  %7181 = vmatpush1.bf16.msra.mxu1 %v13589_v42  ;;  %v13637_v41 = vcombine.low %v243_v24, %v247_v27  ;;  %v13644_v42 = vcombine.high %v250_v35, %v254_v37  ;;  %v295_v24 = vld [vmem:[#allocation4 + $0x4f8] sm:$0xff] }
 0x282   :  { %6854 = vmatprep.subr.bf16.mxu0 %v13596_v43  ;;  %7182 = vmatprep.subr.bf16.mxu1 %v13598_v45  ;;  %v13646_v43 = vcombine.high %v251_v38, %v255_v39  ;;  %v258_v45 = vld [vmem:[#allocation4 + $0x3d0] sm:$0xff]  ;;  %v299_v35 = vld [vmem:[#allocation4 + $0x518] sm:$0xff] }
 0x283   :  { %v13651_v61 = vcombine.low %v258_v45, %v262_v47  ;;  %v303_v37 = vld [vmem:[#allocation4 + $0x538] sm:$0xff] }
 0x285   :  { %6855 = vmatpush1.bf16.msra.mxu0 %v13595_v51  ;;  %7183 = vmatpush1.bf16.msra.mxu1 %v13597_v52  ;;  %v13645_v51 = vcombine.low %v251_v38, %v255_v39  ;;  %v13652_v52 = vcombine.high %v258_v45, %v262_v47  ;;  %v13685_v39 = vcombine.low %v291_v22, %v295_v24  ;;  %v311_v45 = vld [vmem:[#allocation4 + $0x578] sm:$0xff] }
 0x286   :  { %6856 = vmatprep.subr.bf16.mxu0 %v13604_v53  ;;  %7184 = vmatprep.subr.bf16.mxu1 %v13606_v55  ;;  %v13654_v53 = vcombine.high %v259_v48, %v263_v49  ;;  %v266_v55 = vld [vmem:[#allocation4 + $0x410] sm:$0xff] }
 0x287   :  { %v13659_v5 = vcombine.low %v266_v55, %v270_v58 }
 0x289   :  { %6857 = vmatpush1.bf16.msra.mxu0 %v13603_v62  ;;  %7185 = vmatpush1.bf16.msra.mxu1 %v13605_v63  ;;  %v13653_v62 = vcombine.low %v259_v48, %v263_v49  ;;  %v13660_v63 = vcombine.high %v266_v55, %v270_v58  ;;  %v13693_v48 = vcombine.low %v299_v35, %v303_v37  ;;  %v319_v55 = vld [vmem:[#allocation4 + $0x5b8] sm:$0xff] }
 0x28a   :  { %6858 = vmatprep.subr.bf16.mxu0 %v13612_v0  ;;  %7186 = vmatprep.subr.bf16.mxu1 %v13614_v2  ;;  %v13662_v0 = vcombine.high %v267_v59, %v271_v60  ;;  %v274_v2 = vld [vmem:[#allocation4 + $0x450] sm:$0xff] }
 0x28b   :  { %v13667_v15 = vcombine.low %v274_v2, %v278_v57 }
 0x28d   :  { %6859 = vmatpush1.bf16.msra.mxu0 %v13611_v6  ;;  %7187 = vmatpush1.bf16.msra.mxu1 %v13613_v7  ;;  %v13661_v6 = vcombine.low %v267_v59, %v271_v60  ;;  %v13668_v7 = vcombine.high %v274_v2, %v278_v57  ;;  %v327_v2 = vld [vmem:[#allocation4 + $0x5f8] sm:$0xff] }
 0x28e   :  { %6860 = vmatprep.subr.bf16.mxu0 %v13620_v8  ;;  %7188 = vmatprep.subr.bf16.mxu1 %v13622_v9  ;;  %v13670_v8 = vcombine.high %v275_v3, %v279_v4  ;;  %v282_v9 = vld [vmem:[#allocation4 + $0x490] sm:$0xff] }
 0x28f   :  { %v13675_v27 = vcombine.low %v282_v9, %v286_v10 }
 0x291   :  { %6861 = vmatpush1.bf16.msra.mxu0 %v13619_v17  ;;  %7189 = vmatpush1.bf16.msra.mxu1 %v13621_v18  ;;  %v13669_v17 = vcombine.low %v275_v3, %v279_v4  ;;  %v13676_v18 = vcombine.high %v282_v9, %v286_v10  ;;  %v335_v9 = vld [vmem:[#allocation4 + $0x638] sm:$0xff] }
 0x292   :  { %6862 = vmatprep.subr.bf16.mxu0 %v13628_v19  ;;  %7190 = vmatprep.subr.bf16.mxu1 %v13630_v20  ;;  %v13678_v19 = vcombine.high %v283_v11, %v287_v13  ;;  %v290_v20 = vld [vmem:[#allocation4 + $0x4d0] sm:$0xff] }
 0x293   :  { %v13683_v38 = vcombine.low %v290_v20, %v294_v21 }
 0x295   :  { %6863 = vmatpush1.bf16.msra.mxu0 %v13627_v30  ;;  %7191 = vmatpush1.bf16.msra.mxu1 %v13629_v31  ;;  %v13684_v30 = vcombine.high %v290_v20, %v294_v21  ;;  %v13686_v31 = vcombine.high %v291_v22, %v295_v24  ;;  %v343_v20 = vld [vmem:[#allocation4 + $0x678] sm:$0xff] }
 0x296   :  { %6864 = vmatprep.subr.bf16.mxu0 %v13636_v32  ;;  %7192 = vmatprep.subr.bf16.mxu1 %v13638_v33  ;;  %v298_v32 = vld [vmem:[#allocation4 + $0x510] sm:$0xff] }
 0x297   :  { %v302_v33 = vld [vmem:[#allocation4 + $0x530] sm:$0xff] }
 0x298   :  { %v13691_v47 = vcombine.low %v298_v32, %v302_v33 }
 0x299   :  { %6865 = vmatpush1.bf16.msra.mxu0 %v13635_v40  ;;  %7193 = vmatpush1.bf16.msra.mxu1 %v13637_v41  ;;  %v13692_v40 = vcombine.high %v298_v32, %v302_v33  ;;  %v306_v41 = vld [vmem:[#allocation4 + $0x550] sm:$0xff]  ;;  %v351_v32 = vld [vmem:[#allocation4 + $0x6b8] sm:$0xff] }
 0x29a   :  { %6866 = vmatprep.subr.bf16.mxu0 %v13644_v42  ;;  %7194 = vmatprep.subr.bf16.mxu1 %v13646_v43  ;;  %v310_v42 = vld [vmem:[#allocation4 + $0x570] sm:$0xff]  ;;  %v307_v43 = vld [vmem:[#allocation4 + $0x558] sm:$0xff] }
 0x29b   :  { %v13700_v49 = vcombine.high %v306_v41, %v310_v42  ;;  %v13699_v58 = vcombine.low %v306_v41, %v310_v42  ;;  %v13701_v59 = vcombine.low %v307_v43, %v311_v45  ;;  %v359_v41 = vld [vmem:[#allocation4 + $0x6f8] sm:$0xff] }
 0x29d   :  { %6867 = vmatpush1.bf16.msra.mxu0 %v13643_v50  ;;  %7195 = vmatpush1.bf16.msra.mxu1 %v13645_v51  ;;  %v13702_v50 = vcombine.high %v307_v43, %v311_v45  ;;  %v314_v51 = vld [vmem:[#allocation4 + $0x590] sm:$0xff] }
 0x29e   :  { %6868 = vmatprep.subr.bf16.mxu0 %v13652_v52  ;;  %7196 = vmatprep.subr.bf16.mxu1 %v13654_v53  ;;  %v318_v52 = vld [vmem:[#allocation4 + $0x5b0] sm:$0xff]  ;;  %v315_v53 = vld [vmem:[#allocation4 + $0x598] sm:$0xff] }
 0x29f   :  { %v13708_v60 = vcombine.high %v314_v51, %v318_v52  ;;  %v13707_v57 = vcombine.low %v314_v51, %v318_v52  ;;  %v13709_v3 = vcombine.low %v315_v53, %v319_v55  ;;  %v367_v51 = vld [vmem:[#allocation4 + $0x738] sm:$0xff] }
 0x2a1   :  { %6869 = vmatpush1.bf16.msra.mxu0 %v13651_v61  ;;  %7197 = vmatpush1.bf16.msra.mxu1 %v13653_v62  ;;  %v13710_v61 = vcombine.high %v315_v53, %v319_v55  ;;  %v322_v62 = vld [vmem:[#allocation4 + $0x5d0] sm:$0xff] }
 0x2a2   :  { %6879 = vmatprep.subr.bf16.mxu0 %v13660_v63  ;;  %7207 = vmatprep.subr.bf16.mxu1 %v13662_v0  ;;  %v326_v63 = vld [vmem:[#allocation4 + $0x5f0] sm:$0xff]  ;;  %v323_v0 = vld [vmem:[#allocation4 + $0x5d8] sm:$0xff] }
 0x2a3   :  { %v13716_v4 = vcombine.high %v322_v62, %v326_v63  ;;  %v13715_v10 = vcombine.low %v322_v62, %v326_v63  ;;  %v375_v62 = vld [vmem:[#allocation4 + $0x778] sm:$0xff] }
 0x2a4   :  { %6871 = vmatmul.mubr.bf16.vlgmr.msra.gmra.mrb[4].mxu0 %v16118_v12  ;;  %7199 = vmatmul.mubr.bf16.vlgmr.msra.gmra.mrb[4].mxu1 %v16118_v12  ;;  %v13677_v12 = vcombine.low %v283_v11, %v287_v13  ;;  %v13717_v11 = vcombine.low %v323_v0, %v327_v2 }
 0x2a5   :  { %6880 = vmatpush1.bf16.msra.mxu0 %v13659_v5  ;;  %7208 = vmatpush1.bf16.msra.mxu1 %v13661_v6  ;;  %v13718_v5 = vcombine.high %v323_v0, %v327_v2  ;;  %v330_v6 = vld [vmem:[#allocation4 + $0x610] sm:$0xff] }
 0x2a6   :  { %6881 = vmatprep.subr.bf16.mxu0 %v13668_v7  ;;  %7209 = vmatprep.subr.bf16.mxu1 %v13670_v8  ;;  %v334_v7 = vld [vmem:[#allocation4 + $0x630] sm:$0xff]  ;;  %v331_v8 = vld [vmem:[#allocation4 + $0x618] sm:$0xff] }
 0x2a7   :  { %6911 = vmatprep.mubr.bf16.mxu0 %v16120_v23  ;;  %7239 = vmatprep.mubr.bf16.mxu1 %v16120_v23  ;;  %v13694_v23 = vcombine.high %v299_v35, %v303_v37  ;;  %v13724_v13 = vcombine.high %v330_v6, %v334_v7  ;;  %v13723_v21 = vcombine.low %v330_v6, %v334_v7  ;;  %v383_v6 = vld [vmem:[#allocation4 + $0x7b8] sm:$0xff] }
 0x2a8   :  { %v13725_v22 = vcombine.low %v331_v8, %v335_v9 }
 0x2a9   :  { %6882 = vmatpush1.bf16.msra.mxu0 %v13667_v15  ;;  %7210 = vmatpush1.bf16.msra.mxu1 %v13669_v17  ;;  %v13726_v15 = vcombine.high %v331_v8, %v335_v9  ;;  %v338_v17 = vld [vmem:[#allocation4 + $0x650] sm:$0xff] }
 0x2aa   :  { %6883 = vmatprep.subr.bf16.mxu0 %v13676_v18  ;;  %7211 = vmatprep.subr.bf16.mxu1 %v13678_v19  ;;  %v342_v18 = vld [vmem:[#allocation4 + $0x670] sm:$0xff]  ;;  %v339_v19 = vld [vmem:[#allocation4 + $0x658] sm:$0xff] }
 0x2ab   :  { %v13732_v24 = vcombine.high %v338_v17, %v342_v18  ;;  %v13731_v33 = vcombine.low %v338_v17, %v342_v18  ;;  %v13733_v35 = vcombine.low %v339_v19, %v343_v20  ;;  %v391_v17 = vld [vmem:[#allocation4 + $0x7f8] sm:$0xff] }
 0x2ad   :  { %6884 = vmatpush1.bf16.msra.mxu0 %v13675_v27  ;;  %7212 = vmatpush1.bf16.msra.mxu1 %v13677_v12  ;;  %v13734_v27 = vcombine.high %v339_v19, %v343_v20  ;;  %v346_v12 = vld [vmem:[#allocation4 + $0x690] sm:$0xff] }
 0x2ae   :  { %6885 = vmatprep.subr.bf16.mxu0 %v13684_v30  ;;  %7213 = vmatprep.subr.bf16.mxu1 %v13686_v31  ;;  %v350_v30 = vld [vmem:[#allocation4 + $0x6b0] sm:$0xff]  ;;  %v347_v31 = vld [vmem:[#allocation4 + $0x698] sm:$0xff] }
 0x2af   :  { %v13740_v37 = vcombine.high %v346_v12, %v350_v30  ;;  %v13739_v42 = vcombine.low %v346_v12, %v350_v30  ;;  %v13741_v43 = vcombine.low %v347_v31, %v351_v32  ;;  %v399_v12 = vld [vmem:[#allocation4 + $0x838] sm:$0xff] }
 0x2b1   :  { %6886 = vmatpush1.bf16.msra.mxu0 %v13683_v38  ;;  %7214 = vmatpush1.bf16.msra.mxu1 %v13685_v39  ;;  %v13742_v38 = vcombine.high %v347_v31, %v351_v32  ;;  %v354_v39 = vld [vmem:[#allocation4 + $0x6d0] sm:$0xff] }
 0x2b2   :  { %6887 = vmatprep.subr.bf16.mxu0 %v13692_v40  ;;  %7215 = vmatprep.subr.bf16.mxu1 %v13694_v23  ;;  %v358_v40 = vld [vmem:[#allocation4 + $0x6f0] sm:$0xff]  ;;  %v355_v23 = vld [vmem:[#allocation4 + $0x6d8] sm:$0xff] }
 0x2b3   :  { %v13748_v45 = vcombine.high %v354_v39, %v358_v40  ;;  %v13747_v52 = vcombine.low %v354_v39, %v358_v40  ;;  %v13749_v53 = vcombine.low %v355_v23, %v359_v41  ;;  %v407_v39 = vld [vmem:[#allocation4 + $0x878] sm:$0xff] }
 0x2b5   :  { %6888 = vmatpush1.bf16.msra.mxu0 %v13691_v47  ;;  %7216 = vmatpush1.bf16.msra.mxu1 %v13693_v48  ;;  %v13750_v47 = vcombine.high %v355_v23, %v359_v41  ;;  %v362_v48 = vld [vmem:[#allocation4 + $0x710] sm:$0xff] }
 0x2b6   :  { %6889 = vmatprep.subr.bf16.mxu0 %v13700_v49  ;;  %7217 = vmatprep.subr.bf16.mxu1 %v13702_v50  ;;  %v366_v49 = vld [vmem:[#allocation4 + $0x730] sm:$0xff]  ;;  %v363_v50 = vld [vmem:[#allocation4 + $0x718] sm:$0xff] }
 0x2b7   :  { %v13756_v55 = vcombine.high %v362_v48, %v366_v49  ;;  %v13755_v63 = vcombine.low %v362_v48, %v366_v49  ;;  %v13757_v0 = vcombine.low %v363_v50, %v367_v51  ;;  %v415_v48 = vld [vmem:[#allocation4 + $0x8b8] sm:$0xff] }
 0x2b9   :  { %6890 = vmatpush1.bf16.msra.mxu0 %v13699_v58  ;;  %7218 = vmatpush1.bf16.msra.mxu1 %v13701_v59  ;;  %v13758_v58 = vcombine.high %v363_v50, %v367_v51  ;;  %v370_v59 = vld [vmem:[#allocation4 + $0x750] sm:$0xff] }
 0x2ba   :  { %6891 = vmatprep.subr.bf16.mxu0 %v13708_v60  ;;  %7219 = vmatprep.subr.bf16.mxu1 %v13710_v61  ;;  %v374_v60 = vld [vmem:[#allocation4 + $0x770] sm:$0xff]  ;;  %v371_v61 = vld [vmem:[#allocation4 + $0x758] sm:$0xff] }
 0x2bb   :  { %v13764_v2 = vcombine.high %v370_v59, %v374_v60  ;;  %v13763_v7 = vcombine.low %v370_v59, %v374_v60  ;;  %v13765_v8 = vcombine.low %v371_v61, %v375_v62  ;;  %v423_v59 = vld [vmem:[#allocation4 + $0x8f8] sm:$0xff] }
 0x2bd   :  { %6892 = vmatpush1.bf16.msra.mxu0 %v13707_v57  ;;  %7220 = vmatpush1.bf16.msra.mxu1 %v13709_v3  ;;  %v13766_v57 = vcombine.high %v371_v61, %v375_v62  ;;  %v378_v3 = vld [vmem:[#allocation4 + $0x790] sm:$0xff] }
 0x2be   :  { %6893 = vmatprep.subr.bf16.mxu0 %v13716_v4  ;;  %7221 = vmatprep.subr.bf16.mxu1 %v13718_v5  ;;  %v382_v4 = vld [vmem:[#allocation4 + $0x7b0] sm:$0xff]  ;;  %v379_v5 = vld [vmem:[#allocation4 + $0x798] sm:$0xff] }
 0x2bf   :  { %v13772_v9 = vcombine.high %v378_v3, %v382_v4  ;;  %v13771_v18 = vcombine.low %v378_v3, %v382_v4  ;;  %v13773_v19 = vcombine.low %v379_v5, %v383_v6 }
 0x2c1   :  { %6894 = vmatpush1.bf16.msra.mxu0 %v13715_v10  ;;  %7222 = vmatpush1.bf16.msra.mxu1 %v13717_v11  ;;  %v13774_v10 = vcombine.high %v379_v5, %v383_v6  ;;  %v386_v11 = vld [vmem:[#allocation4 + $0x7d0] sm:$0xff] }
 0x2c2   :  { %6895 = vmatprep.subr.bf16.mxu0 %v13724_v13  ;;  %7223 = vmatprep.subr.bf16.mxu1 %v13726_v15  ;;  %v390_v13 = vld [vmem:[#allocation4 + $0x7f0] sm:$0xff]  ;;  %v387_v15 = vld [vmem:[#allocation4 + $0x7d8] sm:$0xff] }
 0x2c3   :  { %v13780_v20 = vcombine.high %v386_v11, %v390_v13  ;;  %v13779_v30 = vcombine.low %v386_v11, %v390_v13  ;;  %v13781_v31 = vcombine.low %v387_v15, %v391_v17  ;;  %v434_v6 = vld [vmem:[#allocation4 + $0x950] sm:$0xff] }
 0x2c5   :  { %6896 = vmatpush1.bf16.msra.mxu0 %v13723_v21  ;;  %7224 = vmatpush1.bf16.msra.mxu1 %v13725_v22  ;;  %v13782_v21 = vcombine.high %v387_v15, %v391_v17  ;;  %v394_v22 = vld [vmem:[#allocation4 + $0x810] sm:$0xff] }
 0x2c6   :  { %6897 = vmatprep.subr.bf16.mxu0 %v13732_v24  ;;  %7225 = vmatprep.subr.bf16.mxu1 %v13734_v27  ;;  %v398_v24 = vld [vmem:[#allocation4 + $0x830] sm:$0xff]  ;;  %v395_v27 = vld [vmem:[#allocation4 + $0x818] sm:$0xff] }
 0x2c7   :  { %v13788_v32 = vcombine.high %v394_v22, %v398_v24  ;;  %v13787_v40 = vcombine.low %v394_v22, %v398_v24  ;;  %v13789_v23 = vcombine.low %v395_v27, %v399_v12  ;;  %v442_v17 = vld [vmem:[#allocation4 + $0x990] sm:$0xff] }
 0x2c9   :  { %6898 = vmatpush1.bf16.msra.mxu0 %v13731_v33  ;;  %7226 = vmatpush1.bf16.msra.mxu1 %v13733_v35  ;;  %v13790_v33 = vcombine.high %v395_v27, %v399_v12  ;;  %v402_v35 = vld [vmem:[#allocation4 + $0x850] sm:$0xff] }
 0x2ca   :  { %6899 = vmatprep.subr.bf16.mxu0 %v13740_v37  ;;  %7227 = vmatprep.subr.bf16.mxu1 %v13742_v38  ;;  %v406_v37 = vld [vmem:[#allocation4 + $0x870] sm:$0xff]  ;;  %v403_v38 = vld [vmem:[#allocation4 + $0x858] sm:$0xff] }
 0x2cb   :  { %v13796_v41 = vcombine.high %v402_v35, %v406_v37  ;;  %v13795_v49 = vcombine.low %v402_v35, %v406_v37  ;;  %v13797_v50 = vcombine.low %v403_v38, %v407_v39  ;;  %v450_v12 = vld [vmem:[#allocation4 + $0x9d0] sm:$0xff] }
 0x2cd   :  { %6900 = vmatpush1.bf16.msra.mxu0 %v13739_v42  ;;  %7228 = vmatpush1.bf16.msra.mxu1 %v13741_v43  ;;  %v13798_v42 = vcombine.high %v403_v38, %v407_v39  ;;  %v410_v43 = vld [vmem:[#allocation4 + $0x890] sm:$0xff] }
 0x2ce   :  { %6901 = vmatprep.subr.bf16.mxu0 %v13748_v45  ;;  %7229 = vmatprep.subr.bf16.mxu1 %v13750_v47  ;;  %v414_v45 = vld [vmem:[#allocation4 + $0x8b0] sm:$0xff]  ;;  %v411_v47 = vld [vmem:[#allocation4 + $0x898] sm:$0xff] }
 0x2cf   :  { %v13804_v51 = vcombine.high %v410_v43, %v414_v45  ;;  %v13803_v60 = vcombine.low %v410_v43, %v414_v45  ;;  %v458_v39 = vld [vmem:[#allocation4 + $0xa10] sm:$0xff] }
 0x2d1   :  { %6902 = vmatpush1.bf16.msra.mxu0 %v13747_v52  ;;  %7230 = vmatpush1.bf16.msra.mxu1 %v13749_v53  ;;  %v13806_v52 = vcombine.high %v411_v47, %v415_v48  ;;  %v418_v53 = vld [vmem:[#allocation4 + $0x8d0] sm:$0xff] }
 0x2d2   :  { %6903 = vmatprep.subr.bf16.mxu0 %v13756_v55  ;;  %7231 = vmatprep.subr.bf16.mxu1 %v13758_v58  ;;  %v422_v55 = vld [vmem:[#allocation4 + $0x8f0] sm:$0xff]  ;;  %v419_v58 = vld [vmem:[#allocation4 + $0x8d8] sm:$0xff] }
 0x2d3   :  { %v13812_v61 = vcombine.high %v418_v53, %v422_v55  ;;  %v13814_v62 = vcombine.high %v419_v58, %v423_v59  ;;  %v13811_v3 = vcombine.low %v418_v53, %v422_v55  ;;  %v13813_v4 = vcombine.low %v419_v58, %v423_v59  ;;  %v474_v59 = vld [vmem:[#allocation4 + $0xa90] sm:$0xff] }
 0x2d5   :  { %6904 = vmatpush1.bf16.msra.mxu0 %v13755_v63  ;;  %7232 = vmatpush1.bf16.msra.mxu1 %v13757_v0  ;;  %v426_v63 = vld [vmem:[#allocation4 + $0x910] sm:$0xff] }
 0x2d6   :  { %6905 = vmatprep.subr.bf16.mxu0 %v13764_v2  ;;  %7233 = vmatprep.subr.bf16.mxu1 %v13766_v57  ;;  %v430_v0 = vld [vmem:[#allocation4 + $0x930] sm:$0xff]  ;;  %v427_v2 = vld [vmem:[#allocation4 + $0x918] sm:$0xff] }
 0x2d7   :  { %v431_v57 = vld [vmem:[#allocation4 + $0x938] sm:$0xff]  ;;  %v13820_v5 = vcombine.high %v426_v63, %v430_v0 }
 0x2d8   :  { %v13821_v11 = vcombine.low %v427_v2, %v431_v57 }
 0x2d9   :  { %6906 = vmatpush1.bf16.msra.mxu0 %v13763_v7  ;;  %7234 = vmatpush1.bf16.msra.mxu1 %v13765_v8  ;;  %v438_v7 = vld [vmem:[#allocation4 + $0x970] sm:$0xff]  ;;  %v435_v8 = vld [vmem:[#allocation4 + $0x958] sm:$0xff] }
 0x2da   :  { %6907 = vmatprep.subr.bf16.mxu0 %v13772_v9  ;;  %7235 = vmatprep.subr.bf16.mxu1 %v13774_v10  ;;  %v439_v9 = vld [vmem:[#allocation4 + $0x978] sm:$0xff]  ;;  %v13819_v10 = vcombine.low %v426_v63, %v430_v0  ;;  %v13828_v13 = vcombine.high %v434_v6, %v438_v7 }
 0x2db   :  { %v13830_v15 = vcombine.high %v435_v8, %v439_v9  ;;  %v13829_v22 = vcombine.low %v435_v8, %v439_v9  ;;  %v490_v9 = vld [vmem:[#allocation4 + $0xb10] sm:$0xff] }
 0x2dd   :  { %6908 = vmatpush1.bf16.msra.mxu0 %v13771_v18  ;;  %7236 = vmatpush1.bf16.msra.mxu1 %v13773_v19  ;;  %v446_v18 = vld [vmem:[#allocation4 + $0x9b0] sm:$0xff]  ;;  %v443_v19 = vld [vmem:[#allocation4 + $0x998] sm:$0xff] }
 0x2de   :  { %6909 = vmatprep.subr.bf16.mxu0 %v13780_v20  ;;  %7237 = vmatprep.subr.bf16.mxu1 %v13782_v21  ;;  %v447_v20 = vld [vmem:[#allocation4 + $0x9b8] sm:$0xff]  ;;  %v13827_v21 = vcombine.low %v434_v6, %v438_v7  ;;  %v13836_v24 = vcombine.high %v442_v17, %v446_v18 }
 0x2df   :  { %v13838_v27 = vcombine.high %v443_v19, %v447_v20  ;;  %v13837_v35 = vcombine.low %v443_v19, %v447_v20  ;;  %v498_v20 = vld [vmem:[#allocation4 + $0xb50] sm:$0xff] }
 0x2e1   :  { %6910 = vmatpush1.bf16.msra.mxu0 %v13779_v30  ;;  %7238 = vmatpush1.bf16.msra.mxu1 %v13781_v31  ;;  %v454_v30 = vld [vmem:[#allocation4 + $0x9f0] sm:$0xff]  ;;  %v451_v31 = vld [vmem:[#allocation4 + $0x9d8] sm:$0xff] }
 0x2e2   :  { %6920 = vmatprep.subr.bf16.mxu0 %v13788_v32  ;;  %7248 = vmatprep.subr.bf16.mxu1 %v13790_v33  ;;  %v455_v32 = vld [vmem:[#allocation4 + $0x9f8] sm:$0xff]  ;;  %v13835_v33 = vcombine.low %v442_v17, %v446_v18  ;;  %v13844_v37 = vcombine.high %v450_v12, %v454_v30 }
 0x2e3   :  { %v13846_v38 = vcombine.high %v451_v31, %v455_v32  ;;  %v13845_v43 = vcombine.low %v451_v31, %v455_v32  ;;  %v506_v32 = vld [vmem:[#allocation4 + $0xb90] sm:$0xff] }
 0x2e4   :  { %6912 = vmatmul.mubr.bf16.vlgmr.msra.gmra.mrb[4].mxu0 %v16126_v25  ;;  %7240 = vmatmul.mubr.bf16.vlgmr.msra.gmra.mrb[4].mxu1 %v16126_v25  ;;  %v13805_v25 = vcombine.low %v411_v47, %v415_v48  ;;  %v466_v48 = vld [vmem:[#allocation4 + $0xa50] sm:$0xff] }
 0x2e5   :  { %6921 = vmatpush1.bf16.msra.mxu0 %v13787_v40  ;;  %7249 = vmatpush1.bf16.msra.mxu1 %v13789_v23  ;;  %v462_v40 = vld [vmem:[#allocation4 + $0xa30] sm:$0xff]  ;;  %v459_v23 = vld [vmem:[#allocation4 + $0xa18] sm:$0xff] }
 0x2e6   :  { %6922 = vmatprep.subr.bf16.mxu0 %v13796_v41  ;;  %7250 = vmatprep.subr.bf16.mxu1 %v13798_v42  ;;  %v463_v41 = vld [vmem:[#allocation4 + $0xa38] sm:$0xff]  ;;  %v13843_v42 = vcombine.low %v450_v12, %v454_v30  ;;  %v13852_v45 = vcombine.high %v458_v39, %v462_v40 }
 0x2e7   :  { %6952 = vmatprep.mubr.bf16.mxu0 %v16128_v34  ;;  %7280 = vmatprep.mubr.bf16.mxu1 %v16128_v34  ;;  %v13822_v34 = vcombine.high %v427_v2, %v431_v57  ;;  %v13854_v47 = vcombine.high %v459_v23, %v463_v41  ;;  %v13853_v53 = vcombine.low %v459_v23, %v463_v41  ;;  %v482_v57 = vld [vmem:[#allocation4 + $0xad0] sm:$0xff] }
 0x2e8   :  { %v514_v41 = vld [vmem:[#allocation4 + $0xbd0] sm:$0xff] }
 0x2e9   :  { %6923 = vmatpush1.bf16.msra.mxu0 %v13795_v49  ;;  %7251 = vmatpush1.bf16.msra.mxu1 %v13797_v50  ;;  %v470_v49 = vld [vmem:[#allocation4 + $0xa70] sm:$0xff]  ;;  %v467_v50 = vld [vmem:[#allocation4 + $0xa58] sm:$0xff] }
 0x2ea   :  { %6924 = vmatprep.subr.bf16.mxu0 %v13804_v51  ;;  %7252 = vmatprep.subr.bf16.mxu1 %v13806_v52  ;;  %v471_v51 = vld [vmem:[#allocation4 + $0xa78] sm:$0xff]  ;;  %v13851_v52 = vcombine.low %v458_v39, %v462_v40  ;;  %v13860_v55 = vcombine.high %v466_v48, %v470_v49 }
 0x2eb   :  { %v13862_v58 = vcombine.high %v467_v50, %v471_v51  ;;  %v13861_v63 = vcombine.low %v467_v50, %v471_v51  ;;  %v522_v51 = vld [vmem:[#allocation4 + $0xc10] sm:$0xff] }
 0x2ed   :  { %6925 = vmatpush1.bf16.msra.mxu0 %v13803_v60  ;;  %7253 = vmatpush1.bf16.msra.mxu1 %v13805_v25  ;;  %v478_v60 = vld [vmem:[#allocation4 + $0xab0] sm:$0xff]  ;;  %v475_v25 = vld [vmem:[#allocation4 + $0xa98] sm:$0xff] }
 0x2ee   :  { %6926 = vmatprep.subr.bf16.mxu0 %v13812_v61  ;;  %7254 = vmatprep.subr.bf16.mxu1 %v13814_v62  ;;  %v479_v61 = vld [vmem:[#allocation4 + $0xab8] sm:$0xff]  ;;  %v13859_v62 = vcombine.low %v466_v48, %v470_v49  ;;  %v13868_v0 = vcombine.high %v474_v59, %v478_v60 }
 0x2ef   :  { %v13870_v2 = vcombine.high %v475_v25, %v479_v61  ;;  %v13869_v6 = vcombine.low %v475_v25, %v479_v61  ;;  %v530_v61 = vld [vmem:[#allocation4 + $0xc50] sm:$0xff] }
 0x2f1   :  { %6927 = vmatpush1.bf16.msra.mxu0 %v13811_v3  ;;  %7255 = vmatpush1.bf16.msra.mxu1 %v13813_v4  ;;  %v486_v3 = vld [vmem:[#allocation4 + $0xaf0] sm:$0xff]  ;;  %v483_v4 = vld [vmem:[#allocation4 + $0xad8] sm:$0xff] }
 0x2f2   :  { %6928 = vmatprep.subr.bf16.mxu0 %v13820_v5  ;;  %7256 = vmatprep.subr.bf16.mxu1 %v13822_v34  ;;  %v487_v5 = vld [vmem:[#allocation4 + $0xaf8] sm:$0xff]  ;;  %v13867_v34 = vcombine.low %v474_v59, %v478_v60  ;;  %v13876_v7 = vcombine.high %v482_v57, %v486_v3 }
 0x2f3   :  { %v13878_v8 = vcombine.high %v483_v4, %v487_v5  ;;  %v13877_v17 = vcombine.low %v483_v4, %v487_v5  ;;  %v538_v5 = vld [vmem:[#allocation4 + $0xc90] sm:$0xff] }
 0x2f5   :  { %6929 = vmatpush1.bf16.msra.mxu0 %v13819_v10  ;;  %7257 = vmatpush1.bf16.msra.mxu1 %v13821_v11  ;;  %v494_v10 = vld [vmem:[#allocation4 + $0xb30] sm:$0xff]  ;;  %v491_v11 = vld [vmem:[#allocation4 + $0xb18] sm:$0xff] }
 0x2f6   :  { %6930 = vmatprep.subr.bf16.mxu0 %v13828_v13  ;;  %7258 = vmatprep.subr.bf16.mxu1 %v13830_v15  ;;  %v495_v13 = vld [vmem:[#allocation4 + $0xb38] sm:$0xff]  ;;  %v13875_v15 = vcombine.low %v482_v57, %v486_v3  ;;  %v13884_v18 = vcombine.high %v490_v9, %v494_v10 }
 0x2f7   :  { %v13886_v19 = vcombine.high %v491_v11, %v495_v13  ;;  %v13885_v12 = vcombine.low %v491_v11, %v495_v13  ;;  %v546_v13 = vld [vmem:[#allocation4 + $0xcd0] sm:$0xff] }
 0x2f9   :  { %6931 = vmatpush1.bf16.msra.mxu0 %v13827_v21  ;;  %7259 = vmatpush1.bf16.msra.mxu1 %v13829_v22  ;;  %v502_v21 = vld [vmem:[#allocation4 + $0xb70] sm:$0xff]  ;;  %v499_v22 = vld [vmem:[#allocation4 + $0xb58] sm:$0xff] }
 0x2fa   :  { %6932 = vmatprep.subr.bf16.mxu0 %v13836_v24  ;;  %7260 = vmatprep.subr.bf16.mxu1 %v13838_v27  ;;  %v503_v24 = vld [vmem:[#allocation4 + $0xb78] sm:$0xff]  ;;  %v13883_v27 = vcombine.low %v490_v9, %v494_v10  ;;  %v13892_v30 = vcombine.high %v498_v20, %v502_v21 }
 0x2fb   :  { %v13894_v31 = vcombine.high %v499_v22, %v503_v24  ;;  %v13893_v39 = vcombine.low %v499_v22, %v503_v24  ;;  %v554_v22 = vld [vmem:[#allocation4 + $0xd10] sm:$0xff] }
 0x2fc   :  { %v558_v24 = vld [vmem:[#allocation4 + $0xd30] sm:$0xff] }
 0x2fd   :  { %6933 = vmatpush1.bf16.msra.mxu0 %v13835_v33  ;;  %7261 = vmatpush1.bf16.msra.mxu1 %v13837_v35  ;;  %v510_v33 = vld [vmem:[#allocation4 + $0xbb0] sm:$0xff]  ;;  %v507_v35 = vld [vmem:[#allocation4 + $0xb98] sm:$0xff] }
 0x2fe   :  { %6934 = vmatprep.subr.bf16.mxu0 %v13844_v37  ;;  %7262 = vmatprep.subr.bf16.mxu1 %v13846_v38  ;;  %v511_v37 = vld [vmem:[#allocation4 + $0xbb8] sm:$0xff]  ;;  %v13891_v38 = vcombine.low %v498_v20, %v502_v21  ;;  %v13900_v40 = vcombine.high %v506_v32, %v510_v33 }
 0x2ff   :  { %v13902_v23 = vcombine.high %v507_v35, %v511_v37  ;;  %v13901_v48 = vcombine.low %v507_v35, %v511_v37  ;;  %v566_v35 = vld [vmem:[#allocation4 + $0xd70] sm:$0xff]  ;;  %v563_v37 = vld [vmem:[#allocation4 + $0xd58] sm:$0xff] }
 0x301   :  { %6935 = vmatpush1.bf16.msra.mxu0 %v13843_v42  ;;  %7263 = vmatpush1.bf16.msra.mxu1 %v13845_v43  ;;  %v518_v42 = vld [vmem:[#allocation4 + $0xbf0] sm:$0xff]  ;;  %v515_v43 = vld [vmem:[#allocation4 + $0xbd8] sm:$0xff] }
 0x302   :  { %6936 = vmatprep.subr.bf16.mxu0 %v13852_v45  ;;  %7264 = vmatprep.subr.bf16.mxu1 %v13854_v47  ;;  %v519_v45 = vld [vmem:[#allocation4 + $0xbf8] sm:$0xff]  ;;  %v13899_v47 = vcombine.low %v506_v32, %v510_v33  ;;  %v13908_v49 = vcombine.high %v514_v41, %v518_v42  ;;  %v13948_v32 = vcombine.high %v554_v22, %v558_v24  ;;  %v562_v33 = vld [vmem:[#allocation4 + $0xd50] sm:$0xff] }
 0x303   :  { %v13910_v50 = vcombine.high %v515_v43, %v519_v45  ;;  %v13909_v59 = vcombine.low %v515_v43, %v519_v45  ;;  %v574_v43 = vld [vmem:[#allocation4 + $0xdb0] sm:$0xff]  ;;  %v571_v45 = vld [vmem:[#allocation4 + $0xd98] sm:$0xff] }
 0x305   :  { %6937 = vmatpush1.bf16.msra.mxu0 %v13851_v52  ;;  %7265 = vmatpush1.bf16.msra.mxu1 %v13853_v53  ;;  %v526_v52 = vld [vmem:[#allocation4 + $0xc30] sm:$0xff]  ;;  %v523_v53 = vld [vmem:[#allocation4 + $0xc18] sm:$0xff] }
 0x306   :  { %6938 = vmatprep.subr.bf16.mxu0 %v13860_v55  ;;  %7266 = vmatprep.subr.bf16.mxu1 %v13862_v58  ;;  %v527_v55 = vld [vmem:[#allocation4 + $0xc38] sm:$0xff]  ;;  %v13907_v58 = vcombine.low %v514_v41, %v518_v42  ;;  %v13916_v60 = vcombine.high %v522_v51, %v526_v52  ;;  %v570_v42 = vld [vmem:[#allocation4 + $0xd90] sm:$0xff] }
 0x307   :  { %v13918_v25 = vcombine.high %v523_v53, %v527_v55  ;;  %v13917_v57 = vcombine.low %v523_v53, %v527_v55  ;;  %v578_v53 = vld [vmem:[#allocation4 + $0xdd0] sm:$0xff] }
 0x308   :  { %v582_v55 = vld [vmem:[#allocation4 + $0xdf0] sm:$0xff] }
 0x309   :  { %6939 = vmatpush1.bf16.msra.mxu0 %v13859_v62  ;;  %7267 = vmatpush1.bf16.msra.mxu1 %v13861_v63  ;;  %v534_v62 = vld [vmem:[#allocation4 + $0xc70] sm:$0xff]  ;;  %v531_v63 = vld [vmem:[#allocation4 + $0xc58] sm:$0xff] }
 0x30a   :  { %6940 = vmatprep.subr.bf16.mxu0 %v13868_v0  ;;  %7268 = vmatprep.subr.bf16.mxu1 %v13870_v2  ;;  %v535_v0 = vld [vmem:[#allocation4 + $0xc78] sm:$0xff]  ;;  %v13915_v2 = vcombine.low %v522_v51, %v526_v52  ;;  %v13924_v3 = vcombine.high %v530_v61, %v534_v62 }
 0x30b   :  { %v13926_v4 = vcombine.high %v531_v63, %v535_v0  ;;  %v13925_v9 = vcombine.low %v531_v63, %v535_v0  ;;  %v13963_v63 = vcombine.low %v570_v42, %v574_v43 }
 0x30d   :  { %6941 = vmatpush1.bf16.msra.mxu0 %v13867_v34  ;;  %7269 = vmatpush1.bf16.msra.mxu1 %v13869_v6  ;;  %v542_v34 = vld [vmem:[#allocation4 + $0xcb0] sm:$0xff]  ;;  %v539_v6 = vld [vmem:[#allocation4 + $0xc98] sm:$0xff] }
 0x30e   :  { %6942 = vmatprep.subr.bf16.mxu0 %v13876_v7  ;;  %7270 = vmatprep.subr.bf16.mxu1 %v13878_v8  ;;  %v543_v7 = vld [vmem:[#allocation4 + $0xcb8] sm:$0xff]  ;;  %v13923_v8 = vcombine.low %v530_v61, %v534_v62  ;;  %v13932_v10 = vcombine.high %v538_v5, %v542_v34 }
 0x30f   :  { %v13934_v11 = vcombine.high %v539_v6, %v543_v7 }
 0x311   :  { %6943 = vmatpush1.bf16.msra.mxu0 %v13875_v15  ;;  %7271 = vmatpush1.bf16.msra.mxu1 %v13877_v17  ;;  %v550_v15 = vld [vmem:[#allocation4 + $0xcf0] sm:$0xff]  ;;  %v547_v17 = vld [vmem:[#allocation4 + $0xcd8] sm:$0xff] }
 0x312   :  { %6944 = vmatprep.subr.bf16.mxu0 %v13884_v18  ;;  %7272 = vmatprep.subr.bf16.mxu1 %v13886_v19  ;;  %v551_v18 = vld [vmem:[#allocation4 + $0xcf8] sm:$0xff]  ;;  %v13931_v19 = vcombine.low %v538_v5, %v542_v34  ;;  %v13940_v20 = vcombine.high %v546_v13, %v550_v15  ;;  %v586_v34 = vld [vmem:[#allocation4 + $0xe10] sm:$0xff] }
 0x313   :  { %v13942_v21 = vcombine.high %v547_v17, %v551_v18 }
 0x315   :  { %6945 = vmatpush1.bf16.msra.mxu0 %v13883_v27  ;;  %7273 = vmatpush1.bf16.msra.mxu1 %v13885_v12  ;;  %v555_v27 = vld [vmem:[#allocation4 + $0xd18] sm:$0xff] }
 0x316   :  { %6946 = vmatprep.subr.bf16.mxu0 %v13892_v30  ;;  %7274 = vmatprep.subr.bf16.mxu1 %v13894_v31  ;;  %v559_v12 = vld [vmem:[#allocation4 + $0xd38] sm:$0xff]  ;;  %v13939_v30 = vcombine.low %v546_v13, %v550_v15  ;;  %v13941_v31 = vcombine.low %v547_v17, %v551_v18  ;;  %v594_v15 = vld [vmem:[#allocation4 + $0xe50] sm:$0xff] }
 0x317   :  { %v598_v17 = vld [vmem:[#allocation4 + $0xe70] sm:$0xff]  ;;  %v595_v18 = vld [vmem:[#allocation4 + $0xe58] sm:$0xff] }
 0x319   :  { %6947 = vmatpush1.bf16.msra.mxu0 %v13891_v38  ;;  %7275 = vmatpush1.bf16.msra.mxu1 %v13893_v39  ;;  %v567_v38 = vld [vmem:[#allocation4 + $0xd78] sm:$0xff]  ;;  %v13947_v39 = vcombine.low %v554_v22, %v558_v24  ;;  %v602_v24 = vld [vmem:[#allocation4 + $0xe90] sm:$0xff] }
 0x31a   :  { %6948 = vmatprep.subr.bf16.mxu0 %v13900_v40  ;;  %7276 = vmatprep.subr.bf16.mxu1 %v13902_v23  ;;  %v13949_v40 = vcombine.low %v555_v27, %v559_v12  ;;  %v13956_v23 = vcombine.high %v562_v33, %v566_v35  ;;  %v13958_v41 = vcombine.high %v563_v37, %v567_v38 }
 0x31d   :  { %6949 = vmatpush1.bf16.msra.mxu0 %v13899_v47  ;;  %7277 = vmatpush1.bf16.msra.mxu1 %v13901_v48  ;;  %v575_v47 = vld [vmem:[#allocation4 + $0xdb8] sm:$0xff]  ;;  %v13955_v48 = vcombine.low %v562_v33, %v566_v35  ;;  %v610_v35 = vld [vmem:[#allocation4 + $0xed0] sm:$0xff] }
 0x31e   :  { %6950 = vmatprep.subr.bf16.mxu0 %v13908_v49  ;;  %7278 = vmatprep.subr.bf16.mxu1 %v13910_v50  ;;  %v13957_v49 = vcombine.low %v563_v37, %v567_v38  ;;  %v13964_v50 = vcombine.high %v570_v42, %v574_v43  ;;  %v13966_v52 = vcombine.high %v571_v45, %v575_v47  ;;  %v614_v37 = vld [vmem:[#allocation4 + $0xef0] sm:$0xff]  ;;  %v611_v38 = vld [vmem:[#allocation4 + $0xed8] sm:$0xff] }
 0x31f   :  { %v618_v43 = vld [vmem:[#allocation4 + $0xf10] sm:$0xff] }
 0x321   :  { %6951 = vmatpush1.bf16.msra.mxu0 %v13907_v58  ;;  %7279 = vmatpush1.bf16.msra.mxu1 %v13909_v59 }
 0x322   :  { %6961 = vmatprep.subr.bf16.mxu0 %v13916_v60  ;;  %7289 = vmatprep.subr.bf16.mxu1 %v13918_v25  ;;  %v579_v60 = vld [vmem:[#allocation4 + $0xdd8] sm:$0xff] }
 0x323   :  { %v583_v25 = vld [vmem:[#allocation4 + $0xdf8] sm:$0xff] }
 0x324   :  { %6953 = vmatmul.mubr.bf16.vlgmr.msra.gmra.mrb[4].mxu0 %v16134_v36  ;;  %7281 = vmatmul.mubr.bf16.vlgmr.msra.gmra.mrb[4].mxu1 %v16134_v36  ;;  %v13933_v36 = vcombine.low %v539_v6, %v543_v7  ;;  %v13974_v5 = vcombine.high %v579_v60, %v583_v25  ;;  %v590_v6 = vld [vmem:[#allocation4 + $0xe30] sm:$0xff]  ;;  %v587_v7 = vld [vmem:[#allocation4 + $0xe18] sm:$0xff] }
 0x325   :  { %6962 = vmatpush1.bf16.msra.mxu0 %v13915_v2  ;;  %7290 = vmatpush1.bf16.msra.mxu1 %v13917_v57  ;;  %v13965_v57 = vcombine.low %v571_v45, %v575_v47  ;;  %v622_v45 = vld [vmem:[#allocation4 + $0xf30] sm:$0xff]  ;;  %v619_v47 = vld [vmem:[#allocation4 + $0xf18] sm:$0xff] }
 0x326   :  { %6963 = vmatprep.subr.bf16.mxu0 %v13924_v3  ;;  %7291 = vmatprep.subr.bf16.mxu1 %v13926_v4  ;;  %v13972_v3 = vcombine.high %v578_v53, %v582_v55 }
 0x327   :  { %6993 = vmatprep.mubr.bf16.mxu0 %v16136_v46  ;;  %7321 = vmatprep.mubr.bf16.mxu1 %v16136_v46  ;;  %v13950_v46 = vcombine.high %v555_v27, %v559_v12  ;;  %v606_v27 = vld [vmem:[#allocation4 + $0xeb0] sm:$0xff]  ;;  %v603_v12 = vld [vmem:[#allocation4 + $0xe98] sm:$0xff] }
 0x329   :  { %6964 = vmatpush1.bf16.msra.mxu0 %v13923_v8  ;;  %7292 = vmatpush1.bf16.msra.mxu1 %v13925_v9  ;;  %v591_v8 = vld [vmem:[#allocation4 + $0xe38] sm:$0xff]  ;;  %v13971_v9 = vcombine.low %v578_v53, %v582_v55  ;;  %v626_v55 = vld [vmem:[#allocation4 + $0xf50] sm:$0xff] }
 0x32a   :  { %6965 = vmatprep.subr.bf16.mxu0 %v13932_v10  ;;  %7293 = vmatprep.subr.bf16.mxu1 %v13934_v11  ;;  %v13973_v10 = vcombine.low %v579_v60, %v583_v25  ;;  %v13980_v11 = vcombine.high %v586_v34, %v590_v6  ;;  %v13982_v13 = vcombine.high %v587_v7, %v591_v8  ;;  %v630_v60 = vld [vmem:[#allocation4 + $0xf70] sm:$0xff]  ;;  %v627_v25 = vld [vmem:[#allocation4 + $0xf58] sm:$0xff] }
 0x32d   :  { %6966 = vmatpush1.bf16.msra.mxu0 %v13931_v19  ;;  %7294 = vmatpush1.bf16.msra.mxu1 %v13933_v36  ;;  %v599_v19 = vld [vmem:[#allocation4 + $0xe78] sm:$0xff]  ;;  %v13979_v36 = vcombine.low %v586_v34, %v590_v6  ;;  %v14019_v6 = vcombine.low %v626_v55, %v630_v60 }
 0x32e   :  { %6967 = vmatprep.subr.bf16.mxu0 %v13940_v20  ;;  %7295 = vmatprep.subr.bf16.mxu1 %v13942_v21  ;;  %v13981_v20 = vcombine.low %v587_v7, %v591_v8  ;;  %v13988_v21 = vcombine.high %v594_v15, %v598_v17  ;;  %v13990_v22 = vcombine.high %v595_v18, %v599_v19  ;;  %v639_v34 = vld [vmem:[#allocation4 + $0xfb8] sm:$0xff] }
 0x331   :  { %6968 = vmatpush1.bf16.msra.mxu0 %v13939_v30  ;;  %7296 = vmatpush1.bf16.msra.mxu1 %v13941_v31  ;;  %v607_v30 = vld [vmem:[#allocation4 + $0xeb8] sm:$0xff]  ;;  %v13987_v31 = vcombine.low %v594_v15, %v598_v17 }
 0x332   :  { %6969 = vmatprep.subr.bf16.mxu0 %v13948_v32  ;;  %7297 = vmatprep.subr.bf16.mxu1 %v13950_v46  ;;  %v13989_v32 = vcombine.low %v595_v18, %v599_v19  ;;  %v13996_v46 = vcombine.high %v602_v24, %v606_v27  ;;  %v13998_v33 = vcombine.high %v603_v12, %v607_v30  ;;  %v647_v15 = vld [vmem:[#allocation4 + $0xff8] sm:$0xff] }
 0x335   :  { %6970 = vmatpush1.bf16.msra.mxu0 %v13947_v39  ;;  %7298 = vmatpush1.bf16.msra.mxu1 %v13949_v40  ;;  %v615_v39 = vld [vmem:[#allocation4 + $0xef8] sm:$0xff]  ;;  %v13995_v40 = vcombine.low %v602_v24, %v606_v27 }
 0x336   :  { %6971 = vmatprep.subr.bf16.mxu0 %v13956_v23  ;;  %7299 = vmatprep.subr.bf16.mxu1 %v13958_v41  ;;  %v13997_v23 = vcombine.low %v603_v12, %v607_v30  ;;  %v14004_v41 = vcombine.high %v610_v35, %v614_v37  ;;  %v14006_v42 = vcombine.high %v611_v38, %v615_v39  ;;  %v655_v24 = vld [vmem:[#allocation4 + $0x1038] sm:$0xff] }
 0x337   :  { %v16194_v51 = vpop.f32.mrb[0].mxu0  ;;  %v16196_v58 = vpop.f32.mrb[0].mxu1 }
 0x338   :  { %v16198_v59 = vpop.f32.mrb[1].mxu0  ;;  %v16200_v61 = vpop.f32.mrb[1].mxu1 }
 0x339   :  { %v6507_v62 = vpop.f32.mrb[2].mxu0  ;;  %6972 = vmatpush1.bf16.msra.mxu0 %v13955_v48  ;;  %v6835_v0 = vpop.f32.mrb[2].mxu1  ;;  %7300 = vmatpush1.bf16.msra.mxu1 %v13957_v49  ;;  %v623_v48 = vld [vmem:[#allocation4 + $0xf38] sm:$0xff]  ;;  %v14003_v49 = vcombine.low %v610_v35, %v614_v37 }
 0x33a   :  { %v6508_v2 = vpop.f32.mrb[3].mxu0  ;;  %6973 = vmatprep.subr.bf16.mxu0 %v13964_v50  ;;  %v6836_v4 = vpop.f32.mrb[3].mxu1  ;;  %7301 = vmatprep.subr.bf16.mxu1 %v13966_v52  ;;  %v14005_v50 = vcombine.low %v611_v38, %v615_v39  ;;  %v14012_v52 = vcombine.high %v618_v43, %v622_v45  ;;  %v14014_v53 = vcombine.high %v619_v47, %v623_v48  ;;  %v631_v62 = vld [vmem:[#allocation4 + $0xf78] sm:$0xff] }
 0x33b   :  { %v14013_v0 = vcombine.low %v619_v47, %v623_v48  ;;  %v14020_v2 = vcombine.high %v626_v55, %v630_v60  ;;  %v638_v4 = vld [vmem:[#allocation4 + $0xfb0] sm:$0xff]  ;;  %v14021_v7 = vcombine.low %v627_v25, %v631_v62  ;;  %v663_v35 = vld [vmem:[#allocation4 + $0x1078] sm:$0xff] }
 0x33c   :  { %v679_v55 = vld [vmem:[#allocation4 + $0x10f8] sm:$0xff] }
 0x33d   :  { %6974 = vmatpush1.bf16.msra.mxu0 %v13963_v63  ;;  %7302 = vmatpush1.bf16.msra.mxu1 %v13965_v57  ;;  %v14011_v63 = vcombine.low %v618_v43, %v622_v45  ;;  %v14022_v57 = vcombine.high %v627_v25, %v631_v62  ;;  %v671_v43 = vld [vmem:[#allocation4 + $0x10b8] sm:$0xff] }
 0x33e   :  { %6975 = vmatprep.subr.bf16.mxu0 %v13972_v3  ;;  %7303 = vmatprep.subr.bf16.mxu1 %v13974_v5  ;;  %v634_v3 = vld [vmem:[#allocation4 + $0xf90] sm:$0xff]  ;;  %v635_v5 = vld [vmem:[#allocation4 + $0xf98] sm:$0xff] }
 0x33f   :  { %v14028_v8 = vcombine.high %v634_v3, %v638_v4  ;;  %v14027_v17 = vcombine.low %v634_v3, %v638_v4  ;;  %v14029_v18 = vcombine.low %v635_v5, %v639_v34 }
 0x341   :  { %6976 = vmatpush1.bf16.msra.mxu0 %v13971_v9  ;;  %7304 = vmatpush1.bf16.msra.mxu1 %v13973_v10  ;;  %v14030_v9 = vcombine.high %v635_v5, %v639_v34  ;;  %v642_v10 = vld [vmem:[#allocation4 + $0xfd0] sm:$0xff] }
 0x342   :  { %6977 = vmatprep.subr.bf16.mxu0 %v13980_v11  ;;  %7305 = vmatprep.subr.bf16.mxu1 %v13982_v13  ;;  %v646_v11 = vld [vmem:[#allocation4 + $0xff0] sm:$0xff]  ;;  %v643_v13 = vld [vmem:[#allocation4 + $0xfd8] sm:$0xff] }
 0x343   :  { %v14036_v19 = vcombine.high %v642_v10, %v646_v11  ;;  %v14035_v27 = vcombine.low %v642_v10, %v646_v11  ;;  %v14037_v12 = vcombine.low %v643_v13, %v647_v15  ;;  %v690_v34 = vld [vmem:[#allocation4 + $0x1150] sm:$0xff] }
 0x345   :  { %6978 = vmatpush1.bf16.msra.mxu0 %v13979_v36  ;;  %7306 = vmatpush1.bf16.msra.mxu1 %v13981_v20  ;;  %v14038_v36 = vcombine.high %v643_v13, %v647_v15  ;;  %v650_v20 = vld [vmem:[#allocation4 + $0x1010] sm:$0xff] }
 0x346   :  { %6979 = vmatprep.subr.bf16.mxu0 %v13988_v21  ;;  %7307 = vmatprep.subr.bf16.mxu1 %v13990_v22  ;;  %v654_v21 = vld [vmem:[#allocation4 + $0x1030] sm:$0xff]  ;;  %v651_v22 = vld [vmem:[#allocation4 + $0x1018] sm:$0xff] }
 0x347   :  { %v14044_v30 = vcombine.high %v650_v20, %v654_v21  ;;  %v14043_v37 = vcombine.low %v650_v20, %v654_v21  ;;  %v14045_v38 = vcombine.low %v651_v22, %v655_v24  ;;  %v698_v15 = vld [vmem:[#allocation4 + $0x1190] sm:$0xff] }
 0x349   :  { %6980 = vmatpush1.bf16.msra.mxu0 %v13987_v31  ;;  %7308 = vmatpush1.bf16.msra.mxu1 %v13989_v32  ;;  %v14046_v31 = vcombine.high %v651_v22, %v655_v24  ;;  %v658_v32 = vld [vmem:[#allocation4 + $0x1050] sm:$0xff] }
 0x34a   :  { %6981 = vmatprep.subr.bf16.mxu0 %v13996_v46  ;;  %7309 = vmatprep.subr.bf16.mxu1 %v13998_v33  ;;  %v662_v46 = vld [vmem:[#allocation4 + $0x1070] sm:$0xff]  ;;  %v659_v33 = vld [vmem:[#allocation4 + $0x1058] sm:$0xff] }
 0x34b   :  { %v14052_v39 = vcombine.high %v658_v32, %v662_v46  ;;  %v14051_v45 = vcombine.low %v658_v32, %v662_v46  ;;  %v14053_v47 = vcombine.low %v659_v33, %v663_v35  ;;  %v706_v24 = vld [vmem:[#allocation4 + $0x11d0] sm:$0xff] }
 0x34d   :  { %6982 = vmatpush1.bf16.msra.mxu0 %v13995_v40  ;;  %7310 = vmatpush1.bf16.msra.mxu1 %v13997_v23  ;;  %v14054_v40 = vcombine.high %v659_v33, %v663_v35  ;;  %v666_v23 = vld [vmem:[#allocation4 + $0x1090] sm:$0xff] }
 0x34e   :  { %6983 = vmatprep.subr.bf16.mxu0 %v14004_v41  ;;  %7311 = vmatprep.subr.bf16.mxu1 %v14006_v42  ;;  %v670_v41 = vld [vmem:[#allocation4 + $0x10b0] sm:$0xff]  ;;  %v667_v42 = vld [vmem:[#allocation4 + $0x1098] sm:$0xff] }
 0x34f   :  { %v14060_v48 = vcombine.high %v666_v23, %v670_v41  ;;  %v14059_v60 = vcombine.low %v666_v23, %v670_v41  ;;  %v714_v35 = vld [vmem:[#allocation4 + $0x1210] sm:$0xff] }
 0x351   :  { %6984 = vmatpush1.bf16.msra.mxu0 %v14003_v49  ;;  %7312 = vmatpush1.bf16.msra.mxu1 %v14005_v50  ;;  %v14062_v49 = vcombine.high %v667_v42, %v671_v43  ;;  %v674_v50 = vld [vmem:[#allocation4 + $0x10d0] sm:$0xff] }
 0x352   :  { %6985 = vmatprep.subr.bf16.mxu0 %v14012_v52  ;;  %7313 = vmatprep.subr.bf16.mxu1 %v14014_v53  ;;  %v678_v52 = vld [vmem:[#allocation4 + $0x10f0] sm:$0xff]  ;;  %v675_v53 = vld [vmem:[#allocation4 + $0x10d8] sm:$0xff] }
 0x353   :  { %v14068_v25 = vcombine.high %v674_v50, %v678_v52  ;;  %v14070_v62 = vcombine.high %v675_v53, %v679_v55  ;;  %v14067_v3 = vcombine.low %v674_v50, %v678_v52  ;;  %v14069_v4 = vcombine.low %v675_v53, %v679_v55  ;;  %v730_v55 = vld [vmem:[#allocation4 + $0x1290] sm:$0xff] }
 0x355   :  { %6986 = vmatpush1.bf16.msra.mxu0 %v14011_v63  ;;  %7314 = vmatpush1.bf16.msra.mxu1 %v14013_v0  ;;  %v682_v63 = vld [vmem:[#allocation4 + $0x1110] sm:$0xff] }
 0x356   :  { %6987 = vmatprep.subr.bf16.mxu0 %v14020_v2  ;;  %7315 = vmatprep.subr.bf16.mxu1 %v14022_v57  ;;  %v686_v0 = vld [vmem:[#allocation4 + $0x1130] sm:$0xff]  ;;  %v683_v2 = vld [vmem:[#allocation4 + $0x1118] sm:$0xff] }
 0x357   :  { %v687_v57 = vld [vmem:[#allocation4 + $0x1138] sm:$0xff]  ;;  %v14076_v5 = vcombine.high %v682_v63, %v686_v0 }
 0x358   :  { %v14077_v10 = vcombine.low %v683_v2, %v687_v57 }
 0x359   :  { %6988 = vmatpush1.bf16.msra.mxu0 %v14019_v6  ;;  %7316 = vmatpush1.bf16.msra.mxu1 %v14021_v7  ;;  %v694_v6 = vld [vmem:[#allocation4 + $0x1170] sm:$0xff]  ;;  %v691_v7 = vld [vmem:[#allocation4 + $0x1158] sm:$0xff] }
 0x35a   :  { %6989 = vmatprep.subr.bf16.mxu0 %v14028_v8  ;;  %7317 = vmatprep.subr.bf16.mxu1 %v14030_v9  ;;  %v695_v8 = vld [vmem:[#allocation4 + $0x1178] sm:$0xff]  ;;  %v14075_v9 = vcombine.low %v682_v63, %v686_v0  ;;  %v14084_v11 = vcombine.high %v690_v34, %v694_v6 }
 0x35b   :  { %v14086_v13 = vcombine.high %v691_v7, %v695_v8  ;;  %v14085_v20 = vcombine.low %v691_v7, %v695_v8  ;;  %v746_v8 = vld [vmem:[#allocation4 + $0x1310] sm:$0xff] }
 0x35d   :  { %6990 = vmatpush1.bf16.msra.mxu0 %v14027_v17  ;;  %7318 = vmatpush1.bf16.msra.mxu1 %v14029_v18  ;;  %v702_v17 = vld [vmem:[#allocation4 + $0x11b0] sm:$0xff]  ;;  %v699_v18 = vld [vmem:[#allocation4 + $0x1198] sm:$0xff] }
 0x35e   :  { %6991 = vmatprep.subr.bf16.mxu0 %v14036_v19  ;;  %7319 = vmatprep.subr.bf16.mxu1 %v14038_v36  ;;  %v703_v19 = vld [vmem:[#allocation4 + $0x11b8] sm:$0xff]  ;;  %v14083_v36 = vcombine.low %v690_v34, %v694_v6  ;;  %v14092_v21 = vcombine.high %v698_v15, %v702_v17 }
 0x35f   :  { %v14094_v22 = vcombine.high %v699_v18, %v703_v19  ;;  %v14093_v32 = vcombine.low %v699_v18, %v703_v19  ;;  %v754_v19 = vld [vmem:[#allocation4 + $0x1350] sm:$0xff] }
 0x361   :  { %6992 = vmatpush1.bf16.msra.mxu0 %v14035_v27  ;;  %7320 = vmatpush1.bf16.msra.mxu1 %v14037_v12  ;;  %v710_v27 = vld [vmem:[#allocation4 + $0x11f0] sm:$0xff]  ;;  %v707_v12 = vld [vmem:[#allocation4 + $0x11d8] sm:$0xff] }
 0x362   :  { %7002 = vmatprep.subr.bf16.mxu0 %v14044_v30  ;;  %7330 = vmatprep.subr.bf16.mxu1 %v14046_v31  ;;  %v711_v30 = vld [vmem:[#allocation4 + $0x11f8] sm:$0xff]  ;;  %v14091_v31 = vcombine.low %v698_v15, %v702_v17  ;;  %v14100_v46 = vcombine.high %v706_v24, %v710_v27 }
 0x363   :  { %v14102_v33 = vcombine.high %v707_v12, %v711_v30  ;;  %v14101_v23 = vcombine.low %v707_v12, %v711_v30  ;;  %v762_v30 = vld [vmem:[#allocation4 + $0x1390] sm:$0xff] }
 0x364   :  { %6994 = vmatmul.mubr.bf16.vlgmr.msra.gmra.mrb[4].mxu0 %v16142_v54  ;;  %7322 = vmatmul.mubr.bf16.vlgmr.msra.gmra.mrb[4].mxu1 %v16142_v54  ;;  %v14061_v54 = vcombine.low %v667_v42, %v671_v43  ;;  %v722_v43 = vld [vmem:[#allocation4 + $0x1250] sm:$0xff] }
 0x365   :  { %7003 = vmatpush1.bf16.msra.mxu0 %v14043_v37  ;;  %7331 = vmatpush1.bf16.msra.mxu1 %v14045_v38  ;;  %v718_v37 = vld [vmem:[#allocation4 + $0x1230] sm:$0xff]  ;;  %v715_v38 = vld [vmem:[#allocation4 + $0x1218] sm:$0xff] }
 0x366   :  { %7004 = vmatprep.subr.bf16.mxu0 %v14052_v39  ;;  %7332 = vmatprep.subr.bf16.mxu1 %v14054_v40  ;;  %v719_v39 = vld [vmem:[#allocation4 + $0x1238] sm:$0xff]  ;;  %v14099_v40 = vcombine.low %v706_v24, %v710_v27  ;;  %v14108_v41 = vcombine.high %v714_v35, %v718_v37 }
 0x367   :  { %7034 = vmatprep.mubr.bf16.mxu0 %v16144_v1  ;;  %7362 = vmatprep.mubr.bf16.mxu1 %v16144_v1  ;;  %v14078_v1 = vcombine.high %v683_v2, %v687_v57  ;;  %v14110_v42 = vcombine.high %v715_v38, %v719_v39  ;;  %v14109_v50 = vcombine.low %v715_v38, %v719_v39  ;;  %v738_v57 = vld [vmem:[#allocation4 + $0x12d0] sm:$0xff] }
 0x368   :  { %v770_v39 = vld [vmem:[#allocation4 + $0x13d0] sm:$0xff] }
 0x369   :  { %7005 = vmatpush1.bf16.msra.mxu0 %v14051_v45  ;;  %7333 = vmatpush1.bf16.msra.mxu1 %v14053_v47  ;;  %v726_v45 = vld [vmem:[#allocation4 + $0x1270] sm:$0xff]  ;;  %v723_v47 = vld [vmem:[#allocation4 + $0x1258] sm:$0xff] }
 0x36a   :  { %7006 = vmatprep.subr.bf16.mxu0 %v14060_v48  ;;  %7334 = vmatprep.subr.bf16.mxu1 %v14062_v49  ;;  %v727_v48 = vld [vmem:[#allocation4 + $0x1278] sm:$0xff]  ;;  %v14107_v49 = vcombine.low %v714_v35, %v718_v37  ;;  %v14116_v52 = vcombine.high %v722_v43, %v726_v45 }
 0x36b   :  { %v14118_v53 = vcombine.high %v723_v47, %v727_v48  ;;  %v14117_v63 = vcombine.low %v723_v47, %v727_v48  ;;  %v778_v48 = vld [vmem:[#allocation4 + $0x1410] sm:$0xff] }
 0x36d   :  { %7007 = vmatpush1.bf16.msra.mxu0 %v14059_v60  ;;  %7335 = vmatpush1.bf16.msra.mxu1 %v14061_v54  ;;  %v734_v60 = vld [vmem:[#allocation4 + $0x12b0] sm:$0xff]  ;;  %v731_v54 = vld [vmem:[#allocation4 + $0x1298] sm:$0xff] }
 0x36e   :  { %7008 = vmatprep.subr.bf16.mxu0 %v14068_v25  ;;  %7336 = vmatprep.subr.bf16.mxu1 %v14070_v62  ;;  %v735_v25 = vld [vmem:[#allocation4 + $0x12b8] sm:$0xff]  ;;  %v14115_v62 = vcombine.low %v722_v43, %v726_v45  ;;  %v14124_v0 = vcombine.high %v730_v55, %v734_v60 }
 0x36f   :  { %v14126_v2 = vcombine.high %v731_v54, %v735_v25  ;;  %v14125_v34 = vcombine.low %v731_v54, %v735_v25  ;;  %v786_v25 = vld [vmem:[#allocation4 + $0x1450] sm:$0xff] }
 0x371   :  { %7009 = vmatpush1.bf16.msra.mxu0 %v14067_v3  ;;  %7337 = vmatpush1.bf16.msra.mxu1 %v14069_v4  ;;  %v742_v3 = vld [vmem:[#allocation4 + $0x12f0] sm:$0xff]  ;;  %v739_v4 = vld [vmem:[#allocation4 + $0x12d8] sm:$0xff] }
 0x372   :  { %7010 = vmatprep.subr.bf16.mxu0 %v14076_v5  ;;  %7338 = vmatprep.subr.bf16.mxu1 %v14078_v1  ;;  %v743_v5 = vld [vmem:[#allocation4 + $0x12f8] sm:$0xff]  ;;  %v14123_v1 = vcombine.low %v730_v55, %v734_v60  ;;  %v14132_v6 = vcombine.high %v738_v57, %v742_v3 }
 0x373   :  { %v14134_v7 = vcombine.high %v739_v4, %v743_v5  ;;  %v14133_v15 = vcombine.low %v739_v4, %v743_v5  ;;  %v794_v5 = vld [vmem:[#allocation4 + $0x1490] sm:$0xff] }
 0x375   :  { %7011 = vmatpush1.bf16.msra.mxu0 %v14075_v9  ;;  %7339 = vmatpush1.bf16.msra.mxu1 %v14077_v10  ;;  %v750_v9 = vld [vmem:[#allocation4 + $0x1330] sm:$0xff]  ;;  %v747_v10 = vld [vmem:[#allocation4 + $0x1318] sm:$0xff] }
 0x376   :  { %7012 = vmatprep.subr.bf16.mxu0 %v14084_v11  ;;  %7340 = vmatprep.subr.bf16.mxu1 %v14086_v13  ;;  %v751_v11 = vld [vmem:[#allocation4 + $0x1338] sm:$0xff]  ;;  %v14131_v13 = vcombine.low %v738_v57, %v742_v3  ;;  %v14140_v17 = vcombine.high %v746_v8, %v750_v9 }
 0x377   :  { %v14142_v18 = vcombine.high %v747_v10, %v751_v11  ;;  %v14141_v24 = vcombine.low %v747_v10, %v751_v11  ;;  %v802_v11 = vld [vmem:[#allocation4 + $0x14d0] sm:$0xff] }
 0x379   :  { %7013 = vmatpush1.bf16.msra.mxu0 %v14083_v36  ;;  %7341 = vmatpush1.bf16.msra.mxu1 %v14085_v20  ;;  %v758_v36 = vld [vmem:[#allocation4 + $0x1370] sm:$0xff]  ;;  %v755_v20 = vld [vmem:[#allocation4 + $0x1358] sm:$0xff] }
 0x37a   :  { %7014 = vmatprep.subr.bf16.mxu0 %v14092_v21  ;;  %7342 = vmatprep.subr.bf16.mxu1 %v14094_v22  ;;  %v759_v21 = vld [vmem:[#allocation4 + $0x1378] sm:$0xff]  ;;  %v14139_v22 = vcombine.low %v746_v8, %v750_v9  ;;  %v14148_v27 = vcombine.high %v754_v19, %v758_v36 }
 0x37b   :  { %v14150_v12 = vcombine.high %v755_v20, %v759_v21  ;;  %v14149_v35 = vcombine.low %v755_v20, %v759_v21  ;;  %v810_v20 = vld [vmem:[#allocation4 + $0x1510] sm:$0xff] }
 0x37c   :  { %v814_v21 = vld [vmem:[#allocation4 + $0x1530] sm:$0xff] }
 0x37d   :  { %7015 = vmatpush1.bf16.msra.mxu0 %v14091_v31  ;;  %7343 = vmatpush1.bf16.msra.mxu1 %v14093_v32  ;;  %v766_v31 = vld [vmem:[#allocation4 + $0x13b0] sm:$0xff]  ;;  %v763_v32 = vld [vmem:[#allocation4 + $0x1398] sm:$0xff] }
 0x37e   :  { %7016 = vmatprep.subr.bf16.mxu0 %v14100_v46  ;;  %7344 = vmatprep.subr.bf16.mxu1 %v14102_v33  ;;  %v767_v46 = vld [vmem:[#allocation4 + $0x13b8] sm:$0xff]  ;;  %v14147_v33 = vcombine.low %v754_v19, %v758_v36  ;;  %v14156_v37 = vcombine.high %v762_v30, %v766_v31 }
 0x37f   :  { %v14158_v38 = vcombine.high %v763_v32, %v767_v46  ;;  %v14157_v43 = vcombine.low %v763_v32, %v767_v46  ;;  %v822_v32 = vld [vmem:[#allocation4 + $0x1570] sm:$0xff]  ;;  %v819_v46 = vld [vmem:[#allocation4 + $0x1558] sm:$0xff] }
 0x381   :  { %7017 = vmatpush1.bf16.msra.mxu0 %v14099_v40  ;;  %7345 = vmatpush1.bf16.msra.mxu1 %v14101_v23  ;;  %v774_v40 = vld [vmem:[#allocation4 + $0x13f0] sm:$0xff]  ;;  %v771_v23 = vld [vmem:[#allocation4 + $0x13d8] sm:$0xff] }
 0x382   :  { %7018 = vmatprep.subr.bf16.mxu0 %v14108_v41  ;;  %7346 = vmatprep.subr.bf16.mxu1 %v14110_v42  ;;  %v775_v41 = vld [vmem:[#allocation4 + $0x13f8] sm:$0xff]  ;;  %v14155_v42 = vcombine.low %v762_v30, %v766_v31  ;;  %v14164_v45 = vcombine.high %v770_v39, %v774_v40  ;;  %v14204_v30 = vcombine.high %v810_v20, %v814_v21  ;;  %v818_v31 = vld [vmem:[#allocation4 + $0x1550] sm:$0xff] }
 0x383   :  { %v14166_v47 = vcombine.high %v771_v23, %v775_v41  ;;  %v14165_v55 = vcombine.low %v771_v23, %v775_v41  ;;  %v830_v23 = vld [vmem:[#allocation4 + $0x15b0] sm:$0xff]  ;;  %v827_v41 = vld [vmem:[#allocation4 + $0x1598] sm:$0xff] }
 0x385   :  { %7019 = vmatpush1.bf16.msra.mxu0 %v14107_v49  ;;  %7347 = vmatpush1.bf16.msra.mxu1 %v14109_v50  ;;  %v782_v49 = vld [vmem:[#allocation4 + $0x1430] sm:$0xff]  ;;  %v779_v50 = vld [vmem:[#allocation4 + $0x1418] sm:$0xff] }
 0x386   :  { %7020 = vmatprep.subr.bf16.mxu0 %v14116_v52  ;;  %7348 = vmatprep.subr.bf16.mxu1 %v14118_v53  ;;  %v783_v52 = vld [vmem:[#allocation4 + $0x1438] sm:$0xff]  ;;  %v14163_v53 = vcombine.low %v770_v39, %v774_v40  ;;  %v14172_v60 = vcombine.high %v778_v48, %v782_v49  ;;  %v826_v40 = vld [vmem:[#allocation4 + $0x1590] sm:$0xff] }
 0x387   :  { %v14174_v54 = vcombine.high %v779_v50, %v783_v52  ;;  %v14173_v57 = vcombine.low %v779_v50, %v783_v52  ;;  %v838_v50 = vld [vmem:[#allocation4 + $0x15f0] sm:$0xff]  ;;  %v835_v52 = vld [vmem:[#allocation4 + $0x15d8] sm:$0xff] }
 0x389   :  { %7021 = vmatpush1.bf16.msra.mxu0 %v14115_v62  ;;  %7349 = vmatpush1.bf16.msra.mxu1 %v14117_v63  ;;  %v790_v62 = vld [vmem:[#allocation4 + $0x1470] sm:$0xff]  ;;  %v787_v63 = vld [vmem:[#allocation4 + $0x1458] sm:$0xff] }
 0x38a   :  { %7022 = vmatprep.subr.bf16.mxu0 %v14124_v0  ;;  %7350 = vmatprep.subr.bf16.mxu1 %v14126_v2  ;;  %v791_v0 = vld [vmem:[#allocation4 + $0x1478] sm:$0xff]  ;;  %v14171_v2 = vcombine.low %v778_v48, %v782_v49  ;;  %v14180_v3 = vcombine.high %v786_v25, %v790_v62  ;;  %v834_v49 = vld [vmem:[#allocation4 + $0x15d0] sm:$0xff] }
 0x38b   :  { %v14182_v4 = vcombine.high %v787_v63, %v791_v0  ;;  %v14181_v8 = vcombine.low %v787_v63, %v791_v0  ;;  %v846_v63 = vld [vmem:[#allocation4 + $0x1630] sm:$0xff]  ;;  %v843_v0 = vld [vmem:[#allocation4 + $0x1618] sm:$0xff] }
 0x38d   :  { %7023 = vmatpush1.bf16.msra.mxu0 %v14123_v1  ;;  %7351 = vmatpush1.bf16.msra.mxu1 %v14125_v34  ;;  %v798_v1 = vld [vmem:[#allocation4 + $0x14b0] sm:$0xff]  ;;  %v795_v34 = vld [vmem:[#allocation4 + $0x1498] sm:$0xff] }
 0x38e   :  { %7024 = vmatprep.subr.bf16.mxu0 %v14132_v6  ;;  %7352 = vmatprep.subr.bf16.mxu1 %v14134_v7  ;;  %v799_v6 = vld [vmem:[#allocation4 + $0x14b8] sm:$0xff]  ;;  %v14179_v7 = vcombine.low %v786_v25, %v790_v62  ;;  %v14188_v9 = vcombine.high %v794_v5, %v798_v1  ;;  %v842_v62 = vld [vmem:[#allocation4 + $0x1610] sm:$0xff] }
 0x38f   :  { %v14190_v10 = vcombine.high %v795_v34, %v799_v6 }
 0x391   :  { %7025 = vmatpush1.bf16.msra.mxu0 %v14131_v13  ;;  %7353 = vmatpush1.bf16.msra.mxu1 %v14133_v15  ;;  %v806_v13 = vld [vmem:[#allocation4 + $0x14f0] sm:$0xff]  ;;  %v803_v15 = vld [vmem:[#allocation4 + $0x14d8] sm:$0xff] }
 0x392   :  { %7026 = vmatprep.subr.bf16.mxu0 %v14140_v17  ;;  %7354 = vmatprep.subr.bf16.mxu1 %v14142_v18  ;;  %v807_v17 = vld [vmem:[#allocation4 + $0x14f8] sm:$0xff]  ;;  %v14187_v18 = vcombine.low %v794_v5, %v798_v1  ;;  %v14196_v19 = vcombine.high %v802_v11, %v806_v13  ;;  %v850_v1 = vld [vmem:[#allocation4 + $0x1650] sm:$0xff] }
 0x393   :  { %v14198_v36 = vcombine.high %v803_v15, %v807_v17 }
 0x395   :  { %7027 = vmatpush1.bf16.msra.mxu0 %v14139_v22  ;;  %7355 = vmatpush1.bf16.msra.mxu1 %v14141_v24  ;;  %v811_v22 = vld [vmem:[#allocation4 + $0x1518] sm:$0xff] }
 0x396   :  { %7028 = vmatprep.subr.bf16.mxu0 %v14148_v27  ;;  %7356 = vmatprep.subr.bf16.mxu1 %v14150_v12  ;;  %v815_v24 = vld [vmem:[#allocation4 + $0x1538] sm:$0xff]  ;;  %v14195_v27 = vcombine.low %v802_v11, %v806_v13  ;;  %v14197_v12 = vcombine.low %v803_v15, %v807_v17  ;;  %v858_v13 = vld [vmem:[#allocation4 + $0x1690] sm:$0xff] }
 0x397   :  { %v862_v15 = vld [vmem:[#allocation4 + $0x16b0] sm:$0xff]  ;;  %v859_v17 = vld [vmem:[#allocation4 + $0x1698] sm:$0xff] }
 0x399   :  { %7029 = vmatpush1.bf16.msra.mxu0 %v14147_v33  ;;  %7357 = vmatpush1.bf16.msra.mxu1 %v14149_v35  ;;  %v823_v33 = vld [vmem:[#allocation4 + $0x1578] sm:$0xff]  ;;  %v14203_v35 = vcombine.low %v810_v20, %v814_v21  ;;  %v866_v21 = vld [vmem:[#allocation4 + $0x16d0] sm:$0xff] }
 0x39a   :  { %7030 = vmatprep.subr.bf16.mxu0 %v14156_v37  ;;  %7358 = vmatprep.subr.bf16.mxu1 %v14158_v38  ;;  %v14205_v37 = vcombine.low %v811_v22, %v815_v24  ;;  %v14212_v38 = vcombine.high %v818_v31, %v822_v32  ;;  %v14214_v39 = vcombine.high %v819_v46, %v823_v33 }
 0x39d   :  { %7031 = vmatpush1.bf16.msra.mxu0 %v14155_v42  ;;  %7359 = vmatpush1.bf16.msra.mxu1 %v14157_v43  ;;  %v831_v42 = vld [vmem:[#allocation4 + $0x15b8] sm:$0xff]  ;;  %v14211_v43 = vcombine.low %v818_v31, %v822_v32  ;;  %v874_v32 = vld [vmem:[#allocation4 + $0x1710] sm:$0xff] }
 0x39e   :  { %7032 = vmatprep.subr.bf16.mxu0 %v14164_v45  ;;  %7360 = vmatprep.subr.bf16.mxu1 %v14166_v47  ;;  %v14213_v45 = vcombine.low %v819_v46, %v823_v33  ;;  %v14220_v47 = vcombine.high %v826_v40, %v830_v23  ;;  %v14222_v48 = vcombine.high %v827_v41, %v831_v42  ;;  %v878_v46 = vld [vmem:[#allocation4 + $0x1730] sm:$0xff]  ;;  %v875_v33 = vld [vmem:[#allocation4 + $0x1718] sm:$0xff] }
 0x3a1   :  { %7033 = vmatpush1.bf16.msra.mxu0 %v14163_v53  ;;  %7361 = vmatpush1.bf16.msra.mxu1 %v14165_v55  ;;  %v839_v53 = vld [vmem:[#allocation4 + $0x15f8] sm:$0xff]  ;;  %v14219_v55 = vcombine.low %v826_v40, %v830_v23  ;;  %v882_v23 = vld [vmem:[#allocation4 + $0x1750] sm:$0xff] }
 0x3a2   :  { %7043 = vmatprep.subr.bf16.mxu0 %v14172_v60  ;;  %7371 = vmatprep.subr.bf16.mxu1 %v14174_v54  ;;  %v14221_v60 = vcombine.low %v827_v41, %v831_v42  ;;  %v14228_v54 = vcombine.high %v834_v49, %v838_v50  ;;  %v14230_v25 = vcombine.high %v835_v52, %v839_v53  ;;  %v886_v41 = vld [vmem:[#allocation4 + $0x1770] sm:$0xff]  ;;  %v883_v42 = vld [vmem:[#allocation4 + $0x1758] sm:$0xff] }
 0x3a4   :  { %7035 = vmatmul.mubr.bf16.vlgmr.msra.gmra.mrb[4].mxu0 %v16150_v14  ;;  %7363 = vmatmul.mubr.bf16.vlgmr.msra.gmra.mrb[4].mxu1 %v16150_v14  ;;  %v14189_v14 = vcombine.low %v795_v34, %v799_v6  ;;  %v854_v34 = vld [vmem:[#allocation4 + $0x1670] sm:$0xff]  ;;  %v851_v6 = vld [vmem:[#allocation4 + $0x1658] sm:$0xff] }
 0x3a5   :  { %7044 = vmatpush1.bf16.msra.mxu0 %v14171_v2  ;;  %7372 = vmatpush1.bf16.msra.mxu1 %v14173_v57  ;;  %v847_v2 = vld [vmem:[#allocation4 + $0x1638] sm:$0xff]  ;;  %v14227_v57 = vcombine.low %v834_v49, %v838_v50  ;;  %v890_v50 = vld [vmem:[#allocation4 + $0x1790] sm:$0xff] }
 0x3a6   :  { %7045 = vmatprep.subr.bf16.mxu0 %v14180_v3  ;;  %7373 = vmatprep.subr.bf16.mxu1 %v14182_v4  ;;  %v14229_v3 = vcombine.low %v835_v52, %v839_v53  ;;  %v14236_v4 = vcombine.high %v842_v62, %v846_v63  ;;  %v14238_v5 = vcombine.high %v843_v0, %v847_v2  ;;  %v894_v52 = vld [vmem:[#allocation4 + $0x17b0] sm:$0xff]  ;;  %v891_v53 = vld [vmem:[#allocation4 + $0x1798] sm:$0xff] }
 0x3a7   :  { %7075 = vmatprep.mubr.bf16.mxu0 %v16152_v26  ;;  %7403 = vmatprep.mubr.bf16.mxu1 %v16152_v26  ;;  %v14206_v26 = vcombine.high %v811_v22, %v815_v24  ;;  %v870_v22 = vld [vmem:[#allocation4 + $0x16f0] sm:$0xff]  ;;  %v867_v24 = vld [vmem:[#allocation4 + $0x16d8] sm:$0xff] }
 0x3a9   :  { %7046 = vmatpush1.bf16.msra.mxu0 %v14179_v7  ;;  %7374 = vmatpush1.bf16.msra.mxu1 %v14181_v8  ;;  %v855_v7 = vld [vmem:[#allocation4 + $0x1678] sm:$0xff]  ;;  %v14235_v8 = vcombine.low %v842_v62, %v846_v63  ;;  %v898_v63 = vld [vmem:[#allocation4 + $0x17d0] sm:$0xff] }
 0x3aa   :  { %7047 = vmatprep.subr.bf16.mxu0 %v14188_v9  ;;  %7375 = vmatprep.subr.bf16.mxu1 %v14190_v10  ;;  %v14237_v9 = vcombine.low %v843_v0, %v847_v2  ;;  %v14244_v10 = vcombine.high %v850_v1, %v854_v34  ;;  %v14246_v11 = vcombine.high %v851_v6, %v855_v7  ;;  %v902_v0 = vld [vmem:[#allocation4 + $0x17f0] sm:$0xff]  ;;  %v899_v2 = vld [vmem:[#allocation4 + $0x17d8] sm:$0xff] }
 0x3ad   :  { %7048 = vmatpush1.bf16.msra.mxu0 %v14187_v18  ;;  %7376 = vmatpush1.bf16.msra.mxu1 %v14189_v14  ;;  %v863_v18 = vld [vmem:[#allocation4 + $0x16b8] sm:$0xff]  ;;  %v14243_v14 = vcombine.low %v850_v1, %v854_v34  ;;  %v906_v34 = vld [vmem:[#allocation4 + $0x1810] sm:$0xff] }
 0x3ae   :  { %7049 = vmatprep.subr.bf16.mxu0 %v14196_v19  ;;  %7377 = vmatprep.subr.bf16.mxu1 %v14198_v36  ;;  %v14245_v19 = vcombine.low %v851_v6, %v855_v7  ;;  %v14252_v36 = vcombine.high %v858_v13, %v862_v15  ;;  %v14254_v20 = vcombine.high %v859_v17, %v863_v18  ;;  %v910_v6 = vld [vmem:[#allocation4 + $0x1830] sm:$0xff]  ;;  %v907_v7 = vld [vmem:[#allocation4 + $0x1818] sm:$0xff] }
 0x3b1   :  { %7050 = vmatpush1.bf16.msra.mxu0 %v14195_v27  ;;  %7378 = vmatpush1.bf16.msra.mxu1 %v14197_v12  ;;  %v871_v27 = vld [vmem:[#allocation4 + $0x16f8] sm:$0xff]  ;;  %v14251_v12 = vcombine.low %v858_v13, %v862_v15  ;;  %v914_v15 = vld [vmem:[#allocation4 + $0x1850] sm:$0xff] }
 0x3b2   :  { %7051 = vmatprep.subr.bf16.mxu0 %v14204_v30  ;;  %7379 = vmatprep.subr.bf16.mxu1 %v14206_v26  ;;  %v14253_v30 = vcombine.low %v859_v17, %v863_v18  ;;  %v14260_v26 = vcombine.high %v866_v21, %v870_v22  ;;  %v14262_v31 = vcombine.high %v867_v24, %v871_v27  ;;  %v918_v17 = vld [vmem:[#allocation4 + $0x1870] sm:$0xff]  ;;  %v915_v18 = vld [vmem:[#allocation4 + $0x1858] sm:$0xff] }
 0x3b5   :  { %7052 = vmatpush1.bf16.msra.mxu0 %v14203_v35  ;;  %7380 = vmatpush1.bf16.msra.mxu1 %v14205_v37  ;;  %v879_v35 = vld [vmem:[#allocation4 + $0x1738] sm:$0xff]  ;;  %v14259_v37 = vcombine.low %v866_v21, %v870_v22  ;;  %v922_v22 = vld [vmem:[#allocation4 + $0x1890] sm:$0xff] }
 0x3b6   :  { %7053 = vmatprep.subr.bf16.mxu0 %v14212_v38  ;;  %7381 = vmatprep.subr.bf16.mxu1 %v14214_v39  ;;  %v14261_v38 = vcombine.low %v867_v24, %v871_v27  ;;  %v14268_v39 = vcombine.high %v874_v32, %v878_v46  ;;  %v14270_v40 = vcombine.high %v875_v33, %v879_v35  ;;  %v926_v24 = vld [vmem:[#allocation4 + $0x18b0] sm:$0xff]  ;;  %v923_v27 = vld [vmem:[#allocation4 + $0x1898] sm:$0xff] }
 0x3b9   :  { %7054 = vmatpush1.bf16.msra.mxu0 %v14211_v43  ;;  %7382 = vmatpush1.bf16.msra.mxu1 %v14213_v45  ;;  %v887_v43 = vld [vmem:[#allocation4 + $0x1778] sm:$0xff]  ;;  %v14267_v45 = vcombine.low %v874_v32, %v878_v46  ;;  %v930_v46 = vld [vmem:[#allocation4 + $0x18d0] sm:$0xff] }
 0x3ba   :  { %7055 = vmatprep.subr.bf16.mxu0 %v14220_v47  ;;  %7383 = vmatprep.subr.bf16.mxu1 %v14222_v48  ;;  %v14269_v47 = vcombine.low %v875_v33, %v879_v35  ;;  %v14276_v48 = vcombine.high %v882_v23, %v886_v41  ;;  %v14278_v49 = vcombine.high %v883_v42, %v887_v43  ;;  %v934_v33 = vld [vmem:[#allocation4 + $0x18f0] sm:$0xff]  ;;  %v931_v35 = vld [vmem:[#allocation4 + $0x18d8] sm:$0xff] }
 0x3bd   :  { %7056 = vmatpush1.bf16.msra.mxu0 %v14219_v55  ;;  %7384 = vmatpush1.bf16.msra.mxu1 %v14221_v60  ;;  %v895_v55 = vld [vmem:[#allocation4 + $0x17b8] sm:$0xff]  ;;  %v14275_v60 = vcombine.low %v882_v23, %v886_v41  ;;  %v938_v23 = vld [vmem:[#allocation4 + $0x1910] sm:$0xff] }
 0x3be   :  { %7057 = vmatprep.subr.bf16.mxu0 %v14228_v54  ;;  %7385 = vmatprep.subr.bf16.mxu1 %v14230_v25  ;;  %v14277_v54 = vcombine.low %v883_v42, %v887_v43  ;;  %v14284_v25 = vcombine.high %v890_v50, %v894_v52  ;;  %v14286_v62 = vcombine.high %v891_v53, %v895_v55  ;;  %v942_v41 = vld [vmem:[#allocation4 + $0x1930] sm:$0xff]  ;;  %v939_v42 = vld [vmem:[#allocation4 + $0x1918] sm:$0xff] }
 0x3bf   :  { %v943_v43 = vld [vmem:[#allocation4 + $0x1938] sm:$0xff] }
 0x3c1   :  { %7058 = vmatpush1.bf16.msra.mxu0 %v14227_v57  ;;  %7386 = vmatpush1.bf16.msra.mxu1 %v14229_v3  ;;  %v903_v57 = vld [vmem:[#allocation4 + $0x17f8] sm:$0xff]  ;;  %v14283_v3 = vcombine.low %v890_v50, %v894_v52  ;;  %v950_v50 = vld [vmem:[#allocation4 + $0x1970] sm:$0xff] }
 0x3c2   :  { %7059 = vmatprep.subr.bf16.mxu0 %v14236_v4  ;;  %7387 = vmatprep.subr.bf16.mxu1 %v14238_v5  ;;  %v14285_v4 = vcombine.low %v891_v53, %v895_v55  ;;  %v14292_v5 = vcombine.high %v898_v63, %v902_v0  ;;  %v14294_v1 = vcombine.high %v899_v2, %v903_v57  ;;  %v947_v52 = vld [vmem:[#allocation4 + $0x1958] sm:$0xff] }
 0x3c3   :  { %v951_v53 = vld [vmem:[#allocation4 + $0x1978] sm:$0xff]  ;;  %v14331_v55 = vcombine.low %v938_v23, %v942_v41 }
 0x3c5   :  { %7060 = vmatpush1.bf16.msra.mxu0 %v14235_v8  ;;  %7388 = vmatpush1.bf16.msra.mxu1 %v14237_v9  ;;  %v911_v8 = vld [vmem:[#allocation4 + $0x1838] sm:$0xff]  ;;  %v14291_v9 = vcombine.low %v898_v63, %v902_v0  ;;  %v958_v63 = vld [vmem:[#allocation4 + $0x19b0] sm:$0xff] }
 0x3c6   :  { %7061 = vmatprep.subr.bf16.mxu0 %v14244_v10  ;;  %7389 = vmatprep.subr.bf16.mxu1 %v14246_v11  ;;  %v14293_v10 = vcombine.low %v899_v2, %v903_v57  ;;  %v14300_v11 = vcombine.high %v906_v34, %v910_v6  ;;  %v14302_v13 = vcombine.high %v907_v7, %v911_v8  ;;  %v955_v0 = vld [vmem:[#allocation4 + $0x1998] sm:$0xff] }
 0x3c7   :  { %v959_v2 = vld [vmem:[#allocation4 + $0x19b8] sm:$0xff] }
 0x3c9   :  { %7062 = vmatpush1.bf16.msra.mxu0 %v14243_v14  ;;  %7390 = vmatpush1.bf16.msra.mxu1 %v14245_v19  ;;  %v919_v14 = vld [vmem:[#allocation4 + $0x1878] sm:$0xff]  ;;  %v14299_v19 = vcombine.low %v906_v34, %v910_v6  ;;  %v966_v34 = vld [vmem:[#allocation4 + $0x19f0] sm:$0xff] }
 0x3ca   :  { %7063 = vmatprep.subr.bf16.mxu0 %v14252_v36  ;;  %7391 = vmatprep.subr.bf16.mxu1 %v14254_v20  ;;  %v14301_v36 = vcombine.low %v907_v7, %v911_v8  ;;  %v14308_v20 = vcombine.high %v914_v15, %v918_v17  ;;  %v14310_v21 = vcombine.high %v915_v18, %v919_v14  ;;  %v963_v6 = vld [vmem:[#allocation4 + $0x19d8] sm:$0xff] }
 0x3cb   :  { %v967_v7 = vld [vmem:[#allocation4 + $0x19f8] sm:$0xff] }
 0x3cd   :  { %7064 = vmatpush1.bf16.msra.mxu0 %v14251_v12  ;;  %7392 = vmatpush1.bf16.msra.mxu1 %v14253_v30  ;;  %v927_v12 = vld [vmem:[#allocation4 + $0x18b8] sm:$0xff]  ;;  %v14307_v30 = vcombine.low %v914_v15, %v918_v17  ;;  %v974_v15 = vld [vmem:[#allocation4 + $0x1a30] sm:$0xff] }
 0x3ce   :  { %7065 = vmatprep.subr.bf16.mxu0 %v14260_v26  ;;  %7393 = vmatprep.subr.bf16.mxu1 %v14262_v31  ;;  %v14309_v26 = vcombine.low %v915_v18, %v919_v14  ;;  %v14316_v31 = vcombine.high %v922_v22, %v926_v24  ;;  %v14318_v32 = vcombine.high %v923_v27, %v927_v12  ;;  %v971_v17 = vld [vmem:[#allocation4 + $0x1a18] sm:$0xff] }
 0x3cf   :  { %v975_v18 = vld [vmem:[#allocation4 + $0x1a38] sm:$0xff] }
 0x3d1   :  { %7066 = vmatpush1.bf16.msra.mxu0 %v14259_v37  ;;  %7394 = vmatpush1.bf16.msra.mxu1 %v14261_v38  ;;  %v935_v37 = vld [vmem:[#allocation4 + $0x18f8] sm:$0xff]  ;;  %v14315_v38 = vcombine.low %v922_v22, %v926_v24  ;;  %v982_v22 = vld [vmem:[#allocation4 + $0x1a70] sm:$0xff] }
 0x3d2   :  { %7067 = vmatprep.subr.bf16.mxu0 %v14268_v39  ;;  %7395 = vmatprep.subr.bf16.mxu1 %v14270_v40  ;;  %v14324_v39 = vcombine.high %v930_v46, %v934_v33  ;;  %v14326_v40 = vcombine.high %v931_v35, %v935_v37  ;;  %v979_v24 = vld [vmem:[#allocation4 + $0x1a58] sm:$0xff] }
 0x3d5   :  { %7068 = vmatpush1.bf16.msra.mxu0 %v14267_v45  ;;  %7396 = vmatpush1.bf16.msra.mxu1 %v14269_v47  ;;  %v14323_v45 = vcombine.low %v930_v46, %v934_v33  ;;  %v14325_v47 = vcombine.low %v931_v35, %v935_v37  ;;  %v990_v46 = vld [vmem:[#allocation4 + $0x1ab0] sm:$0xff]  ;;  %v987_v33 = vld [vmem:[#allocation4 + $0x1a98] sm:$0xff] }
 0x3d6   :  { %7069 = vmatprep.subr.bf16.mxu0 %v14276_v48  ;;  %7397 = vmatprep.subr.bf16.mxu1 %v14278_v49  ;;  %v14332_v48 = vcombine.high %v938_v23, %v942_v41  ;;  %v946_v49 = vld [vmem:[#allocation4 + $0x1950] sm:$0xff]  ;;  %v991_v35 = vld [vmem:[#allocation4 + $0x1ab8] sm:$0xff] }
 0x3d7   :  { %v14339_v57 = vcombine.low %v946_v49, %v950_v50  ;;  %v998_v23 = vld [vmem:[#allocation4 + $0x1af0] sm:$0xff]  ;;  %v995_v41 = vld [vmem:[#allocation4 + $0x1ad8] sm:$0xff] }
 0x3d9   :  { %7070 = vmatpush1.bf16.msra.mxu0 %v14275_v60  ;;  %7398 = vmatpush1.bf16.msra.mxu1 %v14277_v54  ;;  %v14333_v60 = vcombine.low %v939_v42, %v943_v43  ;;  %v14340_v54 = vcombine.high %v946_v49, %v950_v50  ;;  %v1006_v49 = vld [vmem:[#allocation4 + $0x1b30] sm:$0xff]  ;;  %v1003_v50 = vld [vmem:[#allocation4 + $0x1b18] sm:$0xff] }
 0x3da   :  { %7071 = vmatprep.subr.bf16.mxu0 %v14284_v25  ;;  %7399 = vmatprep.subr.bf16.mxu1 %v14286_v62  ;;  %v14342_v25 = vcombine.high %v947_v52, %v951_v53  ;;  %v954_v62 = vld [vmem:[#allocation4 + $0x1990] sm:$0xff] }
 0x3db   :  { %v14347_v8 = vcombine.low %v954_v62, %v958_v63 }
 0x3dd   :  { %7072 = vmatpush1.bf16.msra.mxu0 %v14283_v3  ;;  %7400 = vmatpush1.bf16.msra.mxu1 %v14285_v4  ;;  %v14341_v3 = vcombine.low %v947_v52, %v951_v53  ;;  %v14348_v4 = vcombine.high %v954_v62, %v958_v63  ;;  %v1007_v52 = vld [vmem:[#allocation4 + $0x1b38] sm:$0xff]  ;;  %v1014_v62 = vld [vmem:[#allocation4 + $0x1b70] sm:$0xff] }
 0x3de   :  { %7073 = vmatprep.subr.bf16.mxu0 %v14292_v5  ;;  %7401 = vmatprep.subr.bf16.mxu1 %v14294_v1  ;;  %v14350_v5 = vcombine.high %v955_v0, %v959_v2  ;;  %v962_v1 = vld [vmem:[#allocation4 + $0x19d0] sm:$0xff]  ;;  %v1011_v63 = vld [vmem:[#allocation4 + $0x1b58] sm:$0xff] }
 0x3df   :  { %v14355_v14 = vcombine.low %v962_v1, %v966_v34 }
 0x3e1   :  { %7074 = vmatpush1.bf16.msra.mxu0 %v14291_v9  ;;  %7402 = vmatpush1.bf16.msra.mxu1 %v14293_v10  ;;  %v14349_v9 = vcombine.low %v955_v0, %v959_v2  ;;  %v14356_v10 = vcombine.high %v962_v1, %v966_v34  ;;  %v1015_v0 = vld [vmem:[#allocation4 + $0x1b78] sm:$0xff]  ;;  %v1022_v1 = vld [vmem:[#allocation4 + $0x1bb0] sm:$0xff] }
 0x3e2   :  { %7084 = vmatprep.subr.bf16.mxu0 %v14300_v11  ;;  %7412 = vmatprep.subr.bf16.mxu1 %v14302_v13  ;;  %v14358_v11 = vcombine.high %v963_v6, %v967_v7  ;;  %v970_v13 = vld [vmem:[#allocation4 + $0x1a10] sm:$0xff]  ;;  %v1019_v34 = vld [vmem:[#allocation4 + $0x1b98] sm:$0xff] }
 0x3e4   :  { %7076 = vmatmul.mubr.bf16.vlgmr.msra.gmra.mrb[4].mxu0 %v16158_v44  ;;  %7404 = vmatmul.mubr.bf16.vlgmr.msra.gmra.mrb[4].mxu1 %v16158_v44  ;;  %v14317_v44 = vcombine.low %v923_v27, %v927_v12  ;;  %v983_v27 = vld [vmem:[#allocation4 + $0x1a78] sm:$0xff]  ;;  %v14363_v12 = vcombine.low %v970_v13, %v974_v15 }
 0x3e5   :  { %7085 = vmatpush1.bf16.msra.mxu0 %v14299_v19  ;;  %7413 = vmatpush1.bf16.msra.mxu1 %v14301_v36  ;;  %v14357_v19 = vcombine.low %v963_v6, %v967_v7  ;;  %v14364_v36 = vcombine.high %v970_v13, %v974_v15  ;;  %v1023_v6 = vld [vmem:[#allocation4 + $0x1bb8] sm:$0xff]  ;;  %v1030_v13 = vld [vmem:[#allocation4 + $0x1bf0] sm:$0xff] }
 0x3e6   :  { %7086 = vmatprep.subr.bf16.mxu0 %v14308_v20  ;;  %7414 = vmatprep.subr.bf16.mxu1 %v14310_v21  ;;  %v14366_v20 = vcombine.high %v971_v17, %v975_v18  ;;  %v978_v21 = vld [vmem:[#allocation4 + $0x1a50] sm:$0xff]  ;;  %v1027_v15 = vld [vmem:[#allocation4 + $0x1bd8] sm:$0xff] }
 0x3e7   :  { %7116 = vmatprep.mubr.bf16.mxu0 %v16160_v56  ;;  %7444 = vmatprep.mubr.bf16.mxu1 %v16160_v56  ;;  %v14334_v56 = vcombine.high %v939_v42, %v943_v43  ;;  %v14371_v37 = vcombine.low %v978_v21, %v982_v22  ;;  %v999_v42 = vld [vmem:[#allocation4 + $0x1af8] sm:$0xff] }
 0x3e9   :  { %7087 = vmatpush1.bf16.msra.mxu0 %v14307_v30  ;;  %7415 = vmatpush1.bf16.msra.mxu1 %v14309_v26  ;;  %v14365_v30 = vcombine.low %v971_v17, %v975_v18  ;;  %v14372_v26 = vcombine.high %v978_v21, %v982_v22  ;;  %v1031_v17 = vld [vmem:[#allocation4 + $0x1bf8] sm:$0xff]  ;;  %v1038_v21 = vld [vmem:[#allocation4 + $0x1c30] sm:$0xff] }
 0x3ea   :  { %7088 = vmatprep.subr.bf16.mxu0 %v14316_v31  ;;  %7416 = vmatprep.subr.bf16.mxu1 %v14318_v32  ;;  %v14374_v31 = vcombine.high %v979_v24, %v983_v27  ;;  %v986_v32 = vld [vmem:[#allocation4 + $0x1a90] sm:$0xff]  ;;  %v1035_v22 = vld [vmem:[#allocation4 + $0x1c18] sm:$0xff] }
 0x3eb   :  { %v14379_v43 = vcombine.low %v986_v32, %v990_v46 }
 0x3ed   :  { %7089 = vmatpush1.bf16.msra.mxu0 %v14315_v38  ;;  %7417 = vmatpush1.bf16.msra.mxu1 %v14317_v44  ;;  %v14373_v38 = vcombine.low %v979_v24, %v983_v27  ;;  %v14380_v44 = vcombine.high %v986_v32, %v990_v46  ;;  %v1039_v24 = vld [vmem:[#allocation4 + $0x1c38] sm:$0xff]  ;;  %v1042_v32 = vld [vmem:[#allocation4 + $0x1c50] sm:$0xff] }
 0x3ee   :  { %7090 = vmatprep.subr.bf16.mxu0 %v14324_v39  ;;  %7418 = vmatprep.subr.bf16.mxu1 %v14326_v40  ;;  %v14382_v39 = vcombine.high %v987_v33, %v991_v35  ;;  %v994_v40 = vld [vmem:[#allocation4 + $0x1ad0] sm:$0xff] }
 0x3ef   :  { %v14387_v53 = vcombine.low %v994_v40, %v998_v23  ;;  %v1046_v46 = vld [vmem:[#allocation4 + $0x1c70] sm:$0xff] }
 0x3f1   :  { %7091 = vmatpush1.bf16.msra.mxu0 %v14323_v45  ;;  %7419 = vmatpush1.bf16.msra.mxu1 %v14325_v47  ;;  %v14381_v45 = vcombine.low %v987_v33, %v991_v35  ;;  %v14388_v47 = vcombine.high %v994_v40, %v998_v23  ;;  %v1043_v33 = vld [vmem:[#allocation4 + $0x1c58] sm:$0xff]  ;;  %v1050_v23 = vld [vmem:[#allocation4 + $0x1c90] sm:$0xff] }
 0x3f2   :  { %7092 = vmatprep.subr.bf16.mxu0 %v14332_v48  ;;  %7420 = vmatprep.subr.bf16.mxu1 %v14334_v56  ;;  %v14390_v48 = vcombine.high %v995_v41, %v999_v42  ;;  %v1002_v56 = vld [vmem:[#allocation4 + $0x1b10] sm:$0xff]  ;;  %v1047_v35 = vld [vmem:[#allocation4 + $0x1c78] sm:$0xff] }
 0x3f3   :  { %v14395_v2 = vcombine.low %v1002_v56, %v1006_v49  ;;  %v14438_v40 = vcombine.high %v1043_v33, %v1047_v35 }
 0x3f5   :  { %7093 = vmatpush1.bf16.msra.mxu0 %v14331_v55  ;;  %7421 = vmatpush1.bf16.msra.mxu1 %v14333_v60  ;;  %v14389_v55 = vcombine.low %v995_v41, %v999_v42  ;;  %v14396_v60 = vcombine.high %v1002_v56, %v1006_v49  ;;  %v1054_v41 = vld [vmem:[#allocation4 + $0x1cb0] sm:$0xff]  ;;  %v1051_v42 = vld [vmem:[#allocation4 + $0x1c98] sm:$0xff]  ;;  %v16219_v49 = vld [vmem:[#allocation6] sm:$0xff] }
 0x3f6   :  { %7094 = vmatprep.subr.bf16.mxu0 %v14340_v54  ;;  %7422 = vmatprep.subr.bf16.mxu1 %v14342_v25  ;;  %v14398_v54 = vcombine.high %v1003_v50, %v1007_v52  ;;  %v1010_v25 = vld [vmem:[#allocation4 + $0x1b50] sm:$0xff]  ;;  %v14444_v56 = vcombine.high %v1050_v23, %v1054_v41 }
 0x3f7   :  { %v14403_v7 = vcombine.low %v1010_v25, %v1014_v62 }
 0x3f9   :  { %7095 = vmatpush1.bf16.msra.mxu0 %v14339_v57  ;;  %7423 = vmatpush1.bf16.msra.mxu1 %v14341_v3  ;;  %v14397_v57 = vcombine.low %v1003_v50, %v1007_v52  ;;  %v14404_v3 = vcombine.high %v1010_v25, %v1014_v62  ;;  %v1058_v52 = vld [vmem:[#allocation4 + $0x1cd0] sm:$0xff] }
 0x3fa   :  { %7096 = vmatprep.subr.bf16.mxu0 %v14348_v4  ;;  %7424 = vmatprep.subr.bf16.mxu1 %v14350_v5  ;;  %v14406_v4 = vcombine.high %v1011_v63, %v1015_v0  ;;  %v1018_v5 = vld [vmem:[#allocation4 + $0x1b90] sm:$0xff] }
 0x3fb   :  { %v14411_v18 = vcombine.low %v1018_v5, %v1022_v1 }
 0x3fd   :  { %7097 = vmatpush1.bf16.msra.mxu0 %v14347_v8  ;;  %7425 = vmatpush1.bf16.msra.mxu1 %v14349_v9  ;;  %v14405_v8 = vcombine.low %v1011_v63, %v1015_v0  ;;  %v14412_v9 = vcombine.high %v1018_v5, %v1022_v1  ;;  %v1066_v0 = vld [vmem:[#allocation4 + $0x1d10] sm:$0xff] }
 0x3fe   :  { %7098 = vmatprep.subr.bf16.mxu0 %v14356_v10  ;;  %7426 = vmatprep.subr.bf16.mxu1 %v14358_v11  ;;  %v14414_v10 = vcombine.high %v1019_v34, %v1023_v6  ;;  %v1026_v11 = vld [vmem:[#allocation4 + $0x1bd0] sm:$0xff] }
 0x3ff   :  { %v14419_v27 = vcombine.low %v1026_v11, %v1030_v13 }
 0x401   :  { %7099 = vmatpush1.bf16.msra.mxu0 %v14355_v14  ;;  %7427 = vmatpush1.bf16.msra.mxu1 %v14357_v19  ;;  %v14413_v14 = vcombine.low %v1019_v34, %v1023_v6  ;;  %v14420_v19 = vcombine.high %v1026_v11, %v1030_v13  ;;  %v1074_v6 = vld [vmem:[#allocation4 + $0x1d50] sm:$0xff] }
 0x402   :  { %7100 = vmatprep.subr.bf16.mxu0 %v14364_v36  ;;  %7428 = vmatprep.subr.bf16.mxu1 %v14366_v20  ;;  %v14422_v36 = vcombine.high %v1027_v15, %v1031_v17  ;;  %v1034_v20 = vld [vmem:[#allocation4 + $0x1c10] sm:$0xff] }
 0x405   :  { %7101 = vmatpush1.bf16.msra.mxu0 %v14363_v12  ;;  %7429 = vmatpush1.bf16.msra.mxu1 %v14365_v30  ;;  %v1138_v12 = vlaneseq  ;;  %v14421_v30 = vcombine.low %v1027_v15, %v1031_v17  ;;  %v1082_v17 = vld [vmem:[#allocation4 + $0x1d90] sm:$0xff] }
 0x406   :  { %7102 = vmatprep.subr.bf16.mxu0 %v14372_v26  ;;  %7430 = vmatprep.subr.bf16.mxu1 %v14374_v31  ;;  %v14428_v26 = vcombine.high %v1034_v20, %v1038_v21  ;;  %v14430_v31 = vcombine.high %v1035_v22, %v1039_v24 }
 0x409   :  { %7103 = vmatpush1.bf16.msra.mxu0 %v14371_v37  ;;  %7431 = vmatpush1.bf16.msra.mxu1 %v14373_v38  ;;  %v14427_v37 = vcombine.low %v1034_v20, %v1038_v21  ;;  %v16214_v38 = vshrl.u32 %v1138_v12, 7  ;;  %v1091_v12 = vld [vmem:[#allocation4 + $0x1dd8] sm:$0xff] }
 0x40a   :  { %7104 = vmatprep.subr.bf16.mxu0 %v14380_v44  ;;  %7432 = vmatprep.subr.bf16.mxu1 %v14382_v39  ;;  %v14429_v44 = vcombine.low %v1035_v22, %v1039_v24  ;;  %v14436_v39 = vcombine.high %v1042_v32, %v1046_v46  ;;  %v1090_v24 = vld [vmem:[#allocation4 + $0x1dd0] sm:$0xff] }
 0x40d   :  { %7105 = vmatpush1.bf16.msra.mxu0 %v14379_v43  ;;  %7433 = vmatpush1.bf16.msra.mxu1 %v14381_v45  ;;  %v1055_v43 = vld [vmem:[#allocation4 + $0x1cb8] sm:$0xff]  ;;  %v14435_v45 = vcombine.low %v1042_v32, %v1046_v46 }
 0x40e   :  { %7106 = vmatprep.subr.bf16.mxu0 %v14388_v47  ;;  %7434 = vmatprep.subr.bf16.mxu1 %v14390_v48  ;;  %v1144_v47 = vsub.s32 1, %v16214_v38  ;;  %v14437_v48 = vcombine.low %v1043_v33, %v1047_v35  ;;  %v14446_v50 = vcombine.high %v1051_v42, %v1055_v43  ;;  %v14445_v25 = vcombine.low %v1051_v42, %v1055_v43  ;;  %v1098_v33 = vld [vmem:[#allocation4 + $0x1e10] sm:$0xff] }
 0x40f   :  { %v1102_v35 = vld [vmem:[#allocation4 + $0x1e30] sm:$0xff] }
 0x410   :  { %v1106_v42 = vld [vmem:[#allocation4 + $0x1e50] sm:$0xff] }
 0x411   :  { %7107 = vmatpush1.bf16.msra.mxu0 %v14387_v53  ;;  %7435 = vmatpush1.bf16.msra.mxu1 %v14389_v55  ;;  %v1062_v53 = vld [vmem:[#allocation4 + $0x1cf0] sm:$0xff]  ;;  %v1059_v55 = vld [vmem:[#allocation4 + $0x1cd8] sm:$0xff] }
 0x412   :  { %7108 = vmatprep.subr.bf16.mxu0 %v14396_v60  ;;  %7436 = vmatprep.subr.bf16.mxu1 %v14398_v54  ;;  %v1063_v60 = vld [vmem:[#allocation4 + $0x1cf8] sm:$0xff]  ;;  %v1145_v54 = vrot.slane %v16219_v49, %v1144_v47  ;;  %v14452_v62 = vcombine.high %v1058_v52, %v1062_v53  ;;  %v1110_v43 = vld [vmem:[#allocation4 + $0x1e70] sm:$0xff] }
 0x413   :  { %v14454_v63 = vcombine.high %v1059_v55, %v1063_v60  ;;  %v14453_v5 = vcombine.low %v1059_v55, %v1063_v60 }
 0x415   :  { %7109 = vmatpush1.bf16.msra.mxu0 %v14395_v2  ;;  %7437 = vmatpush1.bf16.msra.mxu1 %v14397_v57  ;;  %v1070_v2 = vld [vmem:[#allocation4 + $0x1d30] sm:$0xff]  ;;  %v1067_v57 = vld [vmem:[#allocation4 + $0x1d18] sm:$0xff] }
 0x416   :  { %7110 = vmatprep.subr.bf16.mxu0 %v14404_v3  ;;  %7438 = vmatprep.subr.bf16.mxu1 %v14406_v4  ;;  %v1071_v3 = vld [vmem:[#allocation4 + $0x1d38] sm:$0xff]  ;;  %v14451_v4 = vcombine.low %v1058_v52, %v1062_v53  ;;  %v14460_v1 = vcombine.high %v1066_v0, %v1070_v2  ;;  %v14500_v53 = vcombine.high %v1106_v42, %v1110_v43 }
 0x417   :  { %v14462_v34 = vcombine.high %v1067_v57, %v1071_v3  ;;  %v14461_v13 = vcombine.low %v1067_v57, %v1071_v3  ;;  %v1122_v3 = vld [vmem:[#allocation4 + $0x1ed0] sm:$0xff] }
 0x419   :  { %7111 = vmatpush1.bf16.msra.mxu0 %v14403_v7  ;;  %7439 = vmatpush1.bf16.msra.mxu1 %v14405_v8  ;;  %v1078_v7 = vld [vmem:[#allocation4 + $0x1d70] sm:$0xff]  ;;  %v1075_v8 = vld [vmem:[#allocation4 + $0x1d58] sm:$0xff] }
 0x41a   :  { %7112 = vmatprep.subr.bf16.mxu0 %v14412_v9  ;;  %7440 = vmatprep.subr.bf16.mxu1 %v14414_v10  ;;  %v1079_v9 = vld [vmem:[#allocation4 + $0x1d78] sm:$0xff]  ;;  %v14459_v10 = vcombine.low %v1066_v0, %v1070_v2  ;;  %v14468_v15 = vcombine.high %v1074_v6, %v1078_v7 }
 0x41b   :  { %v14469_v20 = vcombine.low %v1075_v8, %v1079_v9 }
 0x41d   :  { %7113 = vmatpush1.bf16.msra.mxu0 %v14411_v18  ;;  %7441 = vmatpush1.bf16.msra.mxu1 %v14413_v14  ;;  %v1086_v18 = vld [vmem:[#allocation4 + $0x1db0] sm:$0xff]  ;;  %v1083_v14 = vld [vmem:[#allocation4 + $0x1d98] sm:$0xff] }
 0x41e   :  { %7114 = vmatprep.subr.bf16.mxu0 %v14420_v19  ;;  %7442 = vmatprep.subr.bf16.mxu1 %v14422_v36  ;;  %v1087_v19 = vld [vmem:[#allocation4 + $0x1db8] sm:$0xff]  ;;  %v14467_v36 = vcombine.low %v1074_v6, %v1078_v7  ;;  %v14476_v21 = vcombine.high %v1082_v17, %v1086_v18 }
 0x41f   :  { %v14478_v22 = vcombine.high %v1083_v14, %v1087_v19 }
 0x421   :  { %7115 = vmatpush1.bf16.msra.mxu0 %v14419_v27  ;;  %7443 = vmatpush1.bf16.msra.mxu1 %v14421_v30  ;;  %v1094_v27 = vld [vmem:[#allocation4 + $0x1df0] sm:$0xff]  ;;  %v1095_v30 = vld [vmem:[#allocation4 + $0x1df8] sm:$0xff] }
 0x422   :  { %7125 = vmatprep.subr.bf16.mxu0 %v14428_v26  ;;  %7453 = vmatprep.subr.bf16.mxu1 %v14430_v31  ;;  %v14475_v26 = vcombine.low %v1082_v17, %v1086_v18  ;;  %v14477_v31 = vcombine.low %v1083_v14, %v1087_v19  ;;  %v14484_v32 = vcombine.high %v1090_v24, %v1094_v27  ;;  %v7558_v14 = vld [vmem:[#allocation7] sm:$0xff] }
 0x423   :  { %v14486_v46 = vcombine.high %v1091_v12, %v1095_v30  ;;  %v7562_v19 = vld [vmem:[#allocation7 + $0x20] sm:$0xff] }
 0x424   :  { %7117 = vmatmul.mubr.bf16.vlgmr.msra.gmra.mrb[4].mxu0 %v16166_v16  ;;  %7445 = vmatmul.mubr.bf16.vlgmr.msra.gmra.mrb[4].mxu1 %v16166_v16  ;;  %v14443_v16 = vcombine.low %v1050_v23, %v1054_v41  ;;  %v14492_v23 = vcombine.high %v1098_v33, %v1102_v35 }
 0x425   :  { %7126 = vmatpush1.bf16.msra.mxu0 %v14427_v37  ;;  %7454 = vmatpush1.bf16.msra.mxu1 %v14429_v44  ;;  %v1099_v37 = vld [vmem:[#allocation4 + $0x1e18] sm:$0xff] }
 0x426   :  { %7127 = vmatprep.subr.bf16.mxu0 %v14436_v39  ;;  %7455 = vmatprep.subr.bf16.mxu1 %v14438_v40  ;;  %v1103_v44 = vld [vmem:[#allocation4 + $0x1e38] sm:$0xff]  ;;  %v14483_v39 = vcombine.low %v1090_v24, %v1094_v27  ;;  %v14485_v40 = vcombine.low %v1091_v12, %v1095_v30  ;;  %v14540_v27 = vcombine.high %v7558_v14, %v7562_v19 }
 0x427   :  { %14529 = vmatprep.mubr.msk.bf16.mxu0 %vm6178_vm0, %v16168_v29  ;;  %14530 = vmatprep.mubr.msk.bf16.mxu1 %vm6178_vm0, %v16168_v29  ;;  %v16229_v29 = vadd.f32 %v16198_v59, %v1145_v54  ;;  %v14470_v59 = vcombine.high %v1075_v8, %v1079_v9  ;;  %v14494_v41 = vcombine.high %v1099_v37, %v1103_v44  ;;  %v1118_v54 = vld [vmem:[#allocation4 + $0x1eb0] sm:$0xff] }
 0x428   :  { %v14493_v52 = vcombine.low %v1099_v37, %v1103_v44  ;;  %v1130_v9 = vld [vmem:[#allocation4 + $0x1f10] sm:$0xff]  ;;  %v7574_v44 = vld [vmem:[#allocation7 + $0x80] sm:$0xff] }
 0x429   :  { %7128 = vmatpush1.bf16.msra.mxu0 %v14435_v45  ;;  %7456 = vmatpush1.bf16.msra.mxu1 %v14437_v48  ;;  %v14532_v11 = vmul.f32 -1.442695, %v16229_v29  ;;  %v1107_v48 = vld [vmem:[#allocation4 + $0x1e58] sm:$0xff] }
 0x42a   :  { %7129 = vmatprep.subr.bf16.mxu0 %v14444_v56  ;;  %7457 = vmatprep.subr.bf16.mxu1 %v14446_v50  ;;  %v1111_v56 = vld [vmem:[#allocation4 + $0x1e78] sm:$0xff]  ;;  %v14491_v50 = vcombine.low %v1098_v33, %v1102_v35  ;;  %v7571_v33 = vld [vmem:[#allocation7 + $0x68] sm:$0xff] }
 0x42b   :  { %15772 = vpow2.f32 %v14532_v11  ;;  %v14502_v60 = vcombine.high %v1107_v48, %v1111_v56  ;;  %v14501_v0 = vcombine.low %v1107_v48, %v1111_v56  ;;  %v1131_v11 = vld [vmem:[#allocation4 + $0x1f18] sm:$0xff]  ;;  %v7582_v56 = vld [vmem:[#allocation7 + $0xc0] sm:$0xff] }
 0x42d   :  { %7130 = vmatpush1.bf16.msra.mxu0 %v14443_v16  ;;  %7458 = vmatpush1.bf16.msra.mxu1 %v14445_v25  ;;  %v1114_v16 = vld [vmem:[#allocation4 + $0x1e90] sm:$0xff]  ;;  %v1115_v25 = vld [vmem:[#allocation4 + $0x1e98] sm:$0xff] }
 0x42e   :  { %7131 = vmatprep.subr.bf16.mxu0 %v14452_v62  ;;  %7459 = vmatprep.subr.bf16.mxu1 %v14454_v63  ;;  %v1119_v62 = vld [vmem:[#allocation4 + $0x1eb8] sm:$0xff]  ;;  %v14499_v63 = vcombine.low %v1106_v42, %v1110_v43  ;;  %v14508_v2 = vcombine.high %v1114_v16, %v1118_v54 }
 0x42f   :  { %v14510_v57 = vcombine.high %v1115_v25, %v1119_v62  ;;  %v14509_v6 = vcombine.low %v1115_v25, %v1119_v62  ;;  %v7594_v25 = vld [vmem:[#allocation7 + $0x120] sm:$0xff]  ;;  %v7591_v62 = vld [vmem:[#allocation7 + $0x108] sm:$0xff] }
 0x431   :  { %7132 = vmatpush1.bf16.msra.mxu0 %v14451_v4  ;;  %7460 = vmatpush1.bf16.msra.mxu1 %v14453_v5  ;;  %v1126_v4 = vld [vmem:[#allocation4 + $0x1ef0] sm:$0xff]  ;;  %v1123_v5 = vld [vmem:[#allocation4 + $0x1ed8] sm:$0xff] }
 0x432   :  { %7133 = vmatprep.subr.bf16.mxu0 %v14460_v1  ;;  %7461 = vmatprep.subr.bf16.mxu1 %v14462_v34  ;;  %v1127_v1 = vld [vmem:[#allocation4 + $0x1ef8] sm:$0xff]  ;;  %v14507_v34 = vcombine.low %v1114_v16, %v1118_v54  ;;  %v14516_v7 = vcombine.high %v1122_v3, %v1126_v4  ;;  %v7590_v54 = vld [vmem:[#allocation7 + $0x100] sm:$0xff] }
 0x433   :  { %v14518_v8 = vcombine.high %v1123_v5, %v1127_v1 }
 0x435   :  { %7134 = vmatpush1.bf16.msra.mxu0 %v14459_v10  ;;  %7462 = vmatpush1.bf16.msra.mxu1 %v14461_v13  ;;  %v15773_v45 = vpop.eup %15772  ;;  %v1134_v10 = vld [vmem:[#allocation4 + $0x1f30] sm:$0xff]  ;;  %v1135_v13 = vld [vmem:[#allocation4 + $0x1f38] sm:$0xff] }
 0x436   :  { %7135 = vmatprep.subr.bf16.mxu0 %v14468_v15  ;;  %7463 = vmatprep.subr.bf16.mxu1 %v14470_v59  ;;  %v7519_v55 = vadd.f32 1.0, %v15773_v45  ;;  %v14515_v15 = vcombine.low %v1122_v3, %v1126_v4  ;;  %v14517_v59 = vcombine.low %v1123_v5, %v1127_v1  ;;  %v14524_v17 = vcombine.high %v1130_v9, %v1134_v10  ;;  %v7598_v4 = vld [vmem:[#allocation7 + $0x140] sm:$0xff] }
 0x437   :  { %v14526_v18 = vcombine.high %v1131_v11, %v1135_v13  ;;  %v14525_v24 = vcombine.low %v1131_v11, %v1135_v13  ;;  %v7602_v5 = vld [vmem:[#allocation7 + $0x160] sm:$0xff]  ;;  %v1140_v1 = vsub.s32 0, %v16214_v38 }
 0x438   :  { %15774 = vrcp.f32 %v7519_v55  ;;  %v7606_v13 = vld [vmem:[#allocation7 + $0x180] sm:$0xff] }
 0x439   :  { %7136 = vmatpush1.bf16.msra.mxu0 %v14467_v36  ;;  %7464 = vmatpush1.bf16.msra.mxu1 %v14469_v20  ;;  %v7559_v36 = vld [vmem:[#allocation7 + $0x8] sm:$0xff] }
 0x43a   :  { %7137 = vmatprep.subr.bf16.mxu0 %v14476_v21  ;;  %7465 = vmatprep.subr.bf16.mxu1 %v14478_v22  ;;  %v7563_v20 = vld [vmem:[#allocation7 + $0x28] sm:$0xff]  ;;  %v14523_v22 = vcombine.low %v1130_v9, %v1134_v10  ;;  %v14580_v10 = vcombine.high %v7598_v4, %v7602_v5 }
 0x43b   :  { %v14542_v12 = vcombine.high %v7559_v36, %v7563_v20  ;;  %v14541_v35 = vcombine.low %v7559_v36, %v7563_v20 }
 0x43d   :  { %7138 = vmatpush1.bf16.msra.mxu0 %v14475_v26  ;;  %7466 = vmatpush1.bf16.msra.mxu1 %v14477_v31  ;;  %v7566_v26 = vld [vmem:[#allocation7 + $0x40] sm:$0xff] }
 0x43e   :  { %7139 = vmatprep.subr.bf16.mxu0 %v14484_v32  ;;  %7467 = vmatprep.subr.bf16.mxu1 %v14486_v46  ;;  %v7570_v31 = vld [vmem:[#allocation7 + $0x60] sm:$0xff]  ;;  %v14539_v32 = vcombine.low %v7558_v14, %v7562_v19  ;;  %v7567_v46 = vld [vmem:[#allocation7 + $0x48] sm:$0xff]  ;;  %v14579_v14 = vcombine.low %v7598_v4, %v7602_v5 }
 0x43f   :  { %v14548_v37 = vcombine.high %v7566_v26, %v7570_v31  ;;  %v14547_v42 = vcombine.low %v7566_v26, %v7570_v31  ;;  %v14549_v43 = vcombine.low %v7567_v46, %v7571_v33  ;;  %v7651_v4 = vld [vmem:[#allocation7 + $0x2e8] sm:$0xff] }
 0x441   :  { %7140 = vmatpush1.bf16.msra.mxu0 %v14483_v39  ;;  %7468 = vmatpush1.bf16.msra.mxu1 %v14485_v40  ;;  %v7578_v39 = vld [vmem:[#allocation7 + $0xa0] sm:$0xff] }
 0x442   :  { %7141 = vmatprep.subr.bf16.mxu0 %v14492_v23  ;;  %7469 = vmatprep.subr.bf16.mxu1 %v14494_v41  ;;  %v15775_v21 = vpop.eup %15774  ;;  %v14550_v23 = vcombine.high %v7567_v46, %v7571_v33  ;;  %v7575_v41 = vld [vmem:[#allocation7 + $0x88] sm:$0xff]  ;;  %v14556_v45 = vcombine.high %v7574_v44, %v7578_v39  ;;  %v14555_v55 = vcombine.low %v7574_v44, %v7578_v39 }
 0x443   :  { %v7543_v30 = vmul.f32 %v15775_v21, %v16229_v29  ;;  %v7579_v29 = vld [vmem:[#allocation7 + $0xa8] sm:$0xff] }
 0x444   :  { %v14558_v48 = vcombine.high %v7575_v41, %v7579_v29  ;;  %v7623_v39 = vld [vmem:[#allocation7 + $0x208] sm:$0xff] }
 0x445   :  { %7142 = vmatpush1.bf16.msra.mxu0 %v14491_v50  ;;  %7470 = vmatpush1.bf16.msra.mxu1 %v14493_v52  ;;  %v16233_v40 = vpack.c.bf16 %v7543_v30, %v7543_v30  ;;  %v7586_v50 = vld [vmem:[#allocation7 + $0xe0] sm:$0xff]  ;;  %v7583_v52 = vld [vmem:[#allocation7 + $0xc8] sm:$0xff] }
 0x446   :  { %7143 = vmatprep.subr.bf16.mxu0 %v14500_v53  ;;  %7471 = vmatprep.subr.bf16.mxu1 %v14502_v60  ;;  %v7587_v53 = vld [vmem:[#allocation7 + $0xe8] sm:$0xff]  ;;  %v14564_v60 = vcombine.high %v7582_v56, %v7586_v50 }
 0x447   :  { %v14566_v16 = vcombine.high %v7583_v52, %v7587_v53  ;;  %v7619_v30 = vld [vmem:[#allocation7 + $0x1e8] sm:$0xff] }
 0x449   :  { %7144 = vmatpush1.bf16.msra.mxu0 %v14499_v63  ;;  %7472 = vmatpush1.bf16.msra.mxu1 %v14501_v0  ;;  %v7595_v63 = vld [vmem:[#allocation7 + $0x128] sm:$0xff]  ;;  %v14563_v0 = vcombine.low %v7582_v56, %v7586_v50 }
 0x44a   :  { %7145 = vmatprep.subr.bf16.mxu0 %v14508_v2  ;;  %7473 = vmatprep.subr.bf16.mxu1 %v14510_v57  ;;  %v14565_v2 = vcombine.low %v7583_v52, %v7587_v53  ;;  %v14572_v57 = vcombine.high %v7590_v54, %v7594_v25  ;;  %v14574_v3 = vcombine.high %v7591_v62, %v7595_v63  ;;  %v7635_v56 = vld [vmem:[#allocation7 + $0x268] sm:$0xff] }
 0x44b   :  { %v14573_v9 = vcombine.low %v7591_v62, %v7595_v63 }
 0x44d   :  { %7146 = vmatpush1.bf16.msra.mxu0 %v14507_v34  ;;  %7474 = vmatpush1.bf16.msra.mxu1 %v14509_v6  ;;  %v7599_v34 = vld [vmem:[#allocation7 + $0x148] sm:$0xff] }
 0x44e   :  { %7147 = vmatprep.subr.bf16.mxu0 %v14516_v7  ;;  %7475 = vmatprep.subr.bf16.mxu1 %v14518_v8  ;;  %v7603_v6 = vld [vmem:[#allocation7 + $0x168] sm:$0xff]  ;;  %v14571_v7 = vcombine.low %v7590_v54, %v7594_v25  ;;  %v1152_v8 = vsub.s32 3, %v16214_v38 }
 0x44f   :  { %v14582_v11 = vcombine.high %v7599_v34, %v7603_v6  ;;  %v14581_v36 = vcombine.low %v7599_v34, %v7603_v6  ;;  %v7643_v54 = vld [vmem:[#allocation7 + $0x2a8] sm:$0xff] }
 0x450   :  { %v1153_v19 = vrot.slane %v16219_v49, %v1152_v8 }
 0x451   :  { %7148 = vmatpush1.bf16.msra.mxu0 %v14515_v15  ;;  %7476 = vmatpush1.bf16.msra.mxu1 %v14517_v59  ;;  %v7610_v15 = vld [vmem:[#allocation7 + $0x1a0] sm:$0xff]  ;;  %v1141_v59 = vrot.slane %v16219_v49, %v1140_v1 }
 0x452   :  { %7149 = vmatprep.subr.bf16.mxu0 %v14524_v17  ;;  %7477 = vmatprep.subr.bf16.mxu1 %v14526_v18  ;;  %v7607_v17 = vld [vmem:[#allocation7 + $0x188] sm:$0xff]  ;;  %v14588_v20 = vcombine.high %v7606_v13, %v7610_v15  ;;  %v14587_v26 = vcombine.low %v7606_v13, %v7610_v15  ;;  %v16251_v31 = vadd.f32 %v16200_v61, %v1153_v19 }
 0x453   :  { %v7611_v18 = vld [vmem:[#allocation7 + $0x1a8] sm:$0xff] }
 0x454   :  { %v14590_v21 = vcombine.high %v7607_v17, %v7611_v18  ;;  %v7655_v15 = vld [vmem:[#allocation7 + $0x308] sm:$0xff] }
 0x455   :  { %7150 = vmatpush1.bf16.msra.mxu0 %v14523_v22  ;;  %7478 = vmatpush1.bf16.msra.mxu1 %v14525_v24  ;;  %v7614_v22 = vld [vmem:[#allocation7 + $0x1c0] sm:$0xff] }
 0x456   :  { %10672 = vmatprep.subr.bf16.mxu0 %v14540_v27  ;;  %10836 = vmatprep.subr.bf16.mxu1 %v14542_v12  ;;  %v7618_v24 = vld [vmem:[#allocation7 + $0x1e0] sm:$0xff]  ;;  %v16248_v27 = vadd.f32 %v16194_v51, %v1141_v59  ;;  %v7615_v12 = vld [vmem:[#allocation7 + $0x1c8] sm:$0xff] }
 0x457   :  { %v14596_v46 = vcombine.high %v7614_v22, %v7618_v24  ;;  %v14598_v33 = vcombine.high %v7615_v12, %v7619_v30  ;;  %v7627_v51 = vld [vmem:[#allocation7 + $0x228] sm:$0xff]  ;;  %v14597_v61 = vcombine.low %v7615_v12, %v7619_v30 }
 0x458   :  { %7158 = vmatmul.mubr.bf16.vlgmr.msra.gmra.mrb[4].mxu0 %v16176_v28  ;;  %7486 = vmatmul.mubr.bf16.vlgmr.msra.gmra.mrb[4].mxu1 %v16176_v28  ;;  %v14557_v28 = vcombine.low %v7575_v41, %v7579_v29  ;;  %v14531_v44 = vmul.f32 -1.442695, %v16248_v27  ;;  %v14534_v41 = vmul.f32 -1.442695, %v16251_v31  ;;  %v14605_v52 = vcombine.low %v7623_v39, %v7627_v51  ;;  %v7659_v59 = vld [vmem:[#allocation7 + $0x328] sm:$0xff] }
 0x459   :  { %10673 = vmatpush1.bf16.msra.mxu0 %v14539_v32  ;;  %10704 = vmatprep.mubr.bf16.mxu0 %v16233_v40  ;;  %v14589_v32 = vcombine.low %v7607_v17, %v7611_v18  ;;  %v7667_v12 = vld [vmem:[#allocation7 + $0x368] sm:$0xff] }
 0x45a   :  { %10837 = vmatpush1.bf16.msra.mxu1 %v14541_v35  ;;  %10868 = vmatprep.mubr.bf16.mxu1 %v16233_v40  ;;  %v7622_v35 = vld [vmem:[#allocation7 + $0x200] sm:$0xff]  ;;  %15776 = vpow2.f32 %v14531_v44  ;;  %v7675_v44 = vld [vmem:[#allocation7 + $0x3a8] sm:$0xff] }
 0x45b   :  { %10674 = vmatprep.subr.bf16.mxu0 %v14548_v37  ;;  %10838 = vmatprep.subr.bf16.mxu1 %v14550_v23  ;;  %v7626_v37 = vld [vmem:[#allocation7 + $0x220] sm:$0xff]  ;;  %v14595_v23 = vcombine.low %v7614_v22, %v7618_v24  ;;  %15778 = vpow2.f32 %v14534_v41  ;;  %v7663_v24 = vld [vmem:[#allocation7 + $0x348] sm:$0xff] }
 0x45c   :  { %v14604_v29 = vcombine.high %v7622_v35, %v7626_v37  ;;  %v14603_v50 = vcombine.low %v7622_v35, %v7626_v37  ;;  %v7666_v22 = vld [vmem:[#allocation7 + $0x360] sm:$0xff]  ;;  %v7671_v37 = vld [vmem:[#allocation7 + $0x388] sm:$0xff] }
 0x45d   :  { %10675 = vmatpush1.bf16.msra.mxu0 %v14547_v42  ;;  %v14606_v42 = vcombine.high %v7623_v39, %v7627_v51  ;;  %v7674_v35 = vld [vmem:[#allocation7 + $0x3a0] sm:$0xff]  ;;  %v14645_v51 = vcombine.low %v7663_v24, %v7667_v12  ;;  %v14654_v41 = vcombine.high %v7671_v37, %v7675_v44 }
 0x45e   :  { %10839 = vmatpush1.bf16.msra.mxu1 %v14549_v43  ;;  %10676 = vmatprep.subr.bf16.mxu0 %v14556_v45  ;;  %v7630_v43 = vld [vmem:[#allocation7 + $0x240] sm:$0xff] }
 0x45f   :  { %10840 = vmatprep.subr.bf16.mxu1 %v14558_v48  ;;  %v7634_v45 = vld [vmem:[#allocation7 + $0x260] sm:$0xff]  ;;  %v7631_v48 = vld [vmem:[#allocation7 + $0x248] sm:$0xff] }
 0x460   :  { %v14612_v53 = vcombine.high %v7630_v43, %v7634_v45  ;;  %v14611_v25 = vcombine.low %v7630_v43, %v7634_v45  ;;  %v14613_v62 = vcombine.low %v7631_v48, %v7635_v56  ;;  %v7683_v43 = vld [vmem:[#allocation7 + $0x3e8] sm:$0xff] }
 0x461   :  { %10677 = vmatpush1.bf16.msra.mxu0 %v14555_v55  ;;  %v14614_v55 = vcombine.high %v7631_v48, %v7635_v56  ;;  %v14653_v48 = vcombine.low %v7671_v37, %v7675_v44 }
 0x462   :  { %10841 = vmatpush1.bf16.msra.mxu1 %v14557_v28  ;;  %10678 = vmatprep.subr.bf16.mxu0 %v14564_v60  ;;  %v7638_v28 = vld [vmem:[#allocation7 + $0x280] sm:$0xff] }
 0x463   :  { %10842 = vmatprep.subr.bf16.mxu1 %v14566_v16  ;;  %v7642_v60 = vld [vmem:[#allocation7 + $0x2a0] sm:$0xff]  ;;  %v7639_v16 = vld [vmem:[#allocation7 + $0x288] sm:$0xff] }
 0x464   :  { %v14620_v63 = vcombine.high %v7638_v28, %v7642_v60  ;;  %v14619_v5 = vcombine.low %v7638_v28, %v7642_v60  ;;  %v15777_v34 = vpop.eup %15776  ;;  %v14621_v6 = vcombine.low %v7639_v16, %v7643_v54  ;;  %v7687_v28 = vld [vmem:[#allocation7 + $0x408] sm:$0xff] }
 0x465   :  { %10679 = vmatpush1.bf16.msra.mxu0 %v14563_v0  ;;  %v14622_v0 = vcombine.high %v7639_v16, %v7643_v54  ;;  %v15779_v13 = vpop.eup %15778  ;;  %v7518_v17 = vadd.f32 1.0, %v15777_v34  ;;  %v7691_v60 = vld [vmem:[#allocation7 + $0x428] sm:$0xff] }
 0x466   :  { %10843 = vmatpush1.bf16.msra.mxu1 %v14565_v2  ;;  %10680 = vmatprep.subr.bf16.mxu0 %v14572_v57  ;;  %v7646_v2 = vld [vmem:[#allocation7 + $0x2c0] sm:$0xff]  ;;  %v7699_v34 = vld [vmem:[#allocation7 + $0x468] sm:$0xff] }
 0x467   :  { %10844 = vmatprep.subr.bf16.mxu1 %v14574_v3  ;;  %v7650_v57 = vld [vmem:[#allocation7 + $0x2e0] sm:$0xff]  ;;  %v7647_v3 = vld [vmem:[#allocation7 + $0x2c8] sm:$0xff]  ;;  %15780 = vrcp.f32 %v7518_v17 }
 0x468   :  { %v14627_v18 = vcombine.low %v7646_v2, %v7650_v57 }
 0x469   :  { %10681 = vmatpush1.bf16.msra.mxu0 %v14571_v7  ;;  %v14628_v7 = vcombine.high %v7646_v2, %v7650_v57  ;;  %v7694_v57 = vld [vmem:[#allocation7 + $0x440] sm:$0xff] }
 0x46a   :  { %10845 = vmatpush1.bf16.msra.mxu1 %v14573_v9  ;;  %10682 = vmatprep.subr.bf16.mxu0 %v14580_v10  ;;  %v14630_v9 = vcombine.high %v7647_v3, %v7651_v4  ;;  %v7654_v10 = vld [vmem:[#allocation7 + $0x300] sm:$0xff] }
 0x46b   :  { %10846 = vmatprep.subr.bf16.mxu1 %v14582_v11  ;;  %v7658_v11 = vld [vmem:[#allocation7 + $0x320] sm:$0xff] }
 0x46c   :  { %v14636_v19 = vcombine.high %v7654_v10, %v7658_v11  ;;  %v14635_v30 = vcombine.low %v7654_v10, %v7658_v11  ;;  %v7706_v10 = vld [vmem:[#allocation7 + $0x4a0] sm:$0xff] }
 0x46d   :  { %10683 = vmatpush1.bf16.msra.mxu0 %v14579_v14  ;;  %v14629_v14 = vcombine.low %v7647_v3, %v7651_v4  ;;  %v7698_v3 = vld [vmem:[#allocation7 + $0x460] sm:$0xff] }
 0x46e   :  { %10847 = vmatpush1.bf16.msra.mxu1 %v14581_v36  ;;  %10684 = vmatprep.subr.bf16.mxu0 %v14588_v20  ;;  %v7521_v36 = vadd.f32 1.0, %v15779_v13  ;;  %v14638_v20 = vcombine.high %v7655_v15, %v7659_v59  ;;  %v7703_v13 = vld [vmem:[#allocation7 + $0x488] sm:$0xff] }
 0x46f   :  { %10848 = vmatprep.subr.bf16.mxu1 %v14590_v21  ;;  %v7662_v21 = vld [vmem:[#allocation7 + $0x340] sm:$0xff] }
 0x470   :  { %15782 = vrcp.f32 %v7521_v36  ;;  %v14643_v39 = vcombine.low %v7662_v21, %v7666_v22  ;;  %v7714_v36 = vld [vmem:[#allocation7 + $0x4e0] sm:$0xff] }
 0x471   :  { %10685 = vmatpush1.bf16.msra.mxu0 %v14587_v26  ;;  %v14637_v26 = vcombine.low %v7655_v15, %v7659_v59  ;;  %v7707_v15 = vld [vmem:[#allocation7 + $0x4a8] sm:$0xff]  ;;  %v14675_v59 = vcombine.low %v7694_v57, %v7698_v3 }
 0x472   :  { %10849 = vmatpush1.bf16.msra.mxu1 %v14589_v32  ;;  %10686 = vmatprep.subr.bf16.mxu0 %v14596_v46  ;;  %v14644_v32 = vcombine.high %v7662_v21, %v7666_v22  ;;  %v14646_v46 = vcombine.high %v7663_v24, %v7667_v12  ;;  %v7715_v21 = vld [vmem:[#allocation7 + $0x4e8] sm:$0xff]  ;;  %v14685_v24 = vcombine.low %v7703_v13, %v7707_v15 }
 0x473   :  { %10850 = vmatprep.subr.bf16.mxu1 %v14598_v33  ;;  %v7670_v33 = vld [vmem:[#allocation7 + $0x380] sm:$0xff] }
 0x474   :  { %v14651_v45 = vcombine.low %v7670_v33, %v7674_v35 }
 0x475   :  { %10687 = vmatpush1.bf16.msra.mxu0 %v14595_v23  ;;  %v14652_v23 = vcombine.high %v7670_v33, %v7674_v35  ;;  %v7723_v33 = vld [vmem:[#allocation7 + $0x528] sm:$0xff] }
 0x476   :  { %10851 = vmatpush1.bf16.msra.mxu1 %v14597_v61  ;;  %10688 = vmatprep.subr.bf16.mxu0 %v14604_v29  ;;  %v7678_v61 = vld [vmem:[#allocation7 + $0x3c0] sm:$0xff] }
 0x477   :  { %10852 = vmatprep.subr.bf16.mxu1 %v14606_v42  ;;  %v7682_v29 = vld [vmem:[#allocation7 + $0x3e0] sm:$0xff]  ;;  %v7679_v42 = vld [vmem:[#allocation7 + $0x3c8] sm:$0xff] }
 0x478   :  { %v14660_v56 = vcombine.high %v7678_v61, %v7682_v29  ;;  %v14659_v54 = vcombine.low %v7678_v61, %v7682_v29  ;;  %v7727_v61 = vld [vmem:[#allocation7 + $0x548] sm:$0xff] }
 0x479   :  { %10689 = vmatpush1.bf16.msra.mxu0 %v14603_v50  ;;  %v15781_v50 = vpop.eup %15780  ;;  %v7731_v29 = vld [vmem:[#allocation7 + $0x568] sm:$0xff] }
 0x47a   :  { %10853 = vmatpush1.bf16.msra.mxu1 %v14605_v52  ;;  %10690 = vmatprep.subr.bf16.mxu0 %v14612_v53  ;;  %v14662_v52 = vcombine.high %v7679_v42, %v7683_v43  ;;  %v7686_v53 = vld [vmem:[#allocation7 + $0x400] sm:$0xff]  ;;  %v15783_v16 = vpop.eup %15782 }
 0x47b   :  { %10854 = vmatprep.subr.bf16.mxu1 %v14614_v55  ;;  %v7690_v55 = vld [vmem:[#allocation7 + $0x420] sm:$0xff]  ;;  %v7545_v2 = vmul.f32 %v15783_v16, %v16251_v31 }
 0x47c   :  { %v14667_v4 = vcombine.low %v7686_v53, %v7690_v55 }
 0x47d   :  { %10691 = vmatpush1.bf16.msra.mxu0 %v14611_v25  ;;  %v7542_v25 = vmul.f32 %v15781_v50, %v16248_v27  ;;  %v14676_v27 = vcombine.high %v7694_v57, %v7698_v3  ;;  %v16259_v11 = vpack.c.bf16 %v7545_v2, %v7545_v2  ;;  %v7738_v50 = vld [vmem:[#allocation7 + $0x5a0] sm:$0xff]  ;;  %v7747_v2 = vld [vmem:[#allocation7 + $0x5e8] sm:$0xff] }
 0x47e   :  { %10855 = vmatpush1.bf16.msra.mxu1 %v14613_v62  ;;  %10692 = vmatprep.subr.bf16.mxu0 %v14620_v63  ;;  %v14661_v62 = vcombine.low %v7679_v42, %v7683_v43  ;;  %v14668_v63 = vcombine.high %v7686_v53, %v7690_v55  ;;  %v7735_v53 = vld [vmem:[#allocation7 + $0x588] sm:$0xff] }
 0x47f   :  { %10856 = vmatprep.subr.bf16.mxu1 %v14622_v0  ;;  %v14670_v0 = vcombine.high %v7687_v28, %v7691_v60  ;;  %v7739_v55 = vld [vmem:[#allocation7 + $0x5a8] sm:$0xff] }
 0x481   :  { %10693 = vmatpush1.bf16.msra.mxu0 %v14619_v5  ;;  %v7695_v5 = vld [vmem:[#allocation7 + $0x448] sm:$0xff] }
 0x482   :  { %10857 = vmatpush1.bf16.msra.mxu1 %v14621_v6  ;;  %10694 = vmatprep.subr.bf16.mxu0 %v14628_v7  ;;  %v16257_v6 = vpack.c.bf16 %v7542_v25, %v7542_v25  ;;  %v14669_v7 = vcombine.low %v7687_v28, %v7691_v60  ;;  %v14678_v31 = vcombine.high %v7695_v5, %v7699_v34  ;;  %v7742_v25 = vld [vmem:[#allocation7 + $0x5c0] sm:$0xff] }
 0x483   :  { %10858 = vmatprep.subr.bf16.mxu1 %v14630_v9  ;;  %v7702_v9 = vld [vmem:[#allocation7 + $0x480] sm:$0xff]  ;;  %v14677_v17 = vcombine.low %v7695_v5, %v7699_v34  ;;  %v14709_v60 = vcombine.low %v7727_v61, %v7731_v29 }
 0x484   :  { %v14683_v22 = vcombine.low %v7702_v9, %v7706_v10  ;;  %v7750_v5 = vld [vmem:[#allocation7 + $0x600] sm:$0xff] }
 0x485   :  { %10695 = vmatpush1.bf16.msra.mxu0 %v14627_v18  ;;  %v14684_v18 = vcombine.high %v7702_v9, %v7706_v10  ;;  %v7754_v34 = vld [vmem:[#allocation7 + $0x620] sm:$0xff]  ;;  %v7755_v9 = vld [vmem:[#allocation7 + $0x628] sm:$0xff] }
 0x486   :  { %10859 = vmatpush1.bf16.msra.mxu1 %v14629_v14  ;;  %10696 = vmatprep.subr.bf16.mxu0 %v14636_v19  ;;  %v14686_v14 = vcombine.high %v7703_v13, %v7707_v15  ;;  %v7710_v19 = vld [vmem:[#allocation7 + $0x4c0] sm:$0xff] }
 0x487   :  { %10860 = vmatprep.subr.bf16.mxu1 %v14638_v20  ;;  %v7711_v20 = vld [vmem:[#allocation7 + $0x4c8] sm:$0xff]  ;;  %v14692_v12 = vcombine.high %v7710_v19, %v7714_v36  ;;  %v14691_v35 = vcombine.low %v7710_v19, %v7714_v36  ;;  %v7758_v15 = vld [vmem:[#allocation7 + $0x640] sm:$0xff] }
 0x488   :  { %v14693_v37 = vcombine.low %v7711_v20, %v7715_v21 }
 0x489   :  { %10697 = vmatpush1.bf16.msra.mxu0 %v14635_v30  ;;  %v14694_v30 = vcombine.high %v7711_v20, %v7715_v21  ;;  %v7766_v21 = vld [vmem:[#allocation7 + $0x680] sm:$0xff] }
 0x48a   :  { %10861 = vmatpush1.bf16.msra.mxu1 %v14637_v26  ;;  %10698 = vmatprep.subr.bf16.mxu0 %v14644_v32  ;;  %v7718_v26 = vld [vmem:[#allocation7 + $0x500] sm:$0xff] }
 0x48b   :  { %10862 = vmatprep.subr.bf16.mxu1 %v14646_v46  ;;  %v7722_v32 = vld [vmem:[#allocation7 + $0x520] sm:$0xff]  ;;  %v7719_v46 = vld [vmem:[#allocation7 + $0x508] sm:$0xff] }
 0x48c   :  { %v14700_v44 = vcombine.high %v7718_v26, %v7722_v32  ;;  %v14699_v42 = vcombine.low %v7718_v26, %v7722_v32  ;;  %v14701_v43 = vcombine.low %v7719_v46, %v7723_v33 }
 0x48d   :  { %10699 = vmatpush1.bf16.msra.mxu0 %v14643_v39  ;;  %v14702_v39 = vcombine.high %v7719_v46, %v7723_v33  ;;  %v7774_v33 = vld [vmem:[#allocation7 + $0x6c0] sm:$0xff] }
 0x48e   :  { %10863 = vmatpush1.bf16.msra.mxu1 %v14645_v51  ;;  %10700 = vmatprep.subr.bf16.mxu0 %v14652_v23  ;;  %v7726_v51 = vld [vmem:[#allocation7 + $0x540] sm:$0xff] }
 0x48f   :  { %10864 = vmatprep.subr.bf16.mxu1 %v14654_v41  ;;  %v7730_v23 = vld [vmem:[#allocation7 + $0x560] sm:$0xff]  ;;  %v1148_v41 = vsub.s32 2, %v16214_v38 }
 0x490   :  { %v14707_v28 = vcombine.low %v7726_v51, %v7730_v23 }
 0x491   :  { %10701 = vmatpush1.bf16.msra.mxu0 %v14651_v45  ;;  %v14708_v45 = vcombine.high %v7726_v51, %v7730_v23 }
 0x492   :  { %10865 = vmatpush1.bf16.msra.mxu1 %v14653_v48  ;;  %10702 = vmatprep.subr.bf16.mxu0 %v14660_v56  ;;  %v14710_v48 = vcombine.high %v7727_v61, %v7731_v29  ;;  %v7734_v56 = vld [vmem:[#allocation7 + $0x580] sm:$0xff] }
 0x493   :  { %10866 = vmatprep.subr.bf16.mxu1 %v14662_v52  ;;  %v1149_v52 = vrot.slane %v16219_v49, %v1148_v41  ;;  %v14716_v16 = vcombine.high %v7734_v56, %v7738_v50  ;;  %v14715_v57 = vcombine.low %v7734_v56, %v7738_v50  ;;  %v14717_v49 = vcombine.low %v7735_v53, %v7739_v55 }
 0x495   :  { %10703 = vmatpush1.bf16.msra.mxu0 %v14659_v54  ;;  %v14718_v54 = vcombine.high %v7735_v53, %v7739_v55 }
 0x496   :  { %10867 = vmatpush1.bf16.msra.mxu1 %v14661_v62  ;;  %10713 = vmatprep.subr.bf16.mxu0 %v14668_v63  ;;  %v7746_v62 = vld [vmem:[#allocation7 + $0x5e0] sm:$0xff]  ;;  %v16270_v63 = vadd.f32 %v16196_v58, %v1149_v52 }
 0x497   :  { %10877 = vmatprep.subr.bf16.mxu1 %v14670_v0  ;;  %v7743_v0 = vld [vmem:[#allocation7 + $0x5c8] sm:$0xff]  ;;  %v14724_v3 = vcombine.high %v7742_v25, %v7746_v62  ;;  %v14723_v10 = vcombine.low %v7742_v25, %v7746_v62 }
 0x498   :  { %10705 = vmatmul.mubr.bf16.vlgmr.msra.gmra.mrb[8].mxu0 %v16257_v6  ;;  %v14725_v58 = vcombine.low %v7743_v0, %v7747_v2 }
 0x499   :  { %10869 = vmatmul.mubr.bf16.vlgmr.msra.gmra.mrb[8].mxu1 %v16257_v6  ;;  %10714 = vmatpush1.bf16.msra.mxu0 %v14667_v4  ;;  %v14726_v4 = vcombine.high %v7743_v0, %v7747_v2 }
 0x49a   :  { %10745 = vmatprep.mubr.bf16.mxu0 %v16259_v11  ;;  %10878 = vmatpush1.bf16.msra.mxu1 %v14669_v7  ;;  %v14533_v7 = vmul.f32 -1.442695, %v16270_v63 }
 0x49b   :  { %10909 = vmatprep.mubr.bf16.mxu1 %v16259_v11  ;;  %10715 = vmatprep.subr.bf16.mxu0 %v14676_v27  ;;  %v7751_v27 = vld [vmem:[#allocation7 + $0x608] sm:$0xff] }
 0x49c   :  { %10879 = vmatprep.subr.bf16.mxu1 %v14678_v31  ;;  %v14732_v31 = vcombine.high %v7750_v5, %v7754_v34  ;;  %v14734_v13 = vcombine.high %v7751_v27, %v7755_v9  ;;  %15784 = vpow2.f32 %v14533_v7  ;;  %v14733_v19 = vcombine.low %v7751_v27, %v7755_v9  ;;  %v7806_v9 = vld [vmem:[#allocation7 + $0x7c0] sm:$0xff] }
 0x49d   :  { %10716 = vmatpush1.bf16.msra.mxu0 %v14675_v59  ;;  %v7762_v59 = vld [vmem:[#allocation7 + $0x660] sm:$0xff] }
 0x49e   :  { %10880 = vmatpush1.bf16.msra.mxu1 %v14677_v17  ;;  %10717 = vmatprep.subr.bf16.mxu0 %v14684_v18  ;;  %v7759_v17 = vld [vmem:[#allocation7 + $0x648] sm:$0xff]  ;;  %v14740_v36 = vcombine.high %v7758_v15, %v7762_v59 }
 0x49f   :  { %10881 = vmatprep.subr.bf16.mxu1 %v14686_v14  ;;  %v7763_v18 = vld [vmem:[#allocation7 + $0x668] sm:$0xff]  ;;  %v14731_v14 = vcombine.low %v7750_v5, %v7754_v34 }
 0x4a0   :  { %v14742_v20 = vcombine.high %v7759_v17, %v7763_v18  ;;  %v14741_v26 = vcombine.low %v7759_v17, %v7763_v18 }
 0x4a1   :  { %10718 = vmatpush1.bf16.msra.mxu0 %v14683_v22  ;;  %v7770_v22 = vld [vmem:[#allocation7 + $0x6a0] sm:$0xff] }
 0x4a2   :  { %10882 = vmatpush1.bf16.msra.mxu1 %v14685_v24  ;;  %10719 = vmatprep.subr.bf16.mxu0 %v14692_v12  ;;  %v7767_v24 = vld [vmem:[#allocation7 + $0x688] sm:$0xff]  ;;  %v14748_v32 = vcombine.high %v7766_v21, %v7770_v22 }
 0x4a3   :  { %10883 = vmatprep.subr.bf16.mxu1 %v14694_v30  ;;  %v7771_v12 = vld [vmem:[#allocation7 + $0x6a8] sm:$0xff]  ;;  %v14739_v30 = vcombine.low %v7758_v15, %v7762_v59 }
 0x4a4   :  { %v14750_v46 = vcombine.high %v7767_v24, %v7771_v12  ;;  %v14749_v23 = vcombine.low %v7767_v24, %v7771_v12 }
 0x4a5   :  { %10720 = vmatpush1.bf16.msra.mxu0 %v14691_v35  ;;  %v7778_v35 = vld [vmem:[#allocation7 + $0x6e0] sm:$0xff] }
 0x4a6   :  { %10884 = vmatpush1.bf16.msra.mxu1 %v14693_v37  ;;  %10721 = vmatprep.subr.bf16.mxu0 %v14700_v44  ;;  %v7775_v37 = vld [vmem:[#allocation7 + $0x6c8] sm:$0xff]  ;;  %v15785_v51 = vpop.eup %15784  ;;  %v14756_v61 = vcombine.high %v7774_v33, %v7778_v35  ;;  %v14755_v50 = vcombine.low %v7774_v33, %v7778_v35 }
 0x4a7   :  { %10885 = vmatprep.subr.bf16.mxu1 %v14702_v39  ;;  %v7779_v44 = vld [vmem:[#allocation7 + $0x6e8] sm:$0xff]  ;;  %v14747_v39 = vcombine.low %v7766_v21, %v7770_v22  ;;  %v7520_v56 = vadd.f32 1.0, %v15785_v51  ;;  %v7830_v51 = vld [vmem:[#allocation7 + $0x880] sm:$0xff] }
 0x4a8   :  { %v14758_v29 = vcombine.high %v7775_v37, %v7779_v44  ;;  %v14757_v52 = vcombine.low %v7775_v37, %v7779_v44  ;;  %v7827_v33 = vld [vmem:[#allocation7 + $0x868] sm:$0xff] }
 0x4a9   :  { %10722 = vmatpush1.bf16.msra.mxu0 %v14699_v42  ;;  %v7782_v42 = vld [vmem:[#allocation7 + $0x700] sm:$0xff]  ;;  %15786 = vrcp.f32 %v7520_v56 }
 0x4aa   :  { %10886 = vmatpush1.bf16.msra.mxu1 %v14701_v43  ;;  %10723 = vmatprep.subr.bf16.mxu0 %v14708_v45  ;;  %v7786_v43 = vld [vmem:[#allocation7 + $0x720] sm:$0xff]  ;;  %v7783_v45 = vld [vmem:[#allocation7 + $0x708] sm:$0xff] }
 0x4ab   :  { %10887 = vmatprep.subr.bf16.mxu1 %v14710_v48  ;;  %v7787_v48 = vld [vmem:[#allocation7 + $0x728] sm:$0xff]  ;;  %v14764_v53 = vcombine.high %v7782_v42, %v7786_v43  ;;  %v14763_v25 = vcombine.low %v7782_v42, %v7786_v43  ;;  %v7838_v56 = vld [vmem:[#allocation7 + $0x8c0] sm:$0xff] }
 0x4ac   :  { %v14766_v55 = vcombine.high %v7783_v45, %v7787_v48  ;;  %v14765_v62 = vcombine.low %v7783_v45, %v7787_v48 }
 0x4ad   :  { %10724 = vmatpush1.bf16.msra.mxu0 %v14707_v28  ;;  %v7790_v28 = vld [vmem:[#allocation7 + $0x740] sm:$0xff] }
 0x4ae   :  { %10888 = vmatpush1.bf16.msra.mxu1 %v14709_v60  ;;  %10725 = vmatprep.subr.bf16.mxu0 %v14716_v16  ;;  %v7794_v60 = vld [vmem:[#allocation7 + $0x760] sm:$0xff]  ;;  %v7791_v16 = vld [vmem:[#allocation7 + $0x748] sm:$0xff] }
 0x4af   :  { %10889 = vmatprep.subr.bf16.mxu1 %v14718_v54  ;;  %v7795_v54 = vld [vmem:[#allocation7 + $0x768] sm:$0xff]  ;;  %v14772_v0 = vcombine.high %v7790_v28, %v7794_v60  ;;  %v14771_v5 = vcombine.low %v7790_v28, %v7794_v60 }
 0x4b0   :  { %v14774_v2 = vcombine.high %v7791_v16, %v7795_v54  ;;  %v14773_v34 = vcombine.low %v7791_v16, %v7795_v54  ;;  %v7846_v54 = vld [vmem:[#allocation7 + $0x900] sm:$0xff] }
 0x4b1   :  { %10726 = vmatpush1.bf16.msra.mxu0 %v14715_v57  ;;  %v7798_v57 = vld [vmem:[#allocation7 + $0x780] sm:$0xff] }
 0x4b2   :  { %10890 = vmatpush1.bf16.msra.mxu1 %v14717_v49  ;;  %10727 = vmatprep.subr.bf16.mxu0 %v14724_v3  ;;  %v7802_v49 = vld [vmem:[#allocation7 + $0x7a0] sm:$0xff]  ;;  %v7799_v3 = vld [vmem:[#allocation7 + $0x788] sm:$0xff] }
 0x4b3   :  { %10891 = vmatprep.subr.bf16.mxu1 %v14726_v4  ;;  %v7803_v4 = vld [vmem:[#allocation7 + $0x7a8] sm:$0xff]  ;;  %v14780_v7 = vcombine.high %v7798_v57, %v7802_v49  ;;  %v15787_v17 = vpop.eup %15786 }
 0x4b4   :  { %v14782_v27 = vcombine.high %v7799_v3, %v7803_v4  ;;  %v14781_v15 = vcombine.low %v7799_v3, %v7803_v4  ;;  %v7544_v22 = vmul.f32 %v15787_v17, %v16270_v63  ;;  %v7854_v4 = vld [vmem:[#allocation7 + $0x940] sm:$0xff] }
 0x4b5   :  { %10728 = vmatpush1.bf16.msra.mxu0 %v14723_v10  ;;  %v7810_v10 = vld [vmem:[#allocation7 + $0x7e0] sm:$0xff] }
 0x4b6   :  { %10892 = vmatpush1.bf16.msra.mxu1 %v14725_v58  ;;  %10729 = vmatprep.subr.bf16.mxu0 %v14732_v31  ;;  %v7807_v58 = vld [vmem:[#allocation7 + $0x7c8] sm:$0xff]  ;;  %v14788_v59 = vcombine.high %v7806_v9, %v7810_v10  ;;  %v14787_v21 = vcombine.low %v7806_v9, %v7810_v10  ;;  %v16274_v37 = vpack.c.bf16 %v7544_v22, %v7544_v22 }
 0x4b7   :  { %10893 = vmatprep.subr.bf16.mxu1 %v14734_v13  ;;  %v7811_v31 = vld [vmem:[#allocation7 + $0x7e8] sm:$0xff]  ;;  %v14779_v13 = vcombine.low %v7798_v57, %v7802_v49 }
 0x4b8   :  { %v14790_v18 = vcombine.high %v7807_v58, %v7811_v31  ;;  %v14789_v24 = vcombine.low %v7807_v58, %v7811_v31  ;;  %v7862_v31 = vld [vmem:[#allocation7 + $0x980] sm:$0xff]  ;;  %v7875_v22 = vld [vmem:[#allocation7 + $0x9e8] sm:$0xff] }
 0x4b9   :  { %10730 = vmatpush1.bf16.msra.mxu0 %v14731_v14  ;;  %v7814_v14 = vld [vmem:[#allocation7 + $0x800] sm:$0xff] }
 0x4ba   :  { %10894 = vmatpush1.bf16.msra.mxu1 %v14733_v19  ;;  %10731 = vmatprep.subr.bf16.mxu0 %v14740_v36  ;;  %v7818_v19 = vld [vmem:[#allocation7 + $0x820] sm:$0xff]  ;;  %v7815_v36 = vld [vmem:[#allocation7 + $0x808] sm:$0xff] }
 0x4bb   :  { %10895 = vmatprep.subr.bf16.mxu1 %v14742_v20  ;;  %v7819_v20 = vld [vmem:[#allocation7 + $0x828] sm:$0xff]  ;;  %v14796_v12 = vcombine.high %v7814_v14, %v7818_v19  ;;  %v14795_v35 = vcombine.low %v7814_v14, %v7818_v19 }
 0x4bc   :  { %v14797_v44 = vcombine.low %v7815_v36, %v7819_v20 }
 0x4bd   :  { %10732 = vmatpush1.bf16.msra.mxu0 %v14739_v30  ;;  %v14798_v30 = vcombine.high %v7815_v36, %v7819_v20  ;;  %v7870_v36 = vld [vmem:[#allocation7 + $0x9c0] sm:$0xff] }
 0x4be   :  { %10896 = vmatpush1.bf16.msra.mxu1 %v14741_v26  ;;  %10733 = vmatprep.subr.bf16.mxu0 %v14748_v32  ;;  %v7822_v26 = vld [vmem:[#allocation7 + $0x840] sm:$0xff] }
 0x4bf   :  { %10897 = vmatprep.subr.bf16.mxu1 %v14750_v46  ;;  %v7826_v32 = vld [vmem:[#allocation7 + $0x860] sm:$0xff]  ;;  %v7823_v46 = vld [vmem:[#allocation7 + $0x848] sm:$0xff] }
 0x4c0   :  { %v14806_v63 = vcombine.high %v7823_v46, %v7827_v33  ;;  %v14803_v42 = vcombine.low %v7822_v26, %v7826_v32  ;;  %v14805_v43 = vcombine.low %v7823_v46, %v7827_v33  ;;  %v7874_v20 = vld [vmem:[#allocation7 + $0x9e0] sm:$0xff]  ;;  %v7879_v33 = vld [vmem:[#allocation7 + $0xa08] sm:$0xff] }
 0x4c1   :  { %10734 = vmatpush1.bf16.msra.mxu0 %v14747_v39  ;;  %v14804_v39 = vcombine.high %v7822_v26, %v7826_v32  ;;  %v7878_v32 = vld [vmem:[#allocation7 + $0xa00] sm:$0xff] }
 0x4c2   :  { %10898 = vmatpush1.bf16.msra.mxu1 %v14749_v23  ;;  %10735 = vmatprep.subr.bf16.mxu0 %v14756_v61  ;;  %v7834_v23 = vld [vmem:[#allocation7 + $0x8a0] sm:$0xff]  ;;  %v7831_v61 = vld [vmem:[#allocation7 + $0x888] sm:$0xff] }
 0x4c3   :  { %10899 = vmatprep.subr.bf16.mxu1 %v14758_v29  ;;  %v7835_v29 = vld [vmem:[#allocation7 + $0x8a8] sm:$0xff]  ;;  %v14812_v45 = vcombine.high %v7830_v51, %v7834_v23  ;;  %v7882_v46 = vld [vmem:[#allocation7 + $0xa20] sm:$0xff] }
 0x4c4   :  { %v14814_v48 = vcombine.high %v7831_v61, %v7835_v29  ;;  %v14813_v28 = vcombine.low %v7831_v61, %v7835_v29  ;;  %v7890_v61 = vld [vmem:[#allocation7 + $0xa60] sm:$0xff]  ;;  %v7887_v29 = vld [vmem:[#allocation7 + $0xa48] sm:$0xff] }
 0x4c5   :  { %10736 = vmatpush1.bf16.msra.mxu0 %v14755_v50  ;;  %v7842_v50 = vld [vmem:[#allocation7 + $0x8e0] sm:$0xff] }
 0x4c6   :  { %10900 = vmatpush1.bf16.msra.mxu1 %v14757_v52  ;;  %10737 = vmatprep.subr.bf16.mxu0 %v14764_v53  ;;  %v7839_v52 = vld [vmem:[#allocation7 + $0x8c8] sm:$0xff]  ;;  %v14820_v60 = vcombine.high %v7838_v56, %v7842_v50 }
 0x4c7   :  { %10901 = vmatprep.subr.bf16.mxu1 %v14766_v55  ;;  %v7843_v53 = vld [vmem:[#allocation7 + $0x8e8] sm:$0xff]  ;;  %v14811_v55 = vcombine.low %v7830_v51, %v7834_v23  ;;  %v7886_v23 = vld [vmem:[#allocation7 + $0xa40] sm:$0xff] }
 0x4c8   :  { %v14822_v16 = vcombine.high %v7839_v52, %v7843_v53  ;;  %v14821_v57 = vcombine.low %v7839_v52, %v7843_v53  ;;  %v7898_v52 = vld [vmem:[#allocation7 + $0xaa0] sm:$0xff]  ;;  %v7895_v53 = vld [vmem:[#allocation7 + $0xa88] sm:$0xff] }
 0x4c9   :  { %10738 = vmatpush1.bf16.msra.mxu0 %v14763_v25  ;;  %v7850_v25 = vld [vmem:[#allocation7 + $0x920] sm:$0xff] }
 0x4ca   :  { %10902 = vmatpush1.bf16.msra.mxu1 %v14765_v62  ;;  %10739 = vmatprep.subr.bf16.mxu0 %v14772_v0  ;;  %v7847_v62 = vld [vmem:[#allocation7 + $0x908] sm:$0xff]  ;;  %v14828_v49 = vcombine.high %v7846_v54, %v7850_v25 }
 0x4cb   :  { %10903 = vmatprep.subr.bf16.mxu1 %v14774_v2  ;;  %v7851_v0 = vld [vmem:[#allocation7 + $0x928] sm:$0xff]  ;;  %v14819_v2 = vcombine.low %v7838_v56, %v7842_v50  ;;  %v7894_v50 = vld [vmem:[#allocation7 + $0xa80] sm:$0xff] }
 0x4cc   :  { %v14830_v3 = vcombine.high %v7847_v62, %v7851_v0  ;;  %v14829_v9 = vcombine.low %v7847_v62, %v7851_v0  ;;  %v7906_v62 = vld [vmem:[#allocation7 + $0xae0] sm:$0xff]  ;;  %v7903_v0 = vld [vmem:[#allocation7 + $0xac8] sm:$0xff] }
 0x4cd   :  { %10740 = vmatpush1.bf16.msra.mxu0 %v14771_v5  ;;  %v7858_v5 = vld [vmem:[#allocation7 + $0x960] sm:$0xff] }
 0x4ce   :  { %10904 = vmatpush1.bf16.msra.mxu1 %v14773_v34  ;;  %10741 = vmatprep.subr.bf16.mxu0 %v14780_v7  ;;  %v7855_v34 = vld [vmem:[#allocation7 + $0x948] sm:$0xff]  ;;  %v14836_v10 = vcombine.high %v7854_v4, %v7858_v5  ;;  %v14835_v17 = vcombine.low %v7854_v4, %v7858_v5  ;;  %v7910_v5 = vld [vmem:[#allocation7 + $0xb00] sm:$0xff] }
 0x4cf   :  { %10905 = vmatprep.subr.bf16.mxu1 %v14782_v27  ;;  %v7859_v7 = vld [vmem:[#allocation7 + $0x968] sm:$0xff]  ;;  %v14827_v27 = vcombine.low %v7846_v54, %v7850_v25  ;;  %v7902_v25 = vld [vmem:[#allocation7 + $0xac0] sm:$0xff] }
 0x4d0   :  { %v14838_v58 = vcombine.high %v7855_v34, %v7859_v7 }
 0x4d1   :  { %10742 = vmatpush1.bf16.msra.mxu0 %v14779_v13  ;;  %v7866_v13 = vld [vmem:[#allocation7 + $0x9a0] sm:$0xff] }
 0x4d2   :  { %10906 = vmatpush1.bf16.msra.mxu1 %v14781_v15  ;;  %10743 = vmatprep.subr.bf16.mxu0 %v14788_v59  ;;  %v7863_v15 = vld [vmem:[#allocation7 + $0x988] sm:$0xff]  ;;  %v14844_v14 = vcombine.high %v7862_v31, %v7866_v13 }
 0x4d3   :  { %10907 = vmatprep.subr.bf16.mxu1 %v14790_v18  ;;  %v7867_v59 = vld [vmem:[#allocation7 + $0x9a8] sm:$0xff]  ;;  %v14837_v18 = vcombine.low %v7855_v34, %v7859_v7  ;;  %v7914_v34 = vld [vmem:[#allocation7 + $0xb20] sm:$0xff] }
 0x4d4   :  { %v14846_v19 = vcombine.high %v7863_v15, %v7867_v59  ;;  %v7911_v7 = vld [vmem:[#allocation7 + $0xb08] sm:$0xff] }
 0x4d5   :  { %10744 = vmatpush1.bf16.msra.mxu0 %v14787_v21  ;;  %v7871_v21 = vld [vmem:[#allocation7 + $0x9c8] sm:$0xff] }
 0x4d6   :  { %10908 = vmatpush1.bf16.msra.mxu1 %v14789_v24  ;;  %10754 = vmatprep.subr.bf16.mxu0 %v14796_v12  ;;  %v14843_v24 = vcombine.low %v7862_v31, %v7866_v13  ;;  %v14845_v12 = vcombine.low %v7863_v15, %v7867_v59  ;;  %v14854_v26 = vcombine.high %v7871_v21, %v7875_v22  ;;  %v7918_v13 = vld [vmem:[#allocation7 + $0xb40] sm:$0xff]  ;;  %v7919_v59 = vld [vmem:[#allocation7 + $0xb48] sm:$0xff] }
 0x4d7   :  { %10918 = vmatprep.subr.bf16.mxu1 %v14798_v30  ;;  %v14852_v30 = vcombine.high %v7870_v36, %v7874_v20  ;;  %v7922_v15 = vld [vmem:[#allocation7 + $0xb60] sm:$0xff] }
 0x4d8   :  { %10746 = vmatmul.mubr.bf16.vlgmr.msra.gmra.mrb[8].mxu0 %v16274_v37 }
 0x4d9   :  { %10910 = vmatmul.mubr.bf16.vlgmr.msra.gmra.mrb[8].mxu1 %v16274_v37  ;;  %10755 = vmatpush1.bf16.msra.mxu0 %v14795_v35  ;;  %v7883_v35 = vld [vmem:[#allocation7 + $0xa28] sm:$0xff] }
 0x4da   :  { %10919 = vmatpush1.bf16.msra.mxu1 %v14797_v44  ;;  %10756 = vmatprep.subr.bf16.mxu0 %v14804_v39  ;;  %v14851_v44 = vcombine.low %v7870_v36, %v7874_v20  ;;  %v14853_v39 = vcombine.low %v7871_v21, %v7875_v22  ;;  %v14862_v51 = vcombine.high %v7879_v33, %v7883_v35  ;;  %v7926_v20 = vld [vmem:[#allocation7 + $0xb80] sm:$0xff]  ;;  %v7927_v22 = vld [vmem:[#allocation7 + $0xb88] sm:$0xff] }
 0x4db   :  { %10920 = vmatprep.subr.bf16.mxu1 %v14806_v63  ;;  %v14860_v63 = vcombine.high %v7878_v32, %v7882_v46  ;;  %v7930_v21 = vld [vmem:[#allocation7 + $0xba0] sm:$0xff] }
 0x4dd   :  { %10757 = vmatpush1.bf16.msra.mxu0 %v14803_v42  ;;  %v7891_v42 = vld [vmem:[#allocation7 + $0xa68] sm:$0xff] }
 0x4de   :  { %10921 = vmatpush1.bf16.msra.mxu1 %v14805_v43  ;;  %10758 = vmatprep.subr.bf16.mxu0 %v14812_v45  ;;  %v14859_v43 = vcombine.low %v7878_v32, %v7882_v46  ;;  %v14861_v45 = vcombine.low %v7879_v33, %v7883_v35  ;;  %v14870_v56 = vcombine.high %v7887_v29, %v7891_v42  ;;  %v7934_v46 = vld [vmem:[#allocation7 + $0xbc0] sm:$0xff]  ;;  %v7935_v35 = vld [vmem:[#allocation7 + $0xbc8] sm:$0xff] }
 0x4df   :  { %10922 = vmatprep.subr.bf16.mxu1 %v14814_v48  ;;  %v14868_v48 = vcombine.high %v7886_v23, %v7890_v61  ;;  %v7938_v33 = vld [vmem:[#allocation7 + $0xbe0] sm:$0xff] }
 0x4e1   :  { %10759 = vmatpush1.bf16.msra.mxu0 %v14811_v55  ;;  %v7899_v55 = vld [vmem:[#allocation7 + $0xaa8] sm:$0xff] }
 0x4e2   :  { %10923 = vmatpush1.bf16.msra.mxu1 %v14813_v28  ;;  %10760 = vmatprep.subr.bf16.mxu0 %v14820_v60  ;;  %v14867_v28 = vcombine.low %v7886_v23, %v7890_v61  ;;  %v14869_v60 = vcombine.low %v7887_v29, %v7891_v42  ;;  %v14878_v54 = vcombine.high %v7895_v53, %v7899_v55  ;;  %v16278_v61 = vld [vmem:[#allocation7 + $0xc00] sm:$0xff]  ;;  %v16282_v42 = vld [vmem:[#allocation7 + $0xc08] sm:$0xff] }
 0x4e3   :  { %10924 = vmatprep.subr.bf16.mxu1 %v14822_v16  ;;  %v14876_v16 = vcombine.high %v7894_v50, %v7898_v52  ;;  %v16280_v29 = vld [vmem:[#allocation7 + $0xc20] sm:$0xff] }
 0x4e5   :  { %10761 = vmatpush1.bf16.msra.mxu0 %v14819_v2  ;;  %v7907_v2 = vld [vmem:[#allocation7 + $0xae8] sm:$0xff] }
 0x4e6   :  { %10925 = vmatpush1.bf16.msra.mxu1 %v14821_v57  ;;  %10762 = vmatprep.subr.bf16.mxu0 %v14828_v49  ;;  %v14875_v57 = vcombine.low %v7894_v50, %v7898_v52  ;;  %v14877_v49 = vcombine.low %v7895_v53, %v7899_v55  ;;  %v14886_v4 = vcombine.high %v7903_v0, %v7907_v2  ;;  %v1156_v52 = vsub.s32 4, %v16214_v38 }
 0x4e7   :  { %10926 = vmatprep.subr.bf16.mxu1 %v14830_v3  ;;  %v14884_v3 = vcombine.high %v7902_v25, %v7906_v62  ;;  %v1160_v53 = vsub.s32 5, %v16214_v38  ;;  %v1168_v55 = vsub.s32 7, %v16214_v38 }
 0x4e9   :  { %10763 = vmatpush1.bf16.msra.mxu0 %v14827_v27  ;;  %v7915_v27 = vld [vmem:[#allocation7 + $0xb28] sm:$0xff] }
 0x4ea   :  { %10927 = vmatpush1.bf16.msra.mxu1 %v14829_v9  ;;  %10764 = vmatprep.subr.bf16.mxu0 %v14836_v10  ;;  %v14883_v9 = vcombine.low %v7902_v25, %v7906_v62  ;;  %v14885_v10 = vcombine.low %v7903_v0, %v7907_v2  ;;  %v14894_v31 = vcombine.high %v7911_v7, %v7915_v27 }
 0x4eb   :  { %10928 = vmatprep.subr.bf16.mxu1 %v14838_v58  ;;  %v14892_v58 = vcombine.high %v7910_v5, %v7914_v34 }
 0x4ed   :  { %10765 = vmatpush1.bf16.msra.mxu0 %v14835_v17  ;;  %v7923_v17 = vld [vmem:[#allocation7 + $0xb68] sm:$0xff] }
 0x4ee   :  { %10929 = vmatpush1.bf16.msra.mxu1 %v14837_v18  ;;  %10766 = vmatprep.subr.bf16.mxu0 %v14844_v14  ;;  %v14891_v18 = vcombine.low %v7910_v5, %v7914_v34  ;;  %v14893_v14 = vcombine.low %v7911_v7, %v7915_v27  ;;  %v14902_v36 = vcombine.high %v7919_v59, %v7923_v17 }
 0x4ef   :  { %10930 = vmatprep.subr.bf16.mxu1 %v14846_v19  ;;  %v14900_v19 = vcombine.high %v7918_v13, %v7922_v15 }
 0x4f1   :  { %10767 = vmatpush1.bf16.msra.mxu0 %v14843_v24  ;;  %v7931_v24 = vld [vmem:[#allocation7 + $0xba8] sm:$0xff] }
 0x4f2   :  { %10931 = vmatpush1.bf16.msra.mxu1 %v14845_v12  ;;  %10768 = vmatprep.subr.bf16.mxu0 %v14852_v30  ;;  %v14899_v12 = vcombine.low %v7918_v13, %v7922_v15  ;;  %v14901_v30 = vcombine.low %v7919_v59, %v7923_v17  ;;  %v14910_v32 = vcombine.high %v7927_v22, %v7931_v24 }
 0x4f3   :  { %10932 = vmatprep.subr.bf16.mxu1 %v14854_v26  ;;  %v14908_v26 = vcombine.high %v7926_v20, %v7930_v21 }
 0x4f5   :  { %10769 = vmatpush1.bf16.msra.mxu0 %v14851_v44  ;;  %v7939_v44 = vld [vmem:[#allocation7 + $0xbe8] sm:$0xff] }
 0x4f6   :  { %10933 = vmatpush1.bf16.msra.mxu1 %v14853_v39  ;;  %10770 = vmatprep.subr.bf16.mxu0 %v14860_v63  ;;  %v14907_v39 = vcombine.low %v7926_v20, %v7930_v21  ;;  %v14909_v63 = vcombine.low %v7927_v22, %v7931_v24  ;;  %v14918_v23 = vcombine.high %v7935_v35, %v7939_v44  ;;  %v7950_v21 = vld [vmem:[#allocation7 + $0xc40] sm:$0xff] }
 0x4f7   :  { %10934 = vmatprep.subr.bf16.mxu1 %v14862_v51  ;;  %v14916_v51 = vcombine.high %v7934_v46, %v7938_v33  ;;  %v7954_v24 = vld [vmem:[#allocation7 + $0xc60] sm:$0xff] }
 0x4f9   :  { %10771 = vmatpush1.bf16.msra.mxu0 %v14859_v43  ;;  %v16284_v43 = vld [vmem:[#allocation7 + $0xc28] sm:$0xff] }
 0x4fa   :  { %10935 = vmatpush1.bf16.msra.mxu1 %v14861_v45  ;;  %10772 = vmatprep.subr.bf16.mxu0 %v14868_v48  ;;  %v14915_v45 = vcombine.low %v7934_v46, %v7938_v33  ;;  %v14917_v48 = vcombine.low %v7935_v35, %v7939_v44  ;;  %v14926_v50 = vcombine.high %v16282_v42, %v16284_v43  ;;  %v7958_v35 = vld [vmem:[#allocation7 + $0xc80] sm:$0xff] }
 0x4fb   :  { %10936 = vmatprep.subr.bf16.mxu1 %v14870_v56  ;;  %v14924_v56 = vcombine.high %v16278_v61, %v16280_v29  ;;  %v14925_v46 = vcombine.low %v16282_v42, %v16284_v43  ;;  %v14932_v44 = vcombine.high %v7950_v21, %v7954_v24 }
 0x4fd   :  { %10773 = vmatpush1.bf16.msra.mxu0 %v14867_v28  ;;  %v16293_v28 = vld [vmem:[#allocation6] sm:$0xff] }
 0x4fe   :  { %10937 = vmatpush1.bf16.msra.mxu1 %v14869_v60  ;;  %10774 = vmatprep.subr.bf16.mxu0 %v14876_v16  ;;  %v1157_v60 = vrot.slane %v16293_v28, %v1156_v52  ;;  %v1161_v16 = vrot.slane %v16293_v28, %v1160_v53 }
 0x4ff   :  { %10938 = vmatprep.subr.bf16.mxu1 %v14878_v54  ;;  %v1169_v54 = vrot.slane %v16293_v28, %v1168_v55 }
 0x501   :  { %10775 = vmatpush1.bf16.msra.mxu0 %v14875_v57 }
 0x502   :  { %10939 = vmatpush1.bf16.msra.mxu1 %v14877_v49  ;;  %10776 = vmatprep.subr.bf16.mxu0 %v14884_v3 }
 0x503   :  { %10940 = vmatprep.subr.bf16.mxu1 %v14886_v4 }
 0x505   :  { %10777 = vmatpush1.bf16.msra.mxu0 %v14883_v9 }
 0x506   :  { %10941 = vmatpush1.bf16.msra.mxu1 %v14885_v10  ;;  %10778 = vmatprep.subr.bf16.mxu0 %v14892_v58 }
 0x507   :  { %10942 = vmatprep.subr.bf16.mxu1 %v14894_v31 }
 0x509   :  { %10779 = vmatpush1.bf16.msra.mxu0 %v14891_v18 }
 0x50a   :  { %10943 = vmatpush1.bf16.msra.mxu1 %v14893_v14  ;;  %10780 = vmatprep.subr.bf16.mxu0 %v14900_v19 }
 0x50b   :  { %10944 = vmatprep.subr.bf16.mxu1 %v14902_v36 }
 0x50d   :  { %10781 = vmatpush1.bf16.msra.mxu0 %v14899_v12  ;;  %v7951_v12 = vld [vmem:[#allocation7 + $0xc48] sm:$0xff] }
 0x50e   :  { %10945 = vmatpush1.bf16.msra.mxu1 %v14901_v30  ;;  %10782 = vmatprep.subr.bf16.mxu0 %v14908_v26  ;;  %v7955_v30 = vld [vmem:[#allocation7 + $0xc68] sm:$0xff] }
 0x50f   :  { %10946 = vmatprep.subr.bf16.mxu1 %v14910_v32  ;;  %v14923_v32 = vcombine.low %v16278_v61, %v16280_v29  ;;  %v14931_v61 = vcombine.low %v7950_v21, %v7954_v24  ;;  %v14933_v29 = vcombine.low %v7951_v12, %v7955_v30 }
 0x511   :  { %10783 = vmatpush1.bf16.msra.mxu0 %v14907_v39  ;;  %v14934_v39 = vcombine.high %v7951_v12, %v7955_v30  ;;  %v7998_v30 = vld [vmem:[#allocation7 + $0xdc0] sm:$0xff] }
 0x512   :  { %10947 = vmatpush1.bf16.msra.mxu1 %v14909_v63  ;;  %10784 = vmatprep.subr.bf16.mxu0 %v14916_v51  ;;  %v7962_v63 = vld [vmem:[#allocation7 + $0xca0] sm:$0xff]  ;;  %v7959_v51 = vld [vmem:[#allocation7 + $0xc88] sm:$0xff] }
 0x513   :  { %10948 = vmatprep.subr.bf16.mxu1 %v14918_v23  ;;  %v7963_v23 = vld [vmem:[#allocation7 + $0xca8] sm:$0xff]  ;;  %v14940_v42 = vcombine.high %v7958_v35, %v7962_v63 }
 0x514   :  { %v14942_v43 = vcombine.high %v7959_v51, %v7963_v23 }
 0x515   :  { %10785 = vmatpush1.bf16.msra.mxu0 %v14915_v45 }
 0x516   :  { %10949 = vmatpush1.bf16.msra.mxu1 %v14917_v48  ;;  %10795 = vmatprep.subr.bf16.mxu0 %v14924_v56  ;;  %v7966_v48 = vld [vmem:[#allocation7 + $0xcc0] sm:$0xff] }
 0x517   :  { %10959 = vmatprep.subr.bf16.mxu1 %v14926_v50  ;;  %v7970_v56 = vld [vmem:[#allocation7 + $0xce0] sm:$0xff]  ;;  %v7967_v50 = vld [vmem:[#allocation7 + $0xcc8] sm:$0xff] }
 0x52b   :  { %v7159_v25 = vpop.f32.mrb[4].mxu0  ;;  %v16304_v0 = vpop.f32.mrb[4].mxu1 }
 0x52c   :  { %v15498_v62 = vadd.f32 %v7159_v25, %v1157_v60  ;;  %v7161_v2 = vpop.f32.mrb[5].mxu0  ;;  %v7489_v49 = vpop.f32.mrb[5].mxu1  ;;  %v7971_v60 = vld [vmem:[#allocation7 + $0xce8] sm:$0xff]  ;;  %v14948_v25 = vcombine.high %v7966_v48, %v7970_v56 }
 0x52d   :  { %v15499_v57 = vadd.f32 %v7161_v2, %v1161_v16  ;;  %v7163_v3 = vpop.f32.mrb[6].mxu0  ;;  %v15501_v5 = vadd.f32 %v7489_v49, %v1169_v54  ;;  %v7491_v34 = vpop.f32.mrb[6].mxu1  ;;  %v14939_v16 = vcombine.low %v7958_v35, %v7962_v63  ;;  %v14941_v54 = vcombine.low %v7959_v51, %v7963_v23  ;;  %v7974_v2 = vld [vmem:[#allocation7 + $0xd00] sm:$0xff]  ;;  %v7975_v49 = vld [vmem:[#allocation7 + $0xd08] sm:$0xff] }
 0x52e   :  { %v14535_v4 = vmul.f32 -1.442695, %v15498_v62  ;;  %v7164_v7 = vpop.f32.mrb[7].mxu0  ;;  %v7492_v9 = vpop.f32.mrb[7].mxu1  ;;  %v7979_v3 = vld [vmem:[#allocation7 + $0xd28] sm:$0xff]  ;;  %v8006_v23 = vld [vmem:[#allocation7 + $0xe00] sm:$0xff] }
 0x52f   :  { %v14536_v27 = vmul.f32 -1.442695, %v15499_v57  ;;  %v14538_v10 = vmul.f32 -1.442695, %v15501_v5  ;;  %v14958_v7 = vcombine.high %v7975_v49, %v7979_v3  ;;  %v7986_v9 = vld [vmem:[#allocation7 + $0xd60] sm:$0xff]  ;;  %v8003_v35 = vld [vmem:[#allocation7 + $0xde8] sm:$0xff] }
 0x530   :  { %15788 = vpow2.f32 %v14535_v4  ;;  %v14947_v4 = vcombine.low %v7966_v48, %v7970_v56 }
 0x531   :  { %15790 = vpow2.f32 %v14536_v27  ;;  %v7982_v27 = vld [vmem:[#allocation7 + $0xd40] sm:$0xff] }
 0x532   :  { %15792 = vpow2.f32 %v14538_v10  ;;  %v7983_v10 = vld [vmem:[#allocation7 + $0xd48] sm:$0xff]  ;;  %v14963_v21 = vcombine.low %v7982_v27, %v7986_v9 }
 0x53a   :  { %v15789_v58 = vpop.eup %15788 }
 0x53b   :  { %v7522_v31 = vadd.f32 1.0, %v15789_v58  ;;  %v15791_v13 = vpop.eup %15790  ;;  %v7987_v58 = vld [vmem:[#allocation7 + $0xd68] sm:$0xff] }
 0x53c   :  { %v15793_v15 = vpop.eup %15792  ;;  %v7523_v59 = vadd.f32 1.0, %v15791_v13 }
 0x53d   :  { %15794 = vrcp.f32 %v7522_v31  ;;  %v7525_v17 = vadd.f32 1.0, %v15793_v15  ;;  %v1164_v31 = vsub.s32 6, %v16214_v38  ;;  %v14957_v15 = vcombine.low %v7975_v49, %v7979_v3  ;;  %v8022_v3 = vld [vmem:[#allocation7 + $0xe80] sm:$0xff] }
 0x53e   :  { %15796 = vrcp.f32 %v7523_v59  ;;  %v14964_v59 = vcombine.high %v7982_v27, %v7986_v9 }
 0x53f   :  { %15798 = vrcp.f32 %v7525_v17  ;;  %v14966_v17 = vcombine.high %v7983_v10, %v7987_v58 }
 0x547   :  { %v15795_v18 = vpop.eup %15794 }
 0x548   :  { %v15797_v14 = vpop.eup %15796  ;;  %v7546_v19 = vmul.f32 %v15795_v18, %v15498_v62  ;;  %v14950_v62 = vcombine.high %v7967_v50, %v7971_v60  ;;  %v7990_v18 = vld [vmem:[#allocation7 + $0xd80] sm:$0xff] }
 0x549   :  { %v15799_v36 = vpop.eup %15798  ;;  %v7547_v20 = vmul.f32 %v15797_v14, %v15499_v57  ;;  %v7978_v57 = vld [vmem:[#allocation7 + $0xd20] sm:$0xff] }
 0x54a   :  { %v7549_v22 = vmul.f32 %v15799_v36, %v15501_v5  ;;  %v16312_v33 = vpack.c.bf16 %v7546_v19, %v7546_v19  ;;  %v14949_v5 = vcombine.low %v7967_v50, %v7971_v60  ;;  %v14956_v34 = vcombine.high %v7974_v2, %v7978_v57  ;;  %v7994_v14 = vld [vmem:[#allocation7 + $0xda0] sm:$0xff]  ;;  %v7991_v19 = vld [vmem:[#allocation7 + $0xd88] sm:$0xff] }
 0x54b   :  { %v16306_v26 = vpack.c.bf16 %v7547_v20, %v7547_v20  ;;  %v14955_v13 = vcombine.low %v7974_v2, %v7978_v57  ;;  %v7995_v36 = vld [vmem:[#allocation7 + $0xda8] sm:$0xff]  ;;  %v1165_v20 = vrot.slane %v16293_v28, %v1164_v31  ;;  %v14972_v24 = vcombine.high %v7990_v18, %v7994_v14  ;;  %v8014_v60 = vld [vmem:[#allocation7 + $0xe40] sm:$0xff] }
 0x54c   :  { %v16316_v45 = vpack.c.bf16 %v7549_v22, %v7549_v22  ;;  %v14965_v22 = vcombine.low %v7983_v10, %v7987_v58  ;;  %v14974_v12 = vcombine.high %v7991_v19, %v7995_v36  ;;  %v14973_v63 = vcombine.low %v7991_v19, %v7995_v36  ;;  %v8030_v58 = vld [vmem:[#allocation7 + $0xec0] sm:$0xff] }
 0x54d   :  { %10786 = vmatprep.mubr.bf16.mxu0 %v16306_v26  ;;  %10950 = vmatprep.mubr.bf16.mxu1 %v16306_v26 }
 0x54e   :  { %10787 = vmatmul.mubr.bf16.vlgmr.msra.gmra.mrb[8].mxu0 %v16312_v33  ;;  %10951 = vmatmul.mubr.bf16.vlgmr.msra.gmra.mrb[8].mxu1 %v16312_v33 }
 0x54f   :  { %10796 = vmatpush1.bf16.msra.mxu0 %v14923_v32  ;;  %10960 = vmatpush1.bf16.msra.mxu1 %v14925_v46  ;;  %v8002_v32 = vld [vmem:[#allocation7 + $0xde0] sm:$0xff]  ;;  %v7999_v46 = vld [vmem:[#allocation7 + $0xdc8] sm:$0xff] }
 0x550   :  { %10827 = vmatprep.mubr.bf16.mxu0 %v16316_v45  ;;  %10991 = vmatprep.mubr.bf16.mxu1 %v16316_v45  ;;  %v14980_v28 = vcombine.high %v7998_v30, %v8002_v32  ;;  %v14982_v51 = vcombine.high %v7999_v46, %v8003_v35  ;;  %v14979_v48 = vcombine.low %v7998_v30, %v8002_v32 }
 0x551   :  { %10797 = vmatprep.subr.bf16.mxu0 %v14932_v44  ;;  %10961 = vmatprep.subr.bf16.mxu1 %v14934_v39  ;;  %v16327_v44 = vadd.f32 %v16304_v0, %v1165_v20  ;;  %v14971_v39 = vcombine.low %v7990_v18, %v7994_v14  ;;  %v14981_v56 = vcombine.low %v7999_v46, %v8003_v35  ;;  %v8038_v20 = vld [vmem:[#allocation7 + $0xf00] sm:$0xff] }
 0x553   :  { %10798 = vmatpush1.bf16.msra.mxu0 %v14931_v61  ;;  %10962 = vmatpush1.bf16.msra.mxu1 %v14933_v29  ;;  %v8010_v61 = vld [vmem:[#allocation7 + $0xe20] sm:$0xff]  ;;  %v8007_v29 = vld [vmem:[#allocation7 + $0xe08] sm:$0xff] }
 0x554   :  { %10799 = vmatprep.subr.bf16.mxu0 %v14940_v42  ;;  %10963 = vmatprep.subr.bf16.mxu1 %v14942_v43  ;;  %v8011_v42 = vld [vmem:[#allocation7 + $0xe28] sm:$0xff]  ;;  %v14537_v43 = vmul.f32 -1.442695, %v16327_v44  ;;  %v14988_v0 = vcombine.high %v8006_v23, %v8010_v61 }
 0x555   :  { %v14990_v50 = vcombine.high %v8007_v29, %v8011_v42  ;;  %v14989_v2 = vcombine.low %v8007_v29, %v8011_v42 }
 0x556   :  { %15800 = vpow2.f32 %v14537_v43  ;;  %v8054_v43 = vld [vmem:[#allocation7 + $0xf80] sm:$0xff] }
 0x557   :  { %10800 = vmatpush1.bf16.msra.mxu0 %v14939_v16  ;;  %10964 = vmatpush1.bf16.msra.mxu1 %v14941_v54  ;;  %v8018_v16 = vld [vmem:[#allocation7 + $0xe60] sm:$0xff]  ;;  %v8015_v54 = vld [vmem:[#allocation7 + $0xe48] sm:$0xff] }
 0x558   :  { %10801 = vmatprep.subr.bf16.mxu0 %v14948_v25  ;;  %10965 = vmatprep.subr.bf16.mxu1 %v14950_v62  ;;  %v8019_v25 = vld [vmem:[#allocation7 + $0xe68] sm:$0xff]  ;;  %v14987_v62 = vcombine.low %v8006_v23, %v8010_v61  ;;  %v14996_v57 = vcombine.high %v8014_v60, %v8018_v16 }
 0x559   :  { %v14998_v49 = vcombine.high %v8015_v54, %v8019_v25  ;;  %v14997_v27 = vcombine.low %v8015_v54, %v8019_v25  ;;  %v8062_v25 = vld [vmem:[#allocation7 + $0xfc0] sm:$0xff] }
 0x55b   :  { %10802 = vmatpush1.bf16.msra.mxu0 %v14947_v4  ;;  %10966 = vmatpush1.bf16.msra.mxu1 %v14949_v5  ;;  %v8026_v4 = vld [vmem:[#allocation7 + $0xea0] sm:$0xff]  ;;  %v8023_v5 = vld [vmem:[#allocation7 + $0xe88] sm:$0xff] }
 0x55c   :  { %10803 = vmatprep.subr.bf16.mxu0 %v14956_v34  ;;  %10967 = vmatprep.subr.bf16.mxu1 %v14958_v7  ;;  %v8027_v34 = vld [vmem:[#allocation7 + $0xea8] sm:$0xff]  ;;  %v14995_v7 = vcombine.low %v8014_v60, %v8018_v16  ;;  %v15004_v9 = vcombine.high %v8022_v3, %v8026_v4 }
 0x55d   :  { %v15006_v10 = vcombine.high %v8023_v5, %v8027_v34  ;;  %v15005_v18 = vcombine.low %v8023_v5, %v8027_v34  ;;  %v7560_v34 = vld [vmem:[#allocation7 + $0x10] sm:$0xff] }
 0x55f   :  { %10804 = vmatpush1.bf16.msra.mxu0 %v14955_v13  ;;  %10968 = vmatpush1.bf16.msra.mxu1 %v14957_v15  ;;  %v8034_v13 = vld [vmem:[#allocation7 + $0xee0] sm:$0xff]  ;;  %v8031_v15 = vld [vmem:[#allocation7 + $0xec8] sm:$0xff] }
 0x560   :  { %10805 = vmatprep.subr.bf16.mxu0 %v14964_v59  ;;  %10969 = vmatprep.subr.bf16.mxu1 %v14966_v17  ;;  %v8035_v59 = vld [vmem:[#allocation7 + $0xee8] sm:$0xff]  ;;  %v15003_v17 = vcombine.low %v8022_v3, %v8026_v4  ;;  %v15801_v14 = vpop.eup %15800  ;;  %v15012_v19 = vcombine.high %v8030_v58, %v8034_v13  ;;  %v15011_v30 = vcombine.low %v8030_v58, %v8034_v13 }
 0x561   :  { %v15014_v36 = vcombine.high %v8031_v15, %v8035_v59  ;;  %v15013_v32 = vcombine.low %v8031_v15, %v8035_v59 }
 0x563   :  { %10806 = vmatpush1.bf16.msra.mxu0 %v14963_v21  ;;  %10970 = vmatpush1.bf16.msra.mxu1 %v14965_v22  ;;  %v8042_v21 = vld [vmem:[#allocation7 + $0xf20] sm:$0xff]  ;;  %v8039_v22 = vld [vmem:[#allocation7 + $0xf08] sm:$0xff] }
 0x564   :  { %10807 = vmatprep.subr.bf16.mxu0 %v14972_v24  ;;  %10971 = vmatprep.subr.bf16.mxu1 %v14974_v12  ;;  %v8043_v24 = vld [vmem:[#allocation7 + $0xf28] sm:$0xff]  ;;  %v7524_v12 = vadd.f32 1.0, %v15801_v14  ;;  %v15020_v46 = vcombine.high %v8038_v20, %v8042_v21  ;;  %v15019_v23 = vcombine.low %v8038_v20, %v8042_v21  ;;  %v7572_v14 = vld [vmem:[#allocation7 + $0x70] sm:$0xff] }
 0x565   :  { %v15022_v35 = vcombine.high %v8039_v22, %v8043_v24  ;;  %v15021_v61 = vcombine.low %v8039_v22, %v8043_v24 }
 0x566   :  { %15802 = vrcp.f32 %v7524_v12 }
 0x567   :  { %10808 = vmatpush1.bf16.msra.mxu0 %v14971_v39  ;;  %10972 = vmatpush1.bf16.msra.mxu1 %v14973_v63  ;;  %v8046_v39 = vld [vmem:[#allocation7 + $0xf40] sm:$0xff] }
 0x568   :  { %10809 = vmatprep.subr.bf16.mxu0 %v14980_v28  ;;  %10973 = vmatprep.subr.bf16.mxu1 %v14982_v51  ;;  %v8050_v63 = vld [vmem:[#allocation7 + $0xf60] sm:$0xff]  ;;  %v8047_v28 = vld [vmem:[#allocation7 + $0xf48] sm:$0xff] }
 0x569   :  { %v8051_v51 = vld [vmem:[#allocation7 + $0xf68] sm:$0xff]  ;;  %v15028_v29 = vcombine.high %v8046_v39, %v8050_v63 }
 0x56a   :  { %v15030_v42 = vcombine.high %v8047_v28, %v8051_v51  ;;  %v15029_v60 = vcombine.low %v8047_v28, %v8051_v51  ;;  %v7584_v51 = vld [vmem:[#allocation7 + $0xd0] sm:$0xff] }
 0x56b   :  { %10810 = vmatpush1.bf16.msra.mxu0 %v14979_v48  ;;  %10974 = vmatpush1.bf16.msra.mxu1 %v14981_v56  ;;  %v8058_v48 = vld [vmem:[#allocation7 + $0xfa0] sm:$0xff]  ;;  %v8055_v56 = vld [vmem:[#allocation7 + $0xf88] sm:$0xff] }
 0x56c   :  { %10811 = vmatprep.subr.bf16.mxu0 %v14988_v0  ;;  %10975 = vmatprep.subr.bf16.mxu1 %v14990_v50  ;;  %v8059_v0 = vld [vmem:[#allocation7 + $0xfa8] sm:$0xff]  ;;  %v15027_v50 = vcombine.low %v8046_v39, %v8050_v63  ;;  %v15036_v16 = vcombine.high %v8054_v43, %v8058_v48 }
 0x56d   :  { %v15038_v54 = vcombine.high %v8055_v56, %v8059_v0  ;;  %v15037_v3 = vcombine.low %v8055_v56, %v8059_v0  ;;  %v7592_v0 = vld [vmem:[#allocation7 + $0x110] sm:$0xff] }
 0x56f   :  { %10812 = vmatpush1.bf16.msra.mxu0 %v14987_v62  ;;  %10976 = vmatpush1.bf16.msra.mxu1 %v14989_v2  ;;  %v8066_v62 = vld [vmem:[#allocation7 + $0xfe0] sm:$0xff]  ;;  %v8063_v2 = vld [vmem:[#allocation7 + $0xfc8] sm:$0xff] }
 0x570   :  { %10813 = vmatprep.subr.bf16.mxu0 %v14996_v57  ;;  %10977 = vmatprep.subr.bf16.mxu1 %v14998_v49  ;;  %v8067_v57 = vld [vmem:[#allocation7 + $0xfe8] sm:$0xff]  ;;  %v15035_v49 = vcombine.low %v8054_v43, %v8058_v48  ;;  %v15044_v4 = vcombine.high %v8062_v25, %v8066_v62  ;;  %v15043_v58 = vcombine.low %v8062_v25, %v8066_v62 }
 0x571   :  { %v15046_v5 = vcombine.high %v8063_v2, %v8067_v57  ;;  %v15045_v13 = vcombine.low %v8063_v2, %v8067_v57  ;;  %v7600_v2 = vld [vmem:[#allocation7 + $0x150] sm:$0xff] }
 0x572   :  { %v7604_v57 = vld [vmem:[#allocation7 + $0x170] sm:$0xff] }
 0x573   :  { %10814 = vmatpush1.bf16.msra.mxu0 %v14995_v7  ;;  %10978 = vmatpush1.bf16.msra.mxu1 %v14997_v27  ;;  %v15803_v7 = vpop.eup %15802  ;;  %v7564_v27 = vld [vmem:[#allocation7 + $0x30] sm:$0xff] }
 0x574   :  { %10815 = vmatprep.subr.bf16.mxu0 %v15004_v9  ;;  %10979 = vmatprep.subr.bf16.mxu1 %v15006_v10  ;;  %v7561_v9 = vld [vmem:[#allocation7 + $0x18] sm:$0xff]  ;;  %v7548_v15 = vmul.f32 %v15803_v7, %v16327_v44  ;;  %v14544_v59 = vcombine.high %v7560_v34, %v7564_v27  ;;  %v14543_v20 = vcombine.low %v7560_v34, %v7564_v27  ;;  %v7580_v44 = vld [vmem:[#allocation7 + $0xb0] sm:$0xff] }
 0x575   :  { %v7565_v10 = vld [vmem:[#allocation7 + $0x38] sm:$0xff]  ;;  %v14584_v34 = vcombine.high %v7600_v2, %v7604_v57  ;;  %v7608_v27 = vld [vmem:[#allocation7 + $0x190] sm:$0xff] }
 0x576   :  { %v16331_v21 = vpack.c.bf16 %v7548_v15, %v7548_v15  ;;  %v14545_v22 = vcombine.low %v7561_v9, %v7565_v10 }
 0x577   :  { %10816 = vmatpush1.bf16.msra.mxu0 %v15003_v17  ;;  %10980 = vmatpush1.bf16.msra.mxu1 %v15005_v18  ;;  %v14546_v17 = vcombine.high %v7561_v9, %v7565_v10  ;;  %v7568_v18 = vld [vmem:[#allocation7 + $0x50] sm:$0xff]  ;;  %v7609_v10 = vld [vmem:[#allocation7 + $0x198] sm:$0xff] }
 0x578   :  { %10817 = vmatprep.subr.bf16.mxu0 %v15012_v19  ;;  %10981 = vmatprep.subr.bf16.mxu1 %v15014_v36  ;;  %v7569_v19 = vld [vmem:[#allocation7 + $0x58] sm:$0xff]  ;;  %v14552_v24 = vcombine.high %v7568_v18, %v7572_v14  ;;  %v7612_v9 = vld [vmem:[#allocation7 + $0x1b0] sm:$0xff] }
 0x579   :  { %v7573_v36 = vld [vmem:[#allocation7 + $0x78] sm:$0xff] }
 0x57a   :  { %v14554_v12 = vcombine.high %v7569_v19, %v7573_v36  ;;  %v14553_v39 = vcombine.low %v7569_v19, %v7573_v36  ;;  %v7617_v19 = vld [vmem:[#allocation7 + $0x1d8] sm:$0xff] }
 0x57b   :  { %10818 = vmatpush1.bf16.msra.mxu0 %v15011_v30  ;;  %10982 = vmatpush1.bf16.msra.mxu1 %v15013_v32  ;;  %v7576_v30 = vld [vmem:[#allocation7 + $0x90] sm:$0xff]  ;;  %v7577_v32 = vld [vmem:[#allocation7 + $0x98] sm:$0xff] }
 0x57c   :  { %10819 = vmatprep.subr.bf16.mxu0 %v15020_v46  ;;  %10983 = vmatprep.subr.bf16.mxu1 %v15022_v35  ;;  %v7581_v46 = vld [vmem:[#allocation7 + $0xb8] sm:$0xff]  ;;  %v14551_v35 = vcombine.low %v7568_v18, %v7572_v14  ;;  %v14560_v63 = vcombine.high %v7576_v30, %v7580_v44  ;;  %v7616_v18 = vld [vmem:[#allocation7 + $0x1d0] sm:$0xff] }
 0x57d   :  { %v14562_v28 = vcombine.high %v7577_v32, %v7581_v46  ;;  %v14561_v43 = vcombine.low %v7577_v32, %v7581_v46  ;;  %v7620_v14 = vld [vmem:[#allocation7 + $0x1f0] sm:$0xff]  ;;  %v7621_v36 = vld [vmem:[#allocation7 + $0x1f8] sm:$0xff] }
 0x57e   :  { %v7625_v32 = vld [vmem:[#allocation7 + $0x218] sm:$0xff] }
 0x57f   :  { %10820 = vmatpush1.bf16.msra.mxu0 %v15019_v23  ;;  %10984 = vmatpush1.bf16.msra.mxu1 %v15021_v61  ;;  %v7588_v23 = vld [vmem:[#allocation7 + $0xf0] sm:$0xff]  ;;  %v7585_v61 = vld [vmem:[#allocation7 + $0xd8] sm:$0xff] }
 0x580   :  { %10821 = vmatprep.subr.bf16.mxu0 %v15028_v29  ;;  %10985 = vmatprep.subr.bf16.mxu1 %v15030_v42  ;;  %v7589_v29 = vld [vmem:[#allocation7 + $0xf8] sm:$0xff]  ;;  %v14559_v42 = vcombine.low %v7576_v30, %v7580_v44  ;;  %v14568_v48 = vcombine.high %v7584_v51, %v7588_v23  ;;  %v7624_v30 = vld [vmem:[#allocation7 + $0x210] sm:$0xff] }
 0x581   :  { %v14570_v56 = vcombine.high %v7585_v61, %v7589_v29  ;;  %v7628_v44 = vld [vmem:[#allocation7 + $0x230] sm:$0xff]  ;;  %v7629_v46 = vld [vmem:[#allocation7 + $0x238] sm:$0xff] }
 0x583   :  { %10822 = vmatpush1.bf16.msra.mxu0 %v15027_v50  ;;  %10986 = vmatpush1.bf16.msra.mxu1 %v15029_v60  ;;  %v7596_v50 = vld [vmem:[#allocation7 + $0x130] sm:$0xff]  ;;  %v7597_v60 = vld [vmem:[#allocation7 + $0x138] sm:$0xff] }
 0x584   :  { %10823 = vmatprep.subr.bf16.mxu0 %v15036_v16  ;;  %10987 = vmatprep.subr.bf16.mxu1 %v15038_v54  ;;  %v14567_v16 = vcombine.low %v7584_v51, %v7588_v23  ;;  %v14569_v54 = vcombine.low %v7585_v61, %v7589_v29  ;;  %v14576_v25 = vcombine.high %v7592_v0, %v7596_v50  ;;  %v7632_v51 = vld [vmem:[#allocation7 + $0x250] sm:$0xff]  ;;  %v7633_v61 = vld [vmem:[#allocation7 + $0x258] sm:$0xff] }
 0x585   :  { %v7636_v23 = vld [vmem:[#allocation7 + $0x270] sm:$0xff]  ;;  %v7637_v29 = vld [vmem:[#allocation7 + $0x278] sm:$0xff] }
 0x587   :  { %10824 = vmatpush1.bf16.msra.mxu0 %v15035_v49  ;;  %10988 = vmatpush1.bf16.msra.mxu1 %v15037_v3  ;;  %v7601_v49 = vld [vmem:[#allocation7 + $0x158] sm:$0xff] }
 0x588   :  { %10825 = vmatprep.subr.bf16.mxu0 %v15044_v4  ;;  %10989 = vmatprep.subr.bf16.mxu1 %v15046_v5  ;;  %v7605_v3 = vld [vmem:[#allocation7 + $0x178] sm:$0xff]  ;;  %v14575_v4 = vcombine.low %v7592_v0, %v7596_v50  ;;  %v7640_v0 = vld [vmem:[#allocation7 + $0x290] sm:$0xff] }
 0x589   :  { %v14586_v7 = vcombine.high %v7601_v49, %v7605_v3  ;;  %v14585_v15 = vcombine.low %v7601_v49, %v7605_v3  ;;  %v7644_v50 = vld [vmem:[#allocation7 + $0x2b0] sm:$0xff]  ;;  %v7649_v49 = vld [vmem:[#allocation7 + $0x2d8] sm:$0xff] }
 0x58a   :  { %v7653_v3 = vld [vmem:[#allocation7 + $0x2f8] sm:$0xff] }
 0x58b   :  { %10826 = vmatpush1.bf16.msra.mxu0 %v15043_v58  ;;  %10990 = vmatpush1.bf16.msra.mxu1 %v15045_v13  ;;  %v7613_v58 = vld [vmem:[#allocation7 + $0x1b8] sm:$0xff]  ;;  %v14583_v13 = vcombine.low %v7600_v2, %v7604_v57  ;;  %v7648_v2 = vld [vmem:[#allocation7 + $0x2d0] sm:$0xff] }
 0x58c   :  { %11000 = vmatprep.subr.bf16.mxu0 %v14544_v59  ;;  %11164 = vmatprep.subr.bf16.mxu1 %v14546_v17  ;;  %v14592_v59 = vcombine.high %v7608_v27, %v7612_v9  ;;  %v14594_v17 = vcombine.high %v7609_v10, %v7613_v58  ;;  %v7652_v57 = vld [vmem:[#allocation7 + $0x2f0] sm:$0xff] }
 0x58e   :  { %10828 = vmatmul.mubr.bf16.vlgmr.msra.gmra.mrb[8].mxu0 %v16331_v21  ;;  %10992 = vmatmul.mubr.bf16.vlgmr.msra.gmra.mrb[8].mxu1 %v16331_v21 }
 0x58f   :  { %11001 = vmatpush1.bf16.msra.mxu0 %v14543_v20  ;;  %11032 = vmatprep.mubr.bf16.mxu0 %v16233_v40  ;;  %v14591_v20 = vcombine.low %v7608_v27, %v7612_v9  ;;  %v7656_v27 = vld [vmem:[#allocation7 + $0x310] sm:$0xff] }
 0x590   :  { %11165 = vmatpush1.bf16.msra.mxu1 %v14545_v22  ;;  %11196 = vmatprep.mubr.bf16.mxu1 %v16233_v40  ;;  %v7593_v40 = vld [vmem:[#allocation7 + $0x118] sm:$0xff]  ;;  %v14593_v22 = vcombine.low %v7609_v10, %v7613_v58  ;;  %v7660_v9 = vld [vmem:[#allocation7 + $0x330] sm:$0xff] }
 0x591   :  { %11002 = vmatprep.subr.bf16.mxu0 %v14552_v24  ;;  %11166 = vmatprep.subr.bf16.mxu1 %v14554_v12  ;;  %v14578_v62 = vcombine.high %v7593_v40, %v7597_v60  ;;  %v14577_v5 = vcombine.low %v7593_v40, %v7597_v60  ;;  %v14600_v24 = vcombine.high %v7616_v18, %v7620_v14  ;;  %v7641_v40 = vld [vmem:[#allocation7 + $0x298] sm:$0xff] }
 0x592   :  { %v14602_v12 = vcombine.high %v7617_v19, %v7621_v36  ;;  %v7645_v60 = vld [vmem:[#allocation7 + $0x2b8] sm:$0xff] }
 0x593   :  { %11003 = vmatpush1.bf16.msra.mxu0 %v14551_v35  ;;  %v14599_v35 = vcombine.low %v7616_v18, %v7620_v14  ;;  %v7657_v10 = vld [vmem:[#allocation7 + $0x318] sm:$0xff]  ;;  %v7664_v18 = vld [vmem:[#allocation7 + $0x350] sm:$0xff] }
 0x594   :  { %11167 = vmatpush1.bf16.msra.mxu1 %v14553_v39  ;;  %11004 = vmatprep.subr.bf16.mxu0 %v14560_v63  ;;  %v14601_v39 = vcombine.low %v7617_v19, %v7621_v36  ;;  %v14608_v63 = vcombine.high %v7624_v30, %v7628_v44  ;;  %v7661_v58 = vld [vmem:[#allocation7 + $0x338] sm:$0xff]  ;;  %v7668_v14 = vld [vmem:[#allocation7 + $0x370] sm:$0xff] }
 0x595   :  { %11168 = vmatprep.subr.bf16.mxu1 %v14562_v28  ;;  %v14610_v28 = vcombine.high %v7625_v32, %v7629_v46  ;;  %v7665_v19 = vld [vmem:[#allocation7 + $0x358] sm:$0xff] }
 0x596   :  { %v7669_v36 = vld [vmem:[#allocation7 + $0x378] sm:$0xff] }
 0x597   :  { %11005 = vmatpush1.bf16.msra.mxu0 %v14559_v42  ;;  %v14607_v42 = vcombine.low %v7624_v30, %v7628_v44  ;;  %v7672_v30 = vld [vmem:[#allocation7 + $0x390] sm:$0xff] }
 0x598   :  { %11169 = vmatpush1.bf16.msra.mxu1 %v14561_v43  ;;  %11006 = vmatprep.subr.bf16.mxu0 %v14568_v48  ;;  %v14609_v43 = vcombine.low %v7625_v32, %v7629_v46  ;;  %v14616_v48 = vcombine.high %v7632_v51, %v7636_v23  ;;  %v7676_v44 = vld [vmem:[#allocation7 + $0x3b0] sm:$0xff]  ;;  %v7673_v32 = vld [vmem:[#allocation7 + $0x398] sm:$0xff] }
 0x599   :  { %11170 = vmatprep.subr.bf16.mxu1 %v14570_v56  ;;  %v14618_v56 = vcombine.high %v7633_v61, %v7637_v29  ;;  %v7677_v46 = vld [vmem:[#allocation7 + $0x3b8] sm:$0xff] }
 0x59b   :  { %11007 = vmatpush1.bf16.msra.mxu0 %v14567_v16  ;;  %v14615_v16 = vcombine.low %v7632_v51, %v7636_v23  ;;  %v7680_v51 = vld [vmem:[#allocation7 + $0x3d0] sm:$0xff] }
 0x59c   :  { %11171 = vmatpush1.bf16.msra.mxu1 %v14569_v54  ;;  %11008 = vmatprep.subr.bf16.mxu0 %v14576_v25  ;;  %v14617_v54 = vcombine.low %v7633_v61, %v7637_v29  ;;  %v14624_v25 = vcombine.high %v7640_v0, %v7644_v50  ;;  %v7684_v23 = vld [vmem:[#allocation7 + $0x3f0] sm:$0xff]  ;;  %v7681_v61 = vld [vmem:[#allocation7 + $0x3d8] sm:$0xff] }
 0x59d   :  { %11172 = vmatprep.subr.bf16.mxu1 %v14578_v62  ;;  %v14626_v62 = vcombine.high %v7641_v40, %v7645_v60  ;;  %v7685_v29 = vld [vmem:[#allocation7 + $0x3f8] sm:$0xff] }
 0x59f   :  { %11009 = vmatpush1.bf16.msra.mxu0 %v14575_v4  ;;  %v14623_v4 = vcombine.low %v7640_v0, %v7644_v50  ;;  %v7688_v0 = vld [vmem:[#allocation7 + $0x410] sm:$0xff] }
 0x5a0   :  { %11173 = vmatpush1.bf16.msra.mxu1 %v14577_v5  ;;  %11010 = vmatprep.subr.bf16.mxu0 %v14584_v34  ;;  %v14625_v5 = vcombine.low %v7641_v40, %v7645_v60  ;;  %v14632_v34 = vcombine.high %v7648_v2, %v7652_v57  ;;  %v7692_v50 = vld [vmem:[#allocation7 + $0x430] sm:$0xff]  ;;  %v7689_v40 = vld [vmem:[#allocation7 + $0x418] sm:$0xff] }
 0x5a1   :  { %11174 = vmatprep.subr.bf16.mxu1 %v14586_v7  ;;  %v14634_v7 = vcombine.high %v7649_v49, %v7653_v3  ;;  %v7693_v60 = vld [vmem:[#allocation7 + $0x438] sm:$0xff] }
 0x5a3   :  { %11011 = vmatpush1.bf16.msra.mxu0 %v14583_v13  ;;  %v14631_v13 = vcombine.low %v7648_v2, %v7652_v57  ;;  %v7696_v2 = vld [vmem:[#allocation7 + $0x450] sm:$0xff] }
 0x5a4   :  { %11175 = vmatpush1.bf16.msra.mxu1 %v14585_v15  ;;  %11012 = vmatprep.subr.bf16.mxu0 %v14592_v59  ;;  %v14633_v15 = vcombine.low %v7649_v49, %v7653_v3  ;;  %v14640_v59 = vcombine.high %v7656_v27, %v7660_v9  ;;  %v7700_v57 = vld [vmem:[#allocation7 + $0x470] sm:$0xff]  ;;  %v14671_v49 = vcombine.low %v7688_v0, %v7692_v50  ;;  %v7697_v3 = vld [vmem:[#allocation7 + $0x458] sm:$0xff] }
 0x5a5   :  { %11176 = vmatprep.subr.bf16.mxu1 %v14594_v17  ;;  %v14642_v17 = vcombine.high %v7657_v10, %v7661_v58 }
 0x5a7   :  { %11013 = vmatpush1.bf16.msra.mxu0 %v14591_v20  ;;  %v14639_v20 = vcombine.low %v7656_v27, %v7660_v9  ;;  %v7708_v27 = vld [vmem:[#allocation7 + $0x4b0] sm:$0xff] }
 0x5a8   :  { %11177 = vmatpush1.bf16.msra.mxu1 %v14593_v22  ;;  %11014 = vmatprep.subr.bf16.mxu0 %v14600_v24  ;;  %v14641_v22 = vcombine.low %v7657_v10, %v7661_v58  ;;  %v14648_v24 = vcombine.high %v7664_v18, %v7668_v14  ;;  %v7705_v10 = vld [vmem:[#allocation7 + $0x498] sm:$0xff] }
 0x5a9   :  { %11178 = vmatprep.subr.bf16.mxu1 %v14602_v12  ;;  %v14650_v12 = vcombine.high %v7665_v19, %v7669_v36  ;;  %v7709_v58 = vld [vmem:[#allocation7 + $0x4b8] sm:$0xff] }
 0x5ab   :  { %11015 = vmatpush1.bf16.msra.mxu0 %v14599_v35  ;;  %v14647_v35 = vcombine.low %v7664_v18, %v7668_v14  ;;  %v7712_v18 = vld [vmem:[#allocation7 + $0x4d0] sm:$0xff] }
 0x5ac   :  { %11179 = vmatpush1.bf16.msra.mxu1 %v14601_v39  ;;  %11016 = vmatprep.subr.bf16.mxu0 %v14608_v63  ;;  %v14649_v39 = vcombine.low %v7665_v19, %v7669_v36  ;;  %v14656_v63 = vcombine.high %v7672_v30, %v7676_v44  ;;  %v7716_v14 = vld [vmem:[#allocation7 + $0x4f0] sm:$0xff]  ;;  %v7713_v19 = vld [vmem:[#allocation7 + $0x4d8] sm:$0xff] }
 0x5ad   :  { %11180 = vmatprep.subr.bf16.mxu1 %v14610_v28  ;;  %v14658_v28 = vcombine.high %v7673_v32, %v7677_v46  ;;  %v7717_v36 = vld [vmem:[#allocation7 + $0x4f8] sm:$0xff] }
 0x5af   :  { %11017 = vmatpush1.bf16.msra.mxu0 %v14607_v42  ;;  %v14655_v42 = vcombine.low %v7672_v30, %v7676_v44  ;;  %v7724_v30 = vld [vmem:[#allocation7 + $0x530] sm:$0xff]  ;;  %v7721_v44 = vld [vmem:[#allocation7 + $0x518] sm:$0xff] }
 0x5b0   :  { %11181 = vmatpush1.bf16.msra.mxu1 %v14609_v43  ;;  %11018 = vmatprep.subr.bf16.mxu0 %v14616_v48  ;;  %v14657_v43 = vcombine.low %v7673_v32, %v7677_v46  ;;  %v14664_v48 = vcombine.high %v7680_v51, %v7684_v23  ;;  %v7725_v32 = vld [vmem:[#allocation7 + $0x538] sm:$0xff]  ;;  %v14697_v46 = vcombine.low %v7713_v19, %v7717_v36 }
 0x5b1   :  { %11182 = vmatprep.subr.bf16.mxu1 %v14618_v56  ;;  %v14666_v56 = vcombine.high %v7681_v61, %v7685_v29 }
 0x5b3   :  { %11019 = vmatpush1.bf16.msra.mxu0 %v14615_v16  ;;  %v14663_v16 = vcombine.low %v7680_v51, %v7684_v23  ;;  %v7729_v51 = vld [vmem:[#allocation7 + $0x558] sm:$0xff] }
 0x5b4   :  { %11183 = vmatpush1.bf16.msra.mxu1 %v14617_v54  ;;  %11020 = vmatprep.subr.bf16.mxu0 %v14624_v25  ;;  %v14665_v54 = vcombine.low %v7681_v61, %v7685_v29  ;;  %v14672_v25 = vcombine.high %v7688_v0, %v7692_v50  ;;  %v7733_v23 = vld [vmem:[#allocation7 + $0x578] sm:$0xff]  ;;  %v14705_v29 = vcombine.low %v7721_v44, %v7725_v32 }
 0x5b5   :  { %11184 = vmatprep.subr.bf16.mxu1 %v14626_v62  ;;  %v14674_v62 = vcombine.high %v7689_v40, %v7693_v60  ;;  %v7737_v0 = vld [vmem:[#allocation7 + $0x598] sm:$0xff] }
 0x5b6   :  { %v7741_v50 = vld [vmem:[#allocation7 + $0x5b8] sm:$0xff] }
 0x5b7   :  { %11021 = vmatpush1.bf16.msra.mxu0 %v14623_v4  ;;  %v7701_v4 = vld [vmem:[#allocation7 + $0x478] sm:$0xff] }
 0x5b8   :  { %11185 = vmatpush1.bf16.msra.mxu1 %v14625_v5  ;;  %11022 = vmatprep.subr.bf16.mxu0 %v14632_v34  ;;  %v14673_v5 = vcombine.low %v7689_v40, %v7693_v60  ;;  %v14680_v34 = vcombine.high %v7696_v2, %v7700_v57  ;;  %v14682_v9 = vcombine.high %v7697_v3, %v7701_v4 }
 0x5b9   :  { %11186 = vmatprep.subr.bf16.mxu1 %v14634_v7  ;;  %v7704_v7 = vld [vmem:[#allocation7 + $0x490] sm:$0xff]  ;;  %v14713_v60 = vcombine.low %v7729_v51, %v7733_v23 }
 0x5bb   :  { %11023 = vmatpush1.bf16.msra.mxu0 %v14631_v13  ;;  %v14679_v13 = vcombine.low %v7696_v2, %v7700_v57  ;;  %v7745_v2 = vld [vmem:[#allocation7 + $0x5d8] sm:$0xff] }
 0x5bc   :  { %11187 = vmatpush1.bf16.msra.mxu1 %v14633_v15  ;;  %11024 = vmatprep.subr.bf16.mxu0 %v14640_v59  ;;  %v14681_v15 = vcombine.low %v7697_v3, %v7701_v4  ;;  %v14688_v59 = vcombine.high %v7704_v7, %v7708_v27  ;;  %v7749_v57 = vld [vmem:[#allocation7 + $0x5f8] sm:$0xff]  ;;  %v14721_v3 = vcombine.low %v7737_v0, %v7741_v50 }
 0x5bd   :  { %11188 = vmatprep.subr.bf16.mxu1 %v14642_v17  ;;  %v14690_v17 = vcombine.high %v7705_v10, %v7709_v58 }
 0x5bf   :  { %11025 = vmatpush1.bf16.msra.mxu0 %v14639_v20  ;;  %v14687_v20 = vcombine.low %v7704_v7, %v7708_v27  ;;  %v7756_v7 = vld [vmem:[#allocation7 + $0x630] sm:$0xff]  ;;  %v7753_v27 = vld [vmem:[#allocation7 + $0x618] sm:$0xff] }
 0x5c0   :  { %11189 = vmatpush1.bf16.msra.mxu1 %v14641_v22  ;;  %11026 = vmatprep.subr.bf16.mxu0 %v14648_v24  ;;  %v14696_v22 = vcombine.high %v7712_v18, %v7716_v14  ;;  %v14698_v24 = vcombine.high %v7713_v19, %v7717_v36 }
 0x5c1   :  { %11190 = vmatprep.subr.bf16.mxu1 %v14650_v12  ;;  %v7720_v12 = vld [vmem:[#allocation7 + $0x510] sm:$0xff] }
 0x5c2   :  { %v14703_v61 = vcombine.low %v7720_v12, %v7724_v30 }
 0x5c3   :  { %11027 = vmatpush1.bf16.msra.mxu0 %v14647_v35  ;;  %v14704_v35 = vcombine.high %v7720_v12, %v7724_v30  ;;  %v7769_v12 = vld [vmem:[#allocation7 + $0x698] sm:$0xff] }
 0x5c4   :  { %11191 = vmatpush1.bf16.msra.mxu1 %v14649_v39  ;;  %11028 = vmatprep.subr.bf16.mxu0 %v14656_v63  ;;  %v14706_v39 = vcombine.high %v7721_v44, %v7725_v32  ;;  %v7728_v63 = vld [vmem:[#allocation7 + $0x550] sm:$0xff]  ;;  %v7773_v30 = vld [vmem:[#allocation7 + $0x6b8] sm:$0xff] }
 0x5c5   :  { %11192 = vmatprep.subr.bf16.mxu1 %v14658_v28  ;;  %v7732_v28 = vld [vmem:[#allocation7 + $0x570] sm:$0xff] }
 0x5c6   :  { %v14711_v40 = vcombine.low %v7728_v63, %v7732_v28 }
 0x5c7   :  { %11029 = vmatpush1.bf16.msra.mxu0 %v14655_v42  ;;  %v14712_v42 = vcombine.high %v7728_v63, %v7732_v28  ;;  %v7777_v63 = vld [vmem:[#allocation7 + $0x6d8] sm:$0xff] }
 0x5c8   :  { %11193 = vmatpush1.bf16.msra.mxu1 %v14657_v43  ;;  %11030 = vmatprep.subr.bf16.mxu0 %v14664_v48  ;;  %v14714_v43 = vcombine.high %v7729_v51, %v7733_v23  ;;  %v7736_v48 = vld [vmem:[#allocation7 + $0x590] sm:$0xff]  ;;  %v7781_v28 = vld [vmem:[#allocation7 + $0x6f8] sm:$0xff]  ;;  %v14753_v23 = vcombine.low %v7769_v12, %v7773_v30 }
 0x5c9   :  { %11194 = vmatprep.subr.bf16.mxu1 %v14666_v56  ;;  %v7740_v56 = vld [vmem:[#allocation7 + $0x5b0] sm:$0xff] }
 0x5cb   :  { %11031 = vmatpush1.bf16.msra.mxu0 %v14663_v16  ;;  %v14720_v16 = vcombine.high %v7736_v48, %v7740_v56 }
 0x5cc   :  { %11195 = vmatpush1.bf16.msra.mxu1 %v14665_v54  ;;  %11041 = vmatprep.subr.bf16.mxu0 %v14672_v25  ;;  %v14722_v54 = vcombine.high %v7737_v0, %v7741_v50  ;;  %v7744_v25 = vld [vmem:[#allocation7 + $0x5d0] sm:$0xff]  ;;  %v14761_v50 = vcombine.low %v7777_v63, %v7781_v28 }
 0x5cd   :  { %11205 = vmatprep.subr.bf16.mxu1 %v14674_v62  ;;  %v7748_v62 = vld [vmem:[#allocation7 + $0x5f0] sm:$0xff] }
 0x5ce   :  { %11033 = vmatmul.mubr.bf16.vlgmr.msra.gmra.mrb[12].mxu0 %v16257_v6  ;;  %v14728_v4 = vcombine.high %v7744_v25, %v7748_v62 }
 0x5cf   :  { %11197 = vmatmul.mubr.bf16.vlgmr.msra.gmra.mrb[12].mxu1 %v16257_v6  ;;  %11042 = vmatpush1.bf16.msra.mxu0 %v14671_v49  ;;  %v14689_v6 = vcombine.low %v7705_v10, %v7709_v58  ;;  %v14719_v49 = vcombine.low %v7736_v48, %v7740_v56  ;;  %v14727_v10 = vcombine.low %v7744_v25, %v7748_v62  ;;  %v7785_v48 = vld [vmem:[#allocation7 + $0x718] sm:$0xff] }
 0x5d0   :  { %11073 = vmatprep.mubr.bf16.mxu0 %v16259_v11  ;;  %11206 = vmatpush1.bf16.msra.mxu1 %v14673_v5  ;;  %v14730_v5 = vcombine.high %v7745_v2, %v7749_v57  ;;  %v14729_v58 = vcombine.low %v7745_v2, %v7749_v57  ;;  %v7789_v56 = vld [vmem:[#allocation7 + $0x738] sm:$0xff] }
 0x5d1   :  { %11237 = vmatprep.mubr.bf16.mxu1 %v16259_v11  ;;  %11043 = vmatprep.subr.bf16.mxu0 %v14680_v34  ;;  %v14695_v11 = vcombine.low %v7712_v18, %v7716_v14  ;;  %v7752_v34 = vld [vmem:[#allocation7 + $0x610] sm:$0xff]  ;;  %v7761_v18 = vld [vmem:[#allocation7 + $0x658] sm:$0xff]  ;;  %v14769_v57 = vcombine.low %v7785_v48, %v7789_v56 }
 0x5d2   :  { %11207 = vmatprep.subr.bf16.mxu1 %v14682_v9  ;;  %v7757_v9 = vld [vmem:[#allocation7 + $0x638] sm:$0xff]  ;;  %v14735_v19 = vcombine.low %v7752_v34, %v7756_v7 }
 0x5d3   :  { %11044 = vmatpush1.bf16.msra.mxu0 %v14679_v13  ;;  %v14736_v13 = vcombine.high %v7752_v34, %v7756_v7  ;;  %v7765_v14 = vld [vmem:[#allocation7 + $0x678] sm:$0xff]  ;;  %v14737_v36 = vcombine.low %v7753_v27, %v7757_v9 }
 0x5d4   :  { %11208 = vmatpush1.bf16.msra.mxu1 %v14681_v15  ;;  %11045 = vmatprep.subr.bf16.mxu0 %v14688_v59  ;;  %v14738_v15 = vcombine.high %v7753_v27, %v7757_v9  ;;  %v7760_v59 = vld [vmem:[#allocation7 + $0x650] sm:$0xff]  ;;  %v14745_v32 = vcombine.low %v7761_v18, %v7765_v14  ;;  %v7793_v25 = vld [vmem:[#allocation7 + $0x758] sm:$0xff] }
 0x5d5   :  { %11209 = vmatprep.subr.bf16.mxu1 %v14690_v17  ;;  %v7764_v17 = vld [vmem:[#allocation7 + $0x670] sm:$0xff]  ;;  %v7797_v62 = vld [vmem:[#allocation7 + $0x778] sm:$0xff] }
 0x5d6   :  { %v14743_v44 = vcombine.low %v7760_v59, %v7764_v17  ;;  %v7801_v34 = vld [vmem:[#allocation7 + $0x798] sm:$0xff]  ;;  %v14777_v9 = vcombine.low %v7793_v25, %v7797_v62 }
 0x5d7   :  { %11046 = vmatpush1.bf16.msra.mxu0 %v14687_v20  ;;  %v14744_v20 = vcombine.high %v7760_v59, %v7764_v17  ;;  %v7805_v7 = vld [vmem:[#allocation7 + $0x7b8] sm:$0xff] }
 0x5d8   :  { %11210 = vmatpush1.bf16.msra.mxu1 %v14689_v6  ;;  %11047 = vmatprep.subr.bf16.mxu0 %v14696_v22  ;;  %v14746_v6 = vcombine.high %v7761_v18, %v7765_v14  ;;  %v7768_v22 = vld [vmem:[#allocation7 + $0x690] sm:$0xff]  ;;  %v7809_v59 = vld [vmem:[#allocation7 + $0x7d8] sm:$0xff]  ;;  %v14785_v14 = vcombine.low %v7801_v34, %v7805_v7 }
 0x5d9   :  { %11211 = vmatprep.subr.bf16.mxu1 %v14698_v24  ;;  %v7772_v24 = vld [vmem:[#allocation7 + $0x6b0] sm:$0xff]  ;;  %v7813_v17 = vld [vmem:[#allocation7 + $0x7f8] sm:$0xff] }
 0x5da   :  { %v14751_v51 = vcombine.low %v7768_v22, %v7772_v24 }
 0x5db   :  { %11048 = vmatpush1.bf16.msra.mxu0 %v14695_v11  ;;  %v14752_v11 = vcombine.high %v7768_v22, %v7772_v24  ;;  %v7817_v22 = vld [vmem:[#allocation7 + $0x818] sm:$0xff] }
 0x5dc   :  { %11212 = vmatpush1.bf16.msra.mxu1 %v14697_v46  ;;  %11049 = vmatprep.subr.bf16.mxu0 %v14704_v35  ;;  %v14754_v46 = vcombine.high %v7769_v12, %v7773_v30  ;;  %v7776_v35 = vld [vmem:[#allocation7 + $0x6d0] sm:$0xff]  ;;  %v7821_v24 = vld [vmem:[#allocation7 + $0x838] sm:$0xff]  ;;  %v14793_v30 = vcombine.low %v7809_v59, %v7813_v17 }
 0x5dd   :  { %11213 = vmatprep.subr.bf16.mxu1 %v14706_v39  ;;  %v7780_v39 = vld [vmem:[#allocation7 + $0x6f0] sm:$0xff] }
 0x5de   :  { %v14759_v0 = vcombine.low %v7776_v35, %v7780_v39 }
 0x5df   :  { %11050 = vmatpush1.bf16.msra.mxu0 %v14703_v61  ;;  %v14760_v61 = vcombine.high %v7776_v35, %v7780_v39  ;;  %v7825_v39 = vld [vmem:[#allocation7 + $0x858] sm:$0xff] }
 0x5e0   :  { %11214 = vmatpush1.bf16.msra.mxu1 %v14705_v29  ;;  %11051 = vmatprep.subr.bf16.mxu0 %v14712_v42  ;;  %v14762_v29 = vcombine.high %v7777_v63, %v7781_v28  ;;  %v7784_v42 = vld [vmem:[#allocation7 + $0x710] sm:$0xff]  ;;  %v7829_v63 = vld [vmem:[#allocation7 + $0x878] sm:$0xff]  ;;  %v14801_v28 = vcombine.low %v7817_v22, %v7821_v24 }
 0x5e1   :  { %11215 = vmatprep.subr.bf16.mxu1 %v14714_v43  ;;  %v7788_v43 = vld [vmem:[#allocation7 + $0x730] sm:$0xff] }
 0x5e2   :  { %v14767_v2 = vcombine.low %v7784_v42, %v7788_v43 }
 0x5e3   :  { %11052 = vmatpush1.bf16.msra.mxu0 %v14711_v40  ;;  %v14768_v40 = vcombine.high %v7784_v42, %v7788_v43  ;;  %v7833_v42 = vld [vmem:[#allocation7 + $0x898] sm:$0xff] }
 0x5e4   :  { %11216 = vmatpush1.bf16.msra.mxu1 %v14713_v60  ;;  %11053 = vmatprep.subr.bf16.mxu0 %v14720_v16  ;;  %v14770_v60 = vcombine.high %v7785_v48, %v7789_v56  ;;  %v7792_v16 = vld [vmem:[#allocation7 + $0x750] sm:$0xff]  ;;  %v7837_v43 = vld [vmem:[#allocation7 + $0x8b8] sm:$0xff]  ;;  %v14809_v56 = vcombine.low %v7825_v39, %v7829_v63 }
 0x5e5   :  { %11217 = vmatprep.subr.bf16.mxu1 %v14722_v54  ;;  %v7796_v54 = vld [vmem:[#allocation7 + $0x770] sm:$0xff] }
 0x5e6   :  { %v14775_v27 = vcombine.low %v7792_v16, %v7796_v54 }
 0x5e7   :  { %11054 = vmatpush1.bf16.msra.mxu0 %v14719_v49  ;;  %v14776_v49 = vcombine.high %v7792_v16, %v7796_v54  ;;  %v7841_v16 = vld [vmem:[#allocation7 + $0x8d8] sm:$0xff] }
 0x5e8   :  { %11218 = vmatpush1.bf16.msra.mxu1 %v14721_v3  ;;  %11055 = vmatprep.subr.bf16.mxu0 %v14728_v4  ;;  %v14778_v3 = vcombine.high %v7793_v25, %v7797_v62  ;;  %v7800_v4 = vld [vmem:[#allocation7 + $0x790] sm:$0xff]  ;;  %v7845_v54 = vld [vmem:[#allocation7 + $0x8f8] sm:$0xff] }
 0x5e9   :  { %11219 = vmatprep.subr.bf16.mxu1 %v14730_v5  ;;  %v7804_v5 = vld [vmem:[#allocation7 + $0x7b0] sm:$0xff] }
 0x5ea   :  { %v14783_v18 = vcombine.low %v7800_v4, %v7804_v5 }
 0x5eb   :  { %11056 = vmatpush1.bf16.msra.mxu0 %v14727_v10  ;;  %v14784_v10 = vcombine.high %v7800_v4, %v7804_v5  ;;  %v7853_v4 = vld [vmem:[#allocation7 + $0x938] sm:$0xff]  ;;  %v14825_v5 = vcombine.low %v7841_v16, %v7845_v54 }
 0x5ec   :  { %11220 = vmatpush1.bf16.msra.mxu1 %v14729_v58  ;;  %11057 = vmatprep.subr.bf16.mxu0 %v14736_v13  ;;  %v14786_v58 = vcombine.high %v7801_v34, %v7805_v7  ;;  %v7808_v13 = vld [vmem:[#allocation7 + $0x7d0] sm:$0xff] }
 0x5ed   :  { %11221 = vmatprep.subr.bf16.mxu1 %v14738_v15  ;;  %v7812_v15 = vld [vmem:[#allocation7 + $0x7f0] sm:$0xff] }
 0x5ee   :  { %v14791_v12 = vcombine.low %v7808_v13, %v7812_v15 }
 0x5ef   :  { %11058 = vmatpush1.bf16.msra.mxu0 %v14735_v19  ;;  %v14792_v19 = vcombine.high %v7808_v13, %v7812_v15 }
 0x5f0   :  { %11222 = vmatpush1.bf16.msra.mxu1 %v14737_v36  ;;  %11059 = vmatprep.subr.bf16.mxu0 %v14744_v20  ;;  %v14794_v36 = vcombine.high %v7809_v59, %v7813_v17  ;;  %v7816_v20 = vld [vmem:[#allocation7 + $0x810] sm:$0xff] }
 0x5f1   :  { %11223 = vmatprep.subr.bf16.mxu1 %v14746_v6  ;;  %v7820_v6 = vld [vmem:[#allocation7 + $0x830] sm:$0xff] }
 0x5f2   :  { %v14799_v35 = vcombine.low %v7816_v20, %v7820_v6 }
 0x5f3   :  { %11060 = vmatpush1.bf16.msra.mxu0 %v14743_v44  ;;  %v14800_v44 = vcombine.high %v7816_v20, %v7820_v6 }
 0x5f4   :  { %11224 = vmatpush1.bf16.msra.mxu1 %v14745_v32  ;;  %11061 = vmatprep.subr.bf16.mxu0 %v14752_v11  ;;  %v14802_v32 = vcombine.high %v7817_v22, %v7821_v24  ;;  %v7824_v11 = vld [vmem:[#allocation7 + $0x850] sm:$0xff] }
 0x5f5   :  { %11225 = vmatprep.subr.bf16.mxu1 %v14754_v46  ;;  %v7828_v46 = vld [vmem:[#allocation7 + $0x870] sm:$0xff] }
 0x5f6   :  { %v14807_v48 = vcombine.low %v7824_v11, %v7828_v46 }
 0x5f7   :  { %11062 = vmatpush1.bf16.msra.mxu0 %v14751_v51  ;;  %v14808_v51 = vcombine.high %v7824_v11, %v7828_v46 }
 0x5f8   :  { %11226 = vmatpush1.bf16.msra.mxu1 %v14753_v23  ;;  %11063 = vmatprep.subr.bf16.mxu0 %v14760_v61  ;;  %v7832_v23 = vld [vmem:[#allocation7 + $0x890] sm:$0xff] }
 0x5f9   :  { %11227 = vmatprep.subr.bf16.mxu1 %v14762_v29  ;;  %v7836_v61 = vld [vmem:[#allocation7 + $0x8b0] sm:$0xff]  ;;  %v14810_v29 = vcombine.high %v7825_v39, %v7829_v63 }
 0x5fa   :  { %v14815_v25 = vcombine.low %v7832_v23, %v7836_v61  ;;  %v7880_v63 = vld [vmem:[#allocation7 + $0xa10] sm:$0xff] }
 0x5fb   :  { %11064 = vmatpush1.bf16.msra.mxu0 %v14759_v0  ;;  %v14816_v0 = vcombine.high %v7832_v23, %v7836_v61  ;;  %v7885_v23 = vld [vmem:[#allocation7 + $0xa38] sm:$0xff] }
 0x5fc   :  { %11228 = vmatpush1.bf16.msra.mxu1 %v14761_v50  ;;  %11065 = vmatprep.subr.bf16.mxu0 %v14768_v40  ;;  %v14818_v50 = vcombine.high %v7833_v42, %v7837_v43  ;;  %v7840_v40 = vld [vmem:[#allocation7 + $0x8d0] sm:$0xff] }
 0x5fd   :  { %11229 = vmatprep.subr.bf16.mxu1 %v14770_v60  ;;  %v7844_v60 = vld [vmem:[#allocation7 + $0x8f0] sm:$0xff] }
 0x5fe   :  { %v14824_v62 = vcombine.high %v7840_v40, %v7844_v60 }
 0x5ff   :  { %11066 = vmatpush1.bf16.msra.mxu0 %v14767_v2  ;;  %v14826_v2 = vcombine.high %v7841_v16, %v7845_v54 }
 0x600   :  { %11230 = vmatpush1.bf16.msra.mxu1 %v14769_v57  ;;  %11067 = vmatprep.subr.bf16.mxu0 %v14776_v49  ;;  %v7848_v57 = vld [vmem:[#allocation7 + $0x910] sm:$0xff] }
 0x601   :  { %11231 = vmatprep.subr.bf16.mxu1 %v14778_v3  ;;  %v7852_v49 = vld [vmem:[#allocation7 + $0x930] sm:$0xff]  ;;  %v7849_v3 = vld [vmem:[#allocation7 + $0x918] sm:$0xff] }
 0x602   :  { %v14832_v34 = vcombine.high %v7848_v57, %v7852_v49  ;;  %v14834_v7 = vcombine.high %v7849_v3, %v7853_v4  ;;  %v14831_v13 = vcombine.low %v7848_v57, %v7852_v49  ;;  %v14833_v15 = vcombine.low %v7849_v3, %v7853_v4 }
 0x603   :  { %11068 = vmatpush1.bf16.msra.mxu0 %v14775_v27  ;;  %v7856_v27 = vld [vmem:[#allocation7 + $0x950] sm:$0xff] }
 0x604   :  { %11232 = vmatpush1.bf16.msra.mxu1 %v14777_v9  ;;  %11069 = vmatprep.subr.bf16.mxu0 %v14784_v10  ;;  %v7860_v9 = vld [vmem:[#allocation7 + $0x970] sm:$0xff]  ;;  %v7857_v10 = vld [vmem:[#allocation7 + $0x958] sm:$0xff] }
 0x605   :  { %11233 = vmatprep.subr.bf16.mxu1 %v14786_v58  ;;  %v7861_v58 = vld [vmem:[#allocation7 + $0x978] sm:$0xff]  ;;  %v14840_v59 = vcombine.high %v7856_v27, %v7860_v9  ;;  %v14839_v20 = vcombine.low %v7856_v27, %v7860_v9 }
 0x606   :  { %v14842_v17 = vcombine.high %v7857_v10, %v7861_v58  ;;  %v14841_v6 = vcombine.low %v7857_v10, %v7861_v58 }
 0x607   :  { %11070 = vmatpush1.bf16.msra.mxu0 %v14783_v18  ;;  %v7864_v18 = vld [vmem:[#allocation7 + $0x990] sm:$0xff] }
 0x608   :  { %11234 = vmatpush1.bf16.msra.mxu1 %v14785_v14  ;;  %11071 = vmatprep.subr.bf16.mxu0 %v14792_v19  ;;  %v7868_v14 = vld [vmem:[#allocation7 + $0x9b0] sm:$0xff]  ;;  %v7865_v19 = vld [vmem:[#allocation7 + $0x998] sm:$0xff] }
 0x609   :  { %11235 = vmatprep.subr.bf16.mxu1 %v14794_v36  ;;  %v7869_v36 = vld [vmem:[#allocation7 + $0x9b8] sm:$0xff]  ;;  %v14848_v22 = vcombine.high %v7864_v18, %v7868_v14  ;;  %v14847_v11 = vcombine.low %v7864_v18, %v7868_v14 }
 0x60a   :  { %v14850_v24 = vcombine.high %v7865_v19, %v7869_v36  ;;  %v14849_v46 = vcombine.low %v7865_v19, %v7869_v36 }
 0x60b   :  { %11072 = vmatpush1.bf16.msra.mxu0 %v14791_v12  ;;  %v7872_v12 = vld [vmem:[#allocation7 + $0x9d0] sm:$0xff] }
 0x60c   :  { %11236 = vmatpush1.bf16.msra.mxu1 %v14793_v30  ;;  %11082 = vmatprep.subr.bf16.mxu0 %v14800_v44  ;;  %v7876_v30 = vld [vmem:[#allocation7 + $0x9f0] sm:$0xff]  ;;  %v7873_v44 = vld [vmem:[#allocation7 + $0x9d8] sm:$0xff] }
 0x60d   :  { %11246 = vmatprep.subr.bf16.mxu1 %v14802_v32  ;;  %v7877_v32 = vld [vmem:[#allocation7 + $0x9f8] sm:$0xff]  ;;  %v14855_v61 = vcombine.low %v7872_v12, %v7876_v30 }
 0x60e   :  { %11074 = vmatmul.mubr.bf16.vlgmr.msra.gmra.mrb[12].mxu0 %v16274_v37  ;;  %v14858_v39 = vcombine.high %v7873_v44, %v7877_v32 }
 0x60f   :  { %11238 = vmatmul.mubr.bf16.vlgmr.msra.gmra.mrb[12].mxu1 %v16274_v37  ;;  %11083 = vmatpush1.bf16.msra.mxu0 %v14799_v35  ;;  %v14817_v37 = vcombine.low %v7833_v42, %v7837_v43  ;;  %v14856_v35 = vcombine.high %v7872_v12, %v7876_v30 }
 0x610   :  { %11114 = vmatprep.mubr.bf16.mxu0 %v16306_v26  ;;  %11247 = vmatpush1.bf16.msra.mxu1 %v14801_v28  ;;  %v7884_v28 = vld [vmem:[#allocation7 + $0xa30] sm:$0xff] }
 0x611   :  { %11278 = vmatprep.mubr.bf16.mxu1 %v16306_v26  ;;  %11084 = vmatprep.subr.bf16.mxu0 %v14808_v51  ;;  %v14823_v26 = vcombine.low %v7840_v40, %v7844_v60  ;;  %v7881_v51 = vld [vmem:[#allocation7 + $0xa18] sm:$0xff]  ;;  %v14864_v42 = vcombine.high %v7880_v63, %v7884_v28  ;;  %v14863_v40 = vcombine.low %v7880_v63, %v7884_v28 }
 0x612   :  { %11248 = vmatprep.subr.bf16.mxu1 %v14810_v29  ;;  %v14857_v29 = vcombine.low %v7873_v44, %v7877_v32  ;;  %v14866_v43 = vcombine.high %v7881_v51, %v7885_v23  ;;  %v14865_v60 = vcombine.low %v7881_v51, %v7885_v23 }
 0x613   :  { %11085 = vmatpush1.bf16.msra.mxu0 %v14807_v48  ;;  %v7888_v48 = vld [vmem:[#allocation7 + $0xa50] sm:$0xff] }
 0x614   :  { %11249 = vmatpush1.bf16.msra.mxu1 %v14809_v56  ;;  %11086 = vmatprep.subr.bf16.mxu0 %v14816_v0  ;;  %v7892_v56 = vld [vmem:[#allocation7 + $0xa70] sm:$0xff]  ;;  %v7889_v0 = vld [vmem:[#allocation7 + $0xa58] sm:$0xff] }
 0x615   :  { %11250 = vmatprep.subr.bf16.mxu1 %v14818_v50  ;;  %v7893_v50 = vld [vmem:[#allocation7 + $0xa78] sm:$0xff]  ;;  %v14872_v16 = vcombine.high %v7888_v48, %v7892_v56  ;;  %v14871_v57 = vcombine.low %v7888_v48, %v7892_v56 }
 0x616   :  { %v14874_v54 = vcombine.high %v7889_v0, %v7893_v50  ;;  %v14873_v49 = vcombine.low %v7889_v0, %v7893_v50 }
 0x617   :  { %11087 = vmatpush1.bf16.msra.mxu0 %v14815_v25  ;;  %v7896_v25 = vld [vmem:[#allocation7 + $0xa90] sm:$0xff] }
 0x618   :  { %11251 = vmatpush1.bf16.msra.mxu1 %v14817_v37  ;;  %11088 = vmatprep.subr.bf16.mxu0 %v14824_v62  ;;  %v7900_v37 = vld [vmem:[#allocation7 + $0xab0] sm:$0xff]  ;;  %v7897_v62 = vld [vmem:[#allocation7 + $0xa98] sm:$0xff] }
 0x619   :  { %11252 = vmatprep.subr.bf16.mxu1 %v14826_v2  ;;  %v7901_v2 = vld [vmem:[#allocation7 + $0xab8] sm:$0xff]  ;;  %v14880_v3 = vcombine.high %v7896_v25, %v7900_v37  ;;  %v14879_v27 = vcombine.low %v7896_v25, %v7900_v37 }
 0x61a   :  { %v14882_v4 = vcombine.high %v7897_v62, %v7901_v2  ;;  %v14881_v9 = vcombine.low %v7897_v62, %v7901_v2 }
 0x61b   :  { %11089 = vmatpush1.bf16.msra.mxu0 %v14823_v26  ;;  %v7904_v26 = vld [vmem:[#allocation7 + $0xad0] sm:$0xff] }
 0x61c   :  { %11253 = vmatpush1.bf16.msra.mxu1 %v14825_v5  ;;  %11090 = vmatprep.subr.bf16.mxu0 %v14832_v34  ;;  %v7908_v5 = vld [vmem:[#allocation7 + $0xaf0] sm:$0xff]  ;;  %v7905_v34 = vld [vmem:[#allocation7 + $0xad8] sm:$0xff] }
 0x61d   :  { %11254 = vmatprep.subr.bf16.mxu1 %v14834_v7  ;;  %v7909_v7 = vld [vmem:[#allocation7 + $0xaf8] sm:$0xff]  ;;  %v14888_v10 = vcombine.high %v7904_v26, %v7908_v5  ;;  %v14887_v18 = vcombine.low %v7904_v26, %v7908_v5 }
 0x61e   :  { %v14890_v58 = vcombine.high %v7905_v34, %v7909_v7  ;;  %v14889_v14 = vcombine.low %v7905_v34, %v7909_v7  ;;  %v7957_v26 = vld [vmem:[#allocation7 + $0xc78] sm:$0xff]  ;;  %v7960_v7 = vld [vmem:[#allocation7 + $0xc90] sm:$0xff] }
 0x61f   :  { %11091 = vmatpush1.bf16.msra.mxu0 %v14831_v13  ;;  %v7912_v13 = vld [vmem:[#allocation7 + $0xb10] sm:$0xff] }
 0x620   :  { %11255 = vmatpush1.bf16.msra.mxu1 %v14833_v15  ;;  %11092 = vmatprep.subr.bf16.mxu0 %v14840_v59  ;;  %v7916_v15 = vld [vmem:[#allocation7 + $0xb30] sm:$0xff]  ;;  %v7913_v59 = vld [vmem:[#allocation7 + $0xb18] sm:$0xff] }
 0x621   :  { %11256 = vmatprep.subr.bf16.mxu1 %v14842_v17  ;;  %v7917_v17 = vld [vmem:[#allocation7 + $0xb38] sm:$0xff]  ;;  %v14896_v19 = vcombine.high %v7912_v13, %v7916_v15  ;;  %v14895_v12 = vcombine.low %v7912_v13, %v7916_v15 }
 0x622   :  { %v14898_v36 = vcombine.high %v7913_v59, %v7917_v17  ;;  %v14897_v30 = vcombine.low %v7913_v59, %v7917_v17 }
 0x623   :  { %11093 = vmatpush1.bf16.msra.mxu0 %v14839_v20  ;;  %v7920_v20 = vld [vmem:[#allocation7 + $0xb50] sm:$0xff] }
 0x624   :  { %11257 = vmatpush1.bf16.msra.mxu1 %v14841_v6  ;;  %11094 = vmatprep.subr.bf16.mxu0 %v14848_v22  ;;  %v7924_v6 = vld [vmem:[#allocation7 + $0xb70] sm:$0xff]  ;;  %v7921_v22 = vld [vmem:[#allocation7 + $0xb58] sm:$0xff] }
 0x625   :  { %11258 = vmatprep.subr.bf16.mxu1 %v14850_v24  ;;  %v7925_v24 = vld [vmem:[#allocation7 + $0xb78] sm:$0xff]  ;;  %v14904_v44 = vcombine.high %v7920_v20, %v7924_v6  ;;  %v14903_v63 = vcombine.low %v7920_v20, %v7924_v6 }
 0x626   :  { %v14906_v32 = vcombine.high %v7921_v22, %v7925_v24  ;;  %v14905_v28 = vcombine.low %v7921_v22, %v7925_v24  ;;  %v7976_v24 = vld [vmem:[#allocation7 + $0xd10] sm:$0xff] }
 0x627   :  { %11095 = vmatpush1.bf16.msra.mxu0 %v14847_v11  ;;  %v7928_v11 = vld [vmem:[#allocation7 + $0xb90] sm:$0xff] }
 0x628   :  { %11259 = vmatpush1.bf16.msra.mxu1 %v14849_v46  ;;  %11096 = vmatprep.subr.bf16.mxu0 %v14856_v35  ;;  %v7932_v46 = vld [vmem:[#allocation7 + $0xbb0] sm:$0xff]  ;;  %v7929_v35 = vld [vmem:[#allocation7 + $0xb98] sm:$0xff] }
 0x629   :  { %11260 = vmatprep.subr.bf16.mxu1 %v14858_v39  ;;  %v7933_v39 = vld [vmem:[#allocation7 + $0xbb8] sm:$0xff]  ;;  %v14912_v51 = vcombine.high %v7928_v11, %v7932_v46  ;;  %v14911_v48 = vcombine.low %v7928_v11, %v7932_v46 }
 0x62a   :  { %v14914_v23 = vcombine.high %v7929_v35, %v7933_v39  ;;  %v14913_v56 = vcombine.low %v7929_v35, %v7933_v39  ;;  %v7984_v35 = vld [vmem:[#allocation7 + $0xd50] sm:$0xff] }
 0x62b   :  { %11097 = vmatpush1.bf16.msra.mxu0 %v14855_v61  ;;  %v7936_v61 = vld [vmem:[#allocation7 + $0xbd0] sm:$0xff] }
 0x62c   :  { %11261 = vmatpush1.bf16.msra.mxu1 %v14857_v29  ;;  %11098 = vmatprep.subr.bf16.mxu0 %v14864_v42  ;;  %v7940_v29 = vld [vmem:[#allocation7 + $0xbf0] sm:$0xff]  ;;  %v7937_v42 = vld [vmem:[#allocation7 + $0xbd8] sm:$0xff] }
 0x62d   :  { %11262 = vmatprep.subr.bf16.mxu1 %v14866_v43  ;;  %v7941_v43 = vld [vmem:[#allocation7 + $0xbf8] sm:$0xff]  ;;  %v14920_v0 = vcombine.high %v7936_v61, %v7940_v29  ;;  %v14919_v25 = vcombine.low %v7936_v61, %v7940_v29  ;;  %v7988_v39 = vld [vmem:[#allocation7 + $0xd70] sm:$0xff]  ;;  %v16349_v29 = vld [vmem:[#allocation9] sm:$0xff] }
 0x62e   :  { %v14922_v50 = vcombine.high %v7937_v42, %v7941_v43  ;;  %v14921_v37 = vcombine.low %v7937_v42, %v7941_v43  ;;  %v14968_v61 = vcombine.high %v7984_v35, %v7988_v39  ;;  %v7992_v43 = vld [vmem:[#allocation7 + $0xd90] sm:$0xff] }
 0x62f   :  { %11099 = vmatpush1.bf16.msra.mxu0 %v14863_v40  ;;  %v7944_v40 = vld [vmem:[#allocation7 + $0xc10] sm:$0xff] }
 0x630   :  { %11263 = vmatpush1.bf16.msra.mxu1 %v14865_v60  ;;  %11100 = vmatprep.subr.bf16.mxu0 %v14872_v16  ;;  %v7948_v60 = vld [vmem:[#allocation7 + $0xc30] sm:$0xff]  ;;  %v7945_v16 = vld [vmem:[#allocation7 + $0xc18] sm:$0xff] }
 0x631   :  { %11264 = vmatprep.subr.bf16.mxu1 %v14874_v54  ;;  %v7949_v54 = vld [vmem:[#allocation7 + $0xc38] sm:$0xff]  ;;  %v14928_v62 = vcombine.high %v7944_v40, %v7948_v60 }
 0x632   :  { %v14930_v2 = vcombine.high %v7945_v16, %v7949_v54  ;;  %v14929_v5 = vcombine.low %v7945_v16, %v7949_v54 }
 0x633   :  { %11101 = vmatpush1.bf16.msra.mxu0 %v14871_v57  ;;  %v7952_v57 = vld [vmem:[#allocation7 + $0xc50] sm:$0xff] }
 0x634   :  { %11265 = vmatpush1.bf16.msra.mxu1 %v14873_v49  ;;  %11102 = vmatprep.subr.bf16.mxu0 %v14880_v3  ;;  %v7956_v49 = vld [vmem:[#allocation7 + $0xc70] sm:$0xff]  ;;  %v14927_v3 = vcombine.low %v7944_v40, %v7948_v60  ;;  %v8079_v40 = vrot.slane %v16349_v29, %v1144_v47 }
 0x635   :  { %11266 = vmatprep.subr.bf16.mxu1 %v14882_v4  ;;  %v7953_v4 = vld [vmem:[#allocation7 + $0xc58] sm:$0xff]  ;;  %v14936_v34 = vcombine.high %v7952_v57, %v7956_v49  ;;  %v14935_v13 = vcombine.low %v7952_v57, %v7956_v49 }
 0x636   :  { %v14937_v15 = vcombine.low %v7953_v4, %v7957_v26 }
 0x637   :  { %11103 = vmatpush1.bf16.msra.mxu0 %v14879_v27  ;;  %v7964_v27 = vld [vmem:[#allocation7 + $0xcb0] sm:$0xff] }
 0x638   :  { %11267 = vmatpush1.bf16.msra.mxu1 %v14881_v9  ;;  %11104 = vmatprep.subr.bf16.mxu0 %v14888_v10  ;;  %v14938_v9 = vcombine.high %v7953_v4, %v7957_v26  ;;  %v7961_v10 = vld [vmem:[#allocation7 + $0xc98] sm:$0xff]  ;;  %v14944_v59 = vcombine.high %v7960_v7, %v7964_v27  ;;  %v14943_v20 = vcombine.low %v7960_v7, %v7964_v27 }
 0x639   :  { %11268 = vmatprep.subr.bf16.mxu1 %v14890_v58  ;;  %v7965_v58 = vld [vmem:[#allocation7 + $0xcb8] sm:$0xff] }
 0x63a   :  { %v14946_v17 = vcombine.high %v7961_v10, %v7965_v58  ;;  %v8005_v4 = vld [vmem:[#allocation7 + $0xdf8] sm:$0xff] }
 0x63b   :  { %11105 = vmatpush1.bf16.msra.mxu0 %v14887_v18  ;;  %v7968_v18 = vld [vmem:[#allocation7 + $0xcd0] sm:$0xff] }
 0x63c   :  { %11269 = vmatpush1.bf16.msra.mxu1 %v14889_v14  ;;  %11106 = vmatprep.subr.bf16.mxu0 %v14896_v19  ;;  %v7972_v14 = vld [vmem:[#allocation7 + $0xcf0] sm:$0xff]  ;;  %v7969_v19 = vld [vmem:[#allocation7 + $0xcd8] sm:$0xff] }
 0x63d   :  { %11270 = vmatprep.subr.bf16.mxu1 %v14898_v36  ;;  %v7973_v36 = vld [vmem:[#allocation7 + $0xcf8] sm:$0xff]  ;;  %v14952_v6 = vcombine.high %v7968_v18, %v7972_v14 }
 0x63e   :  { %v14954_v22 = vcombine.high %v7969_v19, %v7973_v36 }
 0x63f   :  { %11107 = vmatpush1.bf16.msra.mxu0 %v14895_v12  ;;  %v7980_v12 = vld [vmem:[#allocation7 + $0xd30] sm:$0xff] }
 0x640   :  { %11271 = vmatpush1.bf16.msra.mxu1 %v14897_v30  ;;  %11108 = vmatprep.subr.bf16.mxu0 %v14904_v44  ;;  %v7977_v30 = vld [vmem:[#allocation7 + $0xd18] sm:$0xff]  ;;  %v14960_v11 = vcombine.high %v7976_v24, %v7980_v12 }
 0x641   :  { %11272 = vmatprep.subr.bf16.mxu1 %v14906_v32  ;;  %v7981_v44 = vld [vmem:[#allocation7 + $0xd38] sm:$0xff]  ;;  %v14953_v32 = vcombine.low %v7969_v19, %v7973_v36 }
 0x642   :  { %v14962_v46 = vcombine.high %v7977_v30, %v7981_v44 }
 0x643   :  { %11109 = vmatpush1.bf16.msra.mxu0 %v14903_v63  ;;  %v7985_v63 = vld [vmem:[#allocation7 + $0xd58] sm:$0xff] }
 0x644   :  { %11273 = vmatpush1.bf16.msra.mxu1 %v14905_v28  ;;  %11110 = vmatprep.subr.bf16.mxu0 %v14912_v51  ;;  %v7989_v28 = vld [vmem:[#allocation7 + $0xd78] sm:$0xff]  ;;  %v14959_v51 = vcombine.low %v7976_v24, %v7980_v12 }
 0x645   :  { %11274 = vmatprep.subr.bf16.mxu1 %v14914_v23  ;;  %v14961_v23 = vcombine.low %v7977_v30, %v7981_v44  ;;  %v14970_v42 = vcombine.high %v7985_v63, %v7989_v28  ;;  %v14969_v60 = vcombine.low %v7985_v63, %v7989_v28  ;;  %v8021_v24 = vld [vmem:[#allocation7 + $0xe78] sm:$0xff] }
 0x647   :  { %11111 = vmatpush1.bf16.msra.mxu0 %v14911_v48  ;;  %v7996_v48 = vld [vmem:[#allocation7 + $0xdb0] sm:$0xff] }
 0x648   :  { %11275 = vmatpush1.bf16.msra.mxu1 %v14913_v56  ;;  %11112 = vmatprep.subr.bf16.mxu0 %v14920_v0  ;;  %v7993_v56 = vld [vmem:[#allocation7 + $0xd98] sm:$0xff]  ;;  %v14976_v16 = vcombine.high %v7992_v43, %v7996_v48  ;;  %v14975_v47 = vcombine.low %v7992_v43, %v7996_v48 }
 0x649   :  { %11276 = vmatprep.subr.bf16.mxu1 %v14922_v50  ;;  %v7997_v0 = vld [vmem:[#allocation7 + $0xdb8] sm:$0xff]  ;;  %v14967_v50 = vcombine.low %v7984_v35, %v7988_v39 }
 0x64a   :  { %v8029_v35 = vld [vmem:[#allocation7 + $0xeb8] sm:$0xff] }
 0x64b   :  { %11113 = vmatpush1.bf16.msra.mxu0 %v14919_v25  ;;  %v8037_v43 = vld [vmem:[#allocation7 + $0xef8] sm:$0xff] }
 0x64c   :  { %11277 = vmatpush1.bf16.msra.mxu1 %v14921_v37  ;;  %11123 = vmatprep.subr.bf16.mxu0 %v14928_v62  ;;  %v14978_v37 = vcombine.high %v7993_v56, %v7997_v0  ;;  %v8000_v62 = vld [vmem:[#allocation7 + $0xdd0] sm:$0xff] }
 0x64d   :  { %11287 = vmatprep.subr.bf16.mxu1 %v14930_v2  ;;  %v8004_v2 = vld [vmem:[#allocation7 + $0xdf0] sm:$0xff] }
 0x64e   :  { %11115 = vmatmul.mubr.bf16.vlgmr.msra.gmra.mrb[12].mxu0 %v16312_v33 }
 0x64f   :  { %11279 = vmatmul.mubr.bf16.vlgmr.msra.gmra.mrb[12].mxu1 %v16312_v33  ;;  %11124 = vmatpush1.bf16.msra.mxu0 %v14927_v3  ;;  %v14945_v33 = vcombine.low %v7961_v10, %v7965_v58  ;;  %v8001_v3 = vld [vmem:[#allocation7 + $0xdd8] sm:$0xff]  ;;  %v14984_v10 = vcombine.high %v8000_v62, %v8004_v2 }
 0x650   :  { %11155 = vmatprep.mubr.bf16.mxu0 %v16316_v45  ;;  %11288 = vmatpush1.bf16.msra.mxu1 %v14929_v5  ;;  %v14986_v58 = vcombine.high %v8001_v3, %v8005_v4  ;;  %v14985_v19 = vcombine.low %v8001_v3, %v8005_v4 }
 0x651   :  { %11319 = vmatprep.mubr.bf16.mxu1 %v16316_v45  ;;  %11125 = vmatprep.subr.bf16.mxu0 %v14936_v34  ;;  %v14951_v45 = vcombine.low %v7968_v18, %v7972_v14  ;;  %v14983_v18 = vcombine.low %v8000_v62, %v8004_v2  ;;  %v8045_v62 = vld [vmem:[#allocation7 + $0xf38] sm:$0xff] }
 0x652   :  { %11289 = vmatprep.subr.bf16.mxu1 %v14938_v9  ;;  %v14977_v9 = vcombine.low %v7993_v56, %v7997_v0 }
 0x653   :  { %11126 = vmatpush1.bf16.msra.mxu0 %v14935_v13  ;;  %v8008_v13 = vld [vmem:[#allocation7 + $0xe10] sm:$0xff] }
 0x654   :  { %11290 = vmatpush1.bf16.msra.mxu1 %v14937_v15  ;;  %11127 = vmatprep.subr.bf16.mxu0 %v14944_v59  ;;  %v8012_v15 = vld [vmem:[#allocation7 + $0xe30] sm:$0xff]  ;;  %v8009_v59 = vld [vmem:[#allocation7 + $0xe18] sm:$0xff] }
 0x655   :  { %11291 = vmatprep.subr.bf16.mxu1 %v14946_v17  ;;  %v8013_v17 = vld [vmem:[#allocation7 + $0xe38] sm:$0xff]  ;;  %v14992_v36 = vcombine.high %v8008_v13, %v8012_v15  ;;  %v14991_v12 = vcombine.low %v8008_v13, %v8012_v15  ;;  %v8056_v15 = vld [vmem:[#allocation7 + $0xf90] sm:$0xff] }
 0x656   :  { %v14993_v30 = vcombine.low %v8009_v59, %v8013_v17 }
 0x657   :  { %11128 = vmatpush1.bf16.msra.mxu0 %v14943_v20  ;;  %v14994_v20 = vcombine.high %v8009_v59, %v8013_v17  ;;  %v8060_v59 = vld [vmem:[#allocation7 + $0xfb0] sm:$0xff]  ;;  %v8057_v17 = vld [vmem:[#allocation7 + $0xf98] sm:$0xff] }
 0x658   :  { %11292 = vmatpush1.bf16.msra.mxu1 %v14945_v33  ;;  %11129 = vmatprep.subr.bf16.mxu0 %v14952_v6  ;;  %v8016_v33 = vld [vmem:[#allocation7 + $0xe50] sm:$0xff] }
 0x659   :  { %11293 = vmatprep.subr.bf16.mxu1 %v14954_v22  ;;  %v8020_v6 = vld [vmem:[#allocation7 + $0xe70] sm:$0xff]  ;;  %v8017_v22 = vld [vmem:[#allocation7 + $0xe58] sm:$0xff] }
 0x65a   :  { %v15000_v44 = vcombine.high %v8016_v33, %v8020_v6  ;;  %v14999_v39 = vcombine.low %v8016_v33, %v8020_v6  ;;  %v15001_v63 = vcombine.low %v8017_v22, %v8021_v24  ;;  %v15040_v33 = vcombine.high %v8056_v15, %v8060_v59 }
 0x65b   :  { %11130 = vmatpush1.bf16.msra.mxu0 %v14951_v45  ;;  %v15002_v45 = vcombine.high %v8017_v22, %v8021_v24  ;;  %v8064_v22 = vld [vmem:[#allocation7 + $0xfd0] sm:$0xff] }
 0x65c   :  { %11294 = vmatpush1.bf16.msra.mxu1 %v14953_v32  ;;  %11131 = vmatprep.subr.bf16.mxu0 %v14960_v11  ;;  %v8024_v32 = vld [vmem:[#allocation7 + $0xe90] sm:$0xff] }
 0x65d   :  { %11295 = vmatprep.subr.bf16.mxu1 %v14962_v46  ;;  %v8028_v11 = vld [vmem:[#allocation7 + $0xeb0] sm:$0xff]  ;;  %v8025_v46 = vld [vmem:[#allocation7 + $0xe98] sm:$0xff] }
 0x65e   :  { %v15008_v28 = vcombine.high %v8024_v32, %v8028_v11  ;;  %v15007_v48 = vcombine.low %v8024_v32, %v8028_v11  ;;  %v15009_v56 = vcombine.low %v8025_v46, %v8029_v35  ;;  %v8068_v24 = vld [vmem:[#allocation7 + $0xff0] sm:$0xff] }
 0x65f   :  { %11132 = vmatpush1.bf16.msra.mxu0 %v14959_v51  ;;  %v15010_v51 = vcombine.high %v8025_v46, %v8029_v35  ;;  %v15048_v32 = vcombine.high %v8064_v22, %v8068_v24 }
 0x660   :  { %11296 = vmatpush1.bf16.msra.mxu1 %v14961_v23  ;;  %11133 = vmatprep.subr.bf16.mxu0 %v14968_v61  ;;  %v8032_v23 = vld [vmem:[#allocation7 + $0xed0] sm:$0xff] }
 0x661   :  { %v16354_v54 = vpop.f32.mrb[8].mxu0  ;;  %v16356_v25 = vpop.f32.mrb[8].mxu1  ;;  %11297 = vmatprep.subr.bf16.mxu1 %v14970_v42  ;;  %v8036_v61 = vld [vmem:[#allocation7 + $0xef0] sm:$0xff]  ;;  %v8033_v42 = vld [vmem:[#allocation7 + $0xed8] sm:$0xff] }
 0x662   :  { %v10831_v57 = vpop.f32.mrb[9].mxu0  ;;  %v16358_v49 = vpop.f32.mrb[9].mxu1  ;;  %v15016_v0 = vcombine.high %v8032_v23, %v8036_v61  ;;  %v15015_v2 = vcombine.low %v8032_v23, %v8036_v61  ;;  %v15710_v23 = vld [vmem:[%s17018_s5 + $0x48] sm:$0xff]  }
 0x663   :  { %v10833_v26 = vpop.f32.mrb[10].mxu0  ;;  %v10997_v5 = vpop.f32.mrb[10].mxu1  ;;  %11134 = vmatpush1.bf16.msra.mxu0 %v14967_v50  ;;  %v16360_v34 = vadd.f32 %v10831_v57, %v8079_v40  ;;  %v15018_v50 = vcombine.high %v8033_v42, %v8037_v43  ;;  %v8040_v40 = vld [vmem:[#allocation7 + $0xf10] sm:$0xff]  ;;  %v15017_v57 = vcombine.low %v8033_v42, %v8037_v43  ;;  %v15712_v42 = vld [vmem:[%s17018_s5 + $0x50] sm:$0xff]  }
 0x664   :  { %11298 = vmatpush1.bf16.msra.mxu1 %v14969_v60  ;;  %v10834_v7 = vpop.f32.mrb[11].mxu0  ;;  %v10998_v27 = vpop.f32.mrb[11].mxu1  ;;  %11135 = vmatprep.subr.bf16.mxu0 %v14976_v16  ;;  %v8044_v60 = vld [vmem:[#allocation7 + $0xf30] sm:$0xff]  ;;  %v15713_v43 = vld [vmem:[%s17018_s5 + $0x10] sm:$0xff]  }
 0x665   :  { %11299 = vmatprep.subr.bf16.mxu1 %v14978_v37  ;;  %v15052_v14 = vmul.f32 -1.442695, %v16360_v34  ;;  %v8041_v37 = vld [vmem:[#allocation7 + $0xf18] sm:$0xff]  ;;  %v15024_v3 = vcombine.high %v8040_v40, %v8044_v60  ;;  %v8048_v5 = vld [vmem:[#allocation7 + $0xf50] sm:$0xff] }
 0x666   :  { %v15026_v26 = vcombine.high %v8041_v37, %v8045_v62  ;;  %v8049_v7 = vld [vmem:[#allocation7 + $0xf58] sm:$0xff] }
 0x667   :  { %11136 = vmatpush1.bf16.msra.mxu0 %v14975_v47  ;;  %15804 = vpow2.f32 %v15052_v14  ;;  %v8052_v47 = vld [vmem:[#allocation7 + $0xf70] sm:$0xff]  ;;  %v8053_v27 = vld [vmem:[#allocation7 + $0xf78] sm:$0xff]  ;;  %v8075_v14 = vrot.slane %v16349_v29, %v1140_v1  ;;  %v15039_v1 = vcombine.low %v8056_v15, %v8060_v59  ;;  %v15727_v59 = vld [vmem:[%s17018_s5 + $0x88] sm:$0xff]  }
 0x668   :  { %11300 = vmatpush1.bf16.msra.mxu1 %v14977_v9  ;;  %11137 = vmatprep.subr.bf16.mxu0 %v14984_v10  ;;  %v15023_v9 = vcombine.low %v8040_v40, %v8044_v60  ;;  %v15025_v10 = vcombine.low %v8041_v37, %v8045_v62  ;;  %v15034_v13 = vcombine.high %v8049_v7, %v8053_v27  ;;  %v15716_v60 = vld [vmem:[%s17018_s5 + $0x60] sm:$0xff]   ;;  %v15718_v37 = vld [vmem:[%s17018_s5 + $0x68] sm:$0xff]  }
 0x669   :  { %11301 = vmatprep.subr.bf16.mxu1 %v14986_v58  ;;  %v15032_v58 = vcombine.high %v8048_v5, %v8052_v47  ;;  %v8083_v62 = vrot.slane %v16349_v29, %v1148_v41  ;;  %v15722_v41 = vld [vmem:[%s17018_s5 + $0x78] sm:$0xff]  }
 0x66b   :  { %11138 = vmatpush1.bf16.msra.mxu0 %v14983_v18  ;;  %v8061_v18 = vld [vmem:[#allocation7 + $0xfb8] sm:$0xff] }
 0x66c   :  { %11302 = vmatpush1.bf16.msra.mxu1 %v14985_v19  ;;  %11139 = vmatprep.subr.bf16.mxu0 %v14992_v36  ;;  %v15031_v19 = vcombine.low %v8048_v5, %v8052_v47  ;;  %v8087_v36 = vrot.slane %v16349_v29, %v1152_v8  ;;  %v15042_v6 = vcombine.high %v8057_v17, %v8061_v18 }
 0x66d   :  { %11303 = vmatprep.subr.bf16.mxu1 %v14994_v20  ;;  %v15033_v20 = vcombine.low %v8049_v7, %v8053_v27  ;;  %v15041_v8 = vcombine.low %v8057_v17, %v8061_v18  ;;  %v15723_v7 = vld [vmem:[%s17018_s5 + $0x38] sm:$0xff]   ;;  %v15724_v27 = vld [vmem:[%s17018_s5 + $0xc0] sm:$0xff]   ;;  %v15728_v17 = vld [vmem:[%s17018_s5 + $0xd0] sm:$0xff]  }
 0x66e   :  { %v15729_v18 = vld [vmem:[%s17018_s5 + $0x90] sm:$0xff]  }
 0x66f   :  { %11140 = vmatpush1.bf16.msra.mxu0 %v14991_v12  ;;  %v8065_v12 = vld [vmem:[#allocation7 + $0xfd8] sm:$0xff] }
 0x670   :  { %11304 = vmatpush1.bf16.msra.mxu1 %v14993_v30  ;;  %11141 = vmatprep.subr.bf16.mxu0 %v15000_v44  ;;  %v8069_v30 = vld [vmem:[#allocation7 + $0xff8] sm:$0xff]  ;;  %v16370_v44 = vadd.f32 %v16354_v54, %v8075_v14 }
 0x671   :  { %11305 = vmatprep.subr.bf16.mxu1 %v15002_v45  ;;  %v15805_v16 = vpop.eup %15804  ;;  %v16373_v45 = vadd.f32 %v16358_v49, %v8087_v36  ;;  %v15050_v11 = vcombine.high %v8065_v12, %v8069_v30  ;;  %v15049_v54 = vcombine.low %v8065_v12, %v8069_v30  ;;  %v15708_v49 = vld [vmem:[%s17018_s5 + $0x40] sm:$0xff]   ;;  %v15736_v12 = vld [vmem:[%s17018_s5 + $0xf0] sm:$0xff]  }
 0x672   :  { %v11353_v4 = vadd.f32 1.0, %v15805_v16  ;;  %v15051_v35 = vmul.f32 -1.442695, %v16370_v44  ;;  %v15717_v16 = vld [vmem:[%s17018_s5 + $0x20] sm:$0xff]   ;;  %v15737_v30 = vld [vmem:[%s17018_s5 + $0xb0] sm:$0xff]  }
 0x673   :  { %11142 = vmatpush1.bf16.msra.mxu0 %v14999_v39  ;;  %v15047_v39 = vcombine.low %v8064_v22, %v8068_v24  ;;  %v15734_v22 = vld [vmem:[%s17018_s5 + $0xe8] sm:$0xff]  }
 0x674   :  { %11306 = vmatpush1.bf16.msra.mxu1 %v15001_v63  ;;  %11143 = vmatprep.subr.bf16.mxu0 %v15008_v28  ;;  %15806 = vrcp.f32 %v11353_v4  ;;  %v15054_v63 = vmul.f32 -1.442695, %v16373_v45  ;;  %v15721_v4 = vld [vmem:[%s17018_s5 + $0x30] sm:$0xff]   ;;  %v15735_v24 = vld [vmem:[%s17018_s5 + $0xa8] sm:$0xff]  }
 0x675   :  { %11307 = vmatprep.subr.bf16.mxu1 %v15010_v51  ;;  %15808 = vpow2.f32 %v15051_v35  ;;  %v15709_v51 = vld [vmem:[%s17018_s5] sm:$0xff]  }
 0x676   :  { %15810 = vpow2.f32 %v15054_v63  ;;  %v15742_v35 = vld [vmem:[%s17018_s5 + $0x100] sm:$0xff]   ;;  %v15744_v63 = vld [vmem:[%s17018_s5 + $0x148] sm:$0xff]  }
 0x677   :  { %11144 = vmatpush1.bf16.msra.mxu0 %v15007_v48 }
 0x678   :  { %11308 = vmatpush1.bf16.msra.mxu1 %v15009_v56  ;;  %11145 = vmatprep.subr.bf16.mxu0 %v15016_v0 }
 0x679   :  { %11309 = vmatprep.subr.bf16.mxu1 %v15018_v50  ;;  %v15715_v50 = vld [vmem:[%s17018_s5 + $0x18] sm:$0xff]  }
 0x67b   :  { %11146 = vmatpush1.bf16.msra.mxu0 %v15015_v2  ;;  %v15719_v2 = vld [vmem:[%s17018_s5 + $0x28] sm:$0xff]  }
 0x67c   :  { %11310 = vmatpush1.bf16.msra.mxu1 %v15017_v57  ;;  %11147 = vmatprep.subr.bf16.mxu0 %v15024_v3  ;;  %v15720_v57 = vld [vmem:[%s17018_s5 + $0x70] sm:$0xff]   ;;  %v15504_v3 = vadd.f32 %v16356_v25, %v8083_v62  ;;  %v15763_v62 = vld [vmem:[%s17018_s5 + $0x1a8] sm:$0xff]  }
 0x67d   :  { %11311 = vmatprep.subr.bf16.mxu1 %v15026_v26 }
 0x67e   :  { %v15807_v46 = vpop.eup %15806  ;;  %v15053_v47 = vmul.f32 -1.442695, %v15504_v3 }
 0x67f   :  { %11148 = vmatpush1.bf16.msra.mxu0 %v15023_v9  ;;  %v11377_v28 = vmul.f32 %v15807_v46, %v16360_v34  ;;  %v15711_v34 = vld [vmem:[%s17018_s5 + $0x8] sm:$0xff]   ;;  %v15809_v48 = vpop.eup %15808  ;;  %v15741_v46 = vld [vmem:[%s17018_s5 + $0x1c0] sm:$0xff]  }
 0x680   :  { %11312 = vmatpush1.bf16.msra.mxu1 %v15025_v10  ;;  %11149 = vmatprep.subr.bf16.mxu0 %v15032_v58  ;;  %v15811_v56 = vpop.eup %15810  ;;  %v11352_v0 = vadd.f32 1.0, %v15809_v48  ;;  %v15725_v10 = vld [vmem:[%s17018_s5 + $0x80] sm:$0xff]   ;;  %v15754_v48 = vld [vmem:[%s17018_s5 + $0x118] sm:$0xff]  }
 0x681   :  { %11313 = vmatprep.subr.bf16.mxu1 %v15034_v13  ;;  %v11385_v61 = vpack.c.bf16 %v11377_v28, %v11377_v28  ;;  %v11355_v40 = vadd.f32 1.0, %v15811_v56  ;;  %v15726_v13 = vld [vmem:[%s17018_s5 + $0xc8] sm:$0xff]   ;;  %v15756_v56 = vld [vmem:[%s17018_s5 + $0x160] sm:$0xff]  }
 0x682   :  { %15812 = vrcp.f32 %v11352_v0  ;;  %v15747_v28 = vld [vmem:[%s17018_s5 + $0x188] sm:$0xff]   ;;  %v15757_v0 = vld [vmem:[%s17018_s5 + $0x1e0] sm:$0xff]  }
 0x683   :  { %11150 = vmatpush1.bf16.msra.mxu0 %v15031_v19  ;;  %15814 = vrcp.f32 %v11355_v40  ;;  %v15730_v19 = vld [vmem:[%s17018_s5 + $0xd8] sm:$0xff]   ;;  %v15759_v40 = vld [vmem:[%s17018_s5 + $0x1a0] sm:$0xff]  }
 0x684   :  { %11314 = vmatpush1.bf16.msra.mxu1 %v15033_v20  ;;  %11151 = vmatprep.subr.bf16.mxu0 %v15040_v33  ;;  %15816 = vpow2.f32 %v15053_v47  ;;  %v15731_v20 = vld [vmem:[%s17018_s5 + $0x98] sm:$0xff]   ;;  %v15732_v33 = vld [vmem:[%s17018_s5 + $0xe0] sm:$0xff]  }
 0x685   :  { %11315 = vmatprep.subr.bf16.mxu1 %v15042_v6  ;;  %v15733_v6 = vld [vmem:[%s17018_s5 + $0xa0] sm:$0xff]   ;;  %v15771_v47 = vld [vmem:[%s17018_s5 + $0x1b8] sm:$0xff]  }
 0x687   :  { %11152 = vmatpush1.bf16.msra.mxu0 %v15039_v1 }
 0x688   :  { %11316 = vmatpush1.bf16.msra.mxu1 %v15041_v8  ;;  %11153 = vmatprep.subr.bf16.mxu0 %v15048_v32 }
 0x689   :  { %11317 = vmatprep.subr.bf16.mxu1 %v15050_v11  ;;  %v15740_v11 = vld [vmem:[%s17018_s5 + $0x140] sm:$0xff]  }
 0x68b   :  { %11154 = vmatpush1.bf16.msra.mxu0 %v15047_v39  ;;  %v15743_v39 = vld [vmem:[%s17018_s5 + $0x180] sm:$0xff]  }
 0x68c   :  { %11318 = vmatpush1.bf16.msra.mxu1 %v15049_v54  ;;  %v15813_v26 = vpop.eup %15812  ;;  %15254 = vmatprep.subr.bf16.mxu0 %v15740_v11  ;;  %v15745_v54 = vld [vmem:[%s17018_s5 + $0x1c8] sm:$0xff]  }
 0x68d   :  { %15210 = vmatprep.subr.bf16.mxu1 %v15708_v49  ;;  %v15815_v5 = vpop.eup %15814  ;;  %v11376_v25 = vmul.f32 %v15813_v26, %v16370_v44  ;;  %v15738_v44 = vld [vmem:[%s17018_s5 + $0xf8] sm:$0xff]   ;;  %v15746_v49 = vld [vmem:[%s17018_s5 + $0x108] sm:$0xff]  }
 0x68e   :  { %11156 = vmatmul.mubr.bf16.vlgmr.msra.gmra.mrb[12].mxu0 %v16331_v21  ;;  %v11379_v9 = vmul.f32 %v15815_v5, %v16373_v45  ;;  %v15817_v14 = vpop.eup %15816  ;;  %v15739_v45 = vld [vmem:[%s17018_s5 + $0xb8] sm:$0xff]  }
 0x68f   :  { %11320 = vmatmul.mubr.bf16.vlgmr.msra.gmra.mrb[12].mxu1 %v16331_v21  ;;  %v15714_v21 = vld [vmem:[%s17018_s5 + $0x58] sm:$0xff]   ;;  %v11384_v58 = vpack.c.bf16 %v11376_v25, %v11376_v25  ;;  %v11354_v36 = vadd.f32 1.0, %v15817_v14  ;;  %15255 = vmatpush3.bf16.msra.mxu0 %v15742_v35  ;;  %v8099_v25 = vrot.slane %v16349_v29, %v1164_v31 }
 0x690   :  { %15211 = vmatpush3.bf16.msra.mxu1 %v15709_v51  ;;  %11943 = vmatprep.mubr.bf16.mxu1 %v11385_v61  ;;  %v11387_v15 = vpack.c.bf16 %v11379_v9, %v11379_v9  ;;  %v15748_v51 = vld [vmem:[%s17018_s5 + $0x150] sm:$0xff]   ;;  %v15769_v26 = vld [vmem:[%s17018_s5 + $0x1f8] sm:$0xff]   ;;  %v8103_v9 = vrot.slane %v16349_v29, %v1168_v55 }
 0x691   :  { %15212 = vmatprep.subr.bf16.mxu1 %v15710_v23  ;;  %15818 = vrcp.f32 %v11354_v36  ;;  %15256 = vmatprep.subr.bf16.mxu0 %v15744_v63  ;;  %v15749_v23 = vld [vmem:[%s17018_s5 + $0x1d0] sm:$0xff]   ;;  %v15770_v5 = vld [vmem:[%s17018_s5 + $0x138] sm:$0xff]  }
 0x692   :  { %v15750_v61 = vld [vmem:[%s17018_s5 + $0x110] sm:$0xff]  }
 0x693   :  { %15257 = vmatpush3.bf16.msra.mxu0 %v15746_v49 }
 0x694   :  { %15213 = vmatpush3.bf16.msra.mxu1 %v15711_v34  ;;  %v15751_v34 = vld [vmem:[%s17018_s5 + $0x190] sm:$0xff]   ;;  %15258 = vmatprep.subr.bf16.mxu0 %v15748_v51 }
 0x695   :  { %15214 = vmatprep.subr.bf16.mxu1 %v15712_v42  ;;  %v15752_v42 = vld [vmem:[%s17018_s5 + $0x158] sm:$0xff]  }
 0x697   :  { %15259 = vmatpush3.bf16.msra.mxu0 %v15750_v61 }
 0x698   :  { %15215 = vmatpush3.bf16.msra.mxu1 %v15713_v43  ;;  %v15753_v43 = vld [vmem:[%s17018_s5 + $0x1d8] sm:$0xff]   ;;  %15260 = vmatprep.subr.bf16.mxu0 %v15752_v42 }
 0x699   :  { %15216 = vmatprep.subr.bf16.mxu1 %v15714_v21  ;;  %v15755_v21 = vld [vmem:[%s17018_s5 + $0x198] sm:$0xff]  }
 0x69b   :  { %v15819_v1 = vpop.eup %15818  ;;  %15261 = vmatpush3.bf16.msra.mxu0 %v15754_v48 }
 0x69c   :  { %15217 = vmatpush3.bf16.msra.mxu1 %v15715_v50  ;;  %v11378_v8 = vmul.f32 %v15819_v1, %v15504_v3  ;;  %v15758_v50 = vld [vmem:[%s17018_s5 + $0x120] sm:$0xff]   ;;  %15262 = vmatprep.subr.bf16.mxu0 %v15756_v56  ;;  %v15766_v3 = vld [vmem:[%s17018_s5 + $0x130] sm:$0xff]  }
 0x69d   :  { %15218 = vmatprep.subr.bf16.mxu1 %v15716_v60  ;;  %v15760_v60 = vld [vmem:[%s17018_s5 + $0x168] sm:$0xff]  }
 0x69e   :  { %v11386_v32 = vpack.c.bf16 %v11378_v8, %v11378_v8 }
 0x69f   :  { %15263 = vmatpush3.bf16.msra.mxu0 %v15758_v50 }
 0x6a0   :  { %15219 = vmatpush3.bf16.msra.mxu1 %v15717_v16  ;;  %v15761_v16 = vld [vmem:[%s17018_s5 + $0x1e8] sm:$0xff]   ;;  %15264 = vmatprep.subr.bf16.mxu0 %v15760_v60 }
 0x6a1   :  { %15220 = vmatprep.subr.bf16.mxu1 %v15718_v37  ;;  %v15762_v37 = vld [vmem:[%s17018_s5 + $0x128] sm:$0xff]  }
 0x6a3   :  { %15265 = vmatpush3.bf16.msra.mxu0 %v15762_v37  ;;  %v15157_v37 = vld [vmem:[%s17020_s7 + $0x18] sm:$0x3] }
 0x6a4   :  { %15221 = vmatpush3.bf16.msra.mxu1 %v15719_v2  ;;  %v15764_v2 = vld [vmem:[%s17018_s5 + $0x170] sm:$0xff]  }
 0x6a5   :  { %15222 = vmatprep.subr.bf16.mxu1 %v15720_v57  ;;  %v15765_v57 = vld [vmem:[%s17018_s5 + $0x1f0] sm:$0xff]   ;;  %15266 = vmatprep.subr.bf16.mxu0 %v15764_v2 }
 0x6a7   :  { %15267 = vmatpush3.bf16.msra.mxu0 %v15766_v3  ;;  %v15996_v3 = vmov 0.0  }
 0x6a8   :  { %15223 = vmatpush3.bf16.msra.mxu1 %v15721_v4  ;;  %v15767_v4 = vld [vmem:[%s17018_s5 + $0x1b0] sm:$0xff]  }
 0x6a9   :  { %15224 = vmatprep.subr.bf16.mxu1 %v15722_v41  ;;  %v15768_v41 = vld [vmem:[%s17018_s5 + $0x178] sm:$0xff]  }
 0x6aa   :  { %15268 = vmatprep.subr.bf16.mxu0 %v15768_v41 }
 0x6ab   :  { %15269 = vmatpush3.bf16.msra.mxu0 %v15770_v5 }
 0x6ac   :  { %15225 = vmatpush3.bf16.msra.mxu1 %v15723_v7  ;;  %v8091_v7 = vrot.slane %v16349_v29, %v1156_v52 }
 0x6ad   :  { %15232 = vmatprep.subr.bf16.mxu1 %v15724_v27  ;;  %v8095_v27 = vrot.slane %v16349_v29, %v1160_v53 }
 0x6af   :  { %11944 = vmatmul.mubr.bf16.vlgmr.msra.gmra.mrb[16].mxu1 %v11384_v58 }
 0x6b0   :  { %15233 = vmatpush3.bf16.msra.mxu1 %v15725_v10  ;;  %11983 = vmatprep.mubr.bf16.mxu1 %v11387_v15 }
 0x6b1   :  { %15234 = vmatprep.subr.bf16.mxu1 %v15726_v13 }
 0x6b4   :  { %15235 = vmatpush3.bf16.msra.mxu1 %v15727_v59 }
 0x6b5   :  { %15236 = vmatprep.subr.bf16.mxu1 %v15728_v17 }
 0x6b8   :  { %15237 = vmatpush3.bf16.msra.mxu1 %v15729_v18 }
 0x6b9   :  { %15238 = vmatprep.subr.bf16.mxu1 %v15730_v19 }
 0x6bc   :  { %15239 = vmatpush3.bf16.msra.mxu1 %v15731_v20 }
 0x6bd   :  { %15240 = vmatprep.subr.bf16.mxu1 %v15732_v33 }
 0x6c0   :  { %15241 = vmatpush3.bf16.msra.mxu1 %v15733_v6 }
 0x6c1   :  { %15242 = vmatprep.subr.bf16.mxu1 %v15734_v22 }
 0x6c4   :  { %15243 = vmatpush3.bf16.msra.mxu1 %v15735_v24 }
 0x6c5   :  { %15244 = vmatprep.subr.bf16.mxu1 %v15736_v12 }
 0x6c8   :  { %15245 = vmatpush3.bf16.msra.mxu1 %v15737_v30 }
 0x6c9   :  { %15246 = vmatprep.subr.bf16.mxu1 %v15738_v44 }
 0x6cc   :  { %15247 = vmatpush3.bf16.msra.mxu1 %v15739_v45 }
 0x6cd   :  { %15276 = vmatprep.subr.bf16.mxu1 %v15741_v46 }
 0x6cf   :  { %11984 = vmatmul.mubr.bf16.vlgmr.msra.gmra.mrb[20].mxu1 %v11386_v32 }
 0x6d0   :  { %15277 = vmatpush3.bf16.msra.mxu1 %v15743_v39 }
 0x6d1   :  { %15278 = vmatprep.subr.bf16.mxu1 %v15745_v54 }
 0x6d4   :  { %15279 = vmatpush3.bf16.msra.mxu1 %v15747_v28 }
 0x6d5   :  { %15280 = vmatprep.subr.bf16.mxu1 %v15749_v23 }
 0x6d8   :  { %15281 = vmatpush3.bf16.msra.mxu1 %v15751_v34 }
 0x6d9   :  { %15282 = vmatprep.subr.bf16.mxu1 %v15753_v43  ;;  %v15059_v43 = vld [vmem:[#allocation10] ss:$0 sm:$0xff] }
 0x6dc   :  { %15283 = vmatpush3.bf16.msra.mxu1 %v15755_v21 }
 0x6dd   :  { %15284 = vmatprep.subr.bf16.mxu1 %v15757_v0 }
 0x6e0   :  { %15285 = vmatpush3.bf16.msra.mxu1 %v15759_v40 }
 0x6e1   :  { %15286 = vmatprep.subr.bf16.mxu1 %v15761_v16  ;;  %v15156_v16 = vld [vmem:[%s17020_s7 + $0x10] sm:$0xff] }
 0x6e2   :  { %v15439_v2 = vpack.c.bf16 %v15157_v37, %v15156_v16  ;;  %v16707_v16 = vld [vmem:[%s17020_s7] sm:$0xff]  ;;  %v16712_v37 = vld [vmem:[%s17020_s7 + $0x8] sm:$0x3] }
 0x6e4   :  { %15287 = vmatpush3.bf16.msra.mxu1 %v15763_v62  ;;  %v15993_v62 = vmov 0.0|0.0  }
 0x6e5   :  { %15288 = vmatprep.subr.bf16.mxu1 %v15765_v57  ;;  %15438 = vmatprep.subr.bf16.mxu0 %v15993_v62 }
 0x6e8   :  { %15289 = vmatpush3.bf16.msra.mxu1 %v15767_v4 }
 0x6e9   :  { %15290 = vmatprep.subr.bf16.mxu1 %v15769_v26 }
 0x6ec   :  { %15291 = vmatpush3.bf16.msra.mxu1 %v15771_v47 }
 0x761   :  { %v11157_v10 = vpop.f32.mrb[12].mxu0 }
 0x762   :  { %v15506_v58 = vadd.f32 %v11157_v10, %v8091_v7  ;;  %v11321_v13 = vpop.f32.mrb[12].mxu1  ;;  %v11159_v15 = vpop.f32.mrb[13].mxu0 }
 0x763   :  { %v15508_v59 = vadd.f32 %v11321_v13, %v8099_v25  ;;  %v15507_v17 = vadd.f32 %v11159_v15, %v8095_v27  ;;  %v11323_v18 = vpop.f32.mrb[13].mxu1  ;;  %v11161_v52 = vpop.f32.mrb[14].mxu0 }
 0x764   :  { %v15055_v14 = vmul.f32 -1.442695, %v15506_v58  ;;  %v15509_v19 = vadd.f32 %v11323_v18, %v8103_v9  ;;  %v11325_v36 = vpop.f32.mrb[14].mxu1  ;;  %v11162_v31 = vpop.f32.mrb[15].mxu0  ;;  %v16609_v18 = vld [vmem:[%s17020_s7 + $0x30] sm:$0xff] }
 0x765   :  { %v15057_v20 = vmul.f32 -1.442695, %v15508_v59  ;;  %v15056_v33 = vmul.f32 -1.442695, %v15507_v17  ;;  %v11326_v6 = vpop.f32.mrb[15].mxu1  ;;  %v16629_v36 = vld [vmem:[%s17020_s7 + $0x70] sm:$0xff] }
 0x766   :  { %15820 = vpow2.f32 %v15055_v14  ;;  %v15058_v53 = vmul.f32 -1.442695, %v15509_v19  ;;  %v16614_v52 = vld [vmem:[%s17020_s7 + $0x38] sm:$0x3]  ;;  %v16619_v14 = vld [vmem:[%s17020_s7 + $0x50] sm:$0xff] }
 0x767   :  { %15822 = vpow2.f32 %v15057_v20  ;;  %v16634_v31 = vld [vmem:[%s17020_s7 + $0x78] sm:$0x3]  ;;  %v16639_v20 = vld [vmem:[%s17020_s7 + $0x90] sm:$0xff] }
 0x768   :  { %15824 = vpow2.f32 %v15056_v33  ;;  %v16644_v33 = vld [vmem:[%s17020_s7 + $0x98] sm:$0x3]  ;;  %v16649_v6 = vld [vmem:[%s17020_s7 + $0xb0] sm:$0xff] }
 0x769   :  { %15826 = vpow2.f32 %v15058_v53  ;;  %v16654_v53 = vld [vmem:[%s17020_s7 + $0xb8] sm:$0x3] }
 0x770   :  { %v15821_v38 = vpop.eup %15820 }
 0x771   :  { %v15823_v55 = vpop.eup %15822  ;;  %v11356_v29 = vadd.f32 1.0, %v15821_v38 }
 0x772   :  { %v15825_v22 = vpop.eup %15824  ;;  %v11358_v24 = vadd.f32 1.0, %v15823_v55  ;;  %v16659_v55 = vld [vmem:[%s17020_s7 + $0xd0] sm:$0xff] }
 0x773   :  { %v15827_v12 = vpop.eup %15826  ;;  %15828 = vrcp.f32 %v11356_v29  ;;  %v11357_v30 = vadd.f32 1.0, %v15825_v22  ;;  %v16664_v29 = vld [vmem:[%s17020_s7 + $0xd8] sm:$0x3] }
 0x774   :  { %15830 = vrcp.f32 %v11358_v24  ;;  %v11359_v44 = vadd.f32 1.0, %v15827_v12  ;;  %v15443_v24 = vpack.c.bf16 %v16614_v52, %v16609_v18 }
 0x775   :  { %15832 = vrcp.f32 %v11357_v30  ;;  %v15451_v30 = vpack.c.bf16 %v16634_v31, %v16629_v36 }
 0x776   :  { %15834 = vrcp.f32 %v11359_v44  ;;  %v15455_v44 = vpack.c.bf16 %v16644_v33, %v16639_v20 }
 0x77d   :  { %v15829_v1 = vpop.eup %15828 }
 0x77e   :  { %v15831_v45 = vpop.eup %15830  ;;  %v11380_v32 = vmul.f32 %v15829_v1, %v15506_v58  ;;  %v15459_v1 = vpack.c.bf16 %v16654_v53, %v16649_v6 }
 0x77f   :  { %v15833_v8 = vpop.eup %15832  ;;  %v11382_v46 = vmul.f32 %v15831_v45, %v15508_v59  ;;  %v15463_v45 = vpack.c.bf16 %v16664_v29, %v16659_v55 }
 0x780   :  { %v15835_v11 = vpop.eup %15834  ;;  %v11381_v35 = vmul.f32 %v15833_v8, %v15507_v17  ;;  %v11388_v49 = vpack.c.bf16 %v11380_v32, %v11380_v32 }
 0x781   :  { %v11383_v39 = vmul.f32 %v15835_v11, %v15509_v19  ;;  %v11390_v23 = vpack.c.bf16 %v11382_v46, %v11382_v46  ;;  %v16624_v19 = vld [vmem:[%s17020_s7 + $0x58] sm:$0x3] }
 0x782   :  { %v11389_v63 = vpack.c.bf16 %v11381_v35, %v11381_v35  ;;  %v15226_v54 = vpop.f32.mrb[16].mxu1  ;;  %v15447_v12 = vpack.c.bf16 %v16624_v19, %v16619_v14 }
 0x783   :  { %v11391_v28 = vpack.c.bf16 %v11383_v39, %v11383_v39  ;;  %v15227_v51 = vpop.f32.mrb[17].mxu1 }
 0x784   :  { %v15228_v61 = vadd.f32 %v15227_v51, %v15226_v54  ;;  %v15229_v34 = vpop.f32.mrb[18].mxu1  ;;  %12023 = vmatprep.mubr.bf16.mxu0 %v11389_v63 }
 0x785   :  { %12063 = vmatprep.mubr.bf16.mxu1 %v11391_v28  ;;  %v15230_v42 = vpop.f32.mrb[19].mxu1  ;;  %12024 = vmatmul.mubr.bf16.vlgmr.msra.gmra.mrb[16].mxu0 %v11388_v49 }
 0x786   :  { %12064 = vmatmul.mubr.bf16.vlgmr.msra.gmra.mrb[24].mxu1 %v11390_v23  ;;  %v11946_v56 = vadd.f32 %v15228_v61, %v15059_v43  ;;  %15344 = vmatprep.mubr.msk.f32.mxu0 %vm15995_vm4, %v15996_v3 }
 0x787   :  { %15441 = vmatpush3.bf16.msk.msra.mxu0 %vm16597_vm3, %v15439_v2 }
 0x788   :  { %15442 = vmatprep.subr.bf16.mxu0 %v15993_v62 }
 0x7a2   :  { %v15248_v48 = vpop.f32.mrb[20].mxu1 }
 0x7a3   :  { %v15249_v21 = vpop.f32.mrb[21].mxu1 }
 0x7a4   :  { %v15250_v0 = vadd.f32 %v15249_v21, %v15248_v48  ;;  %v15251_v50 = vpop.f32.mrb[22].mxu1 }
 0x7a5   :  { %v15252_v40 = vpop.f32.mrb[23].mxu1 }
 0x7a6   :  { %v11986_v60 = vadd.f32 %v15250_v0, %v11946_v56 }
 0x858   :  { %v15270_v4 = vpop.f32.mrb[16].mxu0 }
 0x859   :  { %v15292_v41 = vpop.f32.mrb[24].mxu1  ;;  %v15271_v26 = vpop.f32.mrb[17].mxu0 }
 0x85a   :  { %v15272_v5 = vadd.f32 %v15271_v26, %v15270_v4  ;;  %v15293_v47 = vpop.f32.mrb[25].mxu1  ;;  %v15273_v7 = vpop.f32.mrb[18].mxu0 }
 0x85b   :  { %v15294_v25 = vadd.f32 %v15293_v47, %v15292_v41  ;;  %v15295_v27 = vpop.f32.mrb[26].mxu1  ;;  %v15274_v9 = vpop.f32.mrb[19].mxu0 }
 0x85c   :  { %v12026_v10 = vadd.f32 %v15272_v5, %v11986_v60  ;;  %v15296_v58 = vpop.f32.mrb[27].mxu1 }
 0x85e   :  { %v12066_v13 = vadd.f32 %v15294_v25, %v12026_v10 }
 0x860   :  { %v15124_v15 = vmul.f32 -1.442695, %v12066_v13 }
 0x862   :  { %15836 = vpow2.f32 %v15124_v15 }
 0x86c   :  { %v15837_v59 = vpop.eup %15836 }
 0x86d   :  { %v12074_v17 = vadd.f32 1.0, %v15837_v59 }
 0x86f   :  { %15838 = vrcp.f32 %v12074_v17 }
 0x879   :  { %v15839_v38 = vpop.eup %15838 }
 0x87a   :  { %v16666_v22 = vmul.f32 %v15839_v38, %v12066_v13 }
 0x87c   :  { %vm12087_vm5 = vcmp.ge.f32.partialorder %v16666_v22, -1.6  ;;  %vm12088_vm6 = vcmp.lt.f32.partialorder %v16666_v22, -1.4  ;;  %vm12092_vm7 = vcmp.ge.f32.partialorder %v16666_v22, -1.4 }
 0x87d   :  { %vm12089_vm8 = vmand %vm12087_vm5, %vm12088_vm6  ;;  %vm12093_vm9 = vcmp.lt.f32.partialorder %v16666_v22, -1.2  ;;  %vm12097_vm10 = vcmp.ge.f32.partialorder %v16666_v22, -1.2  ;;  %vm12098_vm11 = vcmp.lt.f32.partialorder %v16666_v22, -1.0  ;;  %vm12102_vm12 = vcmp.ge.f32.partialorder %v16666_v22, -1.0 }
 0x87e   :  { %v15126_v8 = vsel %vm12089_vm8, 1.0, %v15996_v3  ;;  %vm12094_vm13 = vmand %vm12092_vm7, %vm12093_vm9  ;;  %vm12103_vm14 = vcmp.lt.f32.partialorder %v16666_v22, -0.8  ;;  %v15142_v32 = vadd.f32 1.6, %v16666_v22  ;;  %v12177_v11 = vsub.f32 -1.0, %v16666_v22 }
 0x87f   :  { %v15127_v46 = vsel %vm12094_vm13, 1.0, %v15996_v3  ;;  %vm12099_vm15 = vmand %vm12097_vm10, %vm12098_vm11  ;;  %v12170_v35 = vsub.f32 -1.2, %v16666_v22  ;;  %v16694_v39 = vadd.f32 1.4, %v16666_v22  ;;  %v16697_v63 = vadd.f32 1.0, %v16666_v22 }
 0x880   :  { %v15128_v54 = vsel %vm12099_vm15, 1.0, %v15996_v3  ;;  %vm12104_vm0 = vmand %vm12102_vm12, %vm12103_vm14  ;;  %v12168_v49 = vmul.f32 5.0, %v15142_v32  ;;  %v12178_v28 = vmul.f32 5.0, %v12177_v11  ;;  %v15144_v51 = vadd.f32 1.2, %v16666_v22 }
 0x881   :  { %v15129_v23 = vsel %vm12104_vm0, 1.0, %v15996_v3  ;;  %v12171_v61 = vmul.f32 5.0, %v12170_v35  ;;  %v12175_v34 = vmul.f32 5.0, %v16694_v39  ;;  %v12184_v42 = vsub.f32 -0.8, %v16666_v22 }
 0x882   :  { %v12169_v43 = vmul.f32 %v15126_v8, %v12168_v49  ;;  %v12179_v48 = vmul.f32 %v15128_v54, %v12178_v28  ;;  %v12182_v21 = vmul.f32 5.0, %v15144_v51  ;;  %v12271_v56 = vmul.f32 2.5, %v15142_v32 }
 0x883   :  { %v12172_v0 = vmul.f32 %v15127_v46, %v12171_v61  ;;  %v12176_v50 = vmul.f32 %v15127_v46, %v12175_v34  ;;  %v12185_v40 = vmul.f32 5.0, %v12184_v42  ;;  %v12273_v60 = vmul.f32 2.5, %v12177_v11 }
 0x884   :  { %v12183_v2 = vmul.f32 %v15128_v54, %v12182_v21  ;;  %v12276_v4 = vmul.f32 2.5, %v16694_v39  ;;  %v12278_v41 = vmul.f32 2.5, %v12184_v42  ;;  %v12341_v26 = vmul.f32 1.6666666, %v15142_v32 }
 0x885   :  { %v12173_v5 = vadd.f32 %v12172_v0, %v12169_v43  ;;  %v12180_v47 = vadd.f32 %v12179_v48, %v12176_v50  ;;  %v12186_v7 = vmul.f32 %v15129_v23, %v12185_v40  ;;  %v12343_v25 = vmul.f32 1.6666666, %v12184_v42 }
 0x886   :  { %vm12107_vm2 = vcmp.ge.f32.partialorder %v16666_v22, -0.8  ;;  %vm12108_vm5 = vcmp.lt.f32.partialorder %v16666_v22, -0.6  ;;  %vm12112_vm6 = vcmp.ge.f32.partialorder %v16666_v22, -0.6 }
 0x887   :  { %v12187_v9 = vadd.f32 %v12186_v7, %v12183_v2  ;;  %v12272_v10 = vmul.f32 %v12271_v56, %v12173_v5  ;;  %v12274_v58 = vmul.f32 %v12273_v60, %v12180_v47  ;;  %v12277_v13 = vmul.f32 %v12276_v4, %v12180_v47  ;;  %vm12109_vm7 = vmand %vm12107_vm2, %vm12108_vm5 }
 0x888   :  { %v15130_v15 = vsel %vm12109_vm7, 1.0, %v15996_v3  ;;  %vm12113_vm8 = vcmp.lt.f32.partialorder %v16666_v22, -0.4  ;;  %v12189_v59 = vmul.f32 5.0, %v16697_v63  ;;  %v16724_v17 = vsub.f32 -0.6, %v16666_v22 }
 0x889   :  { %v12275_v38 = vadd.f32 %v12274_v58, %v12272_v10  ;;  %v12279_v8 = vmul.f32 %v12278_v41, %v12187_v9  ;;  %vm12114_vm9 = vmand %vm12112_vm6, %vm12113_vm8  ;;  %v15146_v32 = vadd.f32 0.8, %v16666_v22  ;;  %v12198_v11 = vsub.f32 -0.4, %v16666_v22 }
 0x88a   :  { %v15131_v46 = vsel %vm12114_vm9, 1.0, %v15996_v3  ;;  %v12190_v35 = vmul.f32 %v15129_v23, %v12189_v59  ;;  %v12192_v54 = vmul.f32 5.0, %v16724_v17  ;;  %v12281_v49 = vmul.f32 2.5, %v15144_v51 }
 0x88b   :  { %v16730_v28 = vadd.f32 %v12279_v8, %v12277_v13  ;;  %v12342_v61 = vmul.f32 %v12341_v26, %v12275_v38  ;;  %v12196_v34 = vmul.f32 5.0, %v15146_v32  ;;  %v12199_v42 = vmul.f32 5.0, %v12198_v11 }
 0x88c   :  { %v12193_v43 = vmul.f32 %v15130_v15, %v12192_v54  ;;  %v12282_v48 = vmul.f32 %v12281_v49, %v12187_v9  ;;  %v12283_v21 = vmul.f32 2.5, %v16724_v17  ;;  %v12286_v56 = vmul.f32 2.5, %v16697_v63 }
 0x88d   :  { %v12344_v0 = vmul.f32 %v12343_v25, %v16730_v28  ;;  %v12197_v50 = vmul.f32 %v15130_v15, %v12196_v34  ;;  %v12200_v40 = vmul.f32 %v15131_v46, %v12199_v42  ;;  %v12288_v60 = vmul.f32 2.5, %v12198_v11 }
 0x88e   :  { %v12194_v23 = vadd.f32 %v12193_v43, %v12190_v35  ;;  %v12351_v2 = vmul.f32 1.6666666, %v15144_v51  ;;  %v12353_v4 = vmul.f32 1.6666666, %v12198_v11  ;;  %vm12117_vm10 = vcmp.ge.f32.partialorder %v16666_v22, -0.4 }
 0x88f   :  { %v12345_v41 = vadd.f32 %v12344_v0, %v12342_v61  ;;  %v12201_v26 = vadd.f32 %v12200_v40, %v12197_v50  ;;  %vm12118_vm11 = vcmp.lt.f32.partialorder %v16666_v22, -0.2  ;;  %vm12122_vm12 = vcmp.ge.f32.partialorder %v16666_v22, -0.2 }
 0x890   :  { %v12284_v5 = vmul.f32 %v12283_v21, %v12194_v23  ;;  %v12287_v47 = vmul.f32 %v12286_v56, %v12194_v23  ;;  %vm12119_vm13 = vmand %vm12117_vm10, %vm12118_vm11  ;;  %vm12123_vm14 = vcmp.lt.f32.partialorder %v16666_v22, 0.0  ;;  %v16740_v7 = vadd.f32 0.6, %v16666_v22 }
 0x891   :  { %15345 = vmatmul.mubr.msk.f32.vlgmr.msra.gmra.mrb[20].mxu0 %vm12409_vm1, %v12345_v41  ;;  %v12289_v51 = vmul.f32 %v12288_v60, %v12201_v26  ;;  %v15132_v25 = vsel %vm12119_vm13, 1.0, %v15996_v3  ;;  %vm12124_vm15 = vmand %vm12122_vm12, %vm12123_vm14  ;;  %v16745_v9 = vsub.f32 -0.2, %v16666_v22  ;;  %v16748_v10 = vadd.f32 0.4, %v16666_v22 }
 0x892   :  { %15445 = vmatpush3.bf16.msk.msra.mxu0 %vm16597_vm3, %v15443_v24  ;;  %15351 = vmatprep.mubr.msk.f32.mxu0 %vm15995_vm4, %v15996_v3  ;;  %v16757_v58 = vadd.f32 %v12284_v5, %v12282_v48  ;;  %v15133_v13 = vsel %vm12124_vm15, 1.0, %v15996_v3  ;;  %v12203_v15 = vmul.f32 5.0, %v16740_v7  ;;  %v12212_v59 = vsub.f32 0.0, %v16666_v22 }
 0x893   :  { %15446 = vmatprep.subr.bf16.mxu0 %v15993_v62  ;;  %v16763_v38 = vadd.f32 %v12289_v51, %v12287_v47  ;;  %v12206_v18 = vmul.f32 5.0, %v16745_v9  ;;  %v12210_v52 = vmul.f32 5.0, %v16748_v10  ;;  %v12291_v24 = vmul.f32 2.5, %v15146_v32 }
 0x894   :  { %v12352_v8 = vmul.f32 %v12351_v2, %v16757_v58  ;;  %v12204_v11 = vmul.f32 %v15131_v46, %v12203_v15  ;;  %v12213_v35 = vmul.f32 5.0, %v12212_v59  ;;  %v12293_v54 = vmul.f32 2.5, %v16745_v9 }
 0x895   :  { %v12354_v49 = vmul.f32 %v12353_v4, %v16763_v38  ;;  %v12207_v61 = vmul.f32 %v15132_v25, %v12206_v18  ;;  %v12211_v34 = vmul.f32 %v15132_v25, %v12210_v52  ;;  %v12292_v42 = vmul.f32 %v12291_v24, %v12201_v26 }
 0x896   :  { %v12214_v43 = vmul.f32 %v15133_v13, %v12213_v35  ;;  %v12296_v48 = vmul.f32 2.5, %v16740_v7  ;;  %v12298_v21 = vmul.f32 2.5, %v12212_v59  ;;  %v12361_v56 = vmul.f32 1.6666666, %v15146_v32 }
 0x897   :  { %v12355_v0 = vadd.f32 %v12354_v49, %v12352_v8  ;;  %v12208_v50 = vadd.f32 %v12207_v61, %v12204_v11  ;;  %v12363_v40 = vmul.f32 1.6666666, %v12212_v59  ;;  %vm12127_vm0 = vcmp.ge.f32.partialorder %v16666_v22, 0.0 }
 0x898   :  { %v12215_v60 = vadd.f32 %v12214_v43, %v12211_v34  ;;  %vm12128_vm2 = vcmp.lt.f32.partialorder %v16666_v22, 0.2  ;;  %vm12132_vm5 = vcmp.ge.f32.partialorder %v16666_v22, 0.2  ;;  %vm12133_vm6 = vcmp.lt.f32.partialorder %v16666_v22, 0.4 }
 0x899   :  { %15352 = vmatmul.mubr.msk.f32.vlgmr.msra.gmra.mrb[20].mxu0 %vm12409_vm1, %v12355_v0  ;;  %v12294_v46 = vmul.f32 %v12293_v54, %v12208_v50  ;;  %v12297_v23 = vmul.f32 %v12296_v48, %v12208_v50  ;;  %vm12129_vm7 = vmand %vm12127_vm0, %vm12128_vm2  ;;  %v16777_v2 = vadd.f32 0.2, %v16666_v22  ;;  %v16780_v32 = vsub.f32 0.2, %v16666_v22 }
 0x89a   :  { %15449 = vmatpush3.bf16.msk.msra.mxu0 %vm16597_vm3, %v15447_v12  ;;  %15358 = vmatprep.mubr.msk.f32.mxu0 %vm15995_vm4, %v15996_v3  ;;  %v12299_v4 = vmul.f32 %v12298_v21, %v12215_v60  ;;  %v15134_v41 = vsel %vm12129_vm7, 1.0, %v15996_v3  ;;  %vm12134_vm8 = vmand %vm12132_vm5, %vm12133_vm6  ;;  %v12223_v26 = vmul.f32 5.0, %v16666_v22  ;;  %v12225_v5 = vsub.f32 0.4, %v16666_v22 }
 0x89b   :  { %15450 = vmatprep.subr.bf16.mxu0 %v15993_v62  ;;  %v16793_v47 = vadd.f32 %v12294_v46, %v12292_v42  ;;  %v15135_v14 = vsel %vm12134_vm8, 1.0, %v15996_v3  ;;  %v12217_v19 = vmul.f32 5.0, %v16777_v2  ;;  %v12220_v12 = vmul.f32 5.0, %v16780_v32 }
 0x89c   :  { %v16798_v51 = vadd.f32 %v12299_v4, %v12297_v23  ;;  %v12224_v25 = vmul.f32 %v15134_v41, %v12223_v26  ;;  %v12226_v15 = vmul.f32 5.0, %v12225_v5  ;;  %v12301_v59 = vmul.f32 2.5, %v16748_v10 }
 0x89d   :  { %v12362_v18 = vmul.f32 %v12361_v56, %v16793_v47  ;;  %v12218_v52 = vmul.f32 %v15133_v13, %v12217_v19  ;;  %v12221_v24 = vmul.f32 %v15134_v41, %v12220_v12  ;;  %v12303_v8 = vmul.f32 2.5, %v16780_v32 }
 0x89e   :  { %v12364_v11 = vmul.f32 %v12363_v40, %v16798_v51  ;;  %v12227_v35 = vmul.f32 %v15135_v14, %v12226_v15  ;;  %v12302_v54 = vmul.f32 %v12301_v59, %v12215_v60  ;;  %v12306_v49 = vmul.f32 2.5, %v16777_v2 }
 0x89f   :  { %v12222_v61 = vadd.f32 %v12221_v24, %v12218_v52  ;;  %v12308_v34 = vmul.f32 2.5, %v12225_v5  ;;  %v12371_v42 = vmul.f32 1.6666666, %v16748_v10  ;;  %v12373_v43 = vmul.f32 1.6666666, %v12225_v5 }
 0x8a0   :  { %v12365_v48 = vadd.f32 %v12364_v11, %v12362_v18  ;;  %v12228_v21 = vadd.f32 %v12227_v35, %v12224_v25  ;;  %vm12137_vm9 = vcmp.ge.f32.partialorder %v16666_v22, 0.4  ;;  %vm12138_vm10 = vcmp.lt.f32.partialorder %v16666_v22, 0.6 }
 0x8a1   :  { %v12304_v13 = vmul.f32 %v12303_v8, %v12222_v61  ;;  %v12307_v56 = vmul.f32 %v12306_v49, %v12222_v61  ;;  %vm12139_vm11 = vmand %vm12137_vm9, %vm12138_vm10  ;;  %vm12142_vm12 = vcmp.ge.f32.partialorder %v16666_v22, 0.6  ;;  %vm12143_vm13 = vcmp.lt.f32.partialorder %v16666_v22, 0.8 }
 0x8a2   :  { %15359 = vmatmul.mubr.msk.f32.vlgmr.msra.gmra.mrb[20].mxu0 %vm12409_vm1, %v12365_v48  ;;  %v12309_v0 = vmul.f32 %v12308_v34, %v12228_v21  ;;  %v15136_v50 = vsel %vm12139_vm11, 1.0, %v15996_v3  ;;  %vm12144_vm14 = vmand %vm12142_vm12, %vm12143_vm13  ;;  %v16813_v10 = vadd.f32 -0.2, %v16666_v22  ;;  %v16816_v40 = vsub.f32 0.6, %v16666_v22 }
 0x8a3   :  { %15453 = vmatpush3.bf16.msk.msra.mxu0 %vm16597_vm3, %v15451_v30  ;;  %15365 = vmatprep.mubr.msk.f32.mxu0 %vm15995_vm4, %v15996_v3  ;;  %v16825_v60 = vadd.f32 %v12304_v13, %v12302_v54  ;;  %v15137_v46 = vsel %vm12144_vm14, 1.0, %v15996_v3  ;;  %v15151_v23 = vadd.f32 -0.4, %v16666_v22  ;;  %v12239_v4 = vsub.f32 0.8, %v16666_v22 }
 0x8a4   :  { %15454 = vmatprep.subr.bf16.mxu0 %v15993_v62  ;;  %v16831_v41 = vadd.f32 %v12309_v0, %v12307_v56  ;;  %v12230_v36 = vmul.f32 5.0, %v16813_v10  ;;  %v12233_v31 = vmul.f32 5.0, %v16816_v40  ;;  %v12311_v30 = vmul.f32 2.5, %v16666_v22 }
 0x8a5   :  { %v12372_v26 = vmul.f32 %v12371_v42, %v16825_v60  ;;  %v12237_v5 = vmul.f32 5.0, %v15151_v23  ;;  %v12240_v19 = vmul.f32 5.0, %v12239_v4  ;;  %v12313_v12 = vmul.f32 2.5, %v16816_v40 }
 0x8a6   :  { %v12374_v25 = vmul.f32 %v12373_v43, %v16831_v41  ;;  %v12231_v15 = vmul.f32 %v15135_v14, %v12230_v36  ;;  %v12234_v59 = vmul.f32 %v15136_v50, %v12233_v31  ;;  %v12312_v18 = vmul.f32 %v12311_v30, %v12228_v21 }
 0x8a7   :  { %v12238_v52 = vmul.f32 %v15136_v50, %v12237_v5  ;;  %v12241_v24 = vmul.f32 %v15137_v46, %v12240_v19  ;;  %v12316_v8 = vmul.f32 2.5, %v16813_v10  ;;  %v12318_v11 = vmul.f32 2.5, %v12239_v4 }
 0x8a8   :  { %v12375_v35 = vadd.f32 %v12374_v25, %v12372_v26  ;;  %v12235_v54 = vadd.f32 %v12234_v59, %v12231_v15  ;;  %v12381_v49 = vmul.f32 1.6666666, %v16666_v22  ;;  %v12383_v61 = vmul.f32 1.6666666, %v12239_v4 }
 0x8a9   :  { %v12242_v34 = vadd.f32 %v12241_v24, %v12238_v52  ;;  %vm12147_vm15 = vcmp.ge.f32.partialorder %v16666_v22, 0.8  ;;  %vm12148_vm0 = vcmp.lt.f32.partialorder %v16666_v22, 1.0  ;;  %vm12152_vm2 = vcmp.ge.f32.partialorder %v16666_v22, 1.0 }
 0x8aa   :  { %15366 = vmatmul.mubr.msk.f32.vlgmr.msra.gmra.mrb[20].mxu0 %vm12409_vm1, %v12375_v35  ;;  %v12314_v14 = vmul.f32 %v12313_v12, %v12235_v54  ;;  %v12317_v42 = vmul.f32 %v12316_v8, %v12235_v54  ;;  %vm12149_vm5 = vmand %vm12147_vm15, %vm12148_vm0  ;;  %vm12153_vm6 = vcmp.lt.f32.partialorder %v16666_v22, 1.2  ;;  %v16847_v43 = vadd.f32 -0.6, %v16666_v22 }
 0x8ab   :  { %15457 = vmatpush3.bf16.msk.msra.mxu0 %vm16597_vm3, %v15455_v44  ;;  %15372 = vmatprep.mubr.msk.f32.mxu0 %vm15995_vm4, %v15996_v3  ;;  %v12319_v48 = vmul.f32 %v12318_v11, %v12242_v34  ;;  %v15138_v21 = vsel %vm12149_vm5, 1.0, %v15996_v3  ;;  %vm12154_vm7 = vmand %vm12152_vm2, %vm12153_vm6  ;;  %v16858_v13 = vsub.f32 1.0, %v16666_v22  ;;  %v15153_v56 = vadd.f32 -0.8, %v16666_v22 }
 0x8ac   :  { %15458 = vmatprep.subr.bf16.mxu0 %v15993_v62  ;;  %v16862_v0 = vadd.f32 %v12314_v14, %v12312_v18  ;;  %v15139_v20 = vsel %vm12154_vm7, 1.0, %v15996_v3  ;;  %v12244_v33 = vmul.f32 5.0, %v16847_v43  ;;  %v12253_v44 = vsub.f32 1.2, %v16666_v22 }
 0x8ad   :  { %v16867_v50 = vadd.f32 %v12319_v48, %v12317_v42  ;;  %v12247_v4 = vmul.f32 5.0, %v16858_v13  ;;  %v12251_v36 = vmul.f32 5.0, %v15153_v56  ;;  %v12321_v31 = vmul.f32 2.5, %v15151_v23 }
 0x8ae   :  { %v12382_v30 = vmul.f32 %v12381_v49, %v16862_v0  ;;  %v12245_v26 = vmul.f32 %v15137_v46, %v12244_v33  ;;  %v12254_v5 = vmul.f32 5.0, %v12253_v44  ;;  %v12323_v19 = vmul.f32 2.5, %v16858_v13 }
 0x8af   :  { %v12384_v12 = vmul.f32 %v12383_v61, %v16867_v50  ;;  %v12248_v25 = vmul.f32 %v15138_v21, %v12247_v4  ;;  %v12252_v15 = vmul.f32 %v15138_v21, %v12251_v36  ;;  %v12322_v59 = vmul.f32 %v12321_v31, %v12242_v34 }
 0x8b0   :  { %v12255_v18 = vmul.f32 %v15139_v20, %v12254_v5  ;;  %v12326_v52 = vmul.f32 2.5, %v16847_v43  ;;  %v12328_v24 = vmul.f32 2.5, %v12253_v44  ;;  %v12391_v8 = vmul.f32 1.6666666, %v15151_v23 }
 0x8b1   :  { %v12385_v11 = vadd.f32 %v12384_v12, %v12382_v30  ;;  %v12249_v35 = vadd.f32 %v12248_v25, %v12245_v26  ;;  %v12393_v54 = vmul.f32 1.6666666, %v12253_v44  ;;  %vm12157_vm8 = vcmp.ge.f32.partialorder %v16666_v22, 1.2 }
 0x8b2   :  { %v12256_v49 = vadd.f32 %v12255_v18, %v12252_v15  ;;  %vm12158_vm9 = vcmp.lt.f32.partialorder %v16666_v22, 1.4  ;;  %vm12162_vm10 = vcmp.ge.f32.partialorder %v16666_v22, 1.4  ;;  %vm12163_vm11 = vcmp.lt.f32.partialorder %v16666_v22, 1.6 }
 0x8b3   :  { %15373 = vmatmul.mubr.msk.f32.vlgmr.msra.gmra.mrb[20].mxu0 %vm12409_vm1, %v12385_v11  ;;  %v12324_v46 = vmul.f32 %v12323_v19, %v12249_v35  ;;  %v12327_v61 = vmul.f32 %v12326_v52, %v12249_v35  ;;  %vm12159_vm12 = vmand %vm12157_vm8, %vm12158_vm9  ;;  %v15154_v34 = vadd.f32 -1.0, %v16666_v22  ;;  %v16881_v23 = vsub.f32 1.4, %v16666_v22 }
 0x8b4   :  { %15461 = vmatpush3.bf16.msk.msra.mxu0 %vm16597_vm3, %v15459_v1  ;;  %15379 = vmatprep.mubr.msk.f32.mxu0 %vm15995_vm4, %v15996_v3  ;;  %v12329_v14 = vmul.f32 %v12328_v24, %v12256_v49  ;;  %v15140_v42 = vsel %vm12159_vm12, 1.0, %v15996_v3  ;;  %vm12164_vm13 = vmand %vm12162_vm10, %vm12163_vm11  ;;  %v15155_v48 = vadd.f32 -1.2, %v16666_v22  ;;  %v12267_v21 = vsub.f32 1.6, %v16666_v22 }
 0x8b5   :  { %15462 = vmatprep.subr.bf16.mxu0 %v15993_v62  ;;  %v12325_v33 = vadd.f32 %v12324_v46, %v12322_v59  ;;  %v15141_v44 = vsel %vm12164_vm13, 1.0, %v15996_v3  ;;  %v12258_v6 = vmul.f32 5.0, %v15154_v34  ;;  %v12261_v53 = vmul.f32 5.0, %v16881_v23 }
 0x8b6   :  { %v12330_v1 = vadd.f32 %v12329_v14, %v12327_v61  ;;  %v12265_v4 = vmul.f32 5.0, %v15155_v48  ;;  %v12268_v36 = vmul.f32 5.0, %v12267_v21  ;;  %v12331_v31 = vmul.f32 2.5, %v15153_v56 }
 0x8b7   :  { %v12392_v30 = vmul.f32 %v12391_v8, %v12325_v33  ;;  %v12259_v26 = vmul.f32 %v15139_v20, %v12258_v6  ;;  %v12262_v5 = vmul.f32 %v15140_v42, %v12261_v53  ;;  %v12333_v19 = vmul.f32 2.5, %v16881_v23 }
 0x8b8   :  { %v12394_v12 = vmul.f32 %v12393_v54, %v12330_v1  ;;  %v12266_v25 = vmul.f32 %v15140_v42, %v12265_v4  ;;  %v12269_v15 = vmul.f32 %v15141_v44, %v12268_v36  ;;  %v12332_v18 = vmul.f32 %v12331_v31, %v12256_v49 }
 0x8b9   :  { %v12263_v52 = vadd.f32 %v12262_v5, %v12259_v26  ;;  %v12336_v59 = vmul.f32 2.5, %v15154_v34  ;;  %v12338_v24 = vmul.f32 2.5, %v12267_v21  ;;  %v12401_v11 = vmul.f32 1.6666666, %v15153_v56  ;;  %v15166_v26 = vld [vmem:[%s17020_s7 + $0x40] sm:$0xff] }
 0x8ba   :  { %v12395_v35 = vadd.f32 %v12394_v12, %v12392_v30  ;;  %v12270_v46 = vadd.f32 %v12269_v15, %v12266_v25  ;;  %v12403_v27 = vmul.f32 1.6666666, %v12267_v21  ;;  %v15125_v61 = vmul.f32 -1.442695, %v16666_v22  ;;  %v15167_v5 = vld [vmem:[%s17020_s7 + $0x48] sm:$0x3] }
 0x8bb   :  { %v12334_v14 = vmul.f32 %v12333_v19, %v12263_v52  ;;  %v12337_v48 = vmul.f32 %v12336_v59, %v12263_v52  ;;  %v12346_v20 = vmul.f32 1.6666666, %v16694_v39  ;;  %v12348_v8 = vmul.f32 1.6666666, %v16724_v17  ;;  %v15173_v12 = vld [vmem:[%s17020_s7 + $0x68] sm:$0x3] }
 0x8bc   :  { %15380 = vmatmul.mubr.msk.f32.vlgmr.msra.gmra.mrb[20].mxu0 %vm12409_vm1, %v12395_v35  ;;  %v12339_v54 = vmul.f32 %v12338_v24, %v12270_v46  ;;  %15840 = vpow2.f32 %v15125_v61  ;;  %v12356_v49 = vmul.f32 1.6666666, %v16697_v63  ;;  %v12358_v34 = vmul.f32 1.6666666, %v16745_v9  ;;  %v15178_v15 = vld [vmem:[%s17020_s7 + $0x80] sm:$0xff] }
 0x8bd   :  { %15465 = vmatpush3.bf16.msk.msra.mxu0 %vm16597_vm3, %v15463_v45  ;;  %15386 = vmatprep.mubr.msk.f32.mxu0 %vm15995_vm4, %v15996_v3  ;;  %v12335_v39 = vadd.f32 %v12334_v14, %v12332_v18  ;;  %v12347_v17 = vmul.f32 %v12346_v20, %v16730_v28  ;;  %v12349_v56 = vmul.f32 %v12348_v8, %v16757_v58  ;;  %v12366_v42 = vmul.f32 1.6666666, %v16740_v7  ;;  %v15179_v18 = vld [vmem:[%s17020_s7 + $0x88] sm:$0x3]  ;;  %v15184_v59 = vld [vmem:[%s17020_s7 + $0xa0] sm:$0xff] }
 0x8be   :  { %15466 = vmatprep.subr.bf16.mxu0 %v15993_v62  ;;  %v12340_v63 = vadd.f32 %v12339_v54, %v12337_v48  ;;  %v12357_v9 = vmul.f32 %v12356_v49, %v16763_v38  ;;  %v12359_v55 = vmul.f32 %v12358_v34, %v16793_v47  ;;  %v12368_v29 = vmul.f32 1.6666666, %v16780_v32  ;;  %v15185_v24 = vld [vmem:[%s17020_s7 + $0xa8] sm:$0x3]  ;;  %v15190_v35 = vld [vmem:[%s17020_s7 + $0xc0] sm:$0xff] }
 0x8bf   :  { %v12402_v45 = vmul.f32 %v12401_v11, %v12335_v39  ;;  %v12350_v21 = vadd.f32 %v12349_v56, %v12347_v17  ;;  %v12367_v44 = vmul.f32 %v12366_v42, %v16798_v51  ;;  %v12376_v6 = vmul.f32 1.6666666, %v16777_v2  ;;  %v15191_v46 = vld [vmem:[%s17020_s7 + $0xc8] sm:$0x3] }
 0x8c0   :  { %v12404_v28 = vmul.f32 %v12403_v27, %v12340_v63  ;;  %v12360_v53 = vadd.f32 %v12359_v55, %v12357_v9  ;;  %v12369_v58 = vmul.f32 %v12368_v29, %v16825_v60  ;;  %v12378_v7 = vmul.f32 1.6666666, %v16816_v40 }
 0x8c1   :  { %v12377_v4 = vmul.f32 %v12376_v6, %v16831_v41  ;;  %v12386_v38 = vmul.f32 1.6666666, %v16813_v10  ;;  %v12388_v47 = vmul.f32 1.6666666, %v16858_v13  ;;  %v12396_v32 = vmul.f32 1.6666666, %v16847_v43 }
 0x8c2   :  { %v12405_v36 = vadd.f32 %v12404_v28, %v12402_v45  ;;  %v12370_v31 = vadd.f32 %v12369_v58, %v12367_v44  ;;  %v12379_v51 = vmul.f32 %v12378_v7, %v16862_v0  ;;  %v12398_v2 = vmul.f32 1.6666666, %v16881_v23  ;;  %v15160_v23 = vld [vmem:[%s17020_s7 + $0x20] sm:$0xff] }
 0x8c3   :  { %v12387_v27 = vmul.f32 %v12386_v38, %v16867_v50  ;;  %v12389_v30 = vmul.f32 %v12388_v47, %v12325_v33  ;;  %v12397_v60 = vmul.f32 %v12396_v32, %v12330_v1  ;;  %v17024_v10 = vpack.c.bf16 %v16712_v37, %v16707_v16  ;;  %v15161_v16 = vld [vmem:[%s17020_s7 + $0x28] sm:$0x3] }
 0x8c4   :  { %15387 = vmatmul.mubr.msk.f32.vlgmr.msra.gmra.mrb[20].mxu0 %vm12409_vm1, %v12405_v36  ;;  %v12380_v40 = vadd.f32 %v12379_v51, %v12377_v4  ;;  %v12399_v41 = vmul.f32 %v12398_v2, %v12335_v39  ;;  %v15471_v33 = vpack.c.bf16 %v15161_v16, %v15160_v23  ;;  %v15475_v19 = vpack.c.bf16 %v15167_v5, %v15166_v26 }
 0x8c5   :  { %15469 = vmatpush3.bf16.msk.msra.mxu0 %vm16597_vm3, %v17024_v10  ;;  %15393 = vmatprep.mubr.msk.f32.mxu0 %vm15995_vm4, %v15996_v3  ;;  %v12390_v43 = vadd.f32 %v12389_v30, %v12387_v27  ;;  %v15483_v52 = vpack.c.bf16 %v15179_v18, %v15178_v15  ;;  %v15487_v11 = vpack.c.bf16 %v15185_v24, %v15184_v59  ;;  %vm13517_vm14 = vcmask 15360  }
 0x8c6   :  { %v15841_v13 = vpop.eup %15840  ;;  %15470 = vmatprep.subr.bf16.mxu0 %v15993_v62  ;;  %v12400_v0 = vadd.f32 %v12399_v41, %v12397_v60  ;;  %v15491_v61 = vpack.c.bf16 %v15191_v46, %v15190_v35 }
 0x8c7   :  { %v12081_v50 = vadd.f32 1.0, %v15841_v13 }
 0x8c9   :  { %15842 = vrcp.f32 %v12081_v50 }
 0x8d3   :  { %v15843_v37 = vpop.eup %15842 }
 0x8d4   :  { %v12084_v1 = vmul.f32 %v15843_v37, %v16666_v22  ;;  %v15172_v22 = vld [vmem:[%s17020_s7 + $0x60] sm:$0xff] }
 0x8d5   :  { %v15479_v25 = vpack.c.bf16 %v15173_v12, %v15172_v22 }
 0x8d6   :  { %15394 = vmatmul.mubr.msk.f32.vlgmr.msra.gmra.mrb[20].mxu0 %vm12409_vm1, %v12084_v1 }
 0x8d7   :  { %15473 = vmatpush3.bf16.msk.msra.mxu0 %vm16597_vm3, %v15471_v33  ;;  %15400 = vmatprep.mubr.msk.f32.mxu0 %vm15995_vm4, %v15996_v3 }
 0x8d8   :  { %15474 = vmatprep.subr.bf16.mxu0 %v15993_v62 }
 0x8de   :  { %15401 = vmatmul.mubr.msk.f32.vlgmr.msra.gmra.mrb[20].mxu0 %vm12409_vm1, %v12350_v21 }
 0x8df   :  { %15477 = vmatpush3.bf16.msk.msra.mxu0 %vm16597_vm3, %v15475_v19  ;;  %15407 = vmatprep.mubr.msk.f32.mxu0 %vm15995_vm4, %v15996_v3 }
 0x8e0   :  { %15478 = vmatprep.subr.bf16.mxu0 %v15993_v62 }
 0x8e6   :  { %15408 = vmatmul.mubr.msk.f32.vlgmr.msra.gmra.mrb[20].mxu0 %vm12409_vm1, %v12360_v53 }
 0x8e7   :  { %15481 = vmatpush3.bf16.msk.msra.mxu0 %vm16597_vm3, %v15479_v25  ;;  %15414 = vmatprep.mubr.msk.f32.mxu0 %vm15995_vm4, %v15996_v3 }
 0x8e8   :  { %15482 = vmatprep.subr.bf16.mxu0 %v15993_v62 }
 0x8ee   :  { %15415 = vmatmul.mubr.msk.f32.vlgmr.msra.gmra.mrb[20].mxu0 %vm12409_vm1, %v12370_v31 }
 0x8ef   :  { %15485 = vmatpush3.bf16.msk.msra.mxu0 %vm16597_vm3, %v15483_v52  ;;  %15421 = vmatprep.mubr.msk.f32.mxu0 %vm15995_vm4, %v15996_v3 }
 0x8f0   :  { %15486 = vmatprep.subr.bf16.mxu0 %v15993_v62 }
 0x8f6   :  { %15422 = vmatmul.mubr.msk.f32.vlgmr.msra.gmra.mrb[20].mxu0 %vm12409_vm1, %v12380_v40 }
 0x8f7   :  { %15489 = vmatpush3.bf16.msk.msra.mxu0 %vm16597_vm3, %v15487_v11  ;;  %15428 = vmatprep.mubr.msk.f32.mxu0 %vm15995_vm4, %v15996_v3 }
 0x8f8   :  { %15490 = vmatprep.subr.bf16.mxu0 %v15993_v62 }
 0x8fe   :  { %15429 = vmatmul.mubr.msk.f32.vlgmr.msra.gmra.mrb[20].mxu0 %vm12409_vm1, %v12390_v43 }
 0x8ff   :  { %15493 = vmatpush3.bf16.msk.msra.mxu0 %vm16597_vm3, %v15491_v61  ;;  %15435 = vmatprep.mubr.msk.f32.mxu0 %vm15995_vm4, %v15996_v3 }
 0x906   :  { %15436 = vmatmul.mubr.msk.f32.vlgmr.msra.gmra.mrb[20].mxu0 %vm12409_vm1, %v12400_v0 }
 0x9d9   :  { %v13507_v62 = vpop.f32.mrb[20].mxu0 }
 0x9da   :  { %13518 = vst.msk [vmem:[%s17021_s8] sm:$0xff] %vm13517_vm14, %v13507_v62  ;;  %v15437_v14 = vpop.f32.mrb[21].mxu0 }
 0x9db   :  { %13523 = vsyncpa [#allocation3], 1 }
 0x9dc   :  { %13524 = vsyncpa [#allocation5], 1 }
 0x9dd   :  { %13525 = vsyncpa [#allocation8], 1 }
 0x9de   :  { %13526 = vsyncpa [#allocation11], 1 }

</bundles_post_ra>
